<compile_context>
chip_gen: v7x
topology: tpu7x:2x2x1
jax: 0.10.0
libtpu: 0.0.40
codegen_flags: <defaults>
</compile_context>

<pallas_src>
import functools
import math

import jax
import jax.numpy as jnp
from jax.experimental import pallas as pl
from jax.experimental.pallas import tpu as pltpu

EPS = 1e-5


def _residual_block_kernel(x_ref, w1_ref, b1_ref, g1_ref, be1_ref, alpha_ref,
                           w2_ref, b2_ref, g2_ref, be2_ref,
                           out_ref, col_ref, pad_ref, *, N, H, W, C):
    """Whole residual block in one kernel (single grid point, all in VMEM).

    x_ref     : (N, H, W, C)        f32   conv input / residual (NHWC)
    w*_ref    : (12*C, C)           bf16  conv weights; per kh the row blocks
                                          are [ (kh,0) | (kh,1) | (kh,2) | 0 ]
    b*/g*/be* : (1, C)              f32   conv bias / BN gamma / BN beta
    alpha_ref : (1,)                f32   PReLU slope, SMEM
    out_ref   : (N, H, W, C)        f32
    col_ref   : (N, H, W, 12*C)     bf16  im2col scratch (6 x 128-lane slabs)
    pad_ref   : (N, H+2, W+2, 2*C)  bf16  zero-padded source; lanes [0,C) hold
                                          P[a,b]=src[a-1,b-1], lanes [C,2C)
                                          hold P[a,b+1]=src[a-1,b]
    """
    M = N * H * W
    KPAD = 12 * C
    inv_M = 1.0 / float(M)

    # Zero the padded/duplicated source scratch ONCE.  Only its interior is
    # rewritten per conv, so the zero halo stays valid for both convs.
    pad_ref[...] = jnp.zeros(pad_ref.shape, pad_ref.dtype)

    def fill_pad(src):
        # src: (N, H, W, C) bf16, written twice (the two lane halves).  This is
        # the only place the activation is materialized for the scatter; the
        # scatter itself only slices this ref (free views -> plain loads).
        pad_ref[:, 1:H + 1, 1:W + 1, 0:C] = src          # P[a, b]
        pad_ref[:, 1:H + 1, 0:W, C:2 * C] = src          # P[a, b+1]

    def scatter():
        # Six full-extent, 128-lane-wide, 128-aligned unmasked stores per conv.
        for kh in range(3):
            base = kh * 4 * C
            # taps (kh,0) and (kh,1): one 2C-wide window read of the dup buffer
            col_ref[:, :, :, base:base + 2 * C] = pad_ref[:, kh:kh + H, 0:W, :]
            # tap (kh,2) in lanes [base+2C, base+3C); lanes [base+3C, base+4C)
            # carry harmless finite values that hit exact-zero weight rows.
            col_ref[:, :, :, base + 2 * C:base + 4 * C] = (
                pad_ref[:, kh:kh + H, 2:2 + W, :])

    def conv_bn(w_ref, b_row, g_row, be_row):
        # single MXU matmul: (M, 12C) bf16 x (12C, C) bf16 -> (M, C) f32
        patches = col_ref[...].reshape(M, KPAD)
        y = jnp.dot(patches, w_ref[...], preferred_element_type=jnp.float32)
        y = y + b_row
        # one-pass training-mode BN stats (biased variance), f32.
        # (One-pass E[x^2]-mean^2 can lose precision for |mean| >> std; fine at
        #  the validated tolerances and avoids a third pass over y.)
        s1 = jnp.sum(y, axis=0, keepdims=True)
        s2 = jnp.sum(y * y, axis=0, keepdims=True)
        mean = s1 * inv_M
        var = jnp.maximum(s2 * inv_M - mean * mean, 0.0)
        # fold gamma/rsqrt/mean/beta into per-channel scale/shift: the
        # per-element tail is a single fused multiply-add.
        scale = g_row * jax.lax.rsqrt(var + EPS)
        shift = be_row - mean * scale
        return y * scale + shift

    # ---- conv block 1: conv3x3 -> BN -> PReLU ----
    fill_pad(x_ref[...].astype(jnp.bfloat16))
    scatter()
    y = conv_bn(w1_ref, b1_ref[...], g1_ref[...], be1_ref[...])
    alpha = alpha_ref[0]                              # scalar from SMEM
    y = jnp.where(y >= 0.0, y, y * alpha)             # fused with normalize pass

    # ---- conv block 2: conv3x3 -> BN (source re-scattered from VMEM scratch) ----
    fill_pad(y.astype(jnp.bfloat16).reshape(N, H, W, C))
    scatter()
    y = conv_bn(w2_ref, b2_ref[...], g2_ref[...], be2_ref[...])

    # ---- residual add (f32, residual read from the unpadded f32 input) ----
    out_ref[...] = y.reshape(N, H, W, C) + x_ref[...]


@jax.jit
def residual_block(x_nhwc, params):
    """NHWC-native residual block (keep the model NHWC end-to-end)."""
    N, H, W, C = x_nhwc.shape
    x = x_nhwc.astype(jnp.float32)

    def prep_w(w):
        # torch OIHW (Cout, Cin, 3, 3) -> (kh, kw, Cin, Cout), then per kh the
        # row blocks [ (kh,0) | (kh,1) | (kh,2) | zeros ] to match the col
        # buffer's 12C lane layout (zero rows absorb the dead lanes).
        wt = jnp.transpose(w, (2, 3, 1, 0)).astype(jnp.bfloat16)
        zblk = jnp.zeros((C, C), jnp.bfloat16)
        rows = []
        for kh in range(3):
            rows.extend([wt[kh, 0], wt[kh, 1], wt[kh, 2], zblk])
        return jnp.concatenate(rows, axis=0)          # (12*C, C)

    def row(v):
        return v.reshape(1, -1).astype(jnp.float32)

    kernel = functools.partial(_residual_block_kernel, N=N, H=H, W=W, C=C)
    vspec = pl.BlockSpec(memory_space=pltpu.MemorySpace.VMEM)
    sspec = pl.BlockSpec(memory_space=pltpu.MemorySpace.SMEM)

    return pl.pallas_call(
        kernel,
        out_shape=jax.ShapeDtypeStruct((N, H, W, C), jnp.float32),
        in_specs=[vspec,                              # x (f32, also residual)
                  vspec, vspec, vspec, vspec,         # w1, b1, g1, be1
                  sspec,                              # alpha (SMEM scalar)
                  vspec, vspec, vspec, vspec],        # w2, b2, g2, be2
        out_specs=vspec,
        scratch_shapes=[pltpu.VMEM((N, H, W, 12 * C), jnp.bfloat16),
                        pltpu.VMEM((N, H + 2, W + 2, 2 * C), jnp.bfloat16)],
        compiler_params=pltpu.CompilerParams(vmem_limit_bytes=32 * 1024 * 1024),
    )(x,
      prep_w(params['w1']), row(params['b1']), row(params['g1']), row(params['be1']),
      params['alpha'].reshape(1).astype(jnp.float32),
      prep_w(params['w2']), row(params['b2']), row(params['g2']), row(params['be2']))


def init_params(key, C, K=3):
    ks = jax.random.split(key, 8)
    s = 1.0 / math.sqrt(C * K * K)
    return dict(
        w1=jax.random.uniform(ks[0], (C, C, K, K), jnp.float32, -s, s),
        b1=jax.random.uniform(ks[1], (C,), jnp.float32, -s, s),
        g1=jax.random.uniform(ks[2], (C,), jnp.float32, 0.5, 1.5),
        be1=jax.random.uniform(ks[3], (C,), jnp.float32, -0.1, 0.1),
        alpha=jnp.array([0.25], jnp.float32),          # PReLU default init
        w2=jax.random.uniform(ks[4], (C, C, K, K), jnp.float32, -s, s),
        b2=jax.random.uniform(ks[5], (C,), jnp.float32, -s, s),
        g2=jax.random.uniform(ks[6], (C,), jnp.float32, 0.5, 1.5),
        be2=jax.random.uniform(ks[7], (C,), jnp.float32, -0.1, 0.1),
    )


def _reference(x_nchw, p, matmul_dtype=jnp.float32):
    """Pure-JAX NCHW reference mirroring the PyTorch forward (training-mode BN).

    matmul_dtype=float32   : full-precision semantic reference.
    matmul_dtype=bfloat16  : conv operands rounded to bf16 with f32 accumulation
                             (matches the kernel's MXU numerics).
    """
    prec = jax.lax.Precision.HIGHEST

    def conv(x_in, w, b):
        y = jax.lax.conv_general_dilated(
            x_in.astype(matmul_dtype), w.astype(matmul_dtype), (1, 1), 'SAME',
            dimension_numbers=('NCHW', 'OIHW', 'NCHW'),
            precision=prec, preferred_element_type=jnp.float32)
        return y + b[None, :, None, None]

    def bn(y, g, be):
        m = jnp.mean(y, axis=(0, 2, 3), keepdims=True)
        v = jnp.mean((y - m) ** 2, axis=(0, 2, 3), keepdims=True)
        return (y - m) * jax.lax.rsqrt(v + EPS) * g[None, :, None, None] \
            + be[None, :, None, None]

    y = conv(x_nchw, p['w1'], p['b1'])
    y = bn(y, p['g1'], p['be1'])
    y = jnp.where(y >= 0, y, p['alpha'][0] * y)
    y = conv(y, p['w2'], p['b2'])
    y = bn(y, p['g2'], p['be2'])
    return y + x_nchw.astype(jnp.float32)


if __name__ == "__main__":
    key = jax.random.PRNGKey(0)
    kx, kp = jax.random.split(key)

    N, H, W, C = 2, 16, 16, 64                 # module default n_channels=64
    x_nhwc = jax.random.normal(kx, (N, H, W, C), jnp.float32)
    params = init_params(kp, C)

    out = residual_block(x_nhwc, params)
    jax.block_until_ready(out)
    assert out.shape == x_nhwc.shape

    # Compare against the NCHW reference (layout shuffles only in the harness).
    x_nchw = jnp.transpose(x_nhwc, (0, 3, 1, 2))
    out_nchw = jnp.transpose(out, (0, 3, 1, 2))

    # Tight check vs a reference with matched (bf16-operand, f32-accum) numerics.
    ref_bf = _reference(x_nchw, params, matmul_dtype=jnp.bfloat16)
    err_bf = float(jnp.max(jnp.abs(out_nchw - ref_bf)))
    assert bool(jnp.allclose(out_nchw, ref_bf, atol=5e-3, rtol=5e-3)), \
        f"mismatch vs matched-precision reference: max abs err {err_bf}"

    # Loose sanity bound vs the full-f32 reference (bf16 matmul drift only).
    ref_f32 = _reference(x_nchw, params, matmul_dtype=jnp.float32)
    err_f32 = float(jnp.max(jnp.abs(out_nchw - ref_f32)))
    assert err_f32 < 5e-2, f"drift vs full-f32 reference too large: {err_f32}"

    print("KERNEL_OK")
</pallas_src>

<mosaic_0001>
module attributes {stable_mosaic.version = 11 : i64} {
  func.func @_residual_block_kernel(%arg0: memref<2x16x16x64xf32, #tpu.memory_space<vmem>>, %arg1: memref<768x64xbf16, #tpu.memory_space<vmem>>, %arg2: memref<1x64xf32, #tpu.memory_space<vmem>>, %arg3: memref<1x64xf32, #tpu.memory_space<vmem>>, %arg4: memref<1x64xf32, #tpu.memory_space<vmem>>, %arg5: memref<1xf32, #tpu.memory_space<smem>>, %arg6: memref<768x64xbf16, #tpu.memory_space<vmem>>, %arg7: memref<1x64xf32, #tpu.memory_space<vmem>>, %arg8: memref<1x64xf32, #tpu.memory_space<vmem>>, %arg9: memref<1x64xf32, #tpu.memory_space<vmem>>, %arg10: memref<2x16x16x64xf32, #tpu.memory_space<vmem>>, %arg11: memref<2x16x16x768xbf16, #tpu.memory_space<vmem>>, %arg12: memref<2x18x18x128xbf16, #tpu.memory_space<vmem>>) attributes {dimension_semantics = [], scalar_prefetch = 0 : i64, scratch_operands = 2 : i64, tpu.core_type = #tpu.core_type<tc>} {
    %cst = arith.constant 0.000000e+00 : bf16
    %0 = vector.broadcast %cst : bf16 to vector<2x18x18x128xbf16>
    %c0 = arith.constant 0 : index
    %c0_0 = arith.constant 0 : index
    %c0_1 = arith.constant 0 : index
    %c0_2 = arith.constant 0 : index
    %1 = vector.load %arg12[%c0, %c0_0, %c0_1, %c0_2] : memref<2x18x18x128xbf16, #tpu.memory_space<vmem>>, vector<2x18x18x128xbf16>
    tpu.vector_store %arg12[%c0, %c0_0, %c0_1, %c0_2], %0 {strides = array<i32>} : memref<2x18x18x128xbf16, #tpu.memory_space<vmem>>, vector<2x18x18x128xbf16>,
    %c0_3 = arith.constant 0 : index
    %c0_4 = arith.constant 0 : index
    %c0_5 = arith.constant 0 : index
    %c0_6 = arith.constant 0 : index
    %2 = vector.load %arg0[%c0_3, %c0_4, %c0_5, %c0_6] : memref<2x16x16x64xf32, #tpu.memory_space<vmem>>, vector<2x16x16x64xf32>
    %3 = arith.truncf %2 : vector<2x16x16x64xf32> to vector<2x16x16x64xbf16>
    %c0_7 = arith.constant 0 : index
    %c1 = arith.constant 1 : index
    %c1_8 = arith.constant 1 : index
    %c0_9 = arith.constant 0 : index
    %4 = vector.load %arg12[%c0_7, %c1, %c1_8, %c0_9] : memref<2x18x18x128xbf16, #tpu.memory_space<vmem>>, vector<2x16x16x64xbf16>
    tpu.vector_store %arg12[%c0_7, %c1, %c1_8, %c0_9], %3 {strides = array<i32>} : memref<2x18x18x128xbf16, #tpu.memory_space<vmem>>, vector<2x16x16x64xbf16>,
    %c0_10 = arith.constant 0 : index
    %c1_11 = arith.constant 1 : index
    %c0_12 = arith.constant 0 : index
    %c64 = arith.constant 64 : index
    %5 = vector.load %arg12[%c0_10, %c1_11, %c0_12, %c64] : memref<2x18x18x128xbf16, #tpu.memory_space<vmem>>, vector<2x16x16x64xbf16>
    tpu.vector_store %arg12[%c0_10, %c1_11, %c0_12, %c64], %3 {strides = array<i32>} : memref<2x18x18x128xbf16, #tpu.memory_space<vmem>>, vector<2x16x16x64xbf16>,
    %c0_13 = arith.constant 0 : index
    %c0_14 = arith.constant 0 : index
    %c0_15 = arith.constant 0 : index
    %c0_16 = arith.constant 0 : index
    %6 = vector.load %arg12[%c0_13, %c0_14, %c0_15, %c0_16] : memref<2x18x18x128xbf16, #tpu.memory_space<vmem>>, vector<2x16x16x128xbf16>
    %c0_17 = arith.constant 0 : index
    %c0_18 = arith.constant 0 : index
    %c0_19 = arith.constant 0 : index
    %c0_20 = arith.constant 0 : index
    %7 = vector.load %arg11[%c0_17, %c0_18, %c0_19, %c0_20] : memref<2x16x16x768xbf16, #tpu.memory_space<vmem>>, vector<2x16x16x128xbf16>
    tpu.vector_store %arg11[%c0_17, %c0_18, %c0_19, %c0_20], %6 {strides = array<i32>} : memref<2x16x16x768xbf16, #tpu.memory_space<vmem>>, vector<2x16x16x128xbf16>,
    %c0_21 = arith.constant 0 : index
    %c0_22 = arith.constant 0 : index
    %c2 = arith.constant 2 : index
    %c0_23 = arith.constant 0 : index
    %8 = vector.load %arg12[%c0_21, %c0_22, %c2, %c0_23] : memref<2x18x18x128xbf16, #tpu.memory_space<vmem>>, vector<2x16x16x128xbf16>
    %c0_24 = arith.constant 0 : index
    %c0_25 = arith.constant 0 : index
    %c0_26 = arith.constant 0 : index
    %c128 = arith.constant 128 : index
    %9 = vector.load %arg11[%c0_24, %c0_25, %c0_26, %c128] : memref<2x16x16x768xbf16, #tpu.memory_space<vmem>>, vector<2x16x16x128xbf16>
    tpu.vector_store %arg11[%c0_24, %c0_25, %c0_26, %c128], %8 {strides = array<i32>} : memref<2x16x16x768xbf16, #tpu.memory_space<vmem>>, vector<2x16x16x128xbf16>,
    %c0_27 = arith.constant 0 : index
    %c1_28 = arith.constant 1 : index
    %c0_29 = arith.constant 0 : index
    %c0_30 = arith.constant 0 : index
    %10 = vector.load %arg12[%c0_27, %c1_28, %c0_29, %c0_30] : memref<2x18x18x128xbf16, #tpu.memory_space<vmem>>, vector<2x16x16x128xbf16>
    %c0_31 = arith.constant 0 : index
    %c0_32 = arith.constant 0 : index
    %c0_33 = arith.constant 0 : index
    %c256 = arith.constant 256 : index
    %11 = vector.load %arg11[%c0_31, %c0_32, %c0_33, %c256] : memref<2x16x16x768xbf16, #tpu.memory_space<vmem>>, vector<2x16x16x128xbf16>
    tpu.vector_store %arg11[%c0_31, %c0_32, %c0_33, %c256], %10 {strides = array<i32>} : memref<2x16x16x768xbf16, #tpu.memory_space<vmem>>, vector<2x16x16x128xbf16>,
    %c0_34 = arith.constant 0 : index
    %c1_35 = arith.constant 1 : index
    %c2_36 = arith.constant 2 : index
    %c0_37 = arith.constant 0 : index
    %12 = vector.load %arg12[%c0_34, %c1_35, %c2_36, %c0_37] : memref<2x18x18x128xbf16, #tpu.memory_space<vmem>>, vector<2x16x16x128xbf16>
    %c0_38 = arith.constant 0 : index
    %c0_39 = arith.constant 0 : index
    %c0_40 = arith.constant 0 : index
    %c384 = arith.constant 384 : index
    %13 = vector.load %arg11[%c0_38, %c0_39, %c0_40, %c384] : memref<2x16x16x768xbf16, #tpu.memory_space<vmem>>, vector<2x16x16x128xbf16>
    tpu.vector_store %arg11[%c0_38, %c0_39, %c0_40, %c384], %12 {strides = array<i32>} : memref<2x16x16x768xbf16, #tpu.memory_space<vmem>>, vector<2x16x16x128xbf16>,
    %c0_41 = arith.constant 0 : index
    %c2_42 = arith.constant 2 : index
    %c0_43 = arith.constant 0 : index
    %c0_44 = arith.constant 0 : index
    %14 = vector.load %arg12[%c0_41, %c2_42, %c0_43, %c0_44] : memref<2x18x18x128xbf16, #tpu.memory_space<vmem>>, vector<2x16x16x128xbf16>
    %c0_45 = arith.constant 0 : index
    %c0_46 = arith.constant 0 : index
    %c0_47 = arith.constant 0 : index
    %c512 = arith.constant 512 : index
    %15 = vector.load %arg11[%c0_45, %c0_46, %c0_47, %c512] : memref<2x16x16x768xbf16, #tpu.memory_space<vmem>>, vector<2x16x16x128xbf16>
    tpu.vector_store %arg11[%c0_45, %c0_46, %c0_47, %c512], %14 {strides = array<i32>} : memref<2x16x16x768xbf16, #tpu.memory_space<vmem>>, vector<2x16x16x128xbf16>,
    %c0_48 = arith.constant 0 : index
    %c2_49 = arith.constant 2 : index
    %c2_50 = arith.constant 2 : index
    %c0_51 = arith.constant 0 : index
    %16 = vector.load %arg12[%c0_48, %c2_49, %c2_50, %c0_51] : memref<2x18x18x128xbf16, #tpu.memory_space<vmem>>, vector<2x16x16x128xbf16>
    %c0_52 = arith.constant 0 : index
    %c0_53 = arith.constant 0 : index
    %c0_54 = arith.constant 0 : index
    %c640 = arith.constant 640 : index
    %17 = vector.load %arg11[%c0_52, %c0_53, %c0_54, %c640] : memref<2x16x16x768xbf16, #tpu.memory_space<vmem>>, vector<2x16x16x128xbf16>
    tpu.vector_store %arg11[%c0_52, %c0_53, %c0_54, %c640], %16 {strides = array<i32>} : memref<2x16x16x768xbf16, #tpu.memory_space<vmem>>, vector<2x16x16x128xbf16>,
    %c0_55 = arith.constant 0 : index
    %c0_56 = arith.constant 0 : index
    %18 = vector.load %arg2[%c0_55, %c0_56] : memref<1x64xf32, #tpu.memory_space<vmem>>, vector<1x64xf32>
    %c0_57 = arith.constant 0 : index
    %c0_58 = arith.constant 0 : index
    %19 = vector.load %arg3[%c0_57, %c0_58] : memref<1x64xf32, #tpu.memory_space<vmem>>, vector<1x64xf32>
    %c0_59 = arith.constant 0 : index
    %c0_60 = arith.constant 0 : index
    %20 = vector.load %arg4[%c0_59, %c0_60] : memref<1x64xf32, #tpu.memory_space<vmem>>, vector<1x64xf32>
    %c0_61 = arith.constant 0 : index
    %c0_62 = arith.constant 0 : index
    %c0_63 = arith.constant 0 : index
    %c0_64 = arith.constant 0 : index
    %21 = vector.load %arg11[%c0_61, %c0_62, %c0_63, %c0_64] : memref<2x16x16x768xbf16, #tpu.memory_space<vmem>>, vector<2x16x16x768xbf16>
    %22 = vector.shape_cast %21 : vector<2x16x16x768xbf16> to vector<512x768xbf16>
    %c0_65 = arith.constant 0 : index
    %c0_66 = arith.constant 0 : index
    %23 = vector.load %arg1[%c0_65, %c0_66] : memref<768x64xbf16, #tpu.memory_space<vmem>>, vector<768x64xbf16>
    %cst_67 = arith.constant dense<0.000000e+00> : vector<512x64xf32>
    %24 = tpu.matmul %22, %23, %cst_67 {dimension_numbers = #tpu.dot_dimension_numbers<[1], [0], [0], [1], [0, 0, 1, 1], [], []>} : vector<512x768xbf16>, vector<768x64xbf16>, vector<512x64xf32> -> vector<512x64xf32>
    %25 = vector.broadcast %18 : vector<1x64xf32> to vector<512x64xf32>
    %26 = arith.addf %24, %25 : vector<512x64xf32>
    %cst_68 = arith.constant dense<0.000000e+00> : vector<64xf32>
    %27 = vector.multi_reduction <add>, %26, %cst_68 [0] : vector<512x64xf32> to vector<64xf32>
    %28 = vector.shape_cast %27 : vector<64xf32> to vector<1x64xf32>
    %29 = arith.mulf %26, %26 : vector<512x64xf32>
    %cst_69 = arith.constant dense<0.000000e+00> : vector<64xf32>
    %30 = vector.multi_reduction <add>, %29, %cst_69 [0] : vector<512x64xf32> to vector<64xf32>
    %31 = vector.shape_cast %30 : vector<64xf32> to vector<1x64xf32>
    %cst_70 = arith.constant 0.001953125 : f32
    %32 = vector.broadcast %cst_70 : f32 to vector<1x64xf32>
    %33 = arith.mulf %28, %32 : vector<1x64xf32>
    %cst_71 = arith.constant 0.001953125 : f32
    %34 = vector.broadcast %cst_71 : f32 to vector<1x64xf32>
    %35 = arith.mulf %31, %34 : vector<1x64xf32>
    %36 = arith.mulf %33, %33 : vector<1x64xf32>
    %37 = arith.subf %35, %36 : vector<1x64xf32>
    %cst_72 = arith.constant 0.000000e+00 : f32
    %38 = vector.broadcast %cst_72 : f32 to vector<1x64xf32>
    %39 = arith.maximumf %37, %38 : vector<1x64xf32>
    %cst_73 = arith.constant 9.99999974E-6 : f32
    %40 = vector.broadcast %cst_73 : f32 to vector<1x64xf32>
    %41 = arith.addf %39, %40 : vector<1x64xf32>
    %42 = math.rsqrt %41 : vector<1x64xf32>
    %43 = arith.mulf %19, %42 : vector<1x64xf32>
    %44 = arith.mulf %33, %43 : vector<1x64xf32>
    %45 = arith.subf %20, %44 : vector<1x64xf32>
    %46 = vector.broadcast %43 : vector<1x64xf32> to vector<512x64xf32>
    %47 = arith.mulf %26, %46 : vector<512x64xf32>
    %48 = vector.broadcast %45 : vector<1x64xf32> to vector<512x64xf32>
    %49 = arith.addf %47, %48 : vector<512x64xf32>
    %c0_74 = arith.constant 0 : index
    %50 = memref.load %arg5[%c0_74] : memref<1xf32, #tpu.memory_space<smem>>
    %cst_75 = arith.constant 0.000000e+00 : f32
    %51 = vector.broadcast %cst_75 : f32 to vector<512x64xf32>
    %52 = arith.cmpf oge, %49, %51 : vector<512x64xf32>
    %53 = vector.broadcast %50 : f32 to vector<512x64xf32>
    %54 = arith.mulf %49, %53 : vector<512x64xf32>
    %55 = arith.select %52, %49, %54 : vector<512x64xi1>, vector<512x64xf32>
    %56 = arith.truncf %55 : vector<512x64xf32> to vector<512x64xbf16>
    %57 = vector.shape_cast %56 : vector<512x64xbf16> to vector<2x16x16x64xbf16>
    %c0_76 = arith.constant 0 : index
    %c1_77 = arith.constant 1 : index
    %c1_78 = arith.constant 1 : index
    %c0_79 = arith.constant 0 : index
    %58 = vector.load %arg12[%c0_76, %c1_77, %c1_78, %c0_79] : memref<2x18x18x128xbf16, #tpu.memory_space<vmem>>, vector<2x16x16x64xbf16>
    tpu.vector_store %arg12[%c0_76, %c1_77, %c1_78, %c0_79], %57 {strides = array<i32>} : memref<2x18x18x128xbf16, #tpu.memory_space<vmem>>, vector<2x16x16x64xbf16>,
    %c0_80 = arith.constant 0 : index
    %c1_81 = arith.constant 1 : index
    %c0_82 = arith.constant 0 : index
    %c64_83 = arith.constant 64 : index
    %59 = vector.load %arg12[%c0_80, %c1_81, %c0_82, %c64_83] : memref<2x18x18x128xbf16, #tpu.memory_space<vmem>>, vector<2x16x16x64xbf16>
    tpu.vector_store %arg12[%c0_80, %c1_81, %c0_82, %c64_83], %57 {strides = array<i32>} : memref<2x18x18x128xbf16, #tpu.memory_space<vmem>>, vector<2x16x16x64xbf16>,
    %c0_84 = arith.constant 0 : index
    %c0_85 = arith.constant 0 : index
    %c0_86 = arith.constant 0 : index
    %c0_87 = arith.constant 0 : index
    %60 = vector.load %arg12[%c0_84, %c0_85, %c0_86, %c0_87] : memref<2x18x18x128xbf16, #tpu.memory_space<vmem>>, vector<2x16x16x128xbf16>
    %c0_88 = arith.constant 0 : index
    %c0_89 = arith.constant 0 : index
    %c0_90 = arith.constant 0 : index
    %c0_91 = arith.constant 0 : index
    %61 = vector.load %arg11[%c0_88, %c0_89, %c0_90, %c0_91] : memref<2x16x16x768xbf16, #tpu.memory_space<vmem>>, vector<2x16x16x128xbf16>
    tpu.vector_store %arg11[%c0_88, %c0_89, %c0_90, %c0_91], %60 {strides = array<i32>} : memref<2x16x16x768xbf16, #tpu.memory_space<vmem>>, vector<2x16x16x128xbf16>,
    %c0_92 = arith.constant 0 : index
    %c0_93 = arith.constant 0 : index
    %c2_94 = arith.constant 2 : index
    %c0_95 = arith.constant 0 : index
    %62 = vector.load %arg12[%c0_92, %c0_93, %c2_94, %c0_95] : memref<2x18x18x128xbf16, #tpu.memory_space<vmem>>, vector<2x16x16x128xbf16>
    %c0_96 = arith.constant 0 : index
    %c0_97 = arith.constant 0 : index
    %c0_98 = arith.constant 0 : index
    %c128_99 = arith.constant 128 : index
    %63 = vector.load %arg11[%c0_96, %c0_97, %c0_98, %c128_99] : memref<2x16x16x768xbf16, #tpu.memory_space<vmem>>, vector<2x16x16x128xbf16>
    tpu.vector_store %arg11[%c0_96, %c0_97, %c0_98, %c128_99], %62 {strides = array<i32>} : memref<2x16x16x768xbf16, #tpu.memory_space<vmem>>, vector<2x16x16x128xbf16>,
    %c0_100 = arith.constant 0 : index
    %c1_101 = arith.constant 1 : index
    %c0_102 = arith.constant 0 : index
    %c0_103 = arith.constant 0 : index
    %64 = vector.load %arg12[%c0_100, %c1_101, %c0_102, %c0_103] : memref<2x18x18x128xbf16, #tpu.memory_space<vmem>>, vector<2x16x16x128xbf16>
    %c0_104 = arith.constant 0 : index
    %c0_105 = arith.constant 0 : index
    %c0_106 = arith.constant 0 : index
    %c256_107 = arith.constant 256 : index
    %65 = vector.load %arg11[%c0_104, %c0_105, %c0_106, %c256_107] : memref<2x16x16x768xbf16, #tpu.memory_space<vmem>>, vector<2x16x16x128xbf16>
    tpu.vector_store %arg11[%c0_104, %c0_105, %c0_106, %c256_107], %64 {strides = array<i32>} : memref<2x16x16x768xbf16, #tpu.memory_space<vmem>>, vector<2x16x16x128xbf16>,
    %c0_108 = arith.constant 0 : index
    %c1_109 = arith.constant 1 : index
    %c2_110 = arith.constant 2 : index
    %c0_111 = arith.constant 0 : index
    %66 = vector.load %arg12[%c0_108, %c1_109, %c2_110, %c0_111] : memref<2x18x18x128xbf16, #tpu.memory_space<vmem>>, vector<2x16x16x128xbf16>
    %c0_112 = arith.constant 0 : index
    %c0_113 = arith.constant 0 : index
    %c0_114 = arith.constant 0 : index
    %c384_115 = arith.constant 384 : index
    %67 = vector.load %arg11[%c0_112, %c0_113, %c0_114, %c384_115] : memref<2x16x16x768xbf16, #tpu.memory_space<vmem>>, vector<2x16x16x128xbf16>
    tpu.vector_store %arg11[%c0_112, %c0_113, %c0_114, %c384_115], %66 {strides = array<i32>} : memref<2x16x16x768xbf16, #tpu.memory_space<vmem>>, vector<2x16x16x128xbf16>,
    %c0_116 = arith.constant 0 : index
    %c2_117 = arith.constant 2 : index
    %c0_118 = arith.constant 0 : index
    %c0_119 = arith.constant 0 : index
    %68 = vector.load %arg12[%c0_116, %c2_117, %c0_118, %c0_119] : memref<2x18x18x128xbf16, #tpu.memory_space<vmem>>, vector<2x16x16x128xbf16>
    %c0_120 = arith.constant 0 : index
    %c0_121 = arith.constant 0 : index
    %c0_122 = arith.constant 0 : index
    %c512_123 = arith.constant 512 : index
    %69 = vector.load %arg11[%c0_120, %c0_121, %c0_122, %c512_123] : memref<2x16x16x768xbf16, #tpu.memory_space<vmem>>, vector<2x16x16x128xbf16>
    tpu.vector_store %arg11[%c0_120, %c0_121, %c0_122, %c512_123], %68 {strides = array<i32>} : memref<2x16x16x768xbf16, #tpu.memory_space<vmem>>, vector<2x16x16x128xbf16>,
    %c0_124 = arith.constant 0 : index
    %c2_125 = arith.constant 2 : index
    %c2_126 = arith.constant 2 : index
    %c0_127 = arith.constant 0 : index
    %70 = vector.load %arg12[%c0_124, %c2_125, %c2_126, %c0_127] : memref<2x18x18x128xbf16, #tpu.memory_space<vmem>>, vector<2x16x16x128xbf16>
    %c0_128 = arith.constant 0 : index
    %c0_129 = arith.constant 0 : index
    %c0_130 = arith.constant 0 : index
    %c640_131 = arith.constant 640 : index
    %71 = vector.load %arg11[%c0_128, %c0_129, %c0_130, %c640_131] : memref<2x16x16x768xbf16, #tpu.memory_space<vmem>>, vector<2x16x16x128xbf16>
    tpu.vector_store %arg11[%c0_128, %c0_129, %c0_130, %c640_131], %70 {strides = array<i32>} : memref<2x16x16x768xbf16, #tpu.memory_space<vmem>>, vector<2x16x16x128xbf16>,
    %c0_132 = arith.constant 0 : index
    %c0_133 = arith.constant 0 : index
    %72 = vector.load %arg7[%c0_132, %c0_133] : memref<1x64xf32, #tpu.memory_space<vmem>>, vector<1x64xf32>
    %c0_134 = arith.constant 0 : index
    %c0_135 = arith.constant 0 : index
    %73 = vector.load %arg8[%c0_134, %c0_135] : memref<1x64xf32, #tpu.memory_space<vmem>>, vector<1x64xf32>
    %c0_136 = arith.constant 0 : index
    %c0_137 = arith.constant 0 : index
    %74 = vector.load %arg9[%c0_136, %c0_137] : memref<1x64xf32, #tpu.memory_space<vmem>>, vector<1x64xf32>
    %c0_138 = arith.constant 0 : index
    %c0_139 = arith.constant 0 : index
    %c0_140 = arith.constant 0 : index
    %c0_141 = arith.constant 0 : index
    %75 = vector.load %arg11[%c0_138, %c0_139, %c0_140, %c0_141] : memref<2x16x16x768xbf16, #tpu.memory_space<vmem>>, vector<2x16x16x768xbf16>
    %76 = vector.shape_cast %75 : vector<2x16x16x768xbf16> to vector<512x768xbf16>
    %c0_142 = arith.constant 0 : index
    %c0_143 = arith.constant 0 : index
    %77 = vector.load %arg6[%c0_142, %c0_143] : memref<768x64xbf16, #tpu.memory_space<vmem>>, vector<768x64xbf16>
    %cst_144 = arith.constant dense<0.000000e+00> : vector<512x64xf32>
    %78 = tpu.matmul %76, %77, %cst_144 {dimension_numbers = #tpu.dot_dimension_numbers<[1], [0], [0], [1], [0, 0, 1, 1], [], []>} : vector<512x768xbf16>, vector<768x64xbf16>, vector<512x64xf32> -> vector<512x64xf32>
    %79 = vector.broadcast %72 : vector<1x64xf32> to vector<512x64xf32>
    %80 = arith.addf %78, %79 : vector<512x64xf32>
    %cst_145 = arith.constant dense<0.000000e+00> : vector<64xf32>
    %81 = vector.multi_reduction <add>, %80, %cst_145 [0] : vector<512x64xf32> to vector<64xf32>
    %82 = vector.shape_cast %81 : vector<64xf32> to vector<1x64xf32>
    %83 = arith.mulf %80, %80 : vector<512x64xf32>
    %cst_146 = arith.constant dense<0.000000e+00> : vector<64xf32>
    %84 = vector.multi_reduction <add>, %83, %cst_146 [0] : vector<512x64xf32> to vector<64xf32>
    %85 = vector.shape_cast %84 : vector<64xf32> to vector<1x64xf32>
    %cst_147 = arith.constant 0.001953125 : f32
    %86 = vector.broadcast %cst_147 : f32 to vector<1x64xf32>
    %87 = arith.mulf %82, %86 : vector<1x64xf32>
    %cst_148 = arith.constant 0.001953125 : f32
    %88 = vector.broadcast %cst_148 : f32 to vector<1x64xf32>
    %89 = arith.mulf %85, %88 : vector<1x64xf32>
    %90 = arith.mulf %87, %87 : vector<1x64xf32>
    %91 = arith.subf %89, %90 : vector<1x64xf32>
    %cst_149 = arith.constant 0.000000e+00 : f32
    %92 = vector.broadcast %cst_149 : f32 to vector<1x64xf32>
    %93 = arith.maximumf %91, %92 : vector<1x64xf32>
    %cst_150 = arith.constant 9.99999974E-6 : f32
    %94 = vector.broadcast %cst_150 : f32 to vector<1x64xf32>
    %95 = arith.addf %93, %94 : vector<1x64xf32>
    %96 = math.rsqrt %95 : vector<1x64xf32>
    %97 = arith.mulf %73, %96 : vector<1x64xf32>
    %98 = arith.mulf %87, %97 : vector<1x64xf32>
    %99 = arith.subf %74, %98 : vector<1x64xf32>
    %100 = vector.broadcast %97 : vector<1x64xf32> to vector<512x64xf32>
    %101 = arith.mulf %80, %100 : vector<512x64xf32>
    %102 = vector.broadcast %99 : vector<1x64xf32> to vector<512x64xf32>
    %103 = arith.addf %101, %102 : vector<512x64xf32>
    %104 = vector.shape_cast %103 : vector<512x64xf32> to vector<2x16x16x64xf32>
    %c0_151 = arith.constant 0 : index
    %c0_152 = arith.constant 0 : index
    %c0_153 = arith.constant 0 : index
    %c0_154 = arith.constant 0 : index
    %105 = vector.load %arg0[%c0_151, %c0_152, %c0_153, %c0_154] : memref<2x16x16x64xf32, #tpu.memory_space<vmem>>, vector<2x16x16x64xf32>
    %106 = arith.addf %104, %105 : vector<2x16x16x64xf32>
    %c0_155 = arith.constant 0 : index
    %c0_156 = arith.constant 0 : index
    %c0_157 = arith.constant 0 : index
    %c0_158 = arith.constant 0 : index
    %107 = vector.load %arg10[%c0_155, %c0_156, %c0_157, %c0_158] : memref<2x16x16x64xf32, #tpu.memory_space<vmem>>, vector<2x16x16x64xf32>
    tpu.vector_store %arg10[%c0_155, %c0_156, %c0_157, %c0_158], %106 {strides = array<i32>} : memref<2x16x16x64xf32, #tpu.memory_space<vmem>>, vector<2x16x16x64xf32>,
    return
  }
}

</mosaic_0001>

<bundles_post_ra>
// kernel: residual_block.1
= control target key start
LH: loop header
LB: loop body
LE: loop exit
PB: predicated region body
PF: predicated region fallthrough
CT: control target
= control target key end

     0   :  { %s14189_s23 = smov 64   ;;  %v19393_v9 = vmov 0   ;;  %vm402_vm0 = vsmask.f32 256  ;;  %vm1054_vm1 = vcmask 516096   ;;  %v19507_v18 = vmov 0  ;;  %s19382_s0 = inlined_call_operand.vmem [shape: f32[2,16,16,64], index: 0, kind: input, shape index: {}]   ;;  %s19383_s1 = inlined_call_operand.vmem [shape: bf16[768,64], index: 1, kind: input, shape index: {}]   ;;  %s19384_s2 = inlined_call_operand.vmem [shape: f32[1,64], index: 2, kind: input, shape index: {}]   ;;  %s19385_s3 = inlined_call_operand.vmem [shape: f32[1,64], index: 3, kind: input, shape index: {}]   ;;  %s19386_s4 = inlined_call_operand.vmem [shape: f32[1,64], index: 4, kind: input, shape index: {}]   ;;  %s19387_s5 = inlined_call_operand.<no memory space> [shape: f32[1], index: 5, kind: input, shape index: {}]   ;;  %s19388_s6 = inlined_call_operand.vmem [shape: bf16[768,64], index: 6, kind: input, shape index: {}]   ;;  %s19389_s7 = inlined_call_operand.vmem [shape: f32[1,64], index: 7, kind: input, shape index: {}]   ;;  %s19390_s8 = inlined_call_operand.vmem [shape: f32[1,64], index: 8, kind: input, shape index: {}]   ;;  %s19391_s9 = inlined_call_operand.vmem [shape: f32[1,64], index: 9, kind: input, shape index: {}]   ;;  %s19392_s10 = inlined_call_operand.hbm [shape: f32[2,16,16,64], index: 10, kind: output, shape index: {}]  }
   0x1   :  { %v146_v0 = vld [vmem:[%s19382_s0] sm:$0xff]  ;;  %v148_v1 = vld [vmem:[%s19382_s0 + $0x10] sm:$0xff]  ;;  %v147_v2 = vld [vmem:[%s19382_s0 + $0x8] sm:$0xff]  ;;  %43 = vst [vmem:[#allocation3 + $0x14] sm:$0x1] %v19393_v9  ;;  %4520 = vmatprep.subr.bf16.mxu0 %v19393_v9  ;;  %10359 = vmatprep.subr.bf16.mxu1 %v19393_v9  ;;  %vm1046_vm3 = vcmask 519168  }
   0x2   :  { %v14258_v3 = vpack.c.bf16 %v146_v0, %v146_v0  ;;  %v14260_v4 = vpack.c.bf16 %v148_v1, %v148_v1  ;;  %v149_v5 = vld [vmem:[%s19382_s0 + $0x18] sm:$0xff]  ;;  %v14268_v6 = vld [vmem:[%s19382_s0 + $0x28] sm:$0xff]  ;;  %v14270_v7 = vpack.c.bf16 %v147_v2, %v147_v2  ;;  %38 = vst [vmem:[#allocation3] sm:$0xf] %v19393_v9  ;;  %39 = vst [vmem:[#allocation3 + $0x4] sm:$0xf] %v19393_v9 }
   0x3   :  { %v14272_v8 = vpack.c.bf16 %v149_v5, %v149_v5  ;;  %40 = vst [vmem:[#allocation3 + $0x8] sm:$0x1] %v19393_v9  ;;  %41 = vst [vmem:[#allocation3 + $0xc] sm:$0xf] %v19393_v9  ;;  %v14388_v10 = vpack.c.bf16 %v14268_v6, %v14268_v6  ;;  %v153_v13 = vld [vmem:[%s19382_s0 + $0x38] sm:$0xff]  ;;  %v150_v15 = vld [vmem:[%s19382_s0 + $0x20] sm:$0xff] }
   0x4   :  { %1276 = vrot.lane.b32.xlu0 %v14258_v3, %s14189_s23  ;;  %1280 = vrot.lane.b32.xlu1 %v14260_v4, %s14189_s23  ;;  %42 = vst [vmem:[#allocation3 + $0x10] sm:$0xf] %v19393_v9  ;;  %44 = vst [vmem:[#allocation3 + $0x18] sm:$0xf] %v19393_v9  ;;  %v414_v11 = vshrl.u32 %v14270_v7, 16  ;;  %v14416_v20 = vpack.c.bf16 %v153_v13, %v153_v13  ;;  %v152_v21 = vld [vmem:[%s19382_s0 + $0x30] sm:$0xff]  ;;  %v14423_v24 = vpack.c.bf16 %v150_v15, %v150_v15 }
   0x5   :  { %45 = vst [vmem:[#allocation3 + $0x1c] sm:$0xf] %v19393_v9  ;;  %46 = vst [vmem:[#allocation3 + $0x20] sm:$0x1] %v19393_v9  ;;  %v431_v12 = vshrl.u32 %v14272_v8, 16  ;;  %v448_v14 = vshrl.u32 %v14388_v10, 16  ;;  %v14453_v39 = vpack.c.bf16 %v152_v21, %v152_v21 }
   0x6   :  { %47 = vst [vmem:[#allocation3 + $0x24] sm:$0xf] %v19393_v9  ;;  %48 = vst [vmem:[#allocation3 + $0x28] sm:$0xf] %v19393_v9  ;;  %v14401_v16 = vrot.slane %v414_v11, 7  ;;  %v155_v25 = vld [vmem:[%s19382_s0 + $0x48] sm:$0xff] }
   0x7   :  { %49 = vst [vmem:[#allocation3 + $0x2c] sm:$0x1] %v19393_v9  ;;  %50 = vst [vmem:[#allocation3 + $0x30] sm:$0xf] %v19393_v9  ;;  %v14403_v17 = vrot.slane %v431_v12, 7  ;;  %v14414_v19 = vrot.slane %v448_v14, 7  ;;  %v14447_v37 = vpack.c.bf16 %v155_v25, %v155_v25 }
   0x8   :  { %51 = vst [vmem:[#allocation3 + $0x34] sm:$0xf] %v19393_v9  ;;  %52 = vst [vmem:[#allocation3 + $0x38] sm:$0x1] %v19393_v9  ;;  %1278 = vrot.lane.b32.xlu0 %v14270_v7, %s14189_s23  ;;  %1282 = vrot.lane.b32.xlu1 %v14272_v8, %s14189_s23  ;;  %v421_v22 = vrot.slane %v14401_v16, 4  ;;  %v13489_v26 = vld [vmem:[%s19383_s1] sm:$0xff]  }
   0x9   :  { %53 = vst [vmem:[#allocation3 + $0x3c] sm:$0xf] %v19393_v9  ;;  %54 = vst [vmem:[#allocation3 + $0x40] sm:$0xf] %v19393_v9  ;;  %v438_v23 = vrot.slane %v14403_v17, 4  ;;  %v455_v27 = vrot.slane %v14414_v19, 4  ;;  %4521 = vmatpush1.bf16.msra.mxu0 %v13489_v26 }
   0xa   :  { %55 = vst [vmem:[#allocation3 + $0x44] sm:$0x1] %v19393_v9  ;;  %56 = vst [vmem:[#allocation3 + $0x48] sm:$0xf] %v19393_v9  ;;  %v465_v28 = vshrl.u32 %v14416_v20, 16  ;;  %v157_v29 = vld [vmem:[%s19382_s0 + $0x58] sm:$0xff]  ;;  %4522 = vmatprep.subr.bf16.mxu0 %v19393_v9 }
   0xb   :  { %57 = vst [vmem:[#allocation3 + $0x4c] sm:$0xf] %v19393_v9  ;;  %58 = vst [vmem:[#allocation3 + $0x50] sm:$0x1] %v19393_v9  ;;  %v13490_v30 = vld [vmem:[%s19383_s1 + $0x8] sm:$0xff]   ;;  %v14455_v40 = vpack.c.bf16 %v157_v29, %v157_v29  ;;  %v482_v42 = vshrl.u32 %v14447_v37, 16 }
   0xc   :  { %59 = vst [vmem:[#allocation3 + $0x54] sm:$0xf] %v19393_v9  ;;  %60 = vst [vmem:[#allocation3 + $0x58] sm:$0xf] %v19393_v9  ;;  %v1056_v31 = vld [vmem:[#allocation3 + $0x14] sm:$0x1]  ;;  %1286 = vrot.lane.b32.xlu1 %v14388_v10, %s14189_s23  ;;  %1284 = vrot.lane.b32.xlu0 %v14423_v24, %s14189_s23 }
   0xd   :  { %61 = vst [vmem:[#allocation3 + $0x5c] sm:$0x1] %v19393_v9  ;;  %62 = vst [vmem:[#allocation3 + $0x60] sm:$0xf] %v19393_v9  ;;  %v1063_v32 = vld [vmem:[#allocation3 + $0x20] sm:$0x1]  ;;  %4523 = vmatpush1.bf16.msra.mxu0 %v13490_v30 }
   0xe   :  { %63 = vst [vmem:[#allocation3 + $0x64] sm:$0xf] %v19393_v9  ;;  %64 = vst [vmem:[#allocation3 + $0x68] sm:$0x1] %v19393_v9  ;;  %v1070_v33 = vld [vmem:[#allocation3 + $0x2c] sm:$0x1]  ;;  %4524 = vmatprep.subr.bf16.mxu0 %v19393_v9 }
   0xf   :  { %65 = vst [vmem:[#allocation3 + $0x6c] sm:$0xf] %v19393_v9  ;;  %66 = vst [vmem:[#allocation3 + $0x70] sm:$0xf] %v19393_v9  ;;  %v14451_v38 = vrot.slane %v465_v28, 7  ;;  %v154_v43 = vld [vmem:[%s19382_s0 + $0x40] sm:$0xff] }
  0x10   :  { %67 = vst [vmem:[#allocation3 + $0x74] sm:$0x1] %v19393_v9  ;;  %68 = vst [vmem:[#allocation3 + $0x78] sm:$0xf] %v19393_v9  ;;  %v1077_v41 = vld [vmem:[#allocation3 + $0x38] sm:$0x1]  ;;  %1290 = vrot.lane.b32.xlu1 %v14416_v20, %s14189_s23  ;;  %1288 = vrot.lane.b32.xlu0 %v14453_v39, %s14189_s23  ;;  %v14479_v51 = vpack.c.bf16 %v154_v43, %v154_v43 }
  0x11   :  { %69 = vst [vmem:[#allocation3 + $0x7c] sm:$0xf] %v19393_v9  ;;  %70 = vst [vmem:[#allocation3 + $0x80] sm:$0x1] %v19393_v9  ;;  %v159_v44 = vld [vmem:[%s19382_s0 + $0x68] sm:$0xff]  ;;  %v472_v45 = vrot.slane %v14451_v38, 4 }
  0x12   :  { %71 = vst [vmem:[#allocation3 + $0x84] sm:$0xf] %v19393_v9  ;;  %72 = vst [vmem:[#allocation3 + $0x88] sm:$0xf] %v19393_v9  ;;  %v499_v46 = vshrl.u32 %v14455_v40, 16  ;;  %v14469_v47 = vrot.slane %v482_v42, 7  ;;  %v14486_v54 = vpack.c.bf16 %v159_v44, %v159_v44 }
  0x13   :  { %73 = vst [vmem:[#allocation3 + $0x8c] sm:$0x1] %v19393_v9  ;;  %74 = vst [vmem:[#allocation3 + $0x90] sm:$0xf] %v19393_v9  ;;  %v1084_v48 = vld [vmem:[#allocation3 + $0x44] sm:$0x1] }
  0x14   :  { %75 = vst [vmem:[#allocation3 + $0x94] sm:$0xf] %v19393_v9  ;;  %76 = vst [vmem:[#allocation3 + $0x98] sm:$0x1] %v19393_v9  ;;  %v13491_v49 = vld [vmem:[%s19383_s1 + $0x10] sm:$0xff]   ;;  %v14481_v52 = vrot.slane %v499_v46, 7  ;;  %1294 = vrot.lane.b32.xlu1 %v14447_v37, %s14189_s23  ;;  %1292 = vrot.lane.b32.xlu0 %v14479_v51, %s14189_s23 }
  0x15   :  { %77 = vst [vmem:[#allocation3 + $0x9c] sm:$0xf] %v19393_v9  ;;  %78 = vst [vmem:[#allocation3 + $0xa0] sm:$0xf] %v19393_v9  ;;  %v156_v53 = vld [vmem:[%s19382_s0 + $0x50] sm:$0xff]  ;;  %v489_v55 = vrot.slane %v14469_v47, 4  ;;  %4525 = vmatpush1.bf16.msra.mxu0 %v13491_v49 }
  0x16   :  { %79 = vst [vmem:[#allocation3 + $0xa4] sm:$0x1] %v19393_v9  ;;  %80 = vst [vmem:[#allocation3 + $0xa8] sm:$0xf] %v19393_v9  ;;  %v1091_v56 = vld [vmem:[#allocation3 + $0x50] sm:$0x1]  ;;  %4526 = vmatprep.subr.bf16.mxu0 %v19393_v9  ;;  %v14509_v0 = vpack.c.bf16 %v156_v53, %v156_v53 }
  0x17   :  { %81 = vst [vmem:[#allocation3 + $0xac] sm:$0xf] %v19393_v9  ;;  %82 = vst [vmem:[#allocation3 + $0xb0] sm:$0x1] %v19393_v9  ;;  %v161_v57 = vld [vmem:[%s19382_s0 + $0x78] sm:$0xff]  ;;  %v506_v58 = vrot.slane %v14481_v52, 4 }
  0x18   :  { %83 = vst [vmem:[#allocation3 + $0xb4] sm:$0xf] %v19393_v9  ;;  %84 = vst [vmem:[#allocation3 + $0xb8] sm:$0xf] %v19393_v9  ;;  %v516_v59 = vshrl.u32 %v14486_v54, 16  ;;  %v163_v60 = vld [vmem:[%s19382_s0 + $0x88] sm:$0xff]  ;;  %v14513_v2 = vpack.c.bf16 %v161_v57, %v161_v57  ;;  %1298 = vrot.lane.b32.xlu1 %v14455_v40, %s14189_s23  ;;  %1296 = vrot.lane.b32.xlu0 %v14509_v0, %s14189_s23 }
  0x19   :  { %85 = vst [vmem:[#allocation3 + $0xbc] sm:$0x1] %v19393_v9  ;;  %86 = vst [vmem:[#allocation3 + $0xc0] sm:$0xf] %v19393_v9  ;;  %v13492_v61 = vld [vmem:[%s19383_s1 + $0x18] sm:$0xff]   ;;  %v406_v5 = vshrl.u32 %v14258_v3, 16  ;;  %v14519_v12 = vpack.c.bf16 %v163_v60, %v163_v60 }
  0x1a   :  { %87 = vst [vmem:[#allocation3 + $0xc4] sm:$0xf] %v19393_v9  ;;  %88 = vst [vmem:[#allocation3 + $0xc8] sm:$0x1] %v19393_v9  ;;  %v14511_v1 = vrot.slane %v516_v59, 7  ;;  %v158_v11 = vld [vmem:[%s19382_s0 + $0x60] sm:$0xff]  ;;  %4527 = vmatpush1.bf16.msra.mxu0 %v13492_v61 }
  0x1b   :  { %89 = vst [vmem:[#allocation3 + $0xcc] sm:$0xf] %v19393_v9  ;;  %90 = vst [vmem:[#allocation3 + $0xd0] sm:$0xf] %v19393_v9  ;;  %v1098_v6 = vld [vmem:[#allocation3 + $0x5c] sm:$0x1]  ;;  %4528 = vmatprep.subr.bf16.mxu0 %v19393_v9  ;;  %v14541_v29 = vpack.c.bf16 %v158_v11, %v158_v11 }
  0x1c   :  { %91 = vst [vmem:[#allocation3 + $0xd4] sm:$0x1] %v19393_v9  ;;  %92 = vst [vmem:[#allocation3 + $0xd8] sm:$0xf] %v19393_v9  ;;  %v523_v13 = vrot.slane %v14511_v1, 4  ;;  %v533_v14 = vshrl.u32 %v14513_v2, 16  ;;  %1302 = vrot.lane.b32.xlu1 %v14486_v54, %s14189_s23 }
  0x1d   :  { %93 = vst [vmem:[#allocation3 + $0xdc] sm:$0xf] %v19393_v9  ;;  %94 = vst [vmem:[#allocation3 + $0xe0] sm:$0x1] %v19393_v9  ;;  %v165_v15 = vld [vmem:[%s19382_s0 + $0x98] sm:$0xff]  ;;  %v13493_v21 = vld [vmem:[%s19383_s1 + $0x20] sm:$0xff]   ;;  %1300 = vrot.lane.b32.xlu0 %v14541_v29, %s14189_s23 }
  0x1e   :  { %95 = vst [vmem:[#allocation3 + $0xe4] sm:$0xf] %v19393_v9  ;;  %96 = vst [vmem:[#allocation3 + $0xe8] sm:$0xf] %v19393_v9  ;;  %v426_v25 = vshll.u32 %v14260_v4, 16  ;;  %v550_v26 = vshrl.u32 %v14519_v12, 16  ;;  %4529 = vmatpush1.bf16.msra.mxu0 %v13493_v21 }
  0x1f   :  { %97 = vst [vmem:[#allocation3 + $0xec] sm:$0x1] %v19393_v9  ;;  %98 = vst [vmem:[#allocation3 + $0xf0] sm:$0xf] %v19393_v9  ;;  %v14543_v30 = vrot.slane %v533_v14, 7  ;;  %v13494_v42 = vld [vmem:[%s19383_s1 + $0x28] sm:$0xff]   ;;  %4530 = vmatprep.subr.bf16.mxu0 %v19393_v9 }
  0x20   :  { %99 = vst [vmem:[#allocation3 + $0xf4] sm:$0xf] %v19393_v9  ;;  %100 = vst [vmem:[#allocation3 + $0xf8] sm:$0x1] %v19393_v9  ;;  %v167_v43 = vld [vmem:[%s19382_s0 + $0xa8] sm:$0xff]  ;;  %v440_v44 = vshrl.u32 %v14423_v24, 16  ;;  %1306 = vrot.lane.b32.xlu1 %v14513_v2, %s14189_s23 }
  0x21   :  { %101 = vst [vmem:[#allocation3 + $0xfc] sm:$0xf] %v19393_v9  ;;  %102 = vst [vmem:[#allocation3 + $0x100] sm:$0xf] %v19393_v9  ;;  %v14569_v49 = vrot.slane %v406_v5, 7  ;;  %v14587_v61 = vpack.c.bf16 %v167_v43, %v167_v43  ;;  %v171_v14 = vld [vmem:[%s19382_s0 + $0xc8] sm:$0xff] }
  0x22   :  { %103 = vst [vmem:[#allocation3 + $0x104] sm:$0x1] %v19393_v9  ;;  %104 = vst [vmem:[#allocation3 + $0x108] sm:$0xf] %v19393_v9  ;;  %v1119_v60 = vld [vmem:[#allocation3 + $0x80] sm:$0x1]  ;;  %4531 = vmatpush1.bf16.msra.mxu0 %v13494_v42 }
  0x23   :  { %105 = vst [vmem:[#allocation3 + $0x10c] sm:$0xf] %v19393_v9  ;;  %106 = vst [vmem:[#allocation3 + $0x110] sm:$0x1] %v19393_v9  ;;  %4532 = vmatprep.subr.bf16.mxu0 %v19393_v9  ;;  %v457_v21 = vshrl.u32 %v14453_v39, 16  ;;  %v13496_v43 = vld [vmem:[%s19383_s1 + $0x38] sm:$0xff]  }
  0x24   :  { %107 = vst [vmem:[#allocation3 + $0x114] sm:$0xf] %v19393_v9  ;;  %108 = vst [vmem:[#allocation3 + $0x118] sm:$0xf] %v19393_v9  ;;  %v1126_v42 = vld [vmem:[#allocation3 + $0x8c] sm:$0x1]  ;;  %1310 = vrot.lane.b32.xlu1 %v14519_v12, %s14189_s23 }
  0x25   :  { %109 = vst [vmem:[#allocation3 + $0x11c] sm:$0x1] %v19393_v9  ;;  %110 = vst [vmem:[#allocation3 + $0x120] sm:$0xf] %v19393_v9  ;;  %vm1047_vm4 = vsmask.f32 7938 }
  0x26   :  { %111 = vst [vmem:[#allocation3 + $0x124] sm:$0xf] %v19393_v9  ;;  %112 = vst [vmem:[#allocation3 + $0x128] sm:$0x1] %v19393_v9  ;;  %vm403_vm6 = vsmask.f32 4368 }
  0x27   :  { %113 = vst [vmem:[#allocation3 + $0x12c] sm:$0xf] %v19393_v9  ;;  %114 = vst [vmem:[#allocation3 + $0x130] sm:$0xf] %v19393_v9  ;;  %vm2173_vm8 = vcmask 1046528   ;;  %vm1468_vm9 = vcmask 1043968  }
  0x28   :  { %115 = vst [vmem:[#allocation3 + $0x134] sm:$0x1] %v19393_v9  ;;  %116 = vst [vmem:[#allocation3 + $0x138] sm:$0xf] %v19393_v9 }
  0x29   :  { %117 = vst [vmem:[#allocation3 + $0x13c] sm:$0xf] %v19393_v9  ;;  %118 = vst [vmem:[#allocation3 + $0x140] sm:$0x1] %v19393_v9 }
  0x2a   :  { %119 = vst [vmem:[#allocation3 + $0x144] sm:$0xf] %v19393_v9  ;;  %120 = vst [vmem:[#allocation3 + $0x148] sm:$0xf] %v19393_v9 }
  0x2b   :  { %121 = vst [vmem:[#allocation3 + $0x14c] sm:$0x1] %v19393_v9  ;;  %122 = vst [vmem:[#allocation3 + $0x150] sm:$0xf] %v19393_v9 }
  0x2c   :  { %123 = vst [vmem:[#allocation3 + $0x154] sm:$0xf] %v19393_v9  ;;  %124 = vst [vmem:[#allocation3 + $0x158] sm:$0x1] %v19393_v9 }
  0x2d   :  { %125 = vst [vmem:[#allocation3 + $0x15c] sm:$0xf] %v19393_v9  ;;  %126 = vst [vmem:[#allocation3 + $0x160] sm:$0xf] %v19393_v9 }
  0x2e   :  { %127 = vst [vmem:[#allocation3 + $0x164] sm:$0x1] %v19393_v9  ;;  %128 = vst [vmem:[#allocation3 + $0x168] sm:$0xf] %v19393_v9 }
  0x2f   :  { %129 = vst [vmem:[#allocation3 + $0x16c] sm:$0xf] %v19393_v9  ;;  %130 = vst [vmem:[#allocation3 + $0x170] sm:$0x1] %v19393_v9 }
  0x30   :  { %131 = vst [vmem:[#allocation3 + $0x174] sm:$0xf] %v19393_v9  ;;  %132 = vst [vmem:[#allocation3 + $0x178] sm:$0xf] %v19393_v9 }
  0x31   :  { %133 = vst [vmem:[#allocation3 + $0x17c] sm:$0x1] %v19393_v9  ;;  %134 = vst [vmem:[#allocation3 + $0x180] sm:$0xf] %v19393_v9 }
  0x32   :  { %135 = vst [vmem:[#allocation3 + $0x184] sm:$0xf] %v19393_v9  ;;  %136 = vst [vmem:[#allocation3 + $0x188] sm:$0x1] %v19393_v9 }
  0x33   :  { %137 = vst [vmem:[#allocation3 + $0x18c] sm:$0xf] %v19393_v9  ;;  %138 = vst [vmem:[#allocation3 + $0x190] sm:$0xf] %v19393_v9 }
  0x34   :  { %139 = vst [vmem:[#allocation3 + $0x194] sm:$0x1] %v19393_v9  ;;  %140 = vst [vmem:[#allocation3 + $0x198] sm:$0xf] %v19393_v9 }
  0x35   :  { %141 = vst [vmem:[#allocation3 + $0x19c] sm:$0xf] %v19393_v9  ;;  %142 = vst [vmem:[#allocation3 + $0x1a0] sm:$0x1] %v19393_v9 }
  0x36   :  { %143 = vst [vmem:[#allocation3 + $0x1a4] sm:$0xf] %v19393_v9  ;;  %144 = vst [vmem:[#allocation3 + $0x1a8] sm:$0xf] %v19393_v9 }
  0x37   :  { %145 = vst [vmem:[#allocation3 + $0x1ac] sm:$0x1] %v19393_v9  ;;  %vm14406_vm2 = vmand %vm1054_vm1, %vm402_vm0 }
  0x38   :  { %v19508_v18 = vsel %vm14406_vm2, 4294967295, %v19507_v18  ;;  %v1057_v34 = vsel %vm14406_vm2, %v421_v22, %v1056_v31  ;;  %v1064_v35 = vsel %vm14406_vm2, %v438_v23, %v1063_v32  ;;  %v1071_v36 = vsel %vm14406_vm2, %v455_v27, %v1070_v33  ;;  %v1105_v31 = vld [vmem:[#allocation3 + $0x68] sm:$0x1]  ;;  %v160_v32 = vld [vmem:[%s19382_s0 + $0x70] sm:$0xff]  ;;  %vm14698_vm5 = vmand %vm1046_vm3, %vm1047_vm4 }
  0x39   :  { %19509 = vst [vmem:[#allocation8_spill] sm:$0xff] %v19508_v18  ;;  %1058 = vst [vmem:[#allocation3 + $0x14] sm:$0x1] %v1057_v34  ;;  %v1078_v50 = vsel %vm14406_vm2, %v472_v45, %v1077_v41  ;;  %v1085_v62 = vsel %vm14406_vm2, %v489_v55, %v1084_v48  ;;  %v1092_v63 = vsel %vm14406_vm2, %v506_v58, %v1091_v56  ;;  %v409_v22 = vshll.u32 %v14258_v3, 16  ;;  %v1112_v34 = vld [vmem:[#allocation3 + $0x74] sm:$0x1] }
  0x3a   :  { %1065 = vst [vmem:[#allocation3 + $0x20] sm:$0x1] %v1064_v35  ;;  %1072 = vst [vmem:[#allocation3 + $0x2c] sm:$0x1] %v1071_v36  ;;  %v423_v23 = vshrl.u32 %v14260_v4, 16  ;;  %v417_v27 = vshll.u32 %v14270_v7, 16  ;;  %v1099_v28 = vsel %vm14406_vm2, %v523_v13, %v1098_v6  ;;  %v14550_v35 = vpack.c.bf16 %v165_v15, %v165_v15 }
  0x3b   :  { %1079 = vst [vmem:[#allocation3 + $0x38] sm:$0x1] %v1078_v50  ;;  %1086 = vst [vmem:[#allocation3 + $0x44] sm:$0x1] %v1085_v62  ;;  %v14548_v33 = vrot.slane %v550_v26, 7  ;;  %v434_v36 = vshll.u32 %v14272_v8, 16  ;;  %v14577_v55 = vpack.c.bf16 %v160_v32, %v160_v32 }
  0x3c   :  { %1093 = vst [vmem:[#allocation3 + $0x50] sm:$0x1] %v1092_v63  ;;  %1100 = vst [vmem:[#allocation3 + $0x5c] sm:$0x1] %v1099_v28  ;;  %v540_v41 = vrot.slane %v14543_v30, 4  ;;  %v567_v46 = vshrl.u32 %v14550_v35, 16  ;;  %1314 = vrot.lane.b32.xlu1 %v14550_v35, %s14189_s23 }
  0x3d   :  { %v557_v45 = vrot.slane %v14548_v33, 4  ;;  %v169_v48 = vld [vmem:[%s19382_s0 + $0xb8] sm:$0xff]  ;;  %v14571_v50 = vrot.slane %v423_v23, 7  ;;  %v451_v56 = vshll.u32 %v14388_v10, 16  ;;  %v162_v58 = vld [vmem:[%s19382_s0 + $0x80] sm:$0xff]  ;;  %v443_v62 = vshll.u32 %v14423_v24, 16  ;;  %1304 = vrot.lane.b32.xlu0 %v14577_v55, %s14189_s23  ;;  %vm14762_vm7 = vmor %vm402_vm0, %vm403_vm6 }
  0x3e   :  { %v1106_v53 = vsel %vm14406_vm2, %v540_v41, %v1105_v31  ;;  %v14585_v59 = vrot.slane %v567_v46, 7  ;;  %v13495_v63 = vld [vmem:[%s19383_s1 + $0x30] sm:$0xff]   ;;  %v14593_v5 = vpack.c.bf16 %v169_v48, %v169_v48  ;;  %v14595_v6 = vrot.slane %v440_v44, 7  ;;  %v1133_v48 = vld [vmem:[#allocation3 + $0x98] sm:$0x1] }
  0x3f   :  { %1107 = vst [vmem:[#allocation3 + $0x68] sm:$0x1] %v1106_v53  ;;  %v1113_v57 = vsel %vm14406_vm2, %v557_v45, %v1112_v34  ;;  %v584_v13 = vshrl.u32 %v14587_v61, 16  ;;  %v468_v15 = vshll.u32 %v14416_v20, 16  ;;  %v14609_v23 = vpack.c.bf16 %v162_v58, %v162_v58  ;;  %v164_v34 = vld [vmem:[%s19382_s0 + $0x90] sm:$0xff]  ;;  %4533 = vmatpush1.bf16.msra.mxu0 %v13495_v63  ;;  %v173_v53 = vld [vmem:[%s19382_s0 + $0xd8] sm:$0xff] }
  0x40   :  { %1114 = vst [vmem:[#allocation3 + $0x74] sm:$0x1] %v1113_v57  ;;  %v574_v11 = vrot.slane %v14585_v59, 4  ;;  %v601_v26 = vshrl.u32 %v14593_v5, 16  ;;  %v460_v28 = vshll.u32 %v14453_v39, 16  ;;  %v474_v31 = vshrl.u32 %v14479_v51, 16  ;;  %4534 = vmatprep.subr.bf16.mxu0 %v19393_v9  ;;  %1318 = vrot.lane.b32.xlu1 %v14587_v61, %s14189_s23 }
  0x41   :  { %v14619_v41 = vrot.slane %v584_v13, 7  ;;  %v14626_v45 = vpack.c.bf16 %v171_v14, %v171_v14  ;;  %1308 = vrot.lane.b32.xlu0 %v14609_v23, %s14189_s23  ;;  %v14637_v57 = vpack.c.bf16 %v164_v34, %v164_v34  ;;  %v14641_v63 = vrot.slane %v457_v21, 7  ;;  %v179_v20 = vld [vmem:[%s19382_s0 + $0x108] sm:$0xff] }
  0x42   :  { %v1120_v32 = vsel %vm14406_vm2, %v574_v11, %v1119_v60  ;;  %v14624_v44 = vrot.slane %v601_v26, 7  ;;  %v485_v11 = vshll.u32 %v14447_v37, 16  ;;  %v477_v13 = vshll.u32 %v14479_v51, 16  ;;  %v166_v26 = vld [vmem:[%s19382_s0 + $0xa0] sm:$0xff] }
  0x43   :  { %1121 = vst [vmem:[#allocation3 + $0x80] sm:$0x1] %v1120_v32  ;;  %v591_v46 = vrot.slane %v14619_v41, 4  ;;  %v618_v60 = vshrl.u32 %v14626_v45, 16  ;;  %v14650_v32 = vrot.slane %v474_v31, 7  ;;  %4535 = vmatpush1.bf16.msra.mxu0 %v13496_v43  ;;  %v13497_v37 = vld [vmem:[%s19383_s1 + $0x40] sm:$0xff]   ;;  %v14659_v51 = vpack.c.bf16 %v173_v53, %v173_v53 }
  0x44   :  { %v608_v58 = vrot.slane %v14624_v44, 4  ;;  %4536 = vmatprep.subr.bf16.mxu0 %v19393_v9  ;;  %v1140_v31 = vld [vmem:[#allocation3 + $0xa4] sm:$0x1]  ;;  %v175_v43 = vld [vmem:[%s19382_s0 + $0xe8] sm:$0xff]  ;;  %v491_v4 = vshrl.u32 %v14509_v0, 16  ;;  %v19510_v8 = vmov 0  ;;  %1322 = vrot.lane.b32.xlu1 %v14593_v5, %s14189_s23 }
  0x45   :  { %v1127_v14 = vsel %vm14406_vm2, %v591_v46, %v1126_v42  ;;  %v14657_v21 = vrot.slane %v618_v60, 7  ;;  %v411_v42 = vor.u32 %v409_v22, %v14569_v49  ;;  %1312 = vrot.lane.b32.xlu0 %v14637_v57, %s14189_s23  ;;  %v635_v22 = vshrl.u32 %v14659_v51, 16  ;;  %v1049_v53 = vld [vmem:[#allocation3 + $0xc] sm:$0xf]  ;;  %v1059_v46 = vld [vmem:[#allocation3 + $0x18] sm:$0xf] }
  0x46   :  { %1128 = vst [vmem:[#allocation3 + $0x8c] sm:$0x1] %v1127_v14  ;;  %v1134_v34 = vsel %vm14406_vm2, %v608_v58, %v1133_v48  ;;  %v14673_v48 = vpack.c.bf16 %v166_v26, %v166_v26  ;;  %v428_v58 = vor.u32 %v426_v25, %v14571_v50  ;;  %v419_v60 = vor.u32 %v417_v27, %v14401_v16  ;;  %v168_v26 = vld [vmem:[%s19382_s0 + $0xb0] sm:$0xff] }
  0x47   :  { %1135 = vst [vmem:[#allocation3 + $0x98] sm:$0x1] %v1134_v34  ;;  %v625_v3 = vrot.slane %v14657_v21, 4  ;;  %v436_v14 = vor.u32 %v434_v36, %v14403_v17  ;;  %v13498_v34 = vld [vmem:[%s19383_s1 + $0x48] sm:$0xff]   ;;  %4537 = vmatpush1.bf16.msra.mxu0 %v13497_v37  ;;  %v14695_v16 = vrot.slane %v635_v22, 7  ;;  %v19511_v8 = vsel %vm14698_vm5, 4294967295, %v19510_v8 }
  0x48   :  { %19512 = vst [vmem:[#allocation9_spill] sm:$0xff] %v19511_v8  ;;  %v14702_v17 = vpack.c.bf16 %v175_v43, %v175_v43  ;;  %v14707_v25 = vor.u32 %v451_v56, %v14414_v19  ;;  %v14712_v27 = vor.u32 %v443_v62, %v14595_v6  ;;  %4538 = vmatprep.subr.bf16.mxu0 %v19393_v9  ;;  %v170_v36 = vld [vmem:[%s19382_s0 + $0xc0] sm:$0xff]  ;;  %v1147_v37 = vld [vmem:[#allocation3 + $0xb0] sm:$0x1]  ;;  %v1154_v43 = vld [vmem:[#allocation3 + $0xbc] sm:$0x1] }
  0x49   :  { %v1141_v7 = vsel %vm14406_vm2, %v625_v3, %v1140_v31  ;;  %v1050_v10 = vsel %vm14698_vm5, %v411_v42, %v1049_v53  ;;  %v14725_v19 = vor.u32 %v468_v15, %v14451_v38  ;;  %1316 = vrot.lane.b32.xlu0 %v14673_v48, %s14189_s23  ;;  %v14729_v24 = vpack.c.bf16 %v168_v26, %v168_v26  ;;  %v13499_v56 = vld [vmem:[%s19383_s1 + $0x50] sm:$0xff]   ;;  %v13505_v22 = vld [vmem:[#allocation3] sm:$0xfe]  }
  0x4a   :  { %1142 = vst [vmem:[#allocation3 + $0xa4] sm:$0x1] %v1141_v7  ;;  %v642_v62 = vrot.slane %v14695_v16, 4  ;;  %1051 = vst [vmem:[#allocation3 + $0xc] sm:$0xf] %v1050_v10  ;;  %v652_v31 = vshrl.u32 %v14702_v17, 16  ;;  %v14742_v38 = vor.u32 %v460_v28, %v14641_v63  ;;  %v14745_v15 = vor.u32 %v485_v11, %v14469_v47  ;;  %1326 = vrot.lane.b32.xlu1 %v14626_v45, %s14189_s23 }
  0x4b   :  { %v14748_v42 = vor.u32 %v477_v13, %v14650_v32  ;;  %v1060_v3 = vsel %vm14698_vm5, %v428_v58, %v1059_v46  ;;  %4539 = vmatpush1.bf16.msra.mxu0 %v13498_v34  ;;  %v412_v39 = vrot.slane %v14569_v49, 4  ;;  %v494_v47 = vshll.u32 %v14509_v0, 16  ;;  %v13506_v13 = vld [vmem:[#allocation3 + $0x8] ss:$0 sps:$4 sm:$0x11]   ;;  %v13503_v0 = vld [vmem:[%s19383_s1 + $0x70] sm:$0xff]  }
  0x4c   :  { %v1148_v53 = vsel %vm14406_vm2, %v642_v62, %v1147_v37  ;;  %v14754_v26 = vrot.slane %v652_v31, 7  ;;  %1061 = vst [vmem:[#allocation3 + $0x18] sm:$0xf] %v1060_v3  ;;  %4540 = vmatprep.subr.bf16.mxu0 %v19393_v9  ;;  %v19513_v28 = vmov 0  ;;  %v429_v11 = vrot.slane %v14571_v50, 4  ;;  %v172_v50 = vld [vmem:[%s19382_s0 + $0xd0] sm:$0xff] }
  0x4d   :  { %1149 = vst [vmem:[#allocation3 + $0xb0] sm:$0x1] %v1148_v53  ;;  %v19514_v28 = vsel %vm14762_vm7, 4294967295, %v19513_v28  ;;  %v14767_v46 = vpack.c.bf16 %v179_v20, %v179_v20  ;;  %1320 = vrot.lane.b32.xlu0 %v14729_v24, %s14189_s23  ;;  %v14771_v49 = vpack.c.bf16 %v170_v36, %v170_v36  ;;  %v420_v34 = vsel %vm14762_vm7, %v412_v39, %v419_v60  ;;  %v13500_v60 = vld [vmem:[%s19383_s1 + $0x58] sm:$0xff]   ;;  %v1066_v53 = vld [vmem:[#allocation3 + $0x24] sm:$0xf] }
  0x4e   :  { %19515 = vst [vmem:[#allocation10_spill] sm:$0xff] %v19514_v28  ;;  %v659_v58 = vrot.slane %v14754_v26, 4  ;;  %v2174_v7 = vrot.slane %v13505_v22, 1  ;;  %v14776_v37 = vrot.slane %v491_v4, 7  ;;  %1053 = vst.msk [vmem:[#allocation3 + $0x10] sm:$0xf] %vm1046_vm3, %v420_v34  ;;  %v437_v10 = vsel %vm14762_vm7, %v429_v11, %v436_v14  ;;  %1330 = vrot.lane.b32.xlu1 %v14659_v51, %s14189_s23 }
  0x4f   :  { %v2175_v62 = vrot.slane %v13506_v13, 1  ;;  %v686_v36 = vshrl.u32 %v14767_v46, 16  ;;  %v508_v31 = vshrl.u32 %v14541_v29, 16  ;;  %4541 = vmatpush1.bf16.msra.mxu0 %v13499_v56  ;;  %1062 = vst.msk [vmem:[#allocation3 + $0x1c] sm:$0xf] %vm1046_vm3, %v437_v10  ;;  %v689_v20 = vshll.u32 %v14767_v46, 16 }
  0x50   :  { %v1155_v4 = vsel %vm14406_vm2, %v659_v58, %v1154_v43  ;;  %v446_v3 = vrot.slane %v14595_v6, 4  ;;  %v181_v14 = vld [vmem:[%s19382_s0 + $0x118] sm:$0xff]  ;;  %v519_v22 = vshll.u32 %v14486_v54, 16  ;;  %4542 = vmatprep.subr.bf16.mxu0 %v19393_v9  ;;  %v511_v6 = vshll.u32 %v14541_v29, 16  ;;  %v1168_v58 = vld [vmem:[#allocation3 + $0xec] sm:$0x1] }
  0x51   :  { %1156 = vst [vmem:[#allocation3 + $0xbc] sm:$0x1] %v1155_v4  ;;  %v2176_v56 = vsel %vm2173_vm8, %v2174_v7, %v2175_v62  ;;  %v688_v43 = vrot.slane %v686_v36, 7  ;;  %v14802_v39 = vpack.c.bf16 %v181_v14, %v181_v14  ;;  %1324 = vrot.lane.b32.xlu0 %v14771_v49, %s14189_s23  ;;  %v14808_v13 = vpack.c.bf16 %v172_v50, %v172_v50  ;;  %v174_v7 = vld [vmem:[%s19382_s0 + $0xe0] sm:$0xff] }
  0x52   :  { %4552 = vmatprep.mubr.bf16.mxu0 %v2176_v56  ;;  %v454_v34 = vsel %vm14762_vm7, %v446_v3, %v14707_v25  ;;  %v1067_v50 = vsel %vm14698_vm5, %v14712_v27, %v1066_v53  ;;  %v19516_v4 = vshll.u32 %v14455_v40, 16  ;;  %v14828_v25 = vrot.slane %v508_v31, 7  ;;  %1334 = vrot.lane.b32.xlu1 %v14702_v17, %s14189_s23 }
  0x53   :  { %v14816_v10 = vor.u32 %v689_v20, %v688_v43  ;;  %v693_v62 = vrot.slane %v688_v43, 4  ;;  %1069 = vst.msk [vmem:[#allocation3 + $0x28] sm:$0xf] %vm1046_vm3, %v454_v34  ;;  %v703_v36 = vshrl.u32 %v14802_v39, 16  ;;  %v525_v3 = vshrl.u32 %v14577_v55, 16  ;;  %4543 = vmatpush1.bf16.msra.mxu0 %v13500_v60  ;;  %v13501_v20 = vld [vmem:[%s19383_s1 + $0x60] sm:$0xff]  }
  0x54   :  { %v14826_v14 = vor.u32 %v19516_v4, %v14481_v52  ;;  %1068 = vst [vmem:[#allocation3 + $0x24] sm:$0xf] %v1067_v50  ;;  %v706_v56 = vshll.u32 %v14802_v39, 16  ;;  %v542_v27 = vshrl.u32 %v14609_v23, 16  ;;  %4544 = vmatprep.subr.bf16.mxu0 %v19393_v9  ;;  %v463_v31 = vrot.slane %v14641_v63, 4  ;;  %v183_v43 = vld [vmem:[%s19382_s0 + $0x128] sm:$0xff] }
  0x55   :  { %v1169_v40 = vsel %vm14406_vm2, %v693_v62, %v1168_v58  ;;  %v705_v52 = vrot.slane %v703_v36, 7  ;;  %v1073_v60 = vld [vmem:[#allocation3 + $0x30] sm:$0xf]  ;;  %1328 = vrot.lane.b32.xlu0 %v14808_v13, %s14189_s23  ;;  %v14849_v50 = vpack.c.bf16 %v174_v7, %v174_v7  ;;  %v1175_v4 = vld [vmem:[#allocation3 + $0xf8] sm:$0x1]  ;;  %v178_v58 = vld [vmem:[%s19382_s0 + $0x100] sm:$0xff]  ;;  %v14862_v7 = vpack.c.bf16 %v183_v43, %v183_v43 }
  0x56   :  { %1170 = vst [vmem:[#allocation3 + $0xec] sm:$0x1] %v1169_v40  ;;  %v1074_v63 = vsel %vm14698_vm5, %v14742_v38, %v1073_v60  ;;  %v471_v34 = vsel %vm14762_vm7, %v463_v31, %v14725_v19  ;;  %v1080_v40 = vld [vmem:[#allocation3 + $0x3c] sm:$0xf]  ;;  %v14864_v53 = vrot.slane %v525_v3, 7  ;;  %v545_v11 = vshll.u32 %v14609_v23, 16  ;;  %1342 = vrot.lane.b32.xlu1 %v14767_v46, %s14189_s23 }
  0x57   :  { %v14857_v62 = vor.u32 %v706_v56, %v705_v52  ;;  %v710_v36 = vrot.slane %v705_v52, 4  ;;  %1075 = vst [vmem:[#allocation3 + $0x30] sm:$0xf] %v1074_v63  ;;  %4545 = vmatpush1.bf16.msra.mxu0 %v13501_v20  ;;  %v13502_v38 = vld [vmem:[%s19383_s1 + $0x68] sm:$0xff]   ;;  %1076 = vst.msk [vmem:[#allocation3 + $0x34] sm:$0xf] %vm1046_vm3, %v471_v34  ;;  %v1081_v19 = vsel %vm14698_vm5, %v14748_v42, %v1080_v40 }
  0x58   :  { %v480_v56 = vrot.slane %v14650_v32, 4  ;;  %v185_v3 = vld [vmem:[%s19382_s0 + $0x138] sm:$0xff]  ;;  %v14878_v52 = vrot.slane %v542_v27, 7  ;;  %4546 = vmatprep.subr.bf16.mxu0 %v19393_v9  ;;  %v720_v32 = vshrl.u32 %v14862_v7, 16  ;;  %v723_v31 = vshll.u32 %v14862_v7, 16  ;;  %v180_v43 = vld [vmem:[%s19382_s0 + $0x110] sm:$0xff] }
  0x59   :  { %v1176_v20 = vsel %vm14406_vm2, %v710_v36, %v1175_v4  ;;  %1082 = vst [vmem:[#allocation3 + $0x3c] sm:$0xf] %v1081_v19  ;;  %v570_v42 = vshll.u32 %v14550_v35, 16  ;;  %v559_v60 = vshrl.u32 %v14637_v57, 16  ;;  %1332 = vrot.lane.b32.xlu0 %v14849_v50, %s14189_s23  ;;  %v14891_v27 = vpack.c.bf16 %v178_v58, %v178_v58  ;;  %v187_v35 = vld [vmem:[%s19382_s0 + $0x148] sm:$0xff]  ;;  %v184_v23 = vld [vmem:[%s19382_s0 + $0x130] sm:$0xff] }
  0x5a   :  { %1177 = vst [vmem:[#allocation3 + $0xf8] sm:$0x1] %v1176_v20  ;;  %v488_v34 = vsel %vm14762_vm7, %v480_v56, %v14745_v15  ;;  %v496_v4 = vor.u32 %v494_v47, %v14776_v37  ;;  %v722_v63 = vrot.slane %v720_v32, 7  ;;  %v14906_v58 = vpack.c.bf16 %v185_v3, %v185_v3  ;;  %v1182_v47 = vld [vmem:[#allocation3 + $0x104] sm:$0x1]  ;;  %1346 = vrot.lane.b32.xlu1 %v14802_v39, %s14189_s23 }
  0x5b   :  { %1083 = vst.msk [vmem:[#allocation3 + $0x40] sm:$0xf] %vm1046_vm3, %v488_v34  ;;  %v497_v36 = vrot.slane %v14776_v37, 4  ;;  %v521_v40 = vor.u32 %v519_v22, %v14511_v1  ;;  %v513_v15 = vor.u32 %v511_v6, %v14828_v25  ;;  %v562_v56 = vshll.u32 %v14637_v57, 16  ;;  %4547 = vmatpush1.bf16.msra.mxu0 %v13502_v38  ;;  %v1087_v19 = vld [vmem:[#allocation3 + $0x48] sm:$0xf] }
  0x5c   :  { %v14919_v3 = vpack.c.bf16 %v187_v35, %v187_v35  ;;  %4548 = vmatprep.subr.bf16.mxu0 %v19393_v9  ;;  %v14924_v54 = vor.u32 %v723_v31, %v722_v63  ;;  %v727_v1 = vrot.slane %v722_v63, 4  ;;  %v737_v29 = vshrl.u32 %v14906_v58, 16  ;;  %v182_v32 = vld [vmem:[%s19382_s0 + $0x120] sm:$0xff]  ;;  %v1094_v35 = vld [vmem:[#allocation3 + $0x54] sm:$0xf] }
  0x5d   :  { %v740_v37 = vshll.u32 %v14906_v58, 16  ;;  %v587_v22 = vshll.u32 %v14587_v61, 16  ;;  %v576_v6 = vshrl.u32 %v14673_v48, 16  ;;  %1340 = vrot.lane.b32.xlu0 %v14891_v27, %s14189_s23  ;;  %v14932_v38 = vpack.c.bf16 %v180_v43, %v180_v43  ;;  %v1203_v57 = vld [vmem:[#allocation3 + $0x128] sm:$0x1] }
  0x5e   :  { %v505_v46 = vsel %vm14762_vm7, %v497_v36, %v14826_v14  ;;  %v1183_v20 = vsel %vm14406_vm2, %v727_v1, %v1182_v47  ;;  %v739_v31 = vrot.slane %v737_v29, 7  ;;  %v1088_v34 = vsel %vm14698_vm5, %v496_v4, %v1087_v19  ;;  %v13504_v4 = vld [vmem:[%s19383_s1 + $0x78] sm:$0xff]   ;;  %v1189_v19 = vld [vmem:[#allocation3 + $0x110] sm:$0x1]  ;;  %1350 = vrot.lane.b32.xlu1 %v14862_v7, %s14189_s23 }
  0x5f   :  { %1090 = vst.msk [vmem:[#allocation3 + $0x4c] sm:$0xf] %vm1046_vm3, %v505_v46  ;;  %v754_v43 = vshrl.u32 %v14919_v3, 16  ;;  %v19517_v63 = vshll.u32 %v14513_v2, 16  ;;  %v19518_v36 = vshll.u32 %v14577_v55, 16  ;;  %v19519_v1 = vshll.u32 %v14519_v12, 16  ;;  %4549 = vmatpush1.bf16.msra.mxu0 %v13503_v0 }
  0x60   :  { %1184 = vst [vmem:[#allocation3 + $0x104] sm:$0x1] %v1183_v20  ;;  %1089 = vst [vmem:[#allocation3 + $0x48] sm:$0xf] %v1088_v34  ;;  %v757_v2 = vshll.u32 %v14919_v3, 16  ;;  %4550 = vmatprep.subr.bf16.mxu0 %v19393_v9  ;;  %v14964_v55 = vor.u32 %v740_v37, %v739_v31  ;;  %v744_v12 = vrot.slane %v739_v31, 4  ;;  %v547_v20 = vor.u32 %v545_v11, %v14878_v52 }
  0x61   :  { %v538_v14 = vor.u32 %v19517_v63, %v14543_v30  ;;  %v530_v47 = vor.u32 %v19518_v36, %v14864_v53  ;;  %v14955_v29 = vor.u32 %v19519_v1, %v14548_v33  ;;  %v13507_v30 = vld [vmem:[#allocation3] sm:$0xff]   ;;  %v756_v33 = vrot.slane %v754_v43, 7  ;;  %v189_v46 = vld [vmem:[%s19382_s0 + $0x158] sm:$0xff]  ;;  %1344 = vrot.lane.b32.xlu0 %v14932_v38, %s14189_s23  ;;  %v191_v43 = vld [vmem:[%s19382_s0 + $0x168] sm:$0xff] }
  0x62   :  { %v514_v0 = vrot.slane %v14828_v25, 4  ;;  %v14974_v34 = vor.u32 %v570_v42, %v14585_v59  ;;  %v14978_v39 = vpack.c.bf16 %v182_v32, %v182_v32  ;;  %v1196_v37 = vld [vmem:[#allocation3 + $0x11c] sm:$0x1]  ;;  %v1095_v25 = vsel %vm14698_vm5, %v513_v15, %v1094_v35  ;;  %v1101_v32 = vld [vmem:[#allocation3 + $0x60] sm:$0xf]  ;;  %1354 = vrot.lane.b32.xlu1 %v14906_v58, %s14189_s23 }
  0x63   :  { %v1190_v31 = vsel %vm14406_vm2, %v744_v12, %v1189_v19  ;;  %v14987_v11 = vor.u32 %v757_v2, %v756_v33  ;;  %v761_v59 = vrot.slane %v756_v33, 4  ;;  %1096 = vst [vmem:[#allocation3 + $0x54] sm:$0xf] %v1095_v25  ;;  %v14996_v15 = vrot.slane %v559_v60, 7  ;;  %4551 = vmatpush1.bf16.msra.mxu0 %v13504_v4  ;;  %v13508_v36 = vld [vmem:[%s19383_s1 + $0x80] sm:$0xff]  }
  0x64   :  { %v522_v42 = vsel %vm14762_vm7, %v514_v0, %v521_v40  ;;  %v14998_v35 = vrot.slane %v576_v6, 7  ;;  %v579_v63 = vshll.u32 %v14673_v48, 16  ;;  %1191 = vst [vmem:[#allocation3 + $0x110] sm:$0x1] %v1190_v31  ;;  %v15005_v40 = vpack.c.bf16 %v189_v46, %v189_v46  ;;  %4809 = vmatprep.subr.bf16.mxu0 %v19393_v9  ;;  %v1108_v12 = vld [vmem:[#allocation3 + $0x6c] sm:$0xf] }
  0x65   :  { %1097 = vst.msk [vmem:[#allocation3 + $0x58] sm:$0xf] %vm1046_vm3, %v522_v42  ;;  %v1197_v60 = vsel %vm14406_vm2, %v761_v59, %v1196_v37  ;;  %v531_v48 = vrot.slane %v14864_v53, 4  ;;  %v1102_v6 = vsel %vm14698_vm5, %v530_v47, %v1101_v32  ;;  %v15015_v1 = vpack.c.bf16 %v191_v43, %v191_v43  ;;  %1348 = vrot.lane.b32.xlu0 %v14978_v39, %s14189_s23  ;;  %v186_v47 = vld [vmem:[%s19382_s0 + $0x140] sm:$0xff]  ;;  %v193_v37 = vld [vmem:[%s19382_s0 + $0x178] sm:$0xff] }
  0x66   :  { %v604_v4 = vshll.u32 %v14593_v5, 16  ;;  %v15020_v19 = vpack.c.bf16 %v184_v23, %v184_v23  ;;  %1198 = vst [vmem:[#allocation3 + $0x11c] sm:$0x1] %v1197_v60  ;;  %v771_v7 = vshrl.u32 %v15005_v40, 16  ;;  %v774_v2 = vshll.u32 %v15005_v40, 16  ;;  %4553 = vmatmul.mubr.bf16.vlgmr.msra.gmra.mrb[0].mxu0 %v13507_v30  ;;  %1358 = vrot.lane.b32.xlu1 %v14919_v3, %s14189_s23 }
  0x67   :  { %1103 = vst [vmem:[#allocation3 + $0x60] sm:$0xf] %v1102_v6  ;;  %v593_v53 = vshrl.u32 %v14729_v24, 16  ;;  %v539_v33 = vsel %vm14762_vm7, %v531_v48, %v538_v14  ;;  %v788_v0 = vshrl.u32 %v15015_v1, 16  ;;  %v791_v46 = vshll.u32 %v15015_v1, 16  ;;  %4810 = vmatpush1.bf16.msra.mxu0 %v13508_v36  ;;  %v13515_v14 = vld [vmem:[%s19383_s1 + $0x88] sm:$0xff]  }
  0x68   :  { %v564_v25 = vor.u32 %v562_v56, %v14996_v15  ;;  %v596_v30 = vshll.u32 %v14729_v24, 16  ;;  %v610_v31 = vshrl.u32 %v14771_v49, 16  ;;  %v773_v23 = vrot.slane %v771_v7, 7  ;;  %1104 = vst.msk [vmem:[#allocation3 + $0x64] sm:$0xf] %vm1046_vm3, %v539_v33  ;;  %4811 = vmatprep.subr.bf16.mxu0 %v19393_v9 }
  0x69   :  { %v15045_v59 = vor.u32 %v579_v63, %v14998_v35  ;;  %v790_v24 = vrot.slane %v788_v0, 7  ;;  %v1210_v56 = vld [vmem:[#allocation3 + $0x134] sm:$0x1]  ;;  %v548_v42 = vrot.slane %v14878_v52, 4  ;;  %v1109_v32 = vsel %vm14698_vm5, %v547_v20, %v1108_v12  ;;  %1352 = vrot.lane.b32.xlu0 %v15020_v19, %s14189_s23  ;;  %v1115_v7 = vld [vmem:[#allocation3 + $0x78] sm:$0xf] }
  0x6a   :  { %v15055_v43 = vpack.c.bf16 %v186_v47, %v186_v47  ;;  %v15057_v63 = vor.u32 %v774_v2, %v773_v23  ;;  %v778_v36 = vrot.slane %v773_v23, 4  ;;  %1110 = vst [vmem:[#allocation3 + $0x6c] sm:$0xf] %v1109_v32  ;;  %v15059_v60 = vpack.c.bf16 %v193_v37, %v193_v37  ;;  %v188_v52 = vld [vmem:[%s19382_s0 + $0x150] sm:$0xff]  ;;  %v195_v2 = vld [vmem:[%s19382_s0 + $0x188] sm:$0xff]  ;;  %1362 = vrot.lane.b32.xlu1 %v15005_v40, %s14189_s23 }
  0x6b   :  { %v15061_v58 = vrot.slane %v593_v53, 7  ;;  %v15066_v48 = vor.u32 %v791_v46, %v790_v24  ;;  %v795_v20 = vrot.slane %v790_v24, 4  ;;  %v556_v6 = vsel %vm14762_vm7, %v548_v42, %v14955_v29  ;;  %4812 = vmatpush1.bf16.msra.mxu0 %v13515_v14  ;;  %v13522_v53 = vld [vmem:[%s19383_s1 + $0x90] sm:$0xff]   ;;  %v1217_v23 = vld [vmem:[#allocation3 + $0x140] sm:$0x1]  ;;  %v13529_v42 = vld [vmem:[%s19383_s1 + $0x98] sm:$0xff]  }
  0x6c   :  { %v621_v12 = vshll.u32 %v14626_v45, 16  ;;  %v1204_v47 = vsel %vm14406_vm2, %v778_v36, %v1203_v57  ;;  %1111 = vst.msk [vmem:[#allocation3 + $0x70] sm:$0xf] %vm1046_vm3, %v556_v6  ;;  %v805_v33 = vshrl.u32 %v15059_v60, 16  ;;  %v808_v29 = vshll.u32 %v15059_v60, 16  ;;  %4813 = vmatprep.subr.bf16.mxu0 %v19393_v9 }
  0x6d   :  { %v15083_v0 = vrot.slane %v610_v31, 7  ;;  %v613_v46 = vshll.u32 %v14771_v49, 16  ;;  %1205 = vst [vmem:[#allocation3 + $0x128] sm:$0x1] %v1204_v47  ;;  %v1211_v45 = vsel %vm14406_vm2, %v795_v20, %v1210_v56  ;;  %v565_v37 = vrot.slane %v14996_v15, 4  ;;  %1356 = vrot.lane.b32.xlu0 %v15055_v43, %s14189_s23  ;;  %v190_v49 = vld [vmem:[%s19382_s0 + $0x160] sm:$0xff] }
  0x6e   :  { %v15094_v14 = vpack.c.bf16 %v188_v52, %v188_v52  ;;  %1212 = vst [vmem:[#allocation3 + $0x134] sm:$0x1] %v1211_v45  ;;  %v807_v31 = vrot.slane %v805_v33, 7  ;;  %v1116_v3 = vsel %vm14698_vm5, %v564_v25, %v1115_v7  ;;  %v15101_v57 = vpack.c.bf16 %v195_v2, %v195_v2  ;;  %v1122_v56 = vld [vmem:[#allocation3 + $0x84] sm:$0xf]  ;;  %1366 = vrot.lane.b32.xlu1 %v15015_v1, %s14189_s23 }
  0x6f   :  { %v589_v15 = vor.u32 %v587_v22, %v14619_v41  ;;  %v573_v24 = vsel %vm14762_vm7, %v565_v37, %v14974_v34  ;;  %1117 = vst [vmem:[#allocation3 + $0x78] sm:$0xf] %v1116_v3  ;;  %4814 = vmatpush1.bf16.msra.mxu0 %v13522_v53  ;;  %v197_v41 = vld [vmem:[%s19382_s0 + $0x198] sm:$0xff]  ;;  %v598_v22 = vor.u32 %v596_v30, %v15061_v58  ;;  %v638_v34 = vshll.u32 %v14659_v51, 16  ;;  %v192_v30 = vld [vmem:[%s19382_s0 + $0x170] sm:$0xff] }
  0x70   :  { %v15112_v32 = vor.u32 %v808_v29, %v807_v31  ;;  %v812_v25 = vrot.slane %v807_v31, 4  ;;  %1118 = vst.msk [vmem:[#allocation3 + $0x7c] sm:$0xf] %vm1046_vm3, %v573_v24  ;;  %v822_v36 = vshrl.u32 %v15101_v57, 16  ;;  %v825_v61 = vshll.u32 %v15101_v57, 16  ;;  %4815 = vmatprep.subr.bf16.mxu0 %v19393_v9  ;;  %v13550_v51 = vld [vmem:[%s19383_s1 + $0xb0] sm:$0xff]  }
  0x71   :  { %v627_v52 = vshrl.u32 %v14808_v13, 16  ;;  %v15126_v20 = vpack.c.bf16 %v190_v49, %v190_v49  ;;  %1360 = vrot.lane.b32.xlu0 %v15094_v14, %s14189_s23  ;;  %v582_v2 = vrot.slane %v14998_v35, 4  ;;  %v1123_v40 = vsel %vm14698_vm5, %v15045_v59, %v1122_v56  ;;  %v1224_v33 = vld [vmem:[#allocation3 + $0x14c] sm:$0x1]  ;;  %v1129_v45 = vld [vmem:[#allocation3 + $0x90] sm:$0xf] }
  0x72   :  { %v1218_v6 = vsel %vm14406_vm2, %v812_v25, %v1217_v23  ;;  %v824_v7 = vrot.slane %v822_v36, 7  ;;  %v606_v53 = vor.u32 %v604_v4, %v14624_v44  ;;  %v623_v47 = vor.u32 %v621_v12, %v14657_v21  ;;  %1124 = vst [vmem:[#allocation3 + $0x84] sm:$0xf] %v1123_v40  ;;  %v13536_v35 = vld [vmem:[%s19383_s1 + $0xa0] sm:$0xff]   ;;  %v199_v44 = vld [vmem:[%s19382_s0 + $0x1a8] sm:$0xff]  ;;  %1370 = vrot.lane.b32.xlu1 %v15059_v60, %s14189_s23 }
  0x73   :  { %1219 = vst [vmem:[#allocation3 + $0x140] sm:$0x1] %v1218_v6  ;;  %v15143_v29 = vpack.c.bf16 %v197_v41, %v197_v41  ;;  %v615_v37 = vor.u32 %v613_v46, %v15083_v0  ;;  %4816 = vmatpush1.bf16.msra.mxu0 %v13529_v42  ;;  %v590_v5 = vsel %vm14762_vm7, %v582_v2, %v589_v15  ;;  %v15156_v21 = vrot.slane %v627_v52, 7  ;;  %v1136_v31 = vld [vmem:[#allocation3 + $0x9c] sm:$0xf]  ;;  %v194_v15 = vld [vmem:[%s19382_s0 + $0x180] sm:$0xff] }
  0x74   :  { %v15149_v59 = vor.u32 %v825_v61, %v824_v7  ;;  %v829_v49 = vrot.slane %v824_v7, 4  ;;  %v630_v4 = vshll.u32 %v14808_v13, 16  ;;  %4817 = vmatprep.subr.bf16.mxu0 %v19393_v9  ;;  %1125 = vst.msk [vmem:[#allocation3 + $0x88] sm:$0xf] %vm1046_vm3, %v590_v5  ;;  %v15167_v23 = vpack.c.bf16 %v192_v30, %v192_v30  ;;  %v1231_v25 = vld [vmem:[#allocation3 + $0x158] sm:$0x1] }
  0x75   :  { %v839_v12 = vshrl.u32 %v15143_v29, 16  ;;  %v842_v46 = vshll.u32 %v15143_v29, 16  ;;  %1364 = vrot.lane.b32.xlu0 %v15126_v20, %s14189_s23  ;;  %v599_v3 = vrot.slane %v15061_v58, 4  ;;  %v1130_v1 = vsel %vm14698_vm5, %v598_v22, %v1129_v45  ;;  %v13543_v58 = vld [vmem:[%s19383_s1 + $0xa8] sm:$0xff]   ;;  %v201_v22 = vld [vmem:[%s19382_s0 + $0x1b8] sm:$0xff] }
  0x76   :  { %v1225_v13 = vsel %vm14406_vm2, %v829_v49, %v1224_v33  ;;  %1131 = vst [vmem:[#allocation3 + $0x90] sm:$0xf] %v1130_v1  ;;  %v15177_v56 = vpack.c.bf16 %v199_v44, %v199_v44  ;;  %v655_v42 = vshll.u32 %v14702_v17, 16  ;;  %v616_v61 = vrot.slane %v15083_v0, 4  ;;  %v196_v33 = vld [vmem:[%s19382_s0 + $0x190] sm:$0xff]  ;;  %1374 = vrot.lane.b32.xlu1 %v15101_v57, %s14189_s23  ;;  %v205_v17 = vld [vmem:[%s19382_s0 + $0x1d8] sm:$0xff] }
  0x77   :  { %1226 = vst [vmem:[#allocation3 + $0x14c] sm:$0x1] %v1225_v13  ;;  %v841_v24 = vrot.slane %v839_v12, 7  ;;  %4818 = vmatpush1.bf16.msra.mxu0 %v13536_v35  ;;  %v607_v36 = vsel %vm14762_vm7, %v599_v3, %v606_v53  ;;  %v1137_v41 = vsel %vm14698_vm5, %v615_v37, %v1136_v31  ;;  %v644_v0 = vshrl.u32 %v14849_v50, 16  ;;  %v203_v31 = vld [vmem:[%s19382_s0 + $0x1c8] sm:$0xff]  ;;  %v198_v3 = vld [vmem:[%s19382_s0 + $0x1a0] sm:$0xff] }
  0x78   :  { %4819 = vmatprep.subr.bf16.mxu0 %v19393_v9  ;;  %1132 = vst.msk [vmem:[#allocation3 + $0x94] sm:$0xf] %vm1046_vm3, %v607_v36  ;;  %v856_v30 = vshrl.u32 %v15177_v56, 16  ;;  %1138 = vst [vmem:[#allocation3 + $0x9c] sm:$0xf] %v1137_v41  ;;  %v15201_v7 = vpack.c.bf16 %v194_v15, %v194_v15  ;;  %v859_v2 = vshll.u32 %v15177_v56, 16  ;;  %v624_v60 = vsel %vm14762_vm7, %v616_v61, %v623_v47 }
  0x79   :  { %v15193_v52 = vor.u32 %v842_v46, %v841_v24  ;;  %v846_v6 = vrot.slane %v841_v24, 4  ;;  %1368 = vrot.lane.b32.xlu0 %v15167_v23, %s14189_s23  ;;  %v632_v40 = vor.u32 %v630_v4, %v15156_v21  ;;  %1139 = vst.msk [vmem:[#allocation3 + $0xa0] sm:$0xf] %vm1046_vm3, %v624_v60  ;;  %v15213_v37 = vpack.c.bf16 %v201_v22, %v201_v22  ;;  %v1238_v47 = vld [vmem:[#allocation3 + $0x164] sm:$0x1] }
  0x7a   :  { %v858_v45 = vrot.slane %v856_v30, 7  ;;  %v640_v35 = vor.u32 %v638_v34, %v14695_v16  ;;  %v1143_v16 = vld [vmem:[#allocation3 + $0xa8] sm:$0xf]  ;;  %v646_v34 = vrot.slane %v644_v0, 7  ;;  %v647_v12 = vshll.u32 %v14849_v50, 16  ;;  %1378 = vrot.lane.b32.xlu1 %v15143_v29, %s14189_s23  ;;  %v200_v30 = vld [vmem:[%s19382_s0 + $0x1b0] sm:$0xff] }
  0x7b   :  { %v1232_v53 = vsel %vm14406_vm2, %v846_v6, %v1231_v25  ;;  %4820 = vmatpush1.bf16.msra.mxu0 %v13543_v58  ;;  %v873_v44 = vshrl.u32 %v15213_v37, 16  ;;  %v876_v4 = vshll.u32 %v15213_v37, 16  ;;  %v15231_v57 = vpack.c.bf16 %v196_v33, %v196_v33  ;;  %v1245_v24 = vld [vmem:[#allocation3 + $0x170] sm:$0x1]  ;;  %v1150_v33 = vld [vmem:[#allocation3 + $0xb4] sm:$0xf] }
  0x7c   :  { %1233 = vst [vmem:[#allocation3 + $0x158] sm:$0x1] %v1232_v53  ;;  %v15220_v49 = vor.u32 %v859_v2, %v858_v45  ;;  %v863_v5 = vrot.slane %v858_v45, 4  ;;  %4821 = vmatprep.subr.bf16.mxu0 %v19393_v9  ;;  %v633_v46 = vrot.slane %v15156_v21, 4  ;;  %v1144_v50 = vsel %vm14698_vm5, %v632_v40, %v1143_v16  ;;  %v1252_v2 = vld [vmem:[#allocation3 + $0x17c] sm:$0x1] }
  0x7d   :  { %1372 = vrot.lane.b32.xlu0 %v15201_v7, %s14189_s23  ;;  %v875_v1 = vrot.slane %v873_v44, 7  ;;  %v12773_v15 = vpack.c.bf16 %v203_v31, %v203_v31  ;;  %1145 = vst [vmem:[#allocation3 + $0xa8] sm:$0xf] %v1144_v50  ;;  %v649_v41 = vor.u32 %v647_v12, %v646_v34  ;;  %v15254_v22 = vpack.c.bf16 %v198_v3, %v198_v3  ;;  %v204_v12 = vld [vmem:[%s19382_s0 + $0x1d0] sm:$0xff]  ;;  %v207_v3 = vld [vmem:[%s19382_s0 + $0x1e8] sm:$0xff] }
  0x7e   :  { %v1239_v13 = vsel %vm14406_vm2, %v863_v5, %v1238_v47  ;;  %v641_v21 = vsel %vm14762_vm7, %v633_v46, %v640_v35  ;;  %v657_v6 = vor.u32 %v655_v42, %v14754_v26  ;;  %1382 = vrot.lane.b32.xlu1 %v15177_v56, %s14189_s23  ;;  %v650_v53 = vrot.slane %v646_v34, 4  ;;  %v202_v42 = vld [vmem:[%s19382_s0 + $0x1c0] sm:$0xff] }
  0x7f   :  { %1240 = vst [vmem:[#allocation3 + $0x164] sm:$0x1] %v1239_v13  ;;  %4822 = vmatpush1.bf16.msra.mxu0 %v13550_v51  ;;  %v15248_v25 = vor.u32 %v876_v4, %v875_v1  ;;  %v880_v58 = vrot.slane %v875_v1, 4  ;;  %1146 = vst.msk [vmem:[#allocation3 + $0xac] sm:$0xf] %vm1046_vm3, %v641_v21  ;;  %v890_v36 = vshrl.u32 %v12773_v15, 16  ;;  %v15273_v26 = vpack.c.bf16 %v200_v30, %v200_v30  ;;  %v1281_v30 = vpop.permute.xlu1 %1280 }
  0x80   :  { %v893_v61 = vshll.u32 %v12773_v15, 16  ;;  %4823 = vmatprep.subr.bf16.mxu0 %v19393_v9  ;;  %v1151_v56 = vsel %vm14698_vm5, %v649_v41, %v1150_v33  ;;  %v12775_v45 = vpack.c.bf16 %v205_v17, %v205_v17  ;;  %v658_v47 = vsel %vm14762_vm7, %v650_v53, %v657_v6  ;;  %v1259_v51 = vld [vmem:[#allocation3 + $0x188] sm:$0x1]  ;;  %1471 = vst.msk [vmem:[#allocation3 + $0x18] sm:$0xf] %vm1468_vm9, %v1281_v30 }
  0x81   :  { %1376 = vrot.lane.b32.xlu0 %v15231_v57, %s14189_s23  ;;  %v1246_v29 = vsel %vm14406_vm2, %v880_v58, %v1245_v24  ;;  %v892_v0 = vrot.slane %v890_v36, 7  ;;  %1152 = vst [vmem:[#allocation3 + $0xb4] sm:$0xf] %v1151_v56  ;;  %v678_v5 = vshrl.u32 %v14891_v27, 16  ;;  %1153 = vst.msk [vmem:[#allocation3 + $0xb8] sm:$0xf] %vm1046_vm3, %v658_v47  ;;  %v15290_v16 = vpack.c.bf16 %v202_v42, %v202_v42 }
  0x82   :  { %1247 = vst [vmem:[#allocation3 + $0x170] sm:$0x1] %v1246_v29  ;;  %v907_v44 = vshrl.u32 %v12775_v45, 16  ;;  %v910_v4 = vshll.u32 %v12775_v45, 16  ;;  %1386 = vrot.lane.b32.xlu1 %v15213_v37, %s14189_s23  ;;  %v681_v13 = vshll.u32 %v14891_v27, 16  ;;  %v13557_v37 = vld [vmem:[%s19383_s1 + $0xb8] sm:$0xff]   ;;  %v15309_v24 = vpack.c.bf16 %v204_v12, %v204_v12  ;;  %v1277_v29 = vpop.permute.xlu0 %1276 }
  0x83   :  { %v15266_v60 = vor.u32 %v893_v61, %v892_v0  ;;  %v897_v40 = vrot.slane %v892_v0, 4  ;;  %v680_v1 = vrot.slane %v678_v5, 7  ;;  %v12777_v27 = vpack.c.bf16 %v207_v3, %v207_v3  ;;  %4824 = vmatpush1.bf16.msra.mxu0 %v13557_v37  ;;  %v1266_v0 = vld [vmem:[#allocation3 + $0x194] sm:$0x1]  ;;  %1469 = vst.msk [vmem:[#allocation3 + $0xc] sm:$0xf] %vm1468_vm9, %v1277_v29  ;;  %v1283_v47 = vpop.permute.xlu1 %1282 }
  0x84   :  { %v909_v34 = vrot.slane %v907_v44, 7  ;;  %4825 = vmatprep.subr.bf16.mxu0 %v19393_v9  ;;  %v695_v61 = vshrl.u32 %v14932_v38, 16  ;;  %v1164_v33 = vld [vmem:[#allocation3 + $0xe4] sm:$0xf]  ;;  %v698_v42 = vshll.u32 %v14932_v38, 16 }
  0x85   :  { %1380 = vrot.lane.b32.xlu0 %v15254_v22, %s14189_s23  ;;  %v1253_v35 = vsel %vm14406_vm2, %v897_v40, %v1252_v2  ;;  %v924_v21 = vshrl.u32 %v12777_v27, 16  ;;  %v927_v58 = vshll.u32 %v12777_v27, 16  ;;  %v683_v36 = vor.u32 %v681_v13, %v680_v1  ;;  %1472 = vst.msk [vmem:[#allocation3 + $0x1c] sm:$0xf] %vm1468_vm9, %v1283_v47  ;;  %v1171_v13 = vld [vmem:[#allocation3 + $0xf0] sm:$0xf] }
  0x86   :  { %1254 = vst [vmem:[#allocation3 + $0x17c] sm:$0x1] %v1253_v35  ;;  %v15295_v46 = vor.u32 %v910_v4, %v909_v34  ;;  %v914_v31 = vrot.slane %v909_v34, 4  ;;  %1390 = vrot.lane.b32.xlu1 %v12773_v15, %s14189_s23  ;;  %v206_v15 = vld [vmem:[%s19382_s0 + $0x1e0] sm:$0xff]  ;;  %v684_v53 = vrot.slane %v680_v1, 4  ;;  %v697_v17 = vrot.slane %v695_v61, 7  ;;  %v1279_v35 = vpop.permute.xlu0 %1278 }
  0x87   :  { %v926_v41 = vrot.slane %v924_v21, 7  ;;  %v15319_v6 = vpack.c.bf16 %v206_v15, %v206_v15  ;;  %1470 = vst.msk [vmem:[#allocation3 + $0x10] sm:$0xf] %vm1468_vm9, %v1279_v35  ;;  %v13510_v38 = vld [vmem:[#allocation3 + $0x14] ss:$0 sps:$4 sm:$0x11]   ;;  %v1287_v34 = vpop.permute.xlu1 %1286 }
  0x88   :  { %v1260_v50 = vsel %vm14406_vm2, %v914_v31, %v1259_v51  ;;  %v692_v5 = vsel %vm14762_vm7, %v684_v53, %v14816_v10  ;;  %v13513_v44 = vld [vmem:[#allocation3 + $0x20] ss:$0 sps:$4 sm:$0x11]   ;;  %v700_v4 = vor.u32 %v698_v42, %v697_v17  ;;  %v712_v51 = vshrl.u32 %v14978_v39, 16  ;;  %1474 = vst.msk [vmem:[#allocation3 + $0x28] sm:$0xf] %vm1468_vm9, %v1287_v34 }
  0x89   :  { %1384 = vrot.lane.b32.xlu0 %v15273_v26, %s14189_s23  ;;  %1261 = vst [vmem:[#allocation3 + $0x188] sm:$0x1] %v1260_v50  ;;  %v15323_v2 = vor.u32 %v927_v58, %v926_v41  ;;  %v931_v40 = vrot.slane %v926_v41, 4  ;;  %1167 = vst.msk [vmem:[#allocation3 + $0xe8] sm:$0xf] %vm1046_vm3, %v692_v5  ;;  %v13564_v10 = vld [vmem:[%s19383_s1 + $0xc0] sm:$0xff]  }
  0x8a   :  { %1394 = vrot.lane.b32.xlu1 %v12775_v45, %s14189_s23  ;;  %v1165_v45 = vsel %vm14698_vm5, %v683_v36, %v1164_v33  ;;  %v1285_v12 = vpop.permute.xlu0 %1284  ;;  %v701_v31 = vrot.slane %v697_v17, 4  ;;  %v2178_v37 = vrot.slane %v13510_v38, 1  ;;  %v714_v3 = vrot.slane %v712_v51, 7  ;;  %v13517_v21 = vld [vmem:[#allocation3 + $0x2c] ss:$0 sps:$4 sm:$0x11]   ;;  %4826 = vmatpush1.bf16.msra.mxu0 %v13564_v10 }
  0x8b   :  { %v1267_v56 = vsel %vm14406_vm2, %v931_v40, %v1266_v0  ;;  %1166 = vst [vmem:[#allocation3 + $0xe4] sm:$0xf] %v1165_v45  ;;  %1473 = vst.msk [vmem:[#allocation3 + $0x24] sm:$0xf] %vm1468_vm9, %v1285_v12  ;;  %v715_v1 = vshll.u32 %v14978_v39, 16  ;;  %v1172_v50 = vsel %vm14698_vm5, %v700_v4, %v1171_v13  ;;  %v1291_v15 = vpop.permute.xlu1 %1290  ;;  %v2181_v61 = vrot.slane %v13513_v44, 1  ;;  %4827 = vmatprep.subr.bf16.mxu0 %v19393_v9 }
  0x8c   :  { %1268 = vst [vmem:[#allocation3 + $0x194] sm:$0x1] %v1267_v56  ;;  %v709_v58 = vsel %vm14762_vm7, %v701_v31, %v14857_v62  ;;  %1173 = vst [vmem:[#allocation3 + $0xf0] sm:$0xf] %v1172_v50  ;;  %v13512_v36 = vld [vmem:[#allocation3 + $0x18] sm:$0xfe]  }
  0x8d   :  { %1388 = vrot.lane.b32.xlu0 %v15290_v16, %s14189_s23  ;;  %1476 = vst.msk [vmem:[#allocation3 + $0x34] sm:$0xf] %vm1468_vm9, %v1291_v15  ;;  %v2180_v30 = vrot.slane %v13512_v36, 1  ;;  %v717_v0 = vor.u32 %v715_v1, %v714_v3  ;;  %v729_v40 = vshrl.u32 %v15020_v19, 16  ;;  %v2184_v56 = vrot.slane %v13517_v21, 1  ;;  %v13514_v13 = vld [vmem:[#allocation3 + $0x18] sm:$0xff]  }
  0x8e   :  { %1398 = vrot.lane.b32.xlu1 %v12777_v27, %s14189_s23  ;;  %v13509_v27 = vld [vmem:[#allocation3 + $0xc] sm:$0xfe]   ;;  %v1289_v41 = vpop.permute.xlu0 %1288  ;;  %1174 = vst.msk [vmem:[#allocation3 + $0xf4] sm:$0xf] %vm1046_vm3, %v709_v58  ;;  %v718_v45 = vrot.slane %v714_v3, 4  ;;  %v732_v38 = vshll.u32 %v15020_v19, 16 }
  0x8f   :  { %v2177_v39 = vrot.slane %v13509_v27, 1  ;;  %1475 = vst.msk [vmem:[#allocation3 + $0x30] sm:$0xf] %vm1468_vm9, %v1289_v41  ;;  %v13511_v29 = vld [vmem:[#allocation3 + $0xc] sm:$0xff]   ;;  %v1295_v53 = vpop.permute.xlu1 %1294  ;;  %v2182_v33 = vsel %vm2173_vm8, %v2180_v30, %v2181_v61  ;;  %v1178_v35 = vld [vmem:[#allocation3 + $0xfc] sm:$0xf] }
  0x90   :  { %1478 = vst.msk [vmem:[#allocation3 + $0x40] sm:$0xf] %vm1468_vm9, %v1295_v53  ;;  %v731_v5 = vrot.slane %v729_v40, 7  ;;  %v1179_v44 = vsel %vm14698_vm5, %v717_v0, %v1178_v35  ;;  %v726_v51 = vsel %vm14762_vm7, %v718_v45, %v14924_v54  ;;  %v13520_v12 = vld [vmem:[#allocation3 + $0x38] ss:$0 sps:$4 sm:$0x11]  }
  0x91   :  { %1392 = vrot.lane.b32.xlu0 %v15309_v24, %s14189_s23  ;;  %v2179_v62 = vsel %vm2173_vm8, %v2177_v39, %v2178_v37  ;;  %1180 = vst [vmem:[#allocation3 + $0xfc] sm:$0xf] %v1179_v44  ;;  %1181 = vst.msk [vmem:[#allocation3 + $0x100] sm:$0xf] %vm1046_vm3, %v726_v51  ;;  %v746_v10 = vshrl.u32 %v15055_v43, 16  ;;  %v2187_v1 = vrot.slane %v13520_v12, 1 }
  0x92   :  { %4560 = vmatprep.mubr.bf16.mxu0 %v2179_v62  ;;  %v13516_v17 = vld [vmem:[#allocation3 + $0x24] sm:$0xfe]   ;;  %v1293_v42 = vpop.permute.xlu0 %1292  ;;  %v734_v19 = vor.u32 %v732_v38, %v731_v5  ;;  %v735_v27 = vrot.slane %v731_v5, 4  ;;  %v749_v36 = vshll.u32 %v15055_v43, 16  ;;  %v763_v43 = vshrl.u32 %v15094_v14, 16 }
  0x93   :  { %4561 = vmatmul.mubr.bf16.gmra.mrb[4].mxu0 %v13511_v29  ;;  %1477 = vst.msk [vmem:[#allocation3 + $0x3c] sm:$0xf] %vm1468_vm9, %v1293_v42  ;;  %v2183_v47 = vrot.slane %v13516_v17, 1  ;;  %v1299_v4 = vpop.permute.xlu1 %1298  ;;  %v13571_v50 = vld [vmem:[%s19383_s1 + $0xc8] sm:$0xff]   ;;  %v748_v58 = vrot.slane %v746_v10, 7 }
  0x94   :  { %4568 = vmatprep.mubr.bf16.mxu0 %v2182_v33  ;;  %1480 = vst.msk [vmem:[#allocation3 + $0x4c] sm:$0xf] %vm1468_vm9, %v1299_v4  ;;  %v1185_v15 = vld [vmem:[#allocation3 + $0x108] sm:$0xf]  ;;  %4828 = vmatpush1.bf16.msra.mxu0 %v13571_v50  ;;  %v743_v29 = vsel %vm14762_vm7, %v735_v27, %v14964_v55  ;;  %v765_v35 = vrot.slane %v763_v43, 7 }
  0x95   :  { %1396 = vrot.lane.b32.xlu0 %v15319_v6, %s14189_s23  ;;  %v2185_v37 = vsel %vm2173_vm8, %v2183_v47, %v2184_v56  ;;  %v1186_v61 = vsel %vm14698_vm5, %v734_v19, %v1185_v15  ;;  %v13524_v41 = vld [vmem:[#allocation3 + $0x44] ss:$0 sps:$4 sm:$0x11]   ;;  %1188 = vst.msk [vmem:[#allocation3 + $0x10c] sm:$0xf] %vm1046_vm3, %v743_v29  ;;  %4829 = vmatprep.subr.bf16.mxu0 %v19393_v9  ;;  %v752_v42 = vrot.slane %v748_v58, 4 }
  0x96   :  { %v1297_v34 = vpop.permute.xlu0 %1296  ;;  %v13519_v31 = vld [vmem:[#allocation3 + $0x30] sm:$0xfe]   ;;  %1187 = vst [vmem:[#allocation3 + $0x108] sm:$0xf] %v1186_v61  ;;  %v751_v0 = vor.u32 %v749_v36, %v748_v58  ;;  %v13518_v62 = vld [vmem:[#allocation3 + $0x24] sm:$0xff]   ;;  %v2190_v17 = vrot.slane %v13524_v41, 1 }
  0x97   :  { %1479 = vst.msk [vmem:[#allocation3 + $0x48] sm:$0xf] %vm1468_vm9, %v1297_v34  ;;  %v1303_v3 = vpop.permute.xlu1 %1302  ;;  %v2186_v21 = vrot.slane %v13519_v31, 1  ;;  %v1192_v56 = vld [vmem:[#allocation3 + $0x114] sm:$0xf]  ;;  %v766_v47 = vshll.u32 %v15094_v14, 16  ;;  %v760_v44 = vsel %vm14762_vm7, %v752_v42, %v14987_v11 }
  0x98   :  { %1482 = vst.msk [vmem:[#allocation3 + $0x58] sm:$0xf] %vm1468_vm9, %v1303_v3  ;;  %v1193_v5 = vsel %vm14698_vm5, %v751_v0, %v1192_v56  ;;  %v13527_v51 = vld [vmem:[#allocation3 + $0x50] ss:$0 sps:$4 sm:$0x11]   ;;  %v780_v14 = vshrl.u32 %v15126_v20, 16 }
  0x99   :  { %v2188_v53 = vsel %vm2173_vm8, %v2186_v21, %v2187_v1  ;;  %1194 = vst [vmem:[#allocation3 + $0x114] sm:$0xf] %v1193_v5  ;;  %1195 = vst.msk [vmem:[#allocation3 + $0x118] sm:$0xf] %vm1046_vm3, %v760_v44  ;;  %v13521_v34 = vld [vmem:[#allocation3 + $0x30] sm:$0xff]   ;;  %v768_v12 = vor.u32 %v766_v47, %v765_v35  ;;  %v783_v1 = vshll.u32 %v15126_v20, 16 }
  0x9a   :  { %v1301_v54 = vpop.permute.xlu0 %1300  ;;  %v13523_v40 = vld [vmem:[#allocation3 + $0x3c] sm:$0xfe]   ;;  %v2193_v15 = vrot.slane %v13527_v51, 1  ;;  %v13531_v20 = vld [vmem:[#allocation3 + $0x5c] ss:$0 sps:$4 sm:$0x11]  }
  0x9b   :  { %4569 = vmatmul.mubr.bf16.gmra.mrb[8].mxu0 %v13514_v13  ;;  %1481 = vst.msk [vmem:[#allocation3 + $0x54] sm:$0xf] %vm1468_vm9, %v1301_v54  ;;  %v1307_v39 = vpop.permute.xlu1 %1306  ;;  %v2189_v45 = vrot.slane %v13523_v40, 1  ;;  %v13578_v13 = vld [vmem:[%s19383_s1 + $0xd0] sm:$0xff]   ;;  %v1199_v3 = vld [vmem:[#allocation3 + $0x120] sm:$0xf] }
  0x9c   :  { %4576 = vmatprep.mubr.bf16.mxu0 %v2185_v37  ;;  %1484 = vst.msk [vmem:[#allocation3 + $0x64] sm:$0xf] %vm1468_vm9, %v1307_v39  ;;  %v769_v37 = vrot.slane %v765_v35, 4  ;;  %v782_v54 = vrot.slane %v780_v14, 7  ;;  %v1200_v50 = vsel %vm14698_vm5, %v768_v12, %v1199_v3  ;;  %4830 = vmatpush1.bf16.msra.mxu0 %v13578_v13  ;;  %v797_v61 = vshrl.u32 %v15167_v23, 16  ;;  %v13525_v29 = vld [vmem:[#allocation3 + $0x3c] sm:$0xff]  }
  0x9d   :  { %v2191_v10 = vsel %vm2173_vm8, %v2189_v45, %v2190_v17  ;;  %1201 = vst [vmem:[#allocation3 + $0x120] sm:$0xf] %v1200_v50  ;;  %4831 = vmatprep.subr.bf16.mxu0 %v19393_v9  ;;  %v2196_v0 = vrot.slane %v13531_v20, 1  ;;  %v13534_v42 = vld [vmem:[#allocation3 + $0x68] ss:$0 sps:$4 sm:$0x11]  }
  0x9e   :  { %v13526_v19 = vld [vmem:[#allocation3 + $0x48] sm:$0xfe]   ;;  %v777_v58 = vsel %vm14762_vm7, %v769_v37, %v15057_v63  ;;  %v785_v41 = vor.u32 %v783_v1, %v782_v54  ;;  %v786_v40 = vrot.slane %v782_v54, 4  ;;  %v1213_v14 = vld [vmem:[#allocation3 + $0x138] sm:$0xf] }
  0x9f   :  { %v1311_v33 = vpop.permute.xlu1 %1310  ;;  %v2192_v27 = vrot.slane %v13526_v19, 1  ;;  %1202 = vst.msk [vmem:[#allocation3 + $0x124] sm:$0xf] %vm1046_vm3, %v777_v58  ;;  %v13528_v47 = vld [vmem:[#allocation3 + $0x48] sm:$0xff]   ;;  %v1220_v20 = vld [vmem:[#allocation3 + $0x144] sm:$0xf] }
  0xa0   :  { %1486 = vst.msk [vmem:[#allocation3 + $0x70] sm:$0xf] %vm1468_vm9, %v1311_v33  ;;  %v799_v33 = vrot.slane %v797_v61, 7  ;;  %v794_v45 = vsel %vm14762_vm7, %v786_v40, %v15066_v48  ;;  %v2199_v48 = vrot.slane %v13534_v42, 1  ;;  %v848_v40 = vshrl.u32 %v15254_v22, 16  ;;  %v13592_v42 = vld [vmem:[%s19383_s1 + $0xe0] sm:$0xff]  }
  0xa1   :  { %1209 = vst.msk [vmem:[#allocation3 + $0x130] sm:$0xf] %vm1046_vm3, %v794_v45  ;;  %v13538_v13 = vld [vmem:[#allocation3 + $0x74] ss:$0 sps:$4 sm:$0x11]  }
  0xa2   :  { %v13530_v39 = vld [vmem:[#allocation3 + $0x54] sm:$0xfe]   ;;  %v803_v12 = vrot.slane %v799_v33, 4  ;;  %v2202_v58 = vrot.slane %v13538_v13, 1  ;;  %v1227_v45 = vld [vmem:[#allocation3 + $0x150] sm:$0xf] }
  0xa3   :  { %4577 = vmatmul.mubr.bf16.gmra.mrb[12].mxu0 %v13518_v62  ;;  %v1206_v62 = vld [vmem:[#allocation3 + $0x12c] sm:$0xf] }
  0xa4   :  { %4584 = vmatprep.mubr.bf16.mxu0 %v2188_v53  ;;  %v2195_v53 = vrot.slane %v13530_v39, 1  ;;  %v1207_v17 = vsel %vm14698_vm5, %v785_v41, %v1206_v62  ;;  %v811_v3 = vsel %vm14762_vm7, %v803_v12, %v15112_v32  ;;  %v834_v39 = vshll.u32 %v15231_v57, 16 }
  0xa5   :  { %1208 = vst [vmem:[#allocation3 + $0x12c] sm:$0xf] %v1207_v17  ;;  %1216 = vst.msk [vmem:[#allocation3 + $0x13c] sm:$0xf] %vm1046_vm3, %v811_v3  ;;  %v868_v3 = vshll.u32 %v15273_v26, 16 }
  0xa6   :  { %v2197_v44 = vsel %vm2173_vm8, %v2195_v53, %v2196_v0  ;;  %v13541_v0 = vld [vmem:[#allocation3 + $0x80] ss:$0 sps:$4 sm:$0x11]  }
  0xa7   :  { %v2205_v17 = vrot.slane %v13541_v0, 1  ;;  %v13552_v0 = vld [vmem:[#allocation3 + $0xa4] ss:$0 sps:$4 sm:$0x11]  }
  0xab   :  { %4585 = vmatmul.mubr.bf16.gmra.mrb[16].mxu0 %v13521_v34  ;;  %v13585_v34 = vld [vmem:[%s19383_s1 + $0xd8] sm:$0xff]  }
  0xac   :  { %4592 = vmatprep.mubr.bf16.mxu0 %v2191_v10  ;;  %4832 = vmatpush1.bf16.msra.mxu0 %v13585_v34  ;;  %v865_v34 = vshrl.u32 %v15273_v26, 16  ;;  %v882_v26 = vshrl.u32 %v15290_v16, 16 }
  0xad   :  { %4833 = vmatprep.subr.bf16.mxu0 %v19393_v9 }
  0xae   :  { %v1315_v38 = vpop.permute.xlu1 %1314 }
  0xaf   :  { %v1305_v30 = vpop.permute.xlu0 %1304  ;;  %1488 = vst.msk [vmem:[#allocation3 + $0x7c] sm:$0xf] %vm1468_vm9, %v1315_v38  ;;  %v814_v38 = vshrl.u32 %v15201_v7, 16 }
  0xb0   :  { %1483 = vst.msk [vmem:[#allocation3 + $0x60] sm:$0xf] %vm1468_vm9, %v1305_v30  ;;  %v2194_v30 = vsel %vm2173_vm8, %v2192_v27, %v2193_v15  ;;  %v831_v27 = vshrl.u32 %v15231_v57, 16  ;;  %4834 = vmatpush1.bf16.msra.mxu0 %v13592_v42  ;;  %v2214_v42 = vrot.slane %v13552_v0, 1  ;;  %v13613_v0 = vld [vmem:[%s19383_s1 + $0xf8] sm:$0xff]  }
  0xb1   :  { %v816_v19 = vrot.slane %v814_v38, 7  ;;  %4835 = vmatprep.subr.bf16.mxu0 %v19393_v9 }
  0xb2   :  { %v1319_v31 = vpop.permute.xlu1 %1318  ;;  %v833_v41 = vrot.slane %v831_v27, 7  ;;  %v13548_v27 = vld [vmem:[#allocation3 + $0x98] ss:$0 sps:$4 sm:$0x11]  }
  0xb3   :  { %v1309_v55 = vpop.permute.xlu0 %1308  ;;  %1490 = vst.msk [vmem:[#allocation3 + $0x88] sm:$0xf] %vm1468_vm9, %v1319_v31  ;;  %4593 = vmatmul.mubr.bf16.gmra.mrb[20].mxu0 %v13525_v29  ;;  %v817_v31 = vshll.u32 %v15201_v7, 16  ;;  %v13532_v7 = vld [vmem:[#allocation3 + $0x54] sm:$0xff]  }
  0xb4   :  { %1485 = vst.msk [vmem:[#allocation3 + $0x6c] sm:$0xf] %vm1468_vm9, %v1309_v55  ;;  %4600 = vmatprep.mubr.bf16.mxu0 %v2194_v30  ;;  %v800_v55 = vshll.u32 %v15167_v23, 16  ;;  %v836_v57 = vor.u32 %v834_v39, %v833_v41  ;;  %v1241_v39 = vld [vmem:[#allocation3 + $0x168] sm:$0xf] }
  0xb5   :  { %v819_v1 = vor.u32 %v817_v31, %v816_v19 }
  0xb6   :  { %v1323_v21 = vpop.permute.xlu1 %1322  ;;  %v802_v5 = vor.u32 %v800_v55, %v799_v33 }
  0xb7   :  { %v1313_v4 = vpop.permute.xlu0 %1312  ;;  %1492 = vst.msk [vmem:[#allocation3 + $0x94] sm:$0xf] %vm1468_vm9, %v1323_v21  ;;  %v13533_v23 = vld [vmem:[#allocation3 + $0x60] sm:$0xfe]   ;;  %v1221_v29 = vsel %vm14698_vm5, %v819_v1, %v1220_v20  ;;  %v2211_v20 = vrot.slane %v13548_v27, 1 }
  0xb8   :  { %1487 = vst.msk [vmem:[#allocation3 + $0x78] sm:$0xf] %vm1468_vm9, %v1313_v4  ;;  %v2198_v10 = vrot.slane %v13533_v23, 1  ;;  %1222 = vst [vmem:[#allocation3 + $0x144] sm:$0xf] %v1221_v29  ;;  %v13535_v53 = vld [vmem:[#allocation3 + $0x60] sm:$0xff]   ;;  %v1228_v23 = vsel %vm14698_vm5, %v836_v57, %v1227_v45 }
  0xb9   :  { %1229 = vst [vmem:[#allocation3 + $0x150] sm:$0xf] %v1228_v23  ;;  %v1248_v45 = vld [vmem:[#allocation3 + $0x174] sm:$0xf] }
  0xba   :  { %v2200_v15 = vsel %vm2173_vm8, %v2198_v10, %v2199_v48 }
  0xbb   :  { %v1317_v11 = vpop.permute.xlu0 %1316  ;;  %4601 = vmatmul.mubr.bf16.gmra.mrb[24].mxu0 %v13528_v47  ;;  %v13537_v50 = vld [vmem:[#allocation3 + $0x6c] sm:$0xfe]   ;;  %v850_v47 = vrot.slane %v848_v40, 7 }
  0xbc   :  { %1489 = vst.msk [vmem:[#allocation3 + $0x84] sm:$0xf] %vm1468_vm9, %v1317_v11  ;;  %v1327_v43 = vpop.permute.xlu1 %1326  ;;  %4608 = vmatprep.mubr.bf16.mxu0 %v2197_v44  ;;  %v1214_v11 = vsel %vm14698_vm5, %v802_v5, %v1213_v14  ;;  %v2201_v61 = vrot.slane %v13537_v50, 1  ;;  %v851_v5 = vshll.u32 %v15254_v22, 16  ;;  %v13539_v12 = vld [vmem:[#allocation3 + $0x6c] sm:$0xff]  }
  0xbd   :  { %1494 = vst.msk [vmem:[#allocation3 + $0xa0] sm:$0xf] %vm1468_vm9, %v1327_v43  ;;  %1215 = vst [vmem:[#allocation3 + $0x138] sm:$0xf] %v1214_v11  ;;  %v854_v31 = vrot.slane %v850_v47, 4 }
  0xbe   :  { %v2203_v33 = vsel %vm2173_vm8, %v2201_v61, %v2202_v58  ;;  %v853_v22 = vor.u32 %v851_v5, %v850_v47  ;;  %v1234_v11 = vld [vmem:[#allocation3 + $0x15c] sm:$0xf]  ;;  %v13599_v61 = vld [vmem:[%s19383_s1 + $0xe8] sm:$0xff]   ;;  %v902_v5 = vshll.u32 %v15309_v24, 16 }
  0xbf   :  { %v1321_v36 = vpop.permute.xlu0 %1320  ;;  %v13540_v62 = vld [vmem:[#allocation3 + $0x78] sm:$0xfe]   ;;  %v862_v1 = vsel %vm14762_vm7, %v854_v31, %v15220_v49  ;;  %4836 = vmatpush1.bf16.msra.mxu0 %v13599_v61 }
  0xc0   :  { %1491 = vst.msk [vmem:[#allocation3 + $0x90] sm:$0xf] %vm1468_vm9, %v1321_v36  ;;  %v1331_v56 = vpop.permute.xlu1 %1330  ;;  %v820_v36 = vrot.slane %v816_v19, 4  ;;  %4837 = vmatprep.subr.bf16.mxu0 %v19393_v9 }
  0xc1   :  { %1496 = vst.msk [vmem:[#allocation3 + $0xac] sm:$0xf] %vm1468_vm9, %v1331_v56  ;;  %v837_v56 = vrot.slane %v833_v41, 4 }
  0xc2   :  { %v828_v43 = vsel %vm14762_vm7, %v820_v36, %v15149_v59  ;;  %1237 = vst.msk [vmem:[#allocation3 + $0x160] sm:$0xf] %vm1046_vm3, %v862_v1 }
  0xc3   :  { %v1325_v63 = vpop.permute.xlu0 %1324  ;;  %4609 = vmatmul.mubr.bf16.gmra.mrb[28].mxu0 %v13532_v7  ;;  %1223 = vst.msk [vmem:[#allocation3 + $0x148] sm:$0xf] %vm1046_vm3, %v828_v43  ;;  %v845_v44 = vsel %vm14762_vm7, %v837_v56, %v15193_v52  ;;  %v13544_v48 = vld [vmem:[#allocation3 + $0x84] sm:$0xfe]   ;;  %v885_v43 = vshll.u32 %v15290_v16, 16  ;;  %v899_v16 = vshrl.u32 %v15309_v24, 16 }
  0xc4   :  { %1493 = vst.msk [vmem:[#allocation3 + $0x9c] sm:$0xf] %vm1468_vm9, %v1325_v63  ;;  %v1335_v4 = vpop.permute.xlu1 %1334  ;;  %4616 = vmatprep.mubr.bf16.mxu0 %v2200_v15  ;;  %v2207_v13 = vrot.slane %v13544_v48, 1  ;;  %v916_v24 = vshrl.u32 %v15319_v6, 16 }
  0xc5   :  { %1498 = vst.msk [vmem:[#allocation3 + $0xb8] sm:$0xf] %vm1468_vm9, %v1335_v4  ;;  %v901_v47 = vrot.slane %v899_v16, 7 }
  0xc6   :  { %1230 = vst.msk [vmem:[#allocation3 + $0x154] sm:$0xf] %vm1046_vm3, %v845_v44  ;;  %v918_v31 = vrot.slane %v916_v24, 7 }
  0xc7   :  { %v1329_v35 = vpop.permute.xlu0 %1328  ;;  %v904_v48 = vor.u32 %v902_v5, %v901_v47 }
  0xc8   :  { %1495 = vst.msk [vmem:[#allocation3 + $0xa8] sm:$0xf] %vm1468_vm9, %v1329_v35  ;;  %v1343_v37 = vpop.permute.xlu1 %1342  ;;  %v2204_v35 = vrot.slane %v13540_v62, 1 }
  0xc9   :  { %1502 = vst.msk [vmem:[#allocation3 + $0xe8] sm:$0xf] %vm1468_vm9, %v1343_v37  ;;  %v867_v37 = vrot.slane %v865_v34, 7 }
  0xca   :  { %v2206_v14 = vsel %vm2173_vm8, %v2204_v35, %v2205_v17 }
  0xcb   :  { %v1333_v51 = vpop.permute.xlu0 %1332  ;;  %4617 = vmatmul.mubr.bf16.gmra.mrb[32].mxu0 %v13535_v53  ;;  %v870_v15 = vor.u32 %v868_v3, %v867_v37  ;;  %v871_v41 = vrot.slane %v867_v37, 4 }
  0xcc   :  { %1497 = vst.msk [vmem:[#allocation3 + $0xb4] sm:$0xf] %vm1468_vm9, %v1333_v51  ;;  %v1347_v21 = vpop.permute.xlu1 %1346  ;;  %4624 = vmatprep.mubr.bf16.mxu0 %v2203_v33  ;;  %v13545_v51 = vld [vmem:[#allocation3 + $0x8c] ss:$0 sps:$4 sm:$0x11]  }
  0xcd   :  { %1504 = vst.msk [vmem:[#allocation3 + $0xf4] sm:$0xf] %vm1468_vm9, %v1347_v21  ;;  %v2208_v19 = vrot.slane %v13545_v51, 1  ;;  %v13547_v21 = vld [vmem:[#allocation3 + $0x90] sm:$0xfe]   ;;  %v879_v57 = vsel %vm14762_vm7, %v871_v41, %v15248_v25 }
  0xce   :  { %v2210_v29 = vrot.slane %v13547_v21, 1  ;;  %1244 = vst.msk [vmem:[#allocation3 + $0x16c] sm:$0xf] %vm1046_vm3, %v879_v57  ;;  %v13551_v33 = vld [vmem:[#allocation3 + $0x9c] sm:$0xfe]   ;;  %v176_v57 = vld [vmem:[%s19382_s0 + $0xf0] sm:$0xff] }
  0xcf   :  { %v1341_v54 = vpop.permute.xlu0 %1340  ;;  %v2209_v58 = vsel %vm2173_vm8, %v2207_v13, %v2208_v19  ;;  %v2213_v35 = vrot.slane %v13551_v33, 1  ;;  %v13555_v51 = vld [vmem:[#allocation3 + $0xb0] ss:$0 sps:$4 sm:$0x11]   ;;  %v1255_v19 = vld [vmem:[#allocation3 + $0x180] sm:$0xf] }
  0xd0   :  { %1501 = vst.msk [vmem:[#allocation3 + $0xe4] sm:$0xf] %vm1468_vm9, %v1341_v54  ;;  %v1351_v30 = vpop.permute.xlu1 %1350  ;;  %v1235_v54 = vsel %vm14698_vm5, %v853_v22, %v1234_v11  ;;  %v13549_v22 = vld [vmem:[#allocation3 + $0x90] sm:$0xff]   ;;  %v919_v11 = vshll.u32 %v15319_v6, 16  ;;  %v1256_v13 = vsel %vm14698_vm5, %v904_v48, %v1255_v19  ;;  %v2217_v3 = vrot.slane %v13555_v51, 1 }
  0xd1   :  { %1506 = vst.msk [vmem:[#allocation3 + $0x100] sm:$0xf] %vm1468_vm9, %v1351_v30  ;;  %1236 = vst [vmem:[#allocation3 + $0x15c] sm:$0xf] %v1235_v54  ;;  %v884_v30 = vrot.slane %v882_v26, 7  ;;  %v2215_v34 = vsel %vm2173_vm8, %v2213_v35, %v2214_v42 }
  0xd2   :  { %1257 = vst [vmem:[#allocation3 + $0x180] sm:$0xf] %v1256_v13  ;;  %v13559_v6 = vld [vmem:[#allocation3 + $0xbc] ss:$0 sps:$4 sm:$0x11]  }
  0xd3   :  { %v1345_v32 = vpop.permute.xlu0 %1344  ;;  %4625 = vmatmul.mubr.bf16.gmra.mrb[36].mxu0 %v13539_v12  ;;  %v887_v53 = vor.u32 %v885_v43, %v884_v30  ;;  %v888_v56 = vrot.slane %v884_v30, 4  ;;  %v13554_v12 = vld [vmem:[#allocation3 + $0xa8] sm:$0xfe]   ;;  %v13558_v27 = vld [vmem:[#allocation3 + $0xb4] sm:$0xfe]  }
  0xd4   :  { %1503 = vst.msk [vmem:[#allocation3 + $0xf0] sm:$0xf] %vm1468_vm9, %v1345_v32  ;;  %v1355_v55 = vpop.permute.xlu1 %1354  ;;  %4632 = vmatprep.mubr.bf16.mxu0 %v2206_v14  ;;  %v13542_v32 = vld [vmem:[#allocation3 + $0x78] sm:$0xff]   ;;  %v2216_v37 = vrot.slane %v13554_v12, 1 }
  0xd5   :  { %1508 = vst.msk [vmem:[#allocation3 + $0x10c] sm:$0xf] %vm1468_vm9, %v1355_v55  ;;  %v13546_v55 = vld [vmem:[#allocation3 + $0x84] sm:$0xff]   ;;  %v1249_v23 = vsel %vm14698_vm5, %v887_v53, %v1248_v45  ;;  %v896_v44 = vsel %vm14762_vm7, %v888_v56, %v15266_v60  ;;  %v13561_v30 = vld [vmem:[#allocation3 + $0xd8] sm:$0xfe]   ;;  %v15557_v53 = vpack.c.bf16 %v176_v57, %v176_v57 }
  0xd6   :  { %1250 = vst [vmem:[#allocation3 + $0x174] sm:$0xf] %v1249_v23  ;;  %1251 = vst.msk [vmem:[#allocation3 + $0x178] sm:$0xf] %vm1046_vm3, %v896_v44  ;;  %v2218_v21 = vsel %vm2173_vm8, %v2216_v37, %v2217_v3  ;;  %v1161_v45 = vld [vmem:[#allocation3 + $0xc8] sm:$0x1] }
  0xd7   :  { %v1349_v63 = vpop.permute.xlu0 %1348  ;;  %v13562_v43 = vld [vmem:[#allocation3 + $0xe0] ss:$0 sps:$4 sm:$0x11]   ;;  %1336 = vrot.lane.b32.xlu0 %v15557_v53, %s14189_s23  ;;  %v13563_v44 = vld [vmem:[#allocation3 + $0xd8] sm:$0xff]   ;;  %v13567_v12 = vld [vmem:[#allocation3 + $0xe4] sm:$0xff]  }
  0xd8   :  { %1505 = vst.msk [vmem:[#allocation3 + $0xfc] sm:$0xf] %vm1468_vm9, %v1349_v63  ;;  %v1359_v38 = vpop.permute.xlu1 %1358  ;;  %v1242_v63 = vsel %vm14698_vm5, %v870_v15, %v1241_v39  ;;  %v13553_v15 = vld [vmem:[#allocation3 + $0x9c] sm:$0xff]   ;;  %v2223_v16 = vrot.slane %v13562_v43, 1 }
  0xd9   :  { %1510 = vst.msk [vmem:[#allocation3 + $0x118] sm:$0xf] %vm1468_vm9, %v1359_v38  ;;  %1243 = vst [vmem:[#allocation3 + $0x168] sm:$0xf] %v1242_v63 }
  0xda   :  { %v13576_v19 = vld [vmem:[#allocation3 + $0x110] ss:$0 sps:$4 sm:$0x11]   ;;  %v13590_v43 = vld [vmem:[#allocation3 + $0x140] ss:$0 sps:$4 sm:$0x11]  }
  0xdb   :  { %v1353_v59 = vpop.permute.xlu0 %1352  ;;  %4633 = vmatmul.mubr.bf16.gmra.mrb[40].mxu0 %v13542_v32  ;;  %v922_v32 = vrot.slane %v918_v31, 4  ;;  %v13568_v51 = vld [vmem:[#allocation3 + $0xf0] sm:$0xfe]   ;;  %v2235_v3 = vrot.slane %v13576_v19, 1 }
  0xdc   :  { %1507 = vst.msk [vmem:[#allocation3 + $0x108] sm:$0xf] %vm1468_vm9, %v1353_v59  ;;  %v1363_v10 = vpop.permute.xlu1 %1362  ;;  %4640 = vmatprep.mubr.bf16.mxu0 %v2209_v58  ;;  %v2212_v59 = vsel %vm2173_vm8, %v2210_v29, %v2211_v20  ;;  %v1262_v58 = vld [vmem:[#allocation3 + $0x18c] sm:$0xf]  ;;  %v2228_v48 = vrot.slane %v13568_v51, 1 }
  0xdd   :  { %1512 = vst.msk [vmem:[#allocation3 + $0x124] sm:$0xf] %vm1468_vm9, %v1363_v10  ;;  %v13606_v10 = vld [vmem:[%s19383_s1 + $0xf0] sm:$0xff]   ;;  %v930_v61 = vsel %vm14762_vm7, %v922_v32, %v15323_v2  ;;  %v13556_v29 = vld [vmem:[#allocation3 + $0xa8] sm:$0xff]   ;;  %v177_v2 = vld [vmem:[%s19382_s0 + $0xf8] sm:$0xff] }
  0xde   :  { %4838 = vmatpush1.bf16.msra.mxu0 %v13606_v10  ;;  %1265 = vst.msk [vmem:[#allocation3 + $0x190] sm:$0xf] %vm1046_vm3, %v930_v61  ;;  %v13587_v61 = vld [vmem:[#allocation3 + $0x134] ss:$0 sps:$4 sm:$0x11]  }
  0xdf   :  { %v1357_v4 = vpop.permute.xlu0 %1356  ;;  %4839 = vmatprep.subr.bf16.mxu0 %v19393_v9  ;;  %v13594_v57 = vld [vmem:[#allocation3 + $0x14c] ss:$0 sps:$4 sm:$0x11]  }
  0xe0   :  { %1509 = vst.msk [vmem:[#allocation3 + $0x114] sm:$0xf] %vm1468_vm9, %v1357_v4  ;;  %v1367_v7 = vpop.permute.xlu1 %1366 }
  0xe1   :  { %1514 = vst.msk [vmem:[#allocation3 + $0x130] sm:$0xf] %vm1468_vm9, %v1367_v7 }
  0xe2   :  { %4840 = vmatpush1.bf16.msra.mxu0 %v13613_v0 }
  0xe3   :  { %v1361_v52 = vpop.permute.xlu0 %1360  ;;  %4641 = vmatmul.mubr.bf16.gmra.mrb[44].mxu0 %v13546_v55  ;;  %5098 = vmatprep.subr.bf16.mxu0 %v19393_v9 }
  0xe4   :  { %1511 = vst.msk [vmem:[#allocation3 + $0x120] sm:$0xf] %vm1468_vm9, %v1361_v52  ;;  %v1371_v36 = vpop.permute.xlu1 %1370  ;;  %4648 = vmatprep.mubr.bf16.mxu0 %v2212_v59  ;;  %v905_v52 = vrot.slane %v901_v47, 4  ;;  %v13565_v59 = vld [vmem:[#allocation3 + $0xe4] sm:$0xfe]  }
  0xe5   :  { %1516 = vst.msk [vmem:[#allocation3 + $0x13c] sm:$0xf] %vm1468_vm9, %v1371_v36  ;;  %v2219_v36 = vrot.slane %v13558_v27, 1  ;;  %v2225_v23 = vrot.slane %v13565_v59, 1 }
  0xe6   :  { %v913_v7 = vsel %vm14762_vm7, %v905_v52, %v15295_v46 }
  0xe7   :  { %v1365_v50 = vpop.permute.xlu0 %1364  ;;  %1258 = vst.msk [vmem:[#allocation3 + $0x184] sm:$0xf] %vm1046_vm3, %v913_v7  ;;  %v13580_v7 = vld [vmem:[#allocation3 + $0x11c] ss:$0 sps:$4 sm:$0x11]  }
  0xe8   :  { %1513 = vst.msk [vmem:[#allocation3 + $0x12c] sm:$0xf] %vm1468_vm9, %v1365_v50  ;;  %v1375_v40 = vpop.permute.xlu1 %1374  ;;  %v921_v50 = vor.u32 %v919_v11, %v918_v31  ;;  %v13575_v31 = vld [vmem:[#allocation3 + $0x108] sm:$0xfe]   ;;  %v13570_v11 = vld [vmem:[#allocation3 + $0xf0] sm:$0xff]   ;;  %v2238_v27 = vrot.slane %v13580_v7, 1 }
  0xe9   :  { %1518 = vst.msk [vmem:[#allocation3 + $0x148] sm:$0xf] %vm1468_vm9, %v1375_v40  ;;  %v12747_v40 = vpack.c.bf16 %v177_v2, %v177_v2  ;;  %v2234_v37 = vrot.slane %v13575_v31, 1  ;;  %v2247_v2 = vrot.slane %v13590_v43, 1 }
  0xea   :  { %v1263_v20 = vsel %vm14698_vm5, %v921_v50, %v1262_v58  ;;  %v13618_v43 = vld [vmem:[#allocation3 + $0x14] ss:$0 sps:$4 sm:$0x11]  }
  0xeb   :  { %v1369_v49 = vpop.permute.xlu0 %1368  ;;  %4649 = vmatmul.mubr.bf16.gmra.mrb[48].mxu0 %v13549_v22  ;;  %1264 = vst [vmem:[#allocation3 + $0x18c] sm:$0xf] %v1263_v20  ;;  %v669_v33 = vshrl.u32 %v12747_v40, 16  ;;  %v672_v55 = vshll.u32 %v12747_v40, 16  ;;  %1338 = vrot.lane.b32.xlu1 %v12747_v40, %s14189_s23 }
  0xec   :  { %1515 = vst.msk [vmem:[#allocation3 + $0x138] sm:$0xf] %vm1468_vm9, %v1369_v49  ;;  %v1379_v17 = vpop.permute.xlu1 %1378  ;;  %4656 = vmatprep.mubr.bf16.mxu0 %v2215_v34  ;;  %v2220_v49 = vrot.slane %v13559_v6, 1  ;;  %v13569_v22 = vld [vmem:[#allocation3 + $0xf8] ss:$0 sps:$4 sm:$0x11]  }
  0xed   :  { %1520 = vst.msk [vmem:[#allocation3 + $0x154] sm:$0xf] %vm1468_vm9, %v1379_v17  ;;  %v13566_v17 = vld [vmem:[#allocation3 + $0xec] ss:$0 sps:$4 sm:$0x11]   ;;  %v671_v42 = vrot.slane %v669_v33, 7 }
  0xee   :  { %v2221_v63 = vsel %vm2173_vm8, %v2219_v36, %v2220_v49  ;;  %v2229_v24 = vrot.slane %v13569_v22, 1  ;;  %v13573_v34 = vld [vmem:[#allocation3 + $0x104] ss:$0 sps:$4 sm:$0x11]   ;;  %v13579_v6 = vld [vmem:[#allocation3 + $0x114] sm:$0xfe]  }
  0xef   :  { %v1373_v62 = vpop.permute.xlu0 %1372  ;;  %v15564_v35 = vor.u32 %v672_v55, %v671_v42  ;;  %v676_v47 = vrot.slane %v671_v42, 4  ;;  %v2232_v52 = vrot.slane %v13573_v34, 1  ;;  %v2237_v50 = vrot.slane %v13579_v6, 1  ;;  %v13581_v36 = vld [vmem:[#allocation3 + $0x114] sm:$0xff]   ;;  %v13586_v20 = vld [vmem:[#allocation3 + $0x12c] sm:$0xfe]  }
  0xf0   :  { %1517 = vst.msk [vmem:[#allocation3 + $0x144] sm:$0xf] %vm1468_vm9, %v1373_v62  ;;  %v1383_v38 = vpop.permute.xlu1 %1382  ;;  %v2222_v62 = vrot.slane %v13561_v30, 1  ;;  %v13588_v40 = vld [vmem:[#allocation3 + $0x12c] sm:$0xff]   ;;  %v2250_v55 = vrot.slane %v13594_v57, 1 }
  0xf1   :  { %1522 = vst.msk [vmem:[#allocation3 + $0x160] sm:$0xf] %vm1468_vm9, %v1383_v38  ;;  %v1162_v5 = vsel %vm14406_vm2, %v676_v47, %v1161_v45  ;;  %v2226_v38 = vrot.slane %v13566_v17, 1  ;;  %v13597_v42 = vld [vmem:[#allocation3 + $0x158] ss:$0 sps:$4 sm:$0x11]  }
  0xf2   :  { %v2224_v56 = vsel %vm2173_vm8, %v2222_v62, %v2223_v16  ;;  %1163 = vst [vmem:[#allocation3 + $0xc8] sm:$0x1] %v1162_v5  ;;  %v2253_v45 = vrot.slane %v13597_v42, 1  ;;  %v13601_v5 = vld [vmem:[#allocation3 + $0x164] ss:$0 sps:$4 sm:$0x11]  }
  0xf3   :  { %v1377_v25 = vpop.permute.xlu0 %1376  ;;  %4657 = vmatmul.mubr.bf16.gmra.mrb[52].mxu0 %v13553_v15  ;;  %v13583_v15 = vld [vmem:[#allocation3 + $0x128] ss:$0 sps:$4 sm:$0x11]   ;;  %v13589_v30 = vld [vmem:[#allocation3 + $0x138] sm:$0xfe]  }
  0xf4   :  { %1519 = vst.msk [vmem:[#allocation3 + $0x150] sm:$0xf] %vm1468_vm9, %v1377_v25  ;;  %v1387_v14 = vpop.permute.xlu1 %1386  ;;  %4664 = vmatprep.mubr.bf16.mxu0 %v2218_v21  ;;  %v13560_v25 = vld [vmem:[#allocation3 + $0xb4] sm:$0xff]   ;;  %v13582_v21 = vld [vmem:[#allocation3 + $0x120] sm:$0xfe]   ;;  %v2241_v58 = vrot.slane %v13583_v15, 1 }
  0xf5   :  { %1524 = vst.msk [vmem:[#allocation3 + $0x16c] sm:$0xf] %vm1468_vm9, %v1387_v14  ;;  %v2230_v14 = vsel %vm2173_vm8, %v2228_v48, %v2229_v24  ;;  %v2240_v32 = vrot.slane %v13582_v21, 1  ;;  %v2246_v0 = vrot.slane %v13589_v30, 1  ;;  %v13591_v59 = vld [vmem:[#allocation3 + $0x138] sm:$0xff]  }
  0xf6   :  { %v13604_v24 = vld [vmem:[#allocation3 + $0x170] ss:$0 sps:$4 sm:$0x11]   ;;  %v13615_v15 = vld [vmem:[#allocation3 + $0x194] ss:$0 sps:$4 sm:$0x11]  }
  0xf7   :  { %v1381_v4 = vpop.permute.xlu0 %1380  ;;  %v2242_v49 = vsel %vm2173_vm8, %v2240_v32, %v2241_v58  ;;  %v2248_v62 = vsel %vm2173_vm8, %v2246_v0, %v2247_v2  ;;  %v13593_v16 = vld [vmem:[#allocation3 + $0x144] sm:$0xfe]   ;;  %v13617_v30 = vld [vmem:[#allocation3 + $0xc] sm:$0xfe]  }
  0xf8   :  { %1521 = vst.msk [vmem:[#allocation3 + $0x15c] sm:$0xf] %vm1468_vm9, %v1381_v4  ;;  %v1391_v54 = vpop.permute.xlu1 %1390  ;;  %v2227_v4 = vsel %vm2173_vm8, %v2225_v23, %v2226_v38  ;;  %v2249_v33 = vrot.slane %v13593_v16, 1  ;;  %v13595_v47 = vld [vmem:[#allocation3 + $0x144] sm:$0xff]   ;;  %v2975_v16 = vrot.slane %v13618_v43, 1 }
  0xf9   :  { %1526 = vst.msk [vmem:[#allocation3 + $0x178] sm:$0xf] %vm1468_vm9, %v1391_v54  ;;  %v13574_v54 = vld [vmem:[#allocation3 + $0xfc] sm:$0xff]  }
  0xfa   :  { %v2251_v17 = vsel %vm2173_vm8, %v2249_v33, %v2250_v55 }
  0xfb   :  { %v1385_v60 = vpop.permute.xlu0 %1384  ;;  %4665 = vmatmul.mubr.bf16.gmra.mrb[56].mxu0 %v13556_v29  ;;  %v13584_v29 = vld [vmem:[#allocation3 + $0x120] sm:$0xff]   ;;  %v13598_v51 = vld [vmem:[#allocation3 + $0x150] sm:$0xff]  }
  0xfc   :  { %1523 = vst.msk [vmem:[#allocation3 + $0x168] sm:$0xf] %vm1468_vm9, %v1385_v60  ;;  %v1395_v26 = vpop.permute.xlu1 %1394  ;;  %4672 = vmatprep.mubr.bf16.mxu0 %v2221_v63  ;;  %v13572_v60 = vld [vmem:[#allocation3 + $0xfc] sm:$0xfe]  }
  0xfd   :  { %1528 = vst.msk [vmem:[#allocation3 + $0x184] sm:$0xf] %vm1468_vm9, %v1395_v26  ;;  %v2231_v10 = vrot.slane %v13572_v60, 1  ;;  %v13577_v26 = vld [vmem:[#allocation3 + $0x108] sm:$0xff]  }
  0xfe   :  { %v13608_v60 = vld [vmem:[#allocation3 + $0x17c] ss:$0 sps:$4 sm:$0x11]  }
  0xff   :  { %v1389_v1 = vpop.permute.xlu0 %1388  ;;  %v2233_v13 = vsel %vm2173_vm8, %v2231_v10, %v2232_v52  ;;  %v13600_v38 = vld [vmem:[#allocation3 + $0x15c] sm:$0xfe]   ;;  %v2262_v31 = vrot.slane %v13608_v60, 1  ;;  %v13629_v60 = vld [vmem:[#allocation3 + $0x38] ss:$0 sps:$4 sm:$0x11]  }
 0x100   :  { %1525 = vst.msk [vmem:[#allocation3 + $0x174] sm:$0xf] %vm1468_vm9, %v1389_v1  ;;  %v1399_v41 = vpop.permute.xlu1 %1398  ;;  %v2236_v1 = vsel %vm2173_vm8, %v2234_v37, %v2235_v3 }
 0x101   :  { %1530 = vst.msk [vmem:[#allocation3 + $0x190] sm:$0xf] %vm1468_vm9, %v1399_v41  ;;  %v2243_v41 = vrot.slane %v13586_v20, 1 }
 0x103   :  { %v1393_v46 = vpop.permute.xlu0 %1392  ;;  %4673 = vmatmul.mubr.bf16.gmra.mrb[60].mxu0 %v13560_v25  ;;  %v13596_v25 = vld [vmem:[#allocation3 + $0x150] sm:$0xfe]   ;;  %v13603_v48 = vld [vmem:[#allocation3 + $0x168] sm:$0xfe]  }
 0x104   :  { %1527 = vst.msk [vmem:[#allocation3 + $0x180] sm:$0xf] %vm1468_vm9, %v1393_v46  ;;  %4680 = vmatprep.mubr.bf16.mxu0 %v2224_v56  ;;  %v2239_v46 = vsel %vm2173_vm8, %v2237_v50, %v2238_v27  ;;  %v2252_v56 = vrot.slane %v13596_v25, 1  ;;  %v2258_v34 = vrot.slane %v13603_v48, 1  ;;  %v13627_v48 = vld [vmem:[%s19383_s1 + $0x108] sm:$0xff]  }
 0x105   :  { %v13622_v25 = vld [vmem:[#allocation3 + $0x20] ss:$0 sps:$4 sm:$0x11]  }
 0x106   :  { %v2254_v23 = vsel %vm2173_vm8, %v2252_v56, %v2253_v45 }
 0x107   :  { %v1397_v39 = vpop.permute.xlu0 %1396  ;;  %v13607_v52 = vld [vmem:[#allocation3 + $0x174] sm:$0xfe]  }
 0x108   :  { %1529 = vst.msk [vmem:[#allocation3 + $0x18c] sm:$0xf] %vm1468_vm9, %v1397_v39  ;;  %v2244_v39 = vrot.slane %v13587_v61, 1  ;;  %v2261_v19 = vrot.slane %v13607_v52, 1  ;;  %v13609_v27 = vld [vmem:[#allocation3 + $0x174] sm:$0xff]  }
 0x109   :  { %v13628_v52 = vld [vmem:[#allocation3 + $0x30] sm:$0xfe]  }
 0x10a   :  { %v2245_v63 = vsel %vm2173_vm8, %v2243_v41, %v2244_v39  ;;  %v2263_v37 = vsel %vm2173_vm8, %v2261_v19, %v2262_v31  ;;  %v2268_v41 = vrot.slane %v13615_v15, 1  ;;  %v13641_v19 = vld [vmem:[%s19383_s1 + $0x118] sm:$0xff]   ;;  %v2983_v31 = vrot.slane %v13628_v52, 1  ;;  %v13630_v15 = vld [vmem:[#allocation3 + $0x30] sm:$0xff]  }
 0x10b   :  { %4681 = vmatmul.mubr.bf16.gmra.mrb[64].mxu0 %v13563_v44  ;;  %v2255_v44 = vrot.slane %v13600_v38, 1  ;;  %v13610_v3 = vld [vmem:[#allocation3 + $0x180] sm:$0xfe]   ;;  %v13619_v38 = vld [vmem:[#allocation3 + $0xc] sm:$0xff]  }
 0x10c   :  { %4688 = vmatprep.mubr.bf16.mxu0 %v2227_v4  ;;  %v2256_v4 = vrot.slane %v13601_v5, 1  ;;  %v2264_v6 = vrot.slane %v13610_v3, 1  ;;  %v13612_v39 = vld [vmem:[#allocation3 + $0x180] sm:$0xff]  }
 0x10d   :  { %v13632_v3 = vld [vmem:[#allocation3 + $0x44] ss:$0 sps:$4 sm:$0x11]  }
 0x10e   :  { %v2257_v22 = vsel %vm2173_vm8, %v2255_v44, %v2256_v4  ;;  %v13620_v44 = vld [vmem:[%s19383_s1 + $0x100] sm:$0xff]  }
 0x10f   :  { %v13616_v33 = vld [vmem:[#allocation3 + $0x18c] sm:$0xff]  }
 0x113   :  { %4689 = vmatmul.mubr.bf16.gmra.mrb[68].mxu0 %v13567_v12  ;;  %v2259_v12 = vrot.slane %v13604_v24, 1 }
 0x114   :  { %4696 = vmatprep.mubr.bf16.mxu0 %v2230_v14  ;;  %v13602_v14 = vld [vmem:[#allocation3 + $0x15c] sm:$0xff]  }
 0x115   :  { %v2260_v10 = vsel %vm2173_vm8, %v2258_v34, %v2259_v12  ;;  %v13634_v12 = vld [vmem:[%s19383_s1 + $0x110] sm:$0xff]  }
 0x11b   :  { %4697 = vmatmul.mubr.bf16.gmra.mrb[72].mxu0 %v13570_v11  ;;  %v661_v11 = vshrl.u32 %v15557_v53, 16 }
 0x11c   :  { %4704 = vmatprep.mubr.bf16.mxu0 %v2233_v13  ;;  %v13605_v13 = vld [vmem:[#allocation3 + $0x168] sm:$0xff]  }
 0x11d   :  { %v663_v7 = vrot.slane %v661_v11, 7  ;;  %v2984_v11 = vrot.slane %v13629_v60, 1  ;;  %v13656_v60 = vld [vmem:[#allocation3 + $0x90] sm:$0xfe]  }
 0x11f   :  { %v667_v32 = vrot.slane %v663_v7, 4 }
 0x123   :  { %4705 = vmatmul.mubr.bf16.gmra.mrb[76].mxu0 %v13574_v54  ;;  %v13611_v54 = vld [vmem:[#allocation3 + $0x188] ss:$0 sps:$4 sm:$0x11]  }
 0x124   :  { %4712 = vmatprep.mubr.bf16.mxu0 %v2236_v1  ;;  %v664_v1 = vshll.u32 %v15557_v53, 16  ;;  %v2265_v50 = vrot.slane %v13611_v54, 1  ;;  %v675_v53 = vsel %vm14762_vm7, %v667_v32, %v15564_v35  ;;  %v208_v35 = vld [vmem:[%s19382_s0 + $0x1f0] sm:$0xff]  ;;  %v13631_v54 = vld [vmem:[#allocation3 + $0x3c] sm:$0xfe]  }
 0x125   :  { %1160 = vst.msk [vmem:[#allocation3 + $0xc4] sm:$0xf] %vm1046_vm3, %v675_v53  ;;  %v15599_v2 = vpack.c.bf16 %v208_v35, %v208_v35  ;;  %v13669_v32 = vld [vmem:[%s19383_s1 + $0x138] sm:$0xff]   ;;  %v13642_v35 = vld [vmem:[#allocation3 + $0x60] sm:$0xfe]  }
 0x126   :  { %v666_v21 = vor.u32 %v664_v1, %v663_v7  ;;  %v2985_v7 = vsel %vm2173_vm8, %v2983_v31, %v2984_v11  ;;  %v13655_v1 = vld [vmem:[%s19383_s1 + $0x128] sm:$0xff]  }
 0x127   :  { %1400 = vrot.lane.b32.xlu0 %v15599_v2, %s14189_s23 }
 0x12b   :  { %4713 = vmatmul.mubr.bf16.gmra.mrb[80].mxu0 %v13577_v26  ;;  %v2266_v26 = vsel %vm2173_vm8, %v2264_v6, %v2265_v50  ;;  %v2986_v6 = vrot.slane %v13631_v54, 1  ;;  %v2987_v50 = vrot.slane %v13632_v3, 1 }
 0x12c   :  { %4720 = vmatprep.mubr.bf16.mxu0 %v2239_v46  ;;  %v13614_v46 = vld [vmem:[#allocation3 + $0x18c] sm:$0xfe]  }
 0x12d   :  { %v2267_v61 = vrot.slane %v13614_v46, 1  ;;  %v13636_v46 = vld [vmem:[#allocation3 + $0x50] ss:$0 sps:$4 sm:$0x11]  }
 0x133   :  { %4721 = vmatmul.mubr.bf16.gmra.mrb[84].mxu0 %v13581_v36  ;;  %v1157_v36 = vld [vmem:[#allocation3 + $0xc0] sm:$0xf] }
 0x134   :  { %4728 = vmatprep.mubr.bf16.mxu0 %v2242_v49  ;;  %v1158_v20 = vsel %vm14698_vm5, %v666_v21, %v1157_v36  ;;  %v2988_v21 = vsel %vm2173_vm8, %v2986_v6, %v2987_v50  ;;  %v2990_v36 = vrot.slane %v13636_v46, 1 }
 0x135   :  { %1159 = vst [vmem:[#allocation3 + $0xc0] sm:$0xf] %v1158_v20  ;;  %v13633_v20 = vld [vmem:[#allocation3 + $0x3c] sm:$0xff]  }
 0x13b   :  { %4729 = vmatmul.mubr.bf16.gmra.mrb[88].mxu0 %v13584_v29  ;;  %v2269_v29 = vsel %vm2173_vm8, %v2267_v61, %v2268_v41  ;;  %v13638_v61 = vld [vmem:[#allocation3 + $0x54] sm:$0xfe]   ;;  %v13639_v41 = vld [vmem:[#allocation3 + $0x5c] ss:$0 sps:$4 sm:$0x11]  }
 0x13c   :  { %4736 = vmatprep.mubr.bf16.mxu0 %v2245_v63  ;;  %v209_v63 = vld [vmem:[%s19382_s0 + $0x1f8] sm:$0xff]  ;;  %v2993_v43 = vrot.slane %v13639_v41, 1 }
 0x13d   :  { %v12779_v0 = vpack.c.bf16 %v209_v63, %v209_v63  ;;  %v13690_v63 = vld [vmem:[%s19383_s1 + $0x150] sm:$0xff]  }
 0x13f   :  { %v944_v57 = vshll.u32 %v12779_v0, 16  ;;  %1402 = vrot.lane.b32.xlu1 %v12779_v0, %s14189_s23 }
 0x143   :  { %4737 = vmatmul.mubr.bf16.gmra.mrb[92].mxu0 %v13588_v40  ;;  %v941_v40 = vshrl.u32 %v12779_v0, 16  ;;  %v13643_v0 = vld [vmem:[#allocation3 + $0x68] ss:$0 sps:$4 sm:$0x11]  }
 0x144   :  { %4744 = vmatprep.mubr.bf16.mxu0 %v2248_v62  ;;  %v2974_v62 = vrot.slane %v13617_v30, 1  ;;  %v2992_v30 = vrot.slane %v13638_v61, 1 }
 0x145   :  { %v943_v55 = vrot.slane %v941_v40, 7 }
 0x146   :  { %v2976_v45 = vsel %vm2173_vm8, %v2974_v62, %v2975_v16  ;;  %v2994_v40 = vsel %vm2173_vm8, %v2992_v30, %v2993_v43  ;;  %v2996_v62 = vrot.slane %v13643_v0, 1  ;;  %v13640_v16 = vld [vmem:[#allocation3 + $0x54] sm:$0xff]  }
 0x147   :  { %v15604_v42 = vor.u32 %v944_v57, %v943_v55  ;;  %v948_v56 = vrot.slane %v943_v55, 4  ;;  %v2995_v57 = vrot.slane %v13642_v35, 1  ;;  %v13646_v55 = vld [vmem:[#allocation3 + $0x74] ss:$0 sps:$4 sm:$0x11]  }
 0x149   :  { %v1337_v58 = vpop.permute.xlu0 %1336 }
 0x14a   :  { %1499 = vst.msk [vmem:[#allocation3 + $0xc0] sm:$0xf] %vm1468_vm9, %v1337_v58 }
 0x14b   :  { %4745 = vmatmul.mubr.bf16.gmra.mrb[96].mxu0 %v13591_v59  ;;  %v1273_v59 = vld [vmem:[#allocation3 + $0x1a0] sm:$0x1] }
 0x14c   :  { %4752 = vmatprep.mubr.bf16.mxu0 %v2251_v17  ;;  %v13621_v17 = vld [vmem:[#allocation3 + $0x18] sm:$0xfe]  }
 0x14d   :  { %v2977_v5 = vrot.slane %v13621_v17, 1  ;;  %v13697_v17 = vld [vmem:[%s19383_s1 + $0x158] sm:$0xff]  }
 0x153   :  { %4753 = vmatmul.mubr.bf16.gmra.mrb[100].mxu0 %v13595_v47  ;;  %v1274_v47 = vsel %vm14406_vm2, %v948_v56, %v1273_v59  ;;  %v2997_v59 = vsel %vm2173_vm8, %v2995_v57, %v2996_v62  ;;  %v2999_v56 = vrot.slane %v13646_v55, 1 }
 0x154   :  { %4760 = vmatprep.mubr.bf16.mxu0 %v2254_v23  ;;  %1275 = vst [vmem:[#allocation3 + $0x1a0] sm:$0x1] %v1274_v47  ;;  %v2978_v23 = vrot.slane %v13622_v25, 1  ;;  %v13649_v47 = vld [vmem:[#allocation3 + $0x78] sm:$0xfe]  }
 0x156   :  { %v2979_v4 = vsel %vm2173_vm8, %v2977_v5, %v2978_v23  ;;  %v13650_v5 = vld [vmem:[#allocation3 + $0x80] ss:$0 sps:$4 sm:$0x11]  }
 0x15b   :  { %4761 = vmatmul.mubr.bf16.gmra.mrb[104].mxu0 %v13598_v51  ;;  %v13624_v51 = vld [vmem:[#allocation3 + $0x24] sm:$0xfe]  }
 0x15c   :  { %4768 = vmatprep.mubr.bf16.mxu0 %v2257_v22  ;;  %v13625_v22 = vld [vmem:[#allocation3 + $0x2c] ss:$0 sps:$4 sm:$0x11]   ;;  %v2980_v24 = vrot.slane %v13624_v51, 1  ;;  %v13652_v51 = vld [vmem:[#allocation3 + $0x84] sm:$0xfe]  }
 0x15d   :  { %v1339_v49 = vpop.permute.xlu1 %1338  ;;  %v2981_v34 = vrot.slane %v13625_v22, 1  ;;  %v13653_v22 = vld [vmem:[#allocation3 + $0x8c] ss:$0 sps:$4 sm:$0x11]  }
 0x15e   :  { %1500 = vst.msk [vmem:[#allocation3 + $0xc4] sm:$0xf] %vm1468_vm9, %v1339_v49  ;;  %v13676_v49 = vld [vmem:[%s19383_s1 + $0x140] sm:$0xff]  }
 0x163   :  { %4769 = vmatmul.mubr.bf16.gmra.mrb[108].mxu0 %v13602_v14  ;;  %v13623_v14 = vld [vmem:[#allocation3 + $0x18] sm:$0xff]  }
 0x164   :  { %4776 = vmatprep.mubr.bf16.mxu0 %v2260_v10  ;;  %v2982_v10 = vsel %vm2173_vm8, %v2980_v24, %v2981_v34  ;;  %v13704_v24 = vld [vmem:[%s19383_s1 + $0x160] sm:$0xff]   ;;  %v3004_v34 = vrot.slane %v13652_v51, 1 }
 0x16b   :  { %4777 = vmatmul.mubr.bf16.gmra.mrb[112].mxu0 %v13605_v13  ;;  %v13626_v13 = vld [vmem:[#allocation3 + $0x24] sm:$0xff]  }
 0x16c   :  { %4784 = vmatprep.mubr.bf16.mxu0 %v2263_v37  ;;  %v13648_v37 = vld [vmem:[%s19383_s1 + $0x120] sm:$0xff]  }
 0x173   :  { %4785 = vmatmul.mubr.bf16.gmra.mrb[116].mxu0 %v13609_v27  ;;  %v13662_v27 = vld [vmem:[%s19383_s1 + $0x130] sm:$0xff]  }
 0x174   :  { %4792 = vmatprep.mubr.bf16.mxu0 %v2266_v26  ;;  %v13635_v26 = vld [vmem:[#allocation3 + $0x48] sm:$0xfe]  }
 0x175   :  { %v2989_v58 = vrot.slane %v13635_v26, 1 }
 0x177   :  { %v2991_v53 = vsel %vm2173_vm8, %v2989_v58, %v2990_v36 }
 0x17b   :  { %4793 = vmatmul.mubr.bf16.gmra.mrb[120].mxu0 %v13612_v39  ;;  %v13683_v39 = vld [vmem:[%s19383_s1 + $0x148] sm:$0xff]  }
 0x17c   :  { %4800 = vmatprep.mubr.bf16.mxu0 %v2269_v29  ;;  %v13637_v29 = vld [vmem:[#allocation3 + $0x48] sm:$0xff]  }
 0x183   :  { %4801 = vmatmul.mubr.bf16.gmra.mrb[124].mxu0 %v13616_v33  ;;  %v13645_v33 = vld [vmem:[#allocation3 + $0x6c] sm:$0xfe]  }
 0x184   :  { %4841 = vmatprep.mubr.bf16.mxu0 %v2976_v45  ;;  %v2998_v25 = vrot.slane %v13645_v33, 1  ;;  %v13644_v45 = vld [vmem:[#allocation3 + $0x60] sm:$0xff]  }
 0x186   :  { %v3000_v23 = vsel %vm2173_vm8, %v2998_v25, %v2999_v56 }
 0x18b   :  { %4842 = vmatmul.mubr.bf16.vlgmr.msra.gmra.mrb[0].mxu0 %v13619_v38  ;;  %v3001_v38 = vrot.slane %v13649_v47, 1 }
 0x18c   :  { %5099 = vmatpush1.bf16.msra.mxu0 %v13620_v44  ;;  %4849 = vmatprep.mubr.bf16.mxu0 %v2979_v4  ;;  %v3002_v44 = vrot.slane %v13650_v5, 1  ;;  %v13647_v4 = vld [vmem:[#allocation3 + $0x6c] sm:$0xff]  }
 0x18d   :  { %5100 = vmatprep.subr.bf16.mxu0 %v19393_v9 }
 0x190   :  { %5101 = vmatpush1.bf16.msra.mxu0 %v13627_v48  ;;  %v3003_v48 = vsel %vm2173_vm8, %v3001_v38, %v3002_v44 }
 0x191   :  { %5102 = vmatprep.subr.bf16.mxu0 %v19393_v9 }
 0x193   :  { %4850 = vmatmul.mubr.bf16.gmra.mrb[4].mxu0 %v13623_v14  ;;  %v13651_v14 = vld [vmem:[#allocation3 + $0x78] sm:$0xff]  }
 0x194   :  { %4857 = vmatprep.mubr.bf16.mxu0 %v2982_v10  ;;  %5103 = vmatpush1.bf16.msra.mxu0 %v13634_v12  ;;  %v3005_v12 = vrot.slane %v13653_v22, 1  ;;  %v13657_v10 = vld [vmem:[#allocation3 + $0x98] ss:$0 sps:$4 sm:$0x11]  }
 0x195   :  { %5104 = vmatprep.subr.bf16.mxu0 %v19393_v9 }
 0x196   :  { %v3006_v52 = vsel %vm2173_vm8, %v3004_v34, %v3005_v12 }
 0x198   :  { %5105 = vmatpush1.bf16.msra.mxu0 %v13641_v19 }
 0x199   :  { %5106 = vmatprep.subr.bf16.mxu0 %v19393_v9 }
 0x19b   :  { %4858 = vmatmul.mubr.bf16.gmra.mrb[8].mxu0 %v13626_v13 }
 0x19c   :  { %4865 = vmatprep.mubr.bf16.mxu0 %v2985_v7  ;;  %5107 = vmatpush1.bf16.msra.mxu0 %v13648_v37 }
 0x19d   :  { %5108 = vmatprep.subr.bf16.mxu0 %v19393_v9 }
 0x1a0   :  { %5109 = vmatpush1.bf16.msra.mxu0 %v13655_v1 }
 0x1a1   :  { %5110 = vmatprep.subr.bf16.mxu0 %v19393_v9 }
 0x1a3   :  { %4866 = vmatmul.mubr.bf16.gmra.mrb[12].mxu0 %v13630_v15 }
 0x1a4   :  { %4873 = vmatprep.mubr.bf16.mxu0 %v2988_v21  ;;  %5111 = vmatpush1.bf16.msra.mxu0 %v13662_v27 }
 0x1a5   :  { %5112 = vmatprep.subr.bf16.mxu0 %v19393_v9 }
 0x1a8   :  { %5113 = vmatpush1.bf16.msra.mxu0 %v13669_v32 }
 0x1a9   :  { %5114 = vmatprep.subr.bf16.mxu0 %v19393_v9 }
 0x1ab   :  { %4874 = vmatmul.mubr.bf16.gmra.mrb[16].mxu0 %v13633_v20 }
 0x1ac   :  { %4881 = vmatprep.mubr.bf16.mxu0 %v2991_v53  ;;  %5115 = vmatpush1.bf16.msra.mxu0 %v13676_v49 }
 0x1ad   :  { %5116 = vmatprep.subr.bf16.mxu0 %v19393_v9 }
 0x1b0   :  { %5117 = vmatpush1.bf16.msra.mxu0 %v13683_v39 }
 0x1b1   :  { %5118 = vmatprep.subr.bf16.mxu0 %v19393_v9 }
 0x1b3   :  { %4882 = vmatmul.mubr.bf16.gmra.mrb[20].mxu0 %v13637_v29 }
 0x1b4   :  { %4889 = vmatprep.mubr.bf16.mxu0 %v2994_v40  ;;  %5119 = vmatpush1.bf16.msra.mxu0 %v13690_v63 }
 0x1b5   :  { %5120 = vmatprep.subr.bf16.mxu0 %v19393_v9 }
 0x1b8   :  { %5121 = vmatpush1.bf16.msra.mxu0 %v13697_v17 }
 0x1b9   :  { %5122 = vmatprep.subr.bf16.mxu0 %v19393_v9 }
 0x1bb   :  { %4890 = vmatmul.mubr.bf16.gmra.mrb[24].mxu0 %v13640_v16 }
 0x1bc   :  { %4897 = vmatprep.mubr.bf16.mxu0 %v2997_v59  ;;  %5123 = vmatpush1.bf16.msra.mxu0 %v13704_v24 }
 0x1bd   :  { %5124 = vmatprep.subr.bf16.mxu0 %v19393_v9 }
 0x1c3   :  { %4898 = vmatmul.mubr.bf16.gmra.mrb[28].mxu0 %v13644_v45 }
 0x1c4   :  { %4905 = vmatprep.mubr.bf16.mxu0 %v3000_v23 }
 0x1cb   :  { %4906 = vmatmul.mubr.bf16.gmra.mrb[32].mxu0 %v13647_v4 }
 0x1cc   :  { %4913 = vmatprep.mubr.bf16.mxu0 %v3003_v48 }
 0x1d3   :  { %4914 = vmatmul.mubr.bf16.gmra.mrb[36].mxu0 %v13651_v14 }
 0x1d4   :  { %4921 = vmatprep.mubr.bf16.mxu0 %v3006_v52 }
 0x1d5   :  { %16 = vsyncpa [#allocation6], 0  ;;  %v3007_v19 = vrot.slane %v13656_v60, 1  ;;  %v3008_v31 = vrot.slane %v13657_v10, 1  ;;  %v13654_v11 = vld [vmem:[#allocation3 + $0x84] sm:$0xff]   ;;  %v13658_v6 = vld [vmem:[#allocation3 + $0x90] sm:$0xff]   ;;  %v1401_v40 = vpop.permute.xlu0 %1400  ;;  %v1403_v62 = vpop.permute.xlu1 %1402 }
 0x1d6   :  { %v13659_v37 = vld [vmem:[#allocation3 + $0x9c] sm:$0xfe]   ;;  %v13660_v3 = vld [vmem:[#allocation3 + $0xa4] ss:$0 sps:$4 sm:$0x11]   ;;  %v13711_v54 = vld [vmem:[%s19383_s1 + $0x168] sm:$0xff]  }
 0x1d7   :  { %v3009_v13 = vsel %vm2173_vm8, %v3007_v19, %v3008_v31  ;;  %5125 = vmatpush1.bf16.msra.mxu0 %v13711_v54  ;;  %v3010_v7 = vrot.slane %v13659_v37, 1  ;;  %v3011_v1 = vrot.slane %v13660_v3, 1  ;;  %v13663_v27 = vld [vmem:[#allocation3 + $0xa8] sm:$0xfe]   ;;  %v933_v46 = vshrl.u32 %v15599_v2, 16  ;;  %v13661_v32 = vld [vmem:[#allocation3 + $0x9c] sm:$0xff]  }
 0x1d8   :  { %5126 = vmatprep.subr.bf16.mxu0 %v19393_v9  ;;  %v13664_v15 = vld [vmem:[#allocation3 + $0xb0] ss:$0 sps:$4 sm:$0x11]   ;;  %v3013_v21 = vrot.slane %v13663_v27, 1  ;;  %v13666_v36 = vld [vmem:[#allocation3 + $0xb4] sm:$0xfe]  }
 0x1d9   :  { %v3012_v50 = vsel %vm2173_vm8, %v3010_v7, %v3011_v1  ;;  %v3014_v26 = vrot.slane %v13664_v15, 1  ;;  %v13667_v49 = vld [vmem:[#allocation3 + $0xbc] ss:$0 sps:$4 sm:$0x11]   ;;  %v13718_v20 = vld [vmem:[%s19383_s1 + $0x170] sm:$0xff]   ;;  %v935_v61 = vrot.slane %v933_v46, 7 }
 0x1da   :  { %v936_v41 = vshll.u32 %v15599_v2, 16  ;;  %v3016_v53 = vrot.slane %v13666_v36, 1  ;;  %v3017_v39 = vrot.slane %v13667_v49, 1  ;;  %v13665_v30 = vld [vmem:[#allocation3 + $0xa8] sm:$0xff]   ;;  %v13670_v43 = vld [vmem:[#allocation3 + $0xc0] sm:$0xfe]  }
 0x1db   :  { %4922 = vmatmul.mubr.bf16.gmra.mrb[40].mxu0 %v13654_v11  ;;  %v3015_v58 = vsel %vm2173_vm8, %v3013_v21, %v3014_v26  ;;  %v13671_v63 = vld [vmem:[#allocation3 + $0xc8] ss:$0 sps:$4 sm:$0x11]   ;;  %v939_v35 = vrot.slane %v935_v61, 4  ;;  %v1269_v57 = vld [vmem:[#allocation3 + $0x198] sm:$0xf] }
 0x1dc   :  { %4929 = vmatprep.mubr.bf16.mxu0 %v3009_v13  ;;  %5127 = vmatpush1.bf16.msra.mxu0 %v13718_v20  ;;  %v938_v29 = vor.u32 %v936_v41, %v935_v61  ;;  %v3018_v0 = vsel %vm2173_vm8, %v3016_v53, %v3017_v39  ;;  %v3019_v16 = vrot.slane %v13670_v43, 1  ;;  %v3020_v33 = vrot.slane %v13671_v63, 1  ;;  %v13668_v59 = vld [vmem:[#allocation3 + $0xb4] sm:$0xff]   ;;  %v13673_v25 = vld [vmem:[#allocation3 + $0xe4] sm:$0xfe]   ;;  %v13682_v13 = vld [vmem:[#allocation3 + $0xfc] sm:$0xff]  }
 0x1dd   :  { %5128 = vmatprep.subr.bf16.mxu0 %v19393_v9  ;;  %v947_v55 = vsel %vm14762_vm7, %v939_v35, %v15604_v42  ;;  %v13674_v56 = vld [vmem:[#allocation3 + $0xec] ss:$0 sps:$4 sm:$0x11]   ;;  %v13725_v45 = vld [vmem:[%s19383_s1 + $0x178] sm:$0xff]   ;;  %v3022_v42 = vrot.slane %v13673_v25, 1  ;;  %v13672_v5 = vld [vmem:[#allocation3 + $0xc0] sm:$0xff]  }
 0x1de   :  { %v1270_v2 = vsel %vm14698_vm5, %v938_v29, %v1269_v57  ;;  %1272 = vst.msk [vmem:[#allocation3 + $0x19c] sm:$0xf] %vm1046_vm3, %v947_v55  ;;  %v3021_v17 = vsel %vm2173_vm8, %v3019_v16, %v3020_v33  ;;  %v3023_v47 = vrot.slane %v13674_v56, 1  ;;  %v13677_v38 = vld [vmem:[#allocation3 + $0xf0] sm:$0xfe]   ;;  %v13675_v22 = vld [vmem:[#allocation3 + $0xe4] sm:$0xff]  }
 0x1df   :  { %1271 = vst [vmem:[#allocation3 + $0x198] sm:$0xf] %v1270_v2  ;;  %1532 = vst.msk [vmem:[#allocation3 + $0x19c] sm:$0xf] %vm1468_vm9, %v1403_v62  ;;  %v3025_v4 = vrot.slane %v13677_v38, 1  ;;  %v13679_v60 = vld [vmem:[#allocation3 + $0xf0] sm:$0xff]  }
 0x1e0   :  { %1531 = vst.msk [vmem:[#allocation3 + $0x198] sm:$0xf] %vm1468_vm9, %v1401_v40  ;;  %5129 = vmatpush1.bf16.msra.mxu0 %v13725_v45  ;;  %v3024_v23 = vsel %vm2173_vm8, %v3022_v42, %v3023_v47  ;;  %v13678_v44 = vld [vmem:[#allocation3 + $0xf8] ss:$0 sps:$4 sm:$0x11]   ;;  %v13693_v61 = vld [vmem:[#allocation3 + $0x120] sm:$0xff]  }
 0x1e1   :  { %v3026_v51 = vrot.slane %v13678_v44, 1  ;;  %v13680_v24 = vld [vmem:[#allocation3 + $0xfc] sm:$0xfe]   ;;  %v13681_v34 = vld [vmem:[#allocation3 + $0x104] ss:$0 sps:$4 sm:$0x11]  }
 0x1e2   :  { %v3028_v12 = vrot.slane %v13680_v24, 1  ;;  %v3029_v14 = vrot.slane %v13681_v34, 1  ;;  %v13684_v52 = vld [vmem:[#allocation3 + $0x108] sm:$0xfe]   ;;  %v13687_v3 = vld [vmem:[#allocation3 + $0x114] sm:$0xfe]  }
 0x1e3   :  { %4930 = vmatmul.mubr.bf16.gmra.mrb[44].mxu0 %v13658_v6  ;;  %v3027_v48 = vsel %vm2173_vm8, %v3025_v4, %v3026_v51  ;;  %v13685_v19 = vld [vmem:[#allocation3 + $0x110] ss:$0 sps:$4 sm:$0x11]   ;;  %v3031_v31 = vrot.slane %v13684_v52, 1  ;;  %v3034_v7 = vrot.slane %v13687_v3, 1  ;;  %v13686_v6 = vld [vmem:[#allocation3 + $0x108] sm:$0xff]  }
 0x1e4   :  { %4937 = vmatprep.mubr.bf16.mxu0 %v3012_v50  ;;  %v3030_v10 = vsel %vm2173_vm8, %v3028_v12, %v3029_v14  ;;  %v3032_v11 = vrot.slane %v13685_v19, 1  ;;  %v13688_v54 = vld [vmem:[#allocation3 + $0x11c] ss:$0 sps:$4 sm:$0x11]   ;;  %v13691_v27 = vld [vmem:[#allocation3 + $0x120] sm:$0xfe]  }
 0x1e5   :  { %v3035_v1 = vrot.slane %v13688_v54, 1  ;;  %v13692_v15 = vld [vmem:[#allocation3 + $0x128] ss:$0 sps:$4 sm:$0x11]   ;;  %v3037_v21 = vrot.slane %v13691_v27, 1  ;;  %v13689_v46 = vld [vmem:[#allocation3 + $0x114] sm:$0xff]  }
 0x1e6   :  { %v3033_v37 = vsel %vm2173_vm8, %v3031_v31, %v3032_v11  ;;  %v3038_v26 = vrot.slane %v13692_v15, 1  ;;  %v13695_v36 = vld [vmem:[#allocation3 + $0x134] ss:$0 sps:$4 sm:$0x11]   ;;  %v13698_v53 = vld [vmem:[#allocation3 + $0x138] sm:$0xfe]  }
 0x1e7   :  { %v3036_v50 = vsel %vm2173_vm8, %v3034_v7, %v3035_v1  ;;  %v3041_v20 = vrot.slane %v13695_v36, 1  ;;  %v13699_v39 = vld [vmem:[#allocation3 + $0x140] ss:$0 sps:$4 sm:$0x11]   ;;  %v3043_v29 = vrot.slane %v13698_v53, 1  ;;  %v13696_v43 = vld [vmem:[#allocation3 + $0x12c] sm:$0xff]  }
 0x1e8   :  { %v13702_v35 = vld [vmem:[#allocation3 + $0x14c] ss:$0 sps:$4 sm:$0x11]   ;;  %v13700_v62 = vld [vmem:[#allocation3 + $0x138] sm:$0xff]   ;;  %v13705_v16 = vld [vmem:[#allocation3 + $0x150] sm:$0xfe]  }
 0x1e9   :  { %v3047_v57 = vrot.slane %v13702_v35, 1  ;;  %v13706_v33 = vld [vmem:[#allocation3 + $0x158] ss:$0 sps:$4 sm:$0x11]   ;;  %v3049_v55 = vrot.slane %v13705_v16, 1  ;;  %vm5387_vm10 = vcmask 523264  }
 0x1ea   :  { %v13708_v56 = vld [vmem:[#allocation3 + $0x15c] sm:$0xfe]   ;;  %v13709_v45 = vld [vmem:[#allocation3 + $0x164] ss:$0 sps:$4 sm:$0x11]   ;;  %s14191_s24 = smov [#allocation5]  }
 0x1eb   :  { %4938 = vmatmul.mubr.bf16.gmra.mrb[48].mxu0 %v13661_v32  ;;  %v3039_v32 = vsel %vm2173_vm8, %v3037_v21, %v3038_v26  ;;  %v3052_v42 = vrot.slane %v13708_v56, 1  ;;  %v3053_v47 = vrot.slane %v13709_v45, 1  ;;  %v13712_v38 = vld [vmem:[#allocation3 + $0x168] sm:$0xfe]   ;;  %v13715_v24 = vld [vmem:[#allocation3 + $0x174] sm:$0xfe]  }
 0x1ec   :  { %4945 = vmatprep.mubr.bf16.mxu0 %v3015_v58  ;;  %v13694_v58 = vld [vmem:[#allocation3 + $0x12c] sm:$0xfe]   ;;  %v3055_v4 = vrot.slane %v13712_v38, 1  ;;  %v13716_v34 = vld [vmem:[#allocation3 + $0x17c] ss:$0 sps:$4 sm:$0x11]  }
 0x1ed   :  { %v3040_v49 = vrot.slane %v13694_v58, 1  ;;  %v13713_v44 = vld [vmem:[#allocation3 + $0x170] ss:$0 sps:$4 sm:$0x11]   ;;  %v3058_v12 = vrot.slane %v13715_v24, 1  ;;  %v3059_v14 = vrot.slane %v13716_v34, 1 }
 0x1ee   :  { %v3056_v51 = vrot.slane %v13713_v44, 1  ;;  %v13719_v52 = vld [vmem:[#allocation3 + $0x180] sm:$0xfe]   ;;  %v13720_v19 = vld [vmem:[#allocation3 + $0x188] ss:$0 sps:$4 sm:$0x11]  }
 0x1ef   :  { %v3042_v41 = vsel %vm2173_vm8, %v3040_v49, %v3041_v20  ;;  %v3061_v31 = vrot.slane %v13719_v52, 1  ;;  %v3062_v11 = vrot.slane %v13720_v19, 1  ;;  %v13722_v3 = vld [vmem:[#allocation3 + $0x18c] sm:$0xfe]   ;;  %v13729_v58 = vld [vmem:[#allocation3 + $0x18] sm:$0xfe]  }
 0x1f0   :  { %v13723_v54 = vld [vmem:[#allocation3 + $0x194] ss:$0 sps:$4 sm:$0x11]   ;;  %v3064_v7 = vrot.slane %v13722_v3, 1  ;;  %v3775_v49 = vrot.slane %v13729_v58, 1  ;;  %s11903_s25 = sshll.u32 %s14191_s24, 4  ;;  %s11904_s25 = int_to_ptr.vmem [resolvable:$true] %s11903_s25 }
 0x1f1   :  { %v3065_v1 = vrot.slane %v13723_v54, 1  ;;  %v13727_v27 = vld [vmem:[#allocation3 + $0x1a0] ss:$0 sps:$4 sm:$0x11]   ;;  %v13732_v53 = vld [vmem:[#allocation3 + $0x24] sm:$0xfe]   ;;  %p14170_p1 = scmp.lt.s32.totalorder %s11904_s25, %s11904_s25 }
 0x1f2   :  { %v3068_v26 = vrot.slane %v13727_v27, 1  ;;  %v13730_v36 = vld [vmem:[#allocation3 + $0x20] ss:$0 sps:$4 sm:$0x11]   ;;  %v13741_v56 = vld [vmem:[#allocation3 + $0x48] sm:$0xfe]  }
 0x1f3   :  { %4946 = vmatmul.mubr.bf16.gmra.mrb[52].mxu0 %v13665_v30  ;;  %v3044_v30 = vrot.slane %v13699_v39, 1  ;;  %v3066_v15 = vsel %vm2173_vm8, %v3064_v7, %v3065_v1  ;;  %v3776_v20 = vrot.slane %v13730_v36, 1  ;;  %v13733_v39 = vld [vmem:[#allocation3 + $0x2c] ss:$0 sps:$4 sm:$0x11]  }
 0x1f4   :  { %4953 = vmatprep.mubr.bf16.mxu0 %v3018_v0  ;;  %v13701_v0 = vld [vmem:[#allocation3 + $0x144] sm:$0xfe]   ;;  %v13736_v35 = vld [vmem:[#allocation3 + $0x38] ss:$0 sps:$4 sm:$0x11]  }
 0x1f5   :  { %v3045_v63 = vsel %vm2173_vm8, %v3043_v29, %v3044_v30  ;;  %v3046_v40 = vrot.slane %v13701_v0, 1  ;;  %v3778_v29 = vrot.slane %v13732_v53, 1  ;;  %v3779_v30 = vrot.slane %v13733_v39, 1  ;;  %v13735_v0 = vld [vmem:[#allocation3 + $0x30] sm:$0xfe]  }
 0x1f6   :  { %v13738_v16 = vld [vmem:[#allocation3 + $0x3c] sm:$0xfe]   ;;  %v13742_v45 = vld [vmem:[#allocation3 + $0x50] ss:$0 sps:$4 sm:$0x11]  }
 0x1f7   :  { %v3048_v2 = vsel %vm2173_vm8, %v3046_v40, %v3047_v57  ;;  %v3781_v40 = vrot.slane %v13735_v0, 1  ;;  %v3782_v57 = vrot.slane %v13736_v35, 1  ;;  %v13744_v38 = vld [vmem:[#allocation3 + $0x54] sm:$0xfe]   ;;  %v13747_v24 = vld [vmem:[#allocation3 + $0x60] sm:$0xfe]  }
 0x1f8   :  { %v13745_v44 = vld [vmem:[#allocation3 + $0x5c] ss:$0 sps:$4 sm:$0x11]   ;;  %v13748_v34 = vld [vmem:[#allocation3 + $0x68] ss:$0 sps:$4 sm:$0x11]  }
 0x1f9   :  { %v13750_v52 = vld [vmem:[#allocation3 + $0x6c] sm:$0xfe]   ;;  %v13751_v19 = vld [vmem:[#allocation3 + $0x74] ss:$0 sps:$4 sm:$0x11]  }
 0x1fa   :  { %v13753_v3 = vld [vmem:[#allocation3 + $0x78] sm:$0xfe]   ;;  %v13754_v54 = vld [vmem:[#allocation3 + $0x80] ss:$0 sps:$4 sm:$0x11]  }
 0x1fb   :  { %4954 = vmatmul.mubr.bf16.gmra.mrb[56].mxu0 %v13668_v59  ;;  %v3050_v59 = vrot.slane %v13706_v33, 1  ;;  %v13739_v33 = vld [vmem:[#allocation3 + $0x44] ss:$0 sps:$4 sm:$0x11]   ;;  %v3799_v7 = vrot.slane %v13753_v3, 1  ;;  %v3800_v1 = vrot.slane %v13754_v54, 1 }
 0x1fc   :  { %4961 = vmatprep.mubr.bf16.mxu0 %v3021_v17  ;;  %v13703_v17 = vld [vmem:[#allocation3 + $0x144] sm:$0xff]   ;;  %v13759_v58 = vld [vmem:[#allocation3 + $0x90] sm:$0xfe]   ;;  %v13760_v36 = vld [vmem:[#allocation3 + $0x98] ss:$0 sps:$4 sm:$0x11]  }
 0x1fd   :  { %v3051_v25 = vsel %vm2173_vm8, %v3049_v55, %v3050_v59  ;;  %v3784_v55 = vrot.slane %v13738_v16, 1  ;;  %v3785_v59 = vrot.slane %v13739_v33, 1  ;;  %v13756_v27 = vld [vmem:[#allocation3 + $0x84] sm:$0xfe]   ;;  %v13762_v53 = vld [vmem:[#allocation3 + $0x9c] sm:$0xfe]  }
 0x1fe   :  { %v13763_v39 = vld [vmem:[#allocation3 + $0xa4] ss:$0 sps:$4 sm:$0x11]   ;;  %v13765_v0 = vld [vmem:[#allocation3 + $0xa8] sm:$0xfe]  }
 0x1ff   :  { %v13766_v35 = vld [vmem:[#allocation3 + $0xb0] ss:$0 sps:$4 sm:$0x11]   ;;  %v13768_v16 = vld [vmem:[#allocation3 + $0xb4] sm:$0xfe]  }
 0x200   :  { %v13769_v33 = vld [vmem:[#allocation3 + $0xbc] ss:$0 sps:$4 sm:$0x11]   ;;  %v13783_v3 = vld [vmem:[#allocation3 + $0x108] sm:$0xfe]  }
 0x201   :  { %v13784_v54 = vld [vmem:[#allocation3 + $0x110] ss:$0 sps:$4 sm:$0x11]  }
 0x203   :  { %4962 = vmatmul.mubr.bf16.gmra.mrb[60].mxu0 %v13672_v5  ;;  %v13707_v5 = vld [vmem:[#allocation3 + $0x150] sm:$0xff]  }
 0x204   :  { %4969 = vmatprep.mubr.bf16.mxu0 %v3024_v23  ;;  %v3054_v23 = vsel %vm2173_vm8, %v3052_v42, %v3053_v47  ;;  %v3787_v42 = vrot.slane %v13741_v56, 1  ;;  %v3788_v47 = vrot.slane %v13742_v45, 1  ;;  %v13771_v56 = vld [vmem:[#allocation3 + $0xc0] sm:$0xfe]  }
 0x205   :  { %v13772_v45 = vld [vmem:[#allocation3 + $0xc8] ss:$0 sps:$4 sm:$0x11]  }
 0x20b   :  { %4970 = vmatmul.mubr.bf16.gmra.mrb[64].mxu0 %v13675_v22  ;;  %v13710_v22 = vld [vmem:[#allocation3 + $0x15c] sm:$0xff]  }
 0x20c   :  { %4977 = vmatprep.mubr.bf16.mxu0 %v3027_v48  ;;  %v3057_v48 = vsel %vm2173_vm8, %v3055_v4, %v3056_v51  ;;  %v3790_v4 = vrot.slane %v13744_v38, 1  ;;  %v3791_v51 = vrot.slane %v13745_v44, 1  ;;  %v13775_v38 = vld [vmem:[#allocation3 + $0xd4] ss:$0 sps:$4 sm:$0x11]  }
 0x213   :  { %4978 = vmatmul.mubr.bf16.gmra.mrb[68].mxu0 %v13679_v60  ;;  %v13714_v60 = vld [vmem:[#allocation3 + $0x168] sm:$0xff]  }
 0x214   :  { %4985 = vmatprep.mubr.bf16.mxu0 %v3030_v10  ;;  %v3060_v10 = vsel %vm2173_vm8, %v3058_v12, %v3059_v14  ;;  %v3793_v12 = vrot.slane %v13747_v24, 1  ;;  %v3794_v14 = vrot.slane %v13748_v34, 1  ;;  %v13777_v24 = vld [vmem:[#allocation3 + $0xf0] sm:$0xfe]  }
 0x215   :  { %v13778_v34 = vld [vmem:[#allocation3 + $0xf8] ss:$0 sps:$4 sm:$0x11]  }
 0x21b   :  { %4986 = vmatmul.mubr.bf16.gmra.mrb[72].mxu0 %v13682_v13  ;;  %v13717_v13 = vld [vmem:[#allocation3 + $0x174] sm:$0xff]  }
 0x21c   :  { %4993 = vmatprep.mubr.bf16.mxu0 %v3033_v37  ;;  %v3063_v37 = vsel %vm2173_vm8, %v3061_v31, %v3062_v11  ;;  %v3796_v31 = vrot.slane %v13750_v52, 1  ;;  %v3797_v11 = vrot.slane %v13751_v19, 1  ;;  %v13780_v52 = vld [vmem:[#allocation3 + $0xfc] sm:$0xfe]  }
 0x21d   :  { %v13781_v19 = vld [vmem:[#allocation3 + $0x104] ss:$0 sps:$4 sm:$0x11]  }
 0x223   :  { %4994 = vmatmul.mubr.bf16.gmra.mrb[76].mxu0 %v13686_v6  ;;  %v13721_v6 = vld [vmem:[#allocation3 + $0x180] sm:$0xff]  }
 0x224   :  { %5001 = vmatprep.mubr.bf16.mxu0 %v3036_v50  ;;  %v13726_v50 = vld [vmem:[#allocation3 + $0x198] sm:$0xfe]  }
 0x225   :  { %v3067_v21 = vrot.slane %v13726_v50, 1  ;;  %v3801_v50 = vsel %vm2173_vm8, %v3799_v7, %v3800_v1  ;;  %v3829_v7 = vrot.slane %v13783_v3, 1  ;;  %v3830_v1 = vrot.slane %v13784_v54, 1  ;;  %v13813_v3 = vld [vmem:[#allocation3 + $0x180] sm:$0xfe]  }
 0x226   :  { %v13814_v54 = vld [vmem:[#allocation3 + $0x188] ss:$0 sps:$4 sm:$0x11]  }
 0x22b   :  { %5002 = vmatmul.mubr.bf16.gmra.mrb[80].mxu0 %v13689_v46  ;;  %v13724_v46 = vld [vmem:[#allocation3 + $0x18c] sm:$0xff]  }
 0x22c   :  { %5009 = vmatprep.mubr.bf16.mxu0 %v3039_v32  ;;  %v3069_v32 = vsel %vm2173_vm8, %v3067_v21, %v3068_v26  ;;  %v3802_v21 = vrot.slane %v13756_v27, 1  ;;  %v13786_v27 = vld [vmem:[#allocation3 + $0x114] sm:$0xfe]  }
 0x233   :  { %5010 = vmatmul.mubr.bf16.gmra.mrb[84].mxu0 %v13693_v61  ;;  %v13728_v61 = vld [vmem:[#allocation3 + $0x198] sm:$0xff]  }
 0x234   :  { %5017 = vmatprep.mubr.bf16.mxu0 %v3042_v41  ;;  %v3777_v41 = vsel %vm2173_vm8, %v3775_v49, %v3776_v20  ;;  %v3805_v49 = vrot.slane %v13759_v58, 1  ;;  %v3806_v20 = vrot.slane %v13760_v36, 1  ;;  %v13789_v58 = vld [vmem:[#allocation3 + $0x120] sm:$0xfe]  }
 0x235   :  { %v13790_v36 = vld [vmem:[#allocation3 + $0x128] ss:$0 sps:$4 sm:$0x11]  }
 0x23b   :  { %5018 = vmatmul.mubr.bf16.gmra.mrb[88].mxu0 %v13696_v43  ;;  %v13731_v43 = vld [vmem:[#allocation3 + $0x18] sm:$0xff]  }
 0x23c   :  { %5025 = vmatprep.mubr.bf16.mxu0 %v3045_v63  ;;  %v3780_v63 = vsel %vm2173_vm8, %v3778_v29, %v3779_v30  ;;  %v3808_v29 = vrot.slane %v13762_v53, 1  ;;  %v3809_v30 = vrot.slane %v13763_v39, 1  ;;  %v13792_v53 = vld [vmem:[#allocation3 + $0x12c] sm:$0xfe]  }
 0x23d   :  { %v13793_v39 = vld [vmem:[#allocation3 + $0x134] ss:$0 sps:$4 sm:$0x11]  }
 0x243   :  { %5026 = vmatmul.mubr.bf16.gmra.mrb[92].mxu0 %v13700_v62  ;;  %v13734_v62 = vld [vmem:[#allocation3 + $0x24] sm:$0xff]  }
 0x244   :  { %5033 = vmatprep.mubr.bf16.mxu0 %v3048_v2  ;;  %v3783_v2 = vsel %vm2173_vm8, %v3781_v40, %v3782_v57  ;;  %v3811_v40 = vrot.slane %v13765_v0, 1  ;;  %v3812_v57 = vrot.slane %v13766_v35, 1  ;;  %v13795_v0 = vld [vmem:[#allocation3 + $0x138] sm:$0xfe]  }
 0x245   :  { %v13796_v35 = vld [vmem:[#allocation3 + $0x140] ss:$0 sps:$4 sm:$0x11]  }
 0x24b   :  { %5034 = vmatmul.mubr.bf16.gmra.mrb[96].mxu0 %v13703_v17  ;;  %v13737_v17 = vld [vmem:[#allocation3 + $0x30] sm:$0xff]  }
 0x24c   :  { %5041 = vmatprep.mubr.bf16.mxu0 %v3051_v25  ;;  %v3786_v25 = vsel %vm2173_vm8, %v3784_v55, %v3785_v59  ;;  %v3814_v55 = vrot.slane %v13768_v16, 1  ;;  %v3815_v59 = vrot.slane %v13769_v33, 1  ;;  %v13798_v16 = vld [vmem:[#allocation3 + $0x144] sm:$0xfe]  }
 0x24d   :  { %v13799_v33 = vld [vmem:[#allocation3 + $0x14c] ss:$0 sps:$4 sm:$0x11]  }
 0x253   :  { %5042 = vmatmul.mubr.bf16.gmra.mrb[100].mxu0 %v13707_v5  ;;  %v13740_v5 = vld [vmem:[#allocation3 + $0x3c] sm:$0xff]  }
 0x254   :  { %5049 = vmatprep.mubr.bf16.mxu0 %v3054_v23  ;;  %v3789_v23 = vsel %vm2173_vm8, %v3787_v42, %v3788_v47  ;;  %v3817_v42 = vrot.slane %v13771_v56, 1  ;;  %v3818_v47 = vrot.slane %v13772_v45, 1  ;;  %v13801_v56 = vld [vmem:[#allocation3 + $0x150] sm:$0xfe]  }
 0x255   :  { %v13802_v45 = vld [vmem:[#allocation3 + $0x158] ss:$0 sps:$4 sm:$0x11]  }
 0x256   :  { %v3819_v44 = vsel %vm2173_vm8, %v3817_v42, %v3818_v47  ;;  %v3847_v42 = vrot.slane %v13801_v56, 1  ;;  %v3848_v47 = vrot.slane %v13802_v45, 1 }
 0x25b   :  { %5050 = vmatmul.mubr.bf16.gmra.mrb[104].mxu0 %v13710_v22  ;;  %v13743_v22 = vld [vmem:[#allocation3 + $0x48] sm:$0xff]  }
 0x25c   :  { %5057 = vmatprep.mubr.bf16.mxu0 %v3057_v48  ;;  %v3792_v48 = vsel %vm2173_vm8, %v3790_v4, %v3791_v51  ;;  %v3821_v51 = vrot.slane %v13775_v38, 1  ;;  %v13804_v38 = vld [vmem:[#allocation3 + $0x15c] sm:$0xfe]  }
 0x263   :  { %5058 = vmatmul.mubr.bf16.gmra.mrb[108].mxu0 %v13714_v60  ;;  %v13746_v60 = vld [vmem:[#allocation3 + $0x54] sm:$0xff]  }
 0x264   :  { %5065 = vmatprep.mubr.bf16.mxu0 %v3060_v10  ;;  %v3795_v10 = vsel %vm2173_vm8, %v3793_v12, %v3794_v14  ;;  %v13776_v12 = vld [vmem:[#allocation3 + $0xcc] sm:$0xff]   ;;  %v3823_v14 = vrot.slane %v13777_v24, 1 }
 0x265   :  { %v13807_v24 = vld [vmem:[#allocation3 + $0x168] sm:$0xfe]  }
 0x26b   :  { %5066 = vmatmul.mubr.bf16.gmra.mrb[112].mxu0 %v13717_v13  ;;  %v13749_v13 = vld [vmem:[#allocation3 + $0x60] sm:$0xff]  }
 0x26c   :  { %5073 = vmatprep.mubr.bf16.mxu0 %v3063_v37  ;;  %v3798_v37 = vsel %vm2173_vm8, %v3796_v31, %v3797_v11  ;;  %v3826_v31 = vrot.slane %v13780_v52, 1  ;;  %v3827_v11 = vrot.slane %v13781_v19, 1  ;;  %v13810_v52 = vld [vmem:[#allocation3 + $0x174] sm:$0xfe]  }
 0x26d   :  { %v13811_v19 = vld [vmem:[#allocation3 + $0x17c] ss:$0 sps:$4 sm:$0x11]  }
 0x273   :  { %5074 = vmatmul.mubr.bf16.gmra.mrb[116].mxu0 %v13721_v6  ;;  %v13752_v6 = vld [vmem:[#allocation3 + $0x6c] sm:$0xff]  }
 0x274   :  { %5081 = vmatprep.mubr.bf16.mxu0 %v3066_v15  ;;  %v13757_v15 = vld [vmem:[#allocation3 + $0x8c] ss:$0 sps:$4 sm:$0x11]  }
 0x275   :  { %v3803_v26 = vrot.slane %v13757_v15, 1  ;;  %v13787_v15 = vld [vmem:[#allocation3 + $0x11c] ss:$0 sps:$4 sm:$0x11]  }
 0x27b   :  { %5082 = vmatmul.mubr.bf16.gmra.mrb[120].mxu0 %v13724_v46  ;;  %v13755_v46 = vld [vmem:[#allocation3 + $0x78] sm:$0xff]  }
 0x27c   :  { %5089 = vmatprep.mubr.bf16.mxu0 %v3069_v32  ;;  %v3804_v32 = vsel %vm2173_vm8, %v3802_v21, %v3803_v26  ;;  %v3832_v21 = vrot.slane %v13786_v27, 1  ;;  %v3833_v26 = vrot.slane %v13787_v15, 1 }
 0x283   :  { %5090 = vmatmul.mubr.bf16.gmra.mrb[124].mxu0 %v13728_v61  ;;  %v13758_v61 = vld [vmem:[#allocation3 + $0x84] sm:$0xff]  }
 0x284   :  { %5130 = vmatprep.mubr.bf16.mxu0 %v3777_v41  ;;  %v3807_v41 = vsel %vm2173_vm8, %v3805_v49, %v3806_v20  ;;  %v3835_v49 = vrot.slane %v13789_v58, 1  ;;  %v3836_v20 = vrot.slane %v13790_v36, 1 }
 0x28b   :  { %5131 = vmatmul.mubr.bf16.vlgmr.msra.gmra.mrb[0].mxu0 %v13731_v43  ;;  %v13761_v43 = vld [vmem:[#allocation3 + $0x90] sm:$0xff]  }
 0x28c   :  { %5138 = vmatprep.mubr.bf16.mxu0 %v3780_v63  ;;  %v3810_v63 = vsel %vm2173_vm8, %v3808_v29, %v3809_v30  ;;  %v3838_v29 = vrot.slane %v13792_v53, 1  ;;  %v3839_v30 = vrot.slane %v13793_v39, 1  ;;  %v13815_v53 = vld [vmem:[#allocation3 + $0x180] sm:$0xff]  }
 0x293   :  { %5139 = vmatmul.mubr.bf16.gmra.mrb[4].mxu0 %v13734_v62  ;;  %v13764_v62 = vld [vmem:[#allocation3 + $0x9c] sm:$0xff]  }
 0x294   :  { %5146 = vmatprep.mubr.bf16.mxu0 %v3783_v2  ;;  %v3813_v2 = vsel %vm2173_vm8, %v3811_v40, %v3812_v57  ;;  %v3841_v40 = vrot.slane %v13795_v0, 1  ;;  %v3842_v57 = vrot.slane %v13796_v35, 1 }
 0x29b   :  { %5147 = vmatmul.mubr.bf16.gmra.mrb[8].mxu0 %v13737_v17  ;;  %v13767_v17 = vld [vmem:[#allocation3 + $0xa8] sm:$0xff]  }
 0x29c   :  { %5154 = vmatprep.mubr.bf16.mxu0 %v3786_v25  ;;  %v3816_v25 = vsel %vm2173_vm8, %v3814_v55, %v3815_v59  ;;  %v3844_v55 = vrot.slane %v13798_v16, 1  ;;  %v3845_v59 = vrot.slane %v13799_v33, 1  ;;  %v13823_v16 = vld [vmem:[#allocation3 + $0x1ac] ss:$0 sps:$4 sm:$0x11]  }
 0x2a3   :  { %5155 = vmatmul.mubr.bf16.gmra.mrb[12].mxu0 %v13740_v5  ;;  %v13770_v5 = vld [vmem:[#allocation3 + $0xb4] sm:$0xff]  }
 0x2a4   :  { %5162 = vmatprep.mubr.bf16.mxu0 %v3789_v23  ;;  %v13774_v23 = vld [vmem:[#allocation3 + $0xcc] sm:$0xfe]  }
 0x2a5   :  { %v3820_v4 = vrot.slane %v13774_v23, 1  ;;  %v3849_v23 = vsel %vm2173_vm8, %v3847_v42, %v3848_v47  ;;  %v13821_v42 = vld [vmem:[#allocation3 + $0x198] sm:$0xff]  }
 0x2ab   :  { %5163 = vmatmul.mubr.bf16.gmra.mrb[16].mxu0 %v13743_v22  ;;  %v13773_v22 = vld [vmem:[#allocation3 + $0xc0] sm:$0xff]  }
 0x2ac   :  { %5170 = vmatprep.mubr.bf16.mxu0 %v3792_v48  ;;  %v3822_v48 = vsel %vm2173_vm8, %v3820_v4, %v3821_v51  ;;  %v3850_v4 = vrot.slane %v13804_v38, 1  ;;  %v13824_v38 = vld [vmem:[#allocation3 + $0x1a4] sm:$0xff]  }
 0x2b3   :  { %5171 = vmatmul.mubr.bf16.gmra.mrb[20].mxu0 %v13746_v60  ;;  %v3824_v60 = vrot.slane %v13778_v34, 1  ;;  %v13808_v34 = vld [vmem:[#allocation3 + $0x170] ss:$0 sps:$4 sm:$0x11]  }
 0x2b4   :  { %5178 = vmatprep.mubr.bf16.mxu0 %v3795_v10 }
 0x2b5   :  { %v3825_v10 = vsel %vm2173_vm8, %v3823_v14, %v3824_v60  ;;  %v3854_v14 = vrot.slane %v13808_v34, 1  ;;  %v13806_v60 = vld [vmem:[#allocation3 + $0x15c] sm:$0xff]  }
 0x2bb   :  { %5179 = vmatmul.mubr.bf16.gmra.mrb[24].mxu0 %v13749_v13  ;;  %v13779_v13 = vld [vmem:[#allocation3 + $0xf0] sm:$0xff]  }
 0x2bc   :  { %5186 = vmatprep.mubr.bf16.mxu0 %v3798_v37  ;;  %v3828_v37 = vsel %vm2173_vm8, %v3826_v31, %v3827_v11  ;;  %v3856_v31 = vrot.slane %v13810_v52, 1  ;;  %v3857_v11 = vrot.slane %v13811_v19, 1 }
 0x2c3   :  { %5187 = vmatmul.mubr.bf16.gmra.mrb[28].mxu0 %v13752_v6  ;;  %v13782_v6 = vld [vmem:[#allocation3 + $0xfc] sm:$0xff]  }
 0x2c4   :  { %5194 = vmatprep.mubr.bf16.mxu0 %v3801_v50  ;;  %v3831_v50 = vsel %vm2173_vm8, %v3829_v7, %v3830_v1 }
 0x2cb   :  { %5195 = vmatmul.mubr.bf16.gmra.mrb[32].mxu0 %v13755_v46  ;;  %v13785_v46 = vld [vmem:[#allocation3 + $0x108] sm:$0xff]  }
 0x2cc   :  { %5202 = vmatprep.mubr.bf16.mxu0 %v3804_v32  ;;  %v3834_v32 = vsel %vm2173_vm8, %v3832_v21, %v3833_v26  ;;  %v13812_v21 = vld [vmem:[#allocation3 + $0x174] sm:$0xff]  }
 0x2d3   :  { %5203 = vmatmul.mubr.bf16.gmra.mrb[36].mxu0 %v13758_v61  ;;  %v13788_v61 = vld [vmem:[#allocation3 + $0x114] sm:$0xff]  }
 0x2d4   :  { %5210 = vmatprep.mubr.bf16.mxu0 %v3807_v41  ;;  %v3837_v41 = vsel %vm2173_vm8, %v3835_v49, %v3836_v20 }
 0x2db   :  { %5211 = vmatmul.mubr.bf16.gmra.mrb[40].mxu0 %v13761_v43  ;;  %v13791_v43 = vld [vmem:[#allocation3 + $0x120] sm:$0xff]  }
 0x2dc   :  { %5218 = vmatprep.mubr.bf16.mxu0 %v3810_v63  ;;  %v3840_v63 = vsel %vm2173_vm8, %v3838_v29, %v3839_v30  ;;  %v13819_v29 = vld [vmem:[#allocation3 + $0x198] sm:$0xfe]   ;;  %v13820_v30 = vld [vmem:[#allocation3 + $0x1a0] ss:$0 sps:$4 sm:$0x11]  }
 0x2dd   :  { %v3865_v0 = vrot.slane %v13819_v29, 1  ;;  %v3866_v35 = vrot.slane %v13820_v30, 1 }
 0x2df   :  { %v3867_v33 = vsel %vm2173_vm8, %v3865_v0, %v3866_v35 }
 0x2e3   :  { %5219 = vmatmul.mubr.bf16.gmra.mrb[44].mxu0 %v13764_v62  ;;  %v13794_v62 = vld [vmem:[#allocation3 + $0x12c] sm:$0xff]  }
 0x2e4   :  { %5226 = vmatprep.mubr.bf16.mxu0 %v3813_v2  ;;  %v3843_v2 = vsel %vm2173_vm8, %v3841_v40, %v3842_v57  ;;  %v13818_v57 = vld [vmem:[#allocation3 + $0x18c] sm:$0xff]  }
 0x2eb   :  { %5227 = vmatmul.mubr.bf16.gmra.mrb[48].mxu0 %v13767_v17  ;;  %v13797_v17 = vld [vmem:[#allocation3 + $0x138] sm:$0xff]  }
 0x2ec   :  { %5234 = vmatprep.mubr.bf16.mxu0 %v3816_v25  ;;  %v3846_v25 = vsel %vm2173_vm8, %v3844_v55, %v3845_v59  ;;  %v3869_v59 = vrot.slane %v13823_v16, 1 }
 0x2f3   :  { %5235 = vmatmul.mubr.bf16.gmra.mrb[52].mxu0 %v13770_v5  ;;  %v13800_v5 = vld [vmem:[#allocation3 + $0x144] sm:$0xff]  }
 0x2f4   :  { %5242 = vmatprep.mubr.bf16.mxu0 %v3819_v44  ;;  %v13805_v44 = vld [vmem:[#allocation3 + $0x164] ss:$0 sps:$4 sm:$0x11]  }
 0x2f5   :  { %v3851_v51 = vrot.slane %v13805_v44, 1 }
 0x2fb   :  { %5243 = vmatmul.mubr.bf16.gmra.mrb[56].mxu0 %v13773_v22  ;;  %v13803_v22 = vld [vmem:[#allocation3 + $0x150] sm:$0xff]  }
 0x2fc   :  { %5250 = vmatprep.mubr.bf16.mxu0 %v3822_v48  ;;  %v3852_v48 = vsel %vm2173_vm8, %v3850_v4, %v3851_v51 }
 0x303   :  { %5251 = vmatmul.mubr.bf16.gmra.mrb[60].mxu0 %v13776_v12  ;;  %v3853_v12 = vrot.slane %v13807_v24, 1 }
 0x304   :  { %5258 = vmatprep.mubr.bf16.mxu0 %v3825_v10 }
 0x305   :  { %v3855_v10 = vsel %vm2173_vm8, %v3853_v12, %v3854_v14 }
 0x30b   :  { %5259 = vmatmul.mubr.bf16.gmra.mrb[64].mxu0 %v13779_v13  ;;  %v13809_v13 = vld [vmem:[#allocation3 + $0x168] sm:$0xff]  }
 0x30c   :  { %5266 = vmatprep.mubr.bf16.mxu0 %v3828_v37  ;;  %v3858_v37 = vsel %vm2173_vm8, %v3856_v31, %v3857_v11  ;;  %v15770_v11 = vld [vmem:[%s19384_s2] ss:$0 sm:$0xff] }
 0x313   :  { %5267 = vmatmul.mubr.bf16.gmra.mrb[68].mxu0 %v13782_v6  ;;  %v3859_v6 = vrot.slane %v13813_v3, 1 }
 0x314   :  { %5274 = vmatprep.mubr.bf16.mxu0 %v3831_v50  ;;  %v3860_v50 = vrot.slane %v13814_v54, 1 }
 0x316   :  { %v3861_v26 = vsel %vm2173_vm8, %v3859_v6, %v3860_v50 }
 0x31b   :  { %5275 = vmatmul.mubr.bf16.gmra.mrb[72].mxu0 %v13785_v46  ;;  %v13816_v46 = vld [vmem:[#allocation3 + $0x18c] sm:$0xfe]  }
 0x31c   :  { %5282 = vmatprep.mubr.bf16.mxu0 %v3834_v32  ;;  %v13817_v32 = vld [vmem:[#allocation3 + $0x194] ss:$0 sps:$4 sm:$0x11]   ;;  %v3862_v49 = vrot.slane %v13816_v46, 1 }
 0x31d   :  { %v3863_v20 = vrot.slane %v13817_v32, 1 }
 0x31f   :  { %v3864_v39 = vsel %vm2173_vm8, %v3862_v49, %v3863_v20 }
 0x323   :  { %5283 = vmatmul.mubr.bf16.gmra.mrb[76].mxu0 %v13788_v61 }
 0x324   :  { %5290 = vmatprep.mubr.bf16.mxu0 %v3837_v41 }
 0x32b   :  { %5291 = vmatmul.mubr.bf16.gmra.mrb[80].mxu0 %v13791_v43 }
 0x32c   :  { %5298 = vmatprep.mubr.bf16.mxu0 %v3840_v63 }
 0x333   :  { %5299 = vmatmul.mubr.bf16.gmra.mrb[84].mxu0 %v13794_v62 }
 0x334   :  { %5306 = vmatprep.mubr.bf16.mxu0 %v3843_v2  ;;  %v13822_v2 = vld [vmem:[#allocation3 + $0x1a4] sm:$0xfe]  }
 0x335   :  { %v3868_v55 = vrot.slane %v13822_v2, 1 }
 0x337   :  { %v3870_v47 = vsel %vm2173_vm8, %v3868_v55, %v3869_v59 }
 0x33b   :  { %5307 = vmatmul.mubr.bf16.gmra.mrb[88].mxu0 %v13797_v17 }
 0x33c   :  { %5314 = vmatprep.mubr.bf16.mxu0 %v3846_v25 }
 0x343   :  { %5315 = vmatmul.mubr.bf16.gmra.mrb[92].mxu0 %v13800_v5 }
 0x344   :  { %5322 = vmatprep.mubr.bf16.mxu0 %v3849_v23 }
 0x34b   :  { %5323 = vmatmul.mubr.bf16.gmra.mrb[96].mxu0 %v13803_v22 }
 0x34c   :  { %5330 = vmatprep.mubr.bf16.mxu0 %v3852_v48 }
 0x353   :  { %5331 = vmatmul.mubr.bf16.gmra.mrb[100].mxu0 %v13806_v60 }
 0x354   :  { %5338 = vmatprep.mubr.bf16.mxu0 %v3855_v10 }
 0x35b   :  { %5339 = vmatmul.mubr.bf16.gmra.mrb[104].mxu0 %v13809_v13 }
 0x35c   :  { %5346 = vmatprep.mubr.bf16.mxu0 %v3858_v37 }
 0x35e   :  { %v15741_v7 = vpop.f32.mrb[0].mxu0 }
 0x35f   :  { %v5134_v1 = vpop.f32.mrb[1].mxu0  ;;  %v15777_v37 = vadd.f32 %v15770_v11, %v15741_v7 }
 0x360   :  { %v5135_v27 = vpop.f32.mrb[2].mxu0 }
 0x361   :  { %v5137_v15 = vpop.f32.mrb[3].mxu0  ;;  %v15773_v13 = vadd.f32 %v15770_v11, %v5135_v27  ;;  %v5521_v27 = vmul.f32 %v15777_v37, %v15777_v37  ;;  %v5388_v46 = vsel %vm5387_vm10, %v15777_v37, 0.0 }
 0x363   :  { %5347 = vmatmul.mubr.bf16.gmra.mrb[108].mxu0 %v13812_v21  ;;  %v5522_v1 = vmul.f32 %v15773_v13, %v15773_v13  ;;  %v5389_v15 = vsel %vm5387_vm10, %v15773_v13, 0.0  ;;  %v5585_v20 = vsel %vm5387_vm10, %v5521_v27, 0.0 }
 0x364   :  { %5354 = vmatprep.mubr.bf16.mxu0 %v3861_v26  ;;  %v5390_v49 = vadd.f32 %v5389_v15, %v5388_v46 }
 0x365   :  { %v5586_v32 = vsel %vm5387_vm10, %v5522_v1, 0.0 }
 0x366   :  { %v5140_v58 = vpop.f32.mrb[4].mxu0 }
 0x367   :  { %v5142_v36 = vpop.f32.mrb[5].mxu0  ;;  %v15780_v3 = vadd.f32 %v15770_v11, %v5140_v58 }
 0x368   :  { %v5143_v61 = vpop.f32.mrb[6].mxu0 }
 0x369   :  { %v5145_v41 = vpop.f32.mrb[7].mxu0  ;;  %v5523_v7 = vmul.f32 %v15780_v3, %v15780_v3  ;;  %v15795_v21 = vadd.f32 %v15770_v11, %v5143_v61  ;;  %v5391_v58 = vsel %vm5387_vm10, %v15780_v3, 0.0 }
 0x36b   :  { %5355 = vmatmul.mubr.bf16.gmra.mrb[112].mxu0 %v13815_v53  ;;  %v5588_v41 = vsel %vm5387_vm10, %v5523_v7, 0.0  ;;  %v5524_v61 = vmul.f32 %v15795_v21, %v15795_v21  ;;  %v5587_v53 = vadd.f32 %v5586_v32, %v5585_v20  ;;  %v5393_v30 = vsel %vm5387_vm10, %v15795_v21, 0.0 }
 0x36c   :  { %5362 = vmatprep.mubr.bf16.mxu0 %v3864_v39  ;;  %v5392_v39 = vadd.f32 %v5391_v58, %v5390_v49 }
 0x36d   :  { %v5589_v35 = vadd.f32 %v5588_v41, %v5587_v53 }
 0x36e   :  { %v5148_v43 = vpop.f32.mrb[8].mxu0  ;;  %v5394_v55 = vadd.f32 %v5393_v30, %v5392_v39 }
 0x36f   :  { %v5150_v63 = vpop.f32.mrb[9].mxu0  ;;  %v15803_v36 = vadd.f32 %v15770_v11, %v5148_v43 }
 0x370   :  { %v15745_v40 = vpop.f32.mrb[10].mxu0 }
 0x371   :  { %v5153_v62 = vpop.f32.mrb[11].mxu0  ;;  %v5525_v63 = vmul.f32 %v15803_v36, %v15803_v36  ;;  %v15817_v43 = vadd.f32 %v15770_v11, %v15745_v40  ;;  %v5395_v2 = vsel %vm5387_vm10, %v15803_v36, 0.0 }
 0x372   :  { %v5590_v62 = vsel %vm5387_vm10, %v5524_v61, 0.0 }
 0x373   :  { %5363 = vmatmul.mubr.bf16.gmra.mrb[116].mxu0 %v13818_v57  ;;  %v5592_v59 = vsel %vm5387_vm10, %v5525_v63, 0.0  ;;  %v5526_v40 = vmul.f32 %v15817_v43, %v15817_v43 }
 0x374   :  { %5370 = vmatprep.mubr.bf16.mxu0 %v3867_v33 }
 0x376   :  { %v5156_v17 = vpop.f32.mrb[12].mxu0 }
 0x377   :  { %v5158_v25 = vpop.f32.mrb[13].mxu0  ;;  %v15825_v16 = vadd.f32 %v15770_v11, %v5156_v17 }
 0x378   :  { %v15748_v56 = vpop.f32.mrb[14].mxu0  ;;  %v5591_v25 = vadd.f32 %v5590_v62, %v5589_v35 }
 0x379   :  { %v5161_v45 = vpop.f32.mrb[15].mxu0 }
 0x37a   :  { %v5396_v45 = vadd.f32 %v5395_v2, %v5394_v55  ;;  %v5593_v17 = vadd.f32 %v5592_v59, %v5591_v25 }
 0x37b   :  { %5371 = vmatmul.mubr.bf16.gmra.mrb[120].mxu0 %v13821_v42  ;;  %v5397_v42 = vsel %vm5387_vm10, %v15817_v43, 0.0 }
 0x37c   :  { %5378 = vmatprep.mubr.bf16.mxu0 %v3870_v47  ;;  %v5527_v47 = vmul.f32 %v15825_v16, %v15825_v16 }
 0x37e   :  { %v15751_v5 = vpop.f32.mrb[16].mxu0 }
 0x37f   :  { %v5166_v23 = vpop.f32.mrb[17].mxu0 }
 0x380   :  { %v15753_v44 = vpop.f32.mrb[18].mxu0  ;;  %v15836_v23 = vadd.f32 %v15770_v11, %v15748_v56 }
 0x381   :  { %v5169_v4 = vpop.f32.mrb[19].mxu0 }
 0x382   :  { %v5594_v4 = vsel %vm5387_vm10, %v5526_v40, 0.0  ;;  %v5528_v56 = vmul.f32 %v15836_v23, %v15836_v23  ;;  %v5401_v15 = vsel %vm5387_vm10, %v15836_v23, 0.0 }
 0x383   :  { %5379 = vmatmul.mubr.bf16.gmra.mrb[124].mxu0 %v13824_v38 }
 0x384   :  { %v5598_v46 = vsel %vm5387_vm10, %v5528_v56, 0.0 }
 0x386   :  { %v15755_v51 = vpop.f32.mrb[20].mxu0 }
 0x387   :  { %v5174_v22 = vpop.f32.mrb[21].mxu0  ;;  %v15865_v58 = vadd.f32 %v15770_v11, %v15755_v51 }
 0x388   :  { %v15757_v48 = vpop.f32.mrb[22].mxu0  ;;  %v5399_v22 = vsel %vm5387_vm10, %v15825_v16, 0.0 }
 0x389   :  { %v5177_v24 = vpop.f32.mrb[23].mxu0  ;;  %v5531_v51 = vmul.f32 %v15865_v58, %v15865_v58 }
 0x38a   :  { %v15845_v24 = vadd.f32 %v15770_v11, %v15751_v5  ;;  %v15858_v5 = vadd.f32 %v15770_v11, %v15753_v44 }
 0x38b   :  { %v5604_v40 = vsel %vm5387_vm10, %v5531_v51, 0.0 }
 0x38c   :  { %v5529_v7 = vmul.f32 %v15845_v24, %v15845_v24  ;;  %v5403_v32 = vsel %vm5387_vm10, %v15845_v24, 0.0  ;;  %v5530_v61 = vmul.f32 %v15858_v5, %v15858_v5  ;;  %v5405_v63 = vsel %vm5387_vm10, %v15858_v5, 0.0 }
 0x38e   :  { %v15759_v34 = vpop.f32.mrb[24].mxu0  ;;  %v5600_v41 = vsel %vm5387_vm10, %v5529_v7, 0.0  ;;  %v5602_v2 = vsel %vm5387_vm10, %v5530_v61, 0.0 }
 0x38f   :  { %v5182_v12 = vpop.f32.mrb[25].mxu0  ;;  %v15887_v55 = vadd.f32 %v15770_v11, %v15759_v34 }
 0x390   :  { %v15761_v14 = vpop.f32.mrb[26].mxu0 }
 0x391   :  { %v5185_v60 = vpop.f32.mrb[27].mxu0  ;;  %v15900_v34 = vadd.f32 %v15770_v11, %v15761_v14 }
 0x392   :  { %v5398_v60 = vadd.f32 %v5397_v42, %v5396_v45 }
 0x393   :  { %v5534_v14 = vmul.f32 %v15900_v34, %v15900_v34 }
 0x394   :  { %v5400_v27 = vadd.f32 %v5399_v22, %v5398_v60 }
 0x396   :  { %v15763_v10 = vpop.f32.mrb[28].mxu0  ;;  %v5402_v49 = vadd.f32 %v5401_v15, %v5400_v27 }
 0x397   :  { %v5190_v52 = vpop.f32.mrb[29].mxu0  ;;  %v15909_v56 = vadd.f32 %v15770_v11, %v15763_v10 }
 0x398   :  { %v15765_v19 = vpop.f32.mrb[30].mxu0  ;;  %v5404_v39 = vadd.f32 %v5403_v32, %v5402_v49 }
 0x399   :  { %v5193_v31 = vpop.f32.mrb[31].mxu0  ;;  %v15920_v32 = vadd.f32 %v15770_v11, %v15765_v19  ;;  %v5415_v61 = vsel %vm5387_vm10, %v15909_v56, 0.0 }
 0x39a   :  { %v5596_v31 = vsel %vm5387_vm10, %v5527_v47, 0.0  ;;  %v5406_v59 = vadd.f32 %v5405_v63, %v5404_v39 }
 0x39b   :  { %v5536_v19 = vmul.f32 %v15920_v32, %v15920_v32 }
 0x39e   :  { %v15782_v54 = vpop.f32.mrb[32].mxu0 }
 0x39f   :  { %v5198_v6 = vpop.f32.mrb[33].mxu0 }
 0x3a0   :  { %v15786_v50 = vpop.f32.mrb[34].mxu0  ;;  %v5595_v6 = vadd.f32 %v5594_v4, %v5593_v17  ;;  %v5533_v17 = vmul.f32 %v15887_v55, %v15887_v55 }
 0x3a1   :  { %v5201_v26 = vpop.f32.mrb[35].mxu0 }
 0x3a2   :  { %v5597_v26 = vadd.f32 %v5596_v31, %v5595_v6  ;;  %v5411_v31 = vsel %vm5387_vm10, %v15887_v55, 0.0  ;;  %v5608_v27 = vsel %vm5387_vm10, %v5533_v17, 0.0 }
 0x3a4   :  { %v5599_v53 = vadd.f32 %v5598_v46, %v5597_v26  ;;  %v5413_v26 = vsel %vm5387_vm10, %v15900_v34, 0.0  ;;  %v5535_v46 = vmul.f32 %v15909_v56, %v15909_v56 }
 0x3a6   :  { %v15809_v29 = vpop.f32.mrb[36].mxu0  ;;  %v5601_v62 = vadd.f32 %v5600_v41, %v5599_v53  ;;  %v5610_v41 = vsel %vm5387_vm10, %v5534_v14, 0.0  ;;  %v5612_v51 = vsel %vm5387_vm10, %v5535_v46, 0.0 }
 0x3a7   :  { %v5206_v0 = vpop.f32.mrb[37].mxu0 }
 0x3a8   :  { %v15819_v57 = vpop.f32.mrb[38].mxu0  ;;  %v15880_v0 = vadd.f32 %v15770_v11, %v15757_v48  ;;  %v5603_v45 = vadd.f32 %v5602_v2, %v5601_v62 }
 0x3a9   :  { %v5209_v33 = vpop.f32.mrb[39].mxu0 }
 0x3aa   :  { %v5407_v33 = vsel %vm5387_vm10, %v15865_v58, 0.0  ;;  %v5532_v25 = vmul.f32 %v15880_v0, %v15880_v0  ;;  %v5409_v47 = vsel %vm5387_vm10, %v15880_v0, 0.0  ;;  %v5605_v22 = vadd.f32 %v5604_v40, %v5603_v45 }
 0x3ab   :  { %v5408_v48 = vadd.f32 %v5407_v33, %v5406_v59  ;;  %v5417_v33 = vsel %vm5387_vm10, %v15920_v32, 0.0 }
 0x3ac   :  { %v5606_v60 = vsel %vm5387_vm10, %v5532_v25, 0.0  ;;  %v5614_v25 = vsel %vm5387_vm10, %v5536_v19, 0.0 }
 0x3ad   :  { %v5410_v6 = vadd.f32 %v5409_v47, %v5408_v48  ;;  %v5607_v15 = vadd.f32 %v5606_v60, %v5605_v22  ;;  %v15949_v48 = vadd.f32 %v15770_v11, %v15809_v29 }
 0x3ae   :  { %v15838_v38 = vpop.f32.mrb[40].mxu0 }
 0x3af   :  { %v5214_v12 = vpop.f32.mrb[41].mxu0  ;;  %v5412_v7 = vadd.f32 %v5411_v31, %v5410_v6  ;;  %v5609_v10 = vadd.f32 %v5608_v27, %v5607_v15  ;;  %v5539_v29 = vmul.f32 %v15949_v48, %v15949_v48  ;;  %v15964_v27 = vadd.f32 %v15770_v11, %v15819_v57 }
 0x3b0   :  { %v15847_v52 = vpop.f32.mrb[42].mxu0  ;;  %v15971_v46 = vadd.f32 %v15770_v11, %v15838_v38 }
 0x3b1   :  { %v5217_v1 = vpop.f32.mrb[43].mxu0  ;;  %v5414_v39 = vadd.f32 %v5413_v26, %v5412_v7  ;;  %v5611_v62 = vadd.f32 %v5610_v41, %v5609_v10  ;;  %v5423_v26 = vsel %vm5387_vm10, %v15949_v48, 0.0  ;;  %v5620_v41 = vsel %vm5387_vm10, %v5539_v29, 0.0 }
 0x3b2   :  { %v5541_v19 = vmul.f32 %v15971_v46, %v15971_v46  ;;  %v15984_v38 = vadd.f32 %v15770_v11, %v15847_v52 }
 0x3b3   :  { %v5416_v2 = vadd.f32 %v5415_v61, %v5414_v39  ;;  %v5613_v40 = vadd.f32 %v5612_v51, %v5611_v62  ;;  %v5540_v61 = vmul.f32 %v15964_v27, %v15964_v27  ;;  %v5425_v51 = vsel %vm5387_vm10, %v15964_v27, 0.0 }
 0x3b4   :  { %v5542_v52 = vmul.f32 %v15984_v38, %v15984_v38 }
 0x3b5   :  { %v5418_v47 = vadd.f32 %v5417_v33, %v5416_v2  ;;  %v5615_v60 = vadd.f32 %v5614_v25, %v5613_v40  ;;  %v5622_v33 = vsel %vm5387_vm10, %v5540_v61, 0.0 }
 0x3b6   :  { %v15867_v20 = vpop.f32.mrb[44].mxu0  ;;  %v5626_v29 = vsel %vm5387_vm10, %v5542_v52, 0.0 }
 0x3b7   :  { %v5222_v44 = vpop.f32.mrb[45].mxu0  ;;  %v15993_v40 = vadd.f32 %v15770_v11, %v15867_v20 }
 0x3b8   :  { %v15872_v30 = vpop.f32.mrb[46].mxu0  ;;  %v15929_v44 = vadd.f32 %v15770_v11, %v15782_v54  ;;  %v15942_v54 = vadd.f32 %v15770_v11, %v15786_v50 }
 0x3b9   :  { %v5225_v35 = vpop.f32.mrb[47].mxu0 }
 0x3ba   :  { %v5537_v59 = vmul.f32 %v15929_v44, %v15929_v44  ;;  %v5419_v45 = vsel %vm5387_vm10, %v15929_v44, 0.0  ;;  %v5538_v22 = vmul.f32 %v15942_v54, %v15942_v54  ;;  %v5421_v6 = vsel %vm5387_vm10, %v15942_v54, 0.0 }
 0x3bb   :  { %v5420_v31 = vadd.f32 %v5419_v45, %v5418_v47  ;;  %v5624_v47 = vsel %vm5387_vm10, %v5541_v19, 0.0 }
 0x3bc   :  { %v5618_v7 = vsel %vm5387_vm10, %v5538_v22, 0.0 }
 0x3bd   :  { %v5422_v10 = vadd.f32 %v5421_v6, %v5420_v31  ;;  %v16004_v31 = vadd.f32 %v15770_v11, %v15872_v30 }
 0x3be   :  { %v15892_v42 = vpop.f32.mrb[48].mxu0 }
 0x3bf   :  { %v5230_v4 = vpop.f32.mrb[49].mxu0  ;;  %v5424_v57 = vadd.f32 %v5423_v26, %v5422_v10  ;;  %v5544_v30 = vmul.f32 %v16004_v31, %v16004_v31 }
 0x3c0   :  { %v15902_v12 = vpop.f32.mrb[50].mxu0  ;;  %v5616_v4 = vsel %vm5387_vm10, %v5537_v59, 0.0  ;;  %v5427_v59 = vsel %vm5387_vm10, %v15971_v46, 0.0 }
 0x3c1   :  { %v5233_v1 = vpop.f32.mrb[51].mxu0  ;;  %v5617_v15 = vadd.f32 %v5616_v4, %v5615_v60  ;;  %v5426_v45 = vadd.f32 %v5425_v51, %v5424_v57  ;;  %v5543_v60 = vmul.f32 %v15993_v40, %v15993_v40  ;;  %v5433_v51 = vsel %vm5387_vm10, %v16004_v31, 0.0 }
 0x3c3   :  { %v5428_v22 = vadd.f32 %v5427_v59, %v5426_v45 }
 0x3c6   :  { %v15922_v49 = vpop.f32.mrb[52].mxu0 }
 0x3c7   :  { %v5238_v53 = vpop.f32.mrb[53].mxu0  ;;  %v16033_v59 = vadd.f32 %v15770_v11, %v15922_v49 }
 0x3c8   :  { %v15931_v63 = vpop.f32.mrb[54].mxu0  ;;  %v5619_v53 = vadd.f32 %v5618_v7, %v5617_v15  ;;  %v16013_v15 = vadd.f32 %v15770_v11, %v15892_v42  ;;  %v16026_v42 = vadd.f32 %v15770_v11, %v15902_v12 }
 0x3c9   :  { %v5241_v35 = vpop.f32.mrb[55].mxu0  ;;  %v16046_v49 = vadd.f32 %v15770_v11, %v15931_v63 }
 0x3ca   :  { %v5621_v62 = vadd.f32 %v5620_v41, %v5619_v53  ;;  %v5628_v41 = vsel %vm5387_vm10, %v5543_v60, 0.0  ;;  %v5545_v19 = vmul.f32 %v16013_v15, %v16013_v15  ;;  %v5546_v52 = vmul.f32 %v16026_v42, %v16026_v42 }
 0x3cb   :  { %v5437_v60 = vsel %vm5387_vm10, %v16026_v42, 0.0 }
 0x3cc   :  { %v5623_v4 = vadd.f32 %v5622_v33, %v5621_v62  ;;  %v5630_v62 = vsel %vm5387_vm10, %v5544_v30, 0.0  ;;  %v5435_v33 = vsel %vm5387_vm10, %v16013_v15, 0.0 }
 0x3ce   :  { %v15951_v17 = vpop.f32.mrb[56].mxu0  ;;  %v5625_v20 = vadd.f32 %v5624_v47, %v5623_v4  ;;  %v5632_v47 = vsel %vm5387_vm10, %v5545_v19, 0.0  ;;  %v5441_v19 = vsel %vm5387_vm10, %v16046_v49, 0.0 }
 0x3cf   :  { %v5246_v50 = vpop.f32.mrb[57].mxu0 }
 0x3d0   :  { %v15956_v1 = vpop.f32.mrb[58].mxu0  ;;  %v5429_v50 = vsel %vm5387_vm10, %v15984_v38, 0.0  ;;  %v5627_v53 = vadd.f32 %v5626_v29, %v5625_v20  ;;  %v5547_v20 = vmul.f32 %v16033_v59, %v16033_v59 }
 0x3d1   :  { %v5249_v14 = vpop.f32.mrb[59].mxu0  ;;  %v5430_v26 = vadd.f32 %v5429_v50, %v5428_v22 }
 0x3d2   :  { %v5431_v14 = vsel %vm5387_vm10, %v15993_v40, 0.0 }
 0x3d3   :  { %v5432_v57 = vadd.f32 %v5431_v14, %v5430_v26  ;;  %v5439_v26 = vsel %vm5387_vm10, %v16033_v59, 0.0 }
 0x3d6   :  { %v15976_v39 = vpop.f32.mrb[60].mxu0 }
 0x3d7   :  { %v5254_v35 = vpop.f32.mrb[61].mxu0 }
 0x3d8   :  { %v15986_v2 = vpop.f32.mrb[62].mxu0  ;;  %v5629_v35 = vadd.f32 %v5628_v41, %v5627_v53  ;;  %v16053_v41 = vadd.f32 %v15770_v11, %v15951_v17  ;;  %v5548_v53 = vmul.f32 %v16046_v49, %v16046_v49 }
 0x3d9   :  { %v5257_v25 = vpop.f32.mrb[63].mxu0 }
 0x3da   :  { %v5434_v25 = vadd.f32 %v5433_v51, %v5432_v57  ;;  %v5631_v12 = vadd.f32 %v5630_v62, %v5629_v35  ;;  %v5549_v35 = vmul.f32 %v16053_v41, %v16053_v41  ;;  %v16064_v62 = vadd.f32 %v15770_v11, %v15956_v1 }
 0x3dc   :  { %v5436_v22 = vadd.f32 %v5435_v33, %v5434_v25  ;;  %v5633_v14 = vadd.f32 %v5632_v47, %v5631_v12  ;;  %v5638_v47 = vsel %vm5387_vm10, %v5548_v53, 0.0  ;;  %v5550_v1 = vmul.f32 %v16064_v62, %v16064_v62 }
 0x3de   :  { %v16006_v6 = vpop.f32.mrb[64].mxu0  ;;  %v5438_v30 = vadd.f32 %v5437_v60, %v5436_v22  ;;  %v5640_v60 = vsel %vm5387_vm10, %v5549_v35, 0.0 }
 0x3df   :  { %v5262_v7 = vpop.f32.mrb[65].mxu0 }
 0x3e0   :  { %v16015_v10 = vpop.f32.mrb[66].mxu0  ;;  %v5634_v7 = vsel %vm5387_vm10, %v5546_v52, 0.0  ;;  %v5440_v63 = vadd.f32 %v5439_v26, %v5438_v30  ;;  %v5443_v52 = vsel %vm5387_vm10, %v16053_v41, 0.0  ;;  %v16082_v26 = vadd.f32 %v15770_v11, %v15986_v2 }
 0x3e1   :  { %v5265_v61 = vpop.f32.mrb[67].mxu0  ;;  %v5635_v57 = vadd.f32 %v5634_v7, %v5633_v14  ;;  %v5445_v14 = vsel %vm5387_vm10, %v16064_v62, 0.0 }
 0x3e2   :  { %v5636_v61 = vsel %vm5387_vm10, %v5547_v20, 0.0  ;;  %v5442_v22 = vadd.f32 %v5441_v19, %v5440_v63  ;;  %v5552_v2 = vmul.f32 %v16082_v26, %v16082_v26 }
 0x3e3   :  { %v5637_v33 = vadd.f32 %v5636_v61, %v5635_v57  ;;  %v5642_v61 = vsel %vm5387_vm10, %v5550_v1, 0.0  ;;  %v16089_v57 = vadd.f32 %v15770_v11, %v16006_v6  ;;  %v16100_v6 = vadd.f32 %v15770_v11, %v16015_v10 }
 0x3e4   :  { %v5646_v1 = vsel %vm5387_vm10, %v5552_v2, 0.0 }
 0x3e5   :  { %v5639_v20 = vadd.f32 %v5638_v47, %v5637_v33 }
 0x3e6   :  { %v5268_v45 = vpop.f32.mrb[68].mxu0 }
 0x3e7   :  { %v5270_v4 = vpop.f32.mrb[69].mxu0 }
 0x3e8   :  { %v16038_v50 = vpop.f32.mrb[70].mxu0  ;;  %v16071_v4 = vadd.f32 %v15770_v11, %v15976_v39  ;;  %v5641_v39 = vadd.f32 %v5640_v60, %v5639_v20  ;;  %v5451_v20 = vsel %vm5387_vm10, %v16089_v57, 0.0 }
 0x3e9   :  { %v5273_v29 = vpop.f32.mrb[71].mxu0 }
 0x3ea   :  { %v5444_v29 = vadd.f32 %v5443_v52, %v5442_v22  ;;  %v5551_v7 = vmul.f32 %v16071_v4, %v16071_v4  ;;  %v5447_v53 = vsel %vm5387_vm10, %v16071_v4, 0.0  ;;  %v5643_v47 = vadd.f32 %v5642_v61, %v5641_v39 }
 0x3eb   :  { %v5553_v22 = vmul.f32 %v16089_v57, %v16089_v57  ;;  %v5554_v61 = vmul.f32 %v16100_v6, %v16100_v6 }
 0x3ec   :  { %v5446_v19 = vadd.f32 %v5445_v14, %v5444_v29  ;;  %v16106_v29 = vadd.f32 %v15770_v11, %v5268_v45  ;;  %v16117_v45 = vadd.f32 %v15770_v11, %v16038_v50 }
 0x3ed   :  { %v5648_v39 = vsel %vm5387_vm10, %v5553_v22, 0.0 }
 0x3ee   :  { %v5276_v51 = vpop.f32.mrb[72].mxu0  ;;  %v5448_v52 = vadd.f32 %v5447_v53, %v5446_v19  ;;  %v5555_v2 = vmul.f32 %v16106_v29, %v16106_v29 }
 0x3ef   :  { %v5278_v17 = vpop.f32.mrb[73].mxu0  ;;  %v16123_v22 = vadd.f32 %v15770_v11, %v5276_v51 }
 0x3f0   :  { %v5279_v25 = vpop.f32.mrb[74].mxu0  ;;  %v5644_v17 = vsel %vm5387_vm10, %v5551_v7, 0.0 }
 0x3f1   :  { %v5281_v12 = vpop.f32.mrb[75].mxu0  ;;  %v5645_v60 = vadd.f32 %v5644_v17, %v5643_v47  ;;  %v5453_v17 = vsel %vm5387_vm10, %v16100_v6, 0.0 }
 0x3f2   :  { %v5449_v12 = vsel %vm5387_vm10, %v16082_v26, 0.0 }
 0x3f3   :  { %v5450_v14 = vadd.f32 %v5449_v12, %v5448_v52  ;;  %v5650_v52 = vsel %vm5387_vm10, %v5554_v61, 0.0  ;;  %v5455_v12 = vsel %vm5387_vm10, %v16106_v29, 0.0  ;;  %v5557_v61 = vmul.f32 %v16123_v22, %v16123_v22 }
 0x3f5   :  { %v5452_v10 = vadd.f32 %v5451_v20, %v5450_v14  ;;  %v5556_v20 = vmul.f32 %v16117_v45, %v16117_v45 }
 0x3f6   :  { %v5284_v30 = vpop.f32.mrb[76].mxu0 }
 0x3f7   :  { %v5286_v63 = vpop.f32.mrb[77].mxu0 }
 0x3f8   :  { %v5287_v35 = vpop.f32.mrb[78].mxu0  ;;  %v5647_v63 = vadd.f32 %v5646_v1, %v5645_v60  ;;  %v5454_v60 = vadd.f32 %v5453_v17, %v5452_v10  ;;  %v5652_v1 = vsel %vm5387_vm10, %v5555_v2, 0.0  ;;  %v5654_v17 = vsel %vm5387_vm10, %v5556_v20, 0.0 }
 0x3f9   :  { %v5289_v33 = vpop.f32.mrb[79].mxu0  ;;  %v5459_v2 = vsel %vm5387_vm10, %v16123_v22, 0.0 }
 0x3fa   :  { %v5649_v47 = vadd.f32 %v5648_v39, %v5647_v63  ;;  %v5457_v39 = vsel %vm5387_vm10, %v16117_v45, 0.0  ;;  %v16133_v63 = vadd.f32 %v15770_v11, %v5279_v25 }
 0x3fc   :  { %v5651_v14 = vadd.f32 %v5650_v52, %v5649_v47  ;;  %v16139_v47 = vadd.f32 %v15770_v11, %v5284_v30  ;;  %v5558_v9 = vmul.f32 %v16133_v63, %v16133_v63 }
 0x3fe   :  { %v5292_v7 = vpop.f32.mrb[80].mxu0  ;;  %v5559_v20 = vmul.f32 %v16139_v47, %v16139_v47 }
 0x3ff   :  { %v5294_v53 = vpop.f32.mrb[81].mxu0 }
 0x400   :  { %v5295_v19 = vpop.f32.mrb[82].mxu0  ;;  %v5456_v53 = vadd.f32 %v5455_v12, %v5454_v60  ;;  %v5656_v60 = vsel %vm5387_vm10, %v5557_v61, 0.0  ;;  %v16155_v61 = vadd.f32 %v15770_v11, %v5292_v7 }
 0x401   :  { %v5297_v33 = vpop.f32.mrb[83].mxu0  ;;  %v16165_v7 = vadd.f32 %v15770_v11, %v5295_v19 }
 0x402   :  { %v5653_v33 = vadd.f32 %v5652_v1, %v5651_v14  ;;  %v5458_v12 = vadd.f32 %v5457_v39, %v5456_v53  ;;  %v5461_v1 = vsel %vm5387_vm10, %v16133_v63, 0.0  ;;  %v16149_v14 = vadd.f32 %v15770_v11, %v5287_v35  ;;  %19521 = vst [vmem:[#allocation12_spill] sm:$0xff] %v16155_v61 }
 0x403   :  { %v5658_v53 = vsel %vm5387_vm10, %v5558_v9, 0.0  ;;  %v5463_v39 = vsel %vm5387_vm10, %v16139_v47, 0.0  ;;  %19522 = vst [vmem:[#allocation13_spill] sm:$0xff] %v16165_v7 }
 0x404   :  { %v5655_v25 = vadd.f32 %v5654_v17, %v5653_v33  ;;  %v5460_v8 = vadd.f32 %v5459_v2, %v5458_v12  ;;  %19520 = vst [vmem:[#allocation11_spill] sm:$0xff] %v16149_v14  ;;  %v5560_v12 = vmul.f32 %v16149_v14, %v16149_v14  ;;  %v5465_v9 = vsel %vm5387_vm10, %v16149_v14, 0.0 }
 0x406   :  { %v5300_v50 = vpop.f32.mrb[84].mxu0  ;;  %v5657_v30 = vadd.f32 %v5656_v60, %v5655_v25  ;;  %v5462_v17 = vadd.f32 %v5461_v1, %v5460_v8  ;;  %v5561_v25 = vmul.f32 %v16155_v61, %v16155_v61  ;;  %v5662_v8 = vsel %vm5387_vm10, %v5560_v12, 0.0 }
 0x407   :  { %v5302_v51 = vpop.f32.mrb[85].mxu0  ;;  %v5467_v1 = vsel %vm5387_vm10, %v16155_v61, 0.0 }
 0x408   :  { %v5303_v10 = vpop.f32.mrb[86].mxu0  ;;  %v5659_v28 = vadd.f32 %v5658_v53, %v5657_v30  ;;  %v5464_v60 = vadd.f32 %v5463_v39, %v5462_v17  ;;  %v5664_v39 = vsel %vm5387_vm10, %v5561_v25, 0.0  ;;  %v5562_v17 = vmul.f32 %v16165_v7, %v16165_v7 }
 0x409   :  { %v5305_v52 = vpop.f32.mrb[87].mxu0 }
 0x40a   :  { %v5660_v52 = vsel %vm5387_vm10, %v5559_v20, 0.0  ;;  %v16171_v20 = vadd.f32 %v15770_v11, %v5300_v50  ;;  %v5466_v30 = vadd.f32 %v5465_v9, %v5464_v60  ;;  %v16181_v50 = vadd.f32 %v15770_v11, %v5303_v10 }
 0x40b   :  { %v5666_v9 = vsel %vm5387_vm10, %v5562_v17, 0.0 }
 0x40c   :  { %19523 = vst [vmem:[#allocation14_spill] sm:$0xff] %v16171_v20  ;;  %v5468_v19 = vadd.f32 %v5467_v1, %v5466_v30  ;;  %19524 = vst [vmem:[#allocation15_spill] sm:$0xff] %v16181_v50  ;;  %v5471_v25 = vsel %vm5387_vm10, %v16171_v20, 0.0  ;;  %v5564_v30 = vmul.f32 %v16181_v50, %v16181_v50 }
 0x40e   :  { %v5308_v51 = vpop.f32.mrb[88].mxu0 }
 0x40f   :  { %v5310_v33 = vpop.f32.mrb[89].mxu0 }
 0x410   :  { %v5311_v2 = vpop.f32.mrb[90].mxu0  ;;  %v5661_v33 = vadd.f32 %v5660_v52, %v5659_v28  ;;  %v5469_v28 = vsel %vm5387_vm10, %v16165_v7, 0.0  ;;  %v5563_v52 = vmul.f32 %v16171_v20, %v16171_v20 }
 0x411   :  { %v5313_v35 = vpop.f32.mrb[91].mxu0  ;;  %v16197_v17 = vadd.f32 %v15770_v11, %v5311_v2 }
 0x412   :  { %v5663_v18 = vadd.f32 %v5662_v8, %v5661_v33  ;;  %v16187_v33 = vadd.f32 %v15770_v11, %v5308_v51  ;;  %v5470_v8 = vadd.f32 %v5469_v28, %v5468_v19  ;;  %v5668_v1 = vsel %vm5387_vm10, %v5563_v52, 0.0 }
 0x413   :  { %19526 = vst [vmem:[#allocation17_spill] sm:$0xff] %v16197_v17  ;;  %v5670_v28 = vsel %vm5387_vm10, %v5564_v30, 0.0 }
 0x414   :  { %v5665_v60 = vadd.f32 %v5664_v39, %v5663_v18  ;;  %19525 = vst [vmem:[#allocation16_spill] sm:$0xff] %v16187_v33  ;;  %v5472_v7 = vadd.f32 %v5471_v25, %v5470_v8  ;;  %v5473_v18 = vsel %vm5387_vm10, %v16181_v50, 0.0  ;;  %v5565_v39 = vmul.f32 %v16187_v33, %v16187_v33 }
 0x415   :  { %v5475_v52 = vsel %vm5387_vm10, %v16187_v33, 0.0  ;;  %v5566_v50 = vmul.f32 %v16197_v17, %v16197_v17 }
 0x416   :  { %v5316_v53 = vpop.f32.mrb[92].mxu0  ;;  %v5474_v25 = vadd.f32 %v5473_v18, %v5472_v7  ;;  %v5672_v8 = vsel %vm5387_vm10, %v5565_v39, 0.0 }
 0x417   :  { %v5318_v35 = vpop.f32.mrb[93].mxu0  ;;  %v5674_v7 = vsel %vm5387_vm10, %v5566_v50, 0.0 }
 0x418   :  { %v5319_v14 = vpop.f32.mrb[94].mxu0  ;;  %v5667_v35 = vadd.f32 %v5666_v9, %v5665_v60  ;;  %v16203_v60 = vadd.f32 %v15770_v11, %v5316_v53  ;;  %v5476_v20 = vadd.f32 %v5475_v52, %v5474_v25 }
 0x419   :  { %v5321_v12 = vpop.f32.mrb[95].mxu0 }
 0x41a   :  { %v5669_v12 = vadd.f32 %v5668_v1, %v5667_v35  ;;  %19527 = vst [vmem:[#allocation18_spill] sm:$0xff] %v16203_v60  ;;  %v5477_v1 = vsel %vm5387_vm10, %v16197_v17, 0.0  ;;  %v5567_v30 = vmul.f32 %v16203_v60, %v16203_v60  ;;  %v16213_v35 = vadd.f32 %v15770_v11, %v5319_v14 }
 0x41b   :  { %v5479_v18 = vsel %vm5387_vm10, %v16203_v60, 0.0 }
 0x41c   :  { %v5671_v2 = vadd.f32 %v5670_v28, %v5669_v12  ;;  %19528 = vst [vmem:[#allocation19_spill] sm:$0xff] %v16213_v35  ;;  %v5478_v28 = vadd.f32 %v5477_v1, %v5476_v20  ;;  %v5568_v25 = vmul.f32 %v16213_v35, %v16213_v35  ;;  %v5481_v50 = vsel %vm5387_vm10, %v16213_v35, 0.0 }
 0x41e   :  { %v5324_v10 = vpop.f32.mrb[96].mxu0  ;;  %v5673_v53 = vadd.f32 %v5672_v8, %v5671_v2  ;;  %v5480_v8 = vadd.f32 %v5479_v18, %v5478_v28  ;;  %v5678_v20 = vsel %vm5387_vm10, %v5568_v25, 0.0 }
 0x41f   :  { %v5326_v51 = vpop.f32.mrb[97].mxu0  ;;  %v16219_v39 = vadd.f32 %v15770_v11, %v5324_v10 }
 0x420   :  { %v5327_v19 = vpop.f32.mrb[98].mxu0  ;;  %v5675_v17 = vadd.f32 %v5674_v7, %v5673_v53  ;;  %v5482_v53 = vadd.f32 %v5481_v50, %v5480_v8 }
 0x421   :  { %v5329_v9 = vpop.f32.mrb[99].mxu0  ;;  %19529 = vst [vmem:[#allocation20_spill] sm:$0xff] %v16219_v39  ;;  %v5569_v2 = vmul.f32 %v16219_v39, %v16219_v39  ;;  %v16229_v10 = vadd.f32 %v15770_v11, %v5327_v19  ;;  %v5483_v1 = vsel %vm5387_vm10, %v16219_v39, 0.0 }
 0x422   :  { %v5676_v9 = vsel %vm5387_vm10, %v5567_v30, 0.0  ;;  %v5484_v19 = vadd.f32 %v5483_v1, %v5482_v53 }
 0x423   :  { %19530 = vst [vmem:[#allocation21_spill] sm:$0xff] %v16229_v10  ;;  %v5680_v18 = vsel %vm5387_vm10, %v5569_v2, 0.0  ;;  %v5570_v28 = vmul.f32 %v16229_v10, %v16229_v10 }
 0x425   :  { %v5682_v50 = vsel %vm5387_vm10, %v5570_v28, 0.0 }
 0x426   :  { %v5332_v51 = vpop.f32.mrb[100].mxu0 }
 0x427   :  { %v5334_v12 = vpop.f32.mrb[101].mxu0  ;;  %v16235_v30 = vadd.f32 %v15770_v11, %v5332_v51 }
 0x428   :  { %v5335_v52 = vpop.f32.mrb[102].mxu0  ;;  %v5677_v12 = vadd.f32 %v5676_v9, %v5675_v17  ;;  %v5485_v17 = vsel %vm5387_vm10, %v16229_v10, 0.0 }
 0x429   :  { %v5337_v14 = vpop.f32.mrb[103].mxu0  ;;  %19531 = vst [vmem:[#allocation22_spill] sm:$0xff] %v16235_v30  ;;  %v5571_v9 = vmul.f32 %v16235_v30, %v16235_v30  ;;  %v16245_v51 = vadd.f32 %v15770_v11, %v5335_v52  ;;  %v5487_v2 = vsel %vm5387_vm10, %v16235_v30, 0.0 }
 0x42a   :  { %v5679_v35 = vadd.f32 %v5678_v20, %v5677_v12  ;;  %v5486_v20 = vadd.f32 %v5485_v17, %v5484_v19 }
 0x42b   :  { %19532 = vst [vmem:[#allocation23_spill] sm:$0xff] %v16245_v51  ;;  %v5684_v1 = vsel %vm5387_vm10, %v5571_v9, 0.0  ;;  %v5572_v53 = vmul.f32 %v16245_v51, %v16245_v51 }
 0x42c   :  { %v5681_v8 = vadd.f32 %v5680_v18, %v5679_v35  ;;  %v5488_v10 = vadd.f32 %v5487_v2, %v5486_v20  ;;  %v5489_v35 = vsel %vm5387_vm10, %v16245_v51, 0.0 }
 0x42d   :  { %v5686_v17 = vsel %vm5387_vm10, %v5572_v53, 0.0 }
 0x42e   :  { %v5340_v7 = vpop.f32.mrb[104].mxu0  ;;  %v5490_v2 = vadd.f32 %v5489_v35, %v5488_v10 }
 0x42f   :  { %v5342_v14 = vpop.f32.mrb[105].mxu0  ;;  %v16251_v12 = vadd.f32 %v15770_v11, %v5340_v7 }
 0x430   :  { %v5343_v60 = vpop.f32.mrb[106].mxu0  ;;  %v5683_v14 = vadd.f32 %v5682_v50, %v5681_v8 }
 0x431   :  { %v5345_v25 = vpop.f32.mrb[107].mxu0  ;;  %19533 = vst [vmem:[#allocation24_spill] sm:$0xff] %v16251_v12  ;;  %v5573_v18 = vmul.f32 %v16251_v12, %v16251_v12  ;;  %v16261_v28 = vadd.f32 %v15770_v11, %v5343_v60  ;;  %v5491_v9 = vsel %vm5387_vm10, %v16251_v12, 0.0 }
 0x432   :  { %v5685_v25 = vadd.f32 %v5684_v1, %v5683_v14  ;;  %v5492_v30 = vadd.f32 %v5491_v9, %v5490_v2 }
 0x433   :  { %19534 = vst [vmem:[#allocation25_spill] sm:$0xff] %v16261_v28  ;;  %v5688_v20 = vsel %vm5387_vm10, %v5573_v18, 0.0  ;;  %v5574_v51 = vmul.f32 %v16261_v28, %v16261_v28  ;;  %v5493_v1 = vsel %vm5387_vm10, %v16261_v28, 0.0 }
 0x434   :  { %v5687_v60 = vadd.f32 %v5686_v17, %v5685_v25  ;;  %v5494_v17 = vadd.f32 %v5493_v1, %v5492_v30 }
 0x435   :  { %v5690_v10 = vsel %vm5387_vm10, %v5574_v51, 0.0 }
 0x436   :  { %v5348_v52 = vpop.f32.mrb[108].mxu0 }
 0x437   :  { %v5350_v7 = vpop.f32.mrb[109].mxu0  ;;  %v16267_v8 = vadd.f32 %v15770_v11, %v5348_v52  ;;  %v5689_v52 = vadd.f32 %v5688_v20, %v5687_v60 }
 0x438   :  { %v5351_v19 = vpop.f32.mrb[110].mxu0 }
 0x439   :  { %19535 = vst [vmem:[#allocation26_spill] sm:$0xff] %v16267_v8  ;;  %v5353_v50 = vpop.f32.mrb[111].mxu0  ;;  %v5575_v53 = vmul.f32 %v16267_v8, %v16267_v8  ;;  %v16277_v14 = vadd.f32 %v15770_v11, %v5351_v19  ;;  %v5495_v35 = vsel %vm5387_vm10, %v16267_v8, 0.0  ;;  %v5691_v28 = vadd.f32 %v5690_v10, %v5689_v52 }
 0x43a   :  { %v5496_v20 = vadd.f32 %v5495_v35, %v5494_v17 }
 0x43b   :  { %19536 = vst [vmem:[#allocation27_spill] sm:$0xff] %v16277_v14  ;;  %v5692_v50 = vsel %vm5387_vm10, %v5575_v53, 0.0  ;;  %v5576_v2 = vmul.f32 %v16277_v14, %v16277_v14  ;;  %v5497_v51 = vsel %vm5387_vm10, %v16277_v14, 0.0 }
 0x43c   :  { %v5498_v53 = vadd.f32 %v5497_v51, %v5496_v20 }
 0x43d   :  { %v5694_v30 = vsel %vm5387_vm10, %v5576_v2, 0.0 }
 0x43e   :  { %v5356_v7 = vpop.f32.mrb[112].mxu0 }
 0x43f   :  { %v16283_v18 = vadd.f32 %v15770_v11, %v5356_v7  ;;  %v5358_v25 = vpop.f32.mrb[113].mxu0 }
 0x440   :  { %v5359_v9 = vpop.f32.mrb[114].mxu0  ;;  %v5693_v25 = vadd.f32 %v5692_v50, %v5691_v28 }
 0x441   :  { %19537 = vst [vmem:[#allocation28_spill] sm:$0xff] %v16283_v18  ;;  %v5361_v19 = vpop.f32.mrb[115].mxu0  ;;  %v5577_v60 = vmul.f32 %v16283_v18, %v16283_v18  ;;  %v16293_v7 = vadd.f32 %v15770_v11, %v5359_v9  ;;  %v5499_v1 = vsel %vm5387_vm10, %v16283_v18, 0.0 }
 0x442   :  { %v5695_v19 = vadd.f32 %v5694_v30, %v5693_v25  ;;  %v5500_v9 = vadd.f32 %v5499_v1, %v5498_v53 }
 0x443   :  { %19538 = vst [vmem:[#allocation29_spill] sm:$0xff] %v16293_v7  ;;  %v5696_v52 = vsel %vm5387_vm10, %v5577_v60, 0.0  ;;  %v5578_v10 = vmul.f32 %v16293_v7, %v16293_v7  ;;  %v5501_v28 = vsel %vm5387_vm10, %v16293_v7, 0.0 }
 0x444   :  { %v5697_v51 = vadd.f32 %v5696_v52, %v5695_v19 }
 0x445   :  { %v5698_v60 = vsel %vm5387_vm10, %v5578_v10, 0.0 }
 0x446   :  { %v5364_v8 = vpop.f32.mrb[116].mxu0  ;;  %v5699_v1 = vadd.f32 %v5698_v60, %v5697_v51 }
 0x447   :  { %v16302_v35 = vadd.f32 %v15770_v11, %v5364_v8  ;;  %v5366_v17 = vpop.f32.mrb[117].mxu0 }
 0x448   :  { %v5367_v14 = vpop.f32.mrb[118].mxu0  ;;  %v5502_v17 = vadd.f32 %v5501_v28, %v5500_v9 }
 0x449   :  { %19539 = vst [vmem:[#allocation30_spill] sm:$0xff] %v16302_v35  ;;  %v5579_v50 = vmul.f32 %v16302_v35, %v16302_v35  ;;  %v16309_v2 = vadd.f32 %v15770_v11, %v5367_v14  ;;  %v5369_v20 = vpop.f32.mrb[119].mxu0  ;;  %v5503_v8 = vsel %vm5387_vm10, %v16302_v35, 0.0 }
 0x44a   :  { %v5504_v53 = vadd.f32 %v5503_v8, %v5502_v17 }
 0x44b   :  { %19540 = vst [vmem:[#allocation31_spill] sm:$0xff] %v16309_v2  ;;  %v5700_v25 = vsel %vm5387_vm10, %v5579_v50, 0.0  ;;  %v5580_v30 = vmul.f32 %v16309_v2, %v16309_v2  ;;  %v5505_v14 = vsel %vm5387_vm10, %v16309_v2, 0.0 }
 0x44c   :  { %v5701_v10 = vadd.f32 %v5700_v25, %v5699_v1  ;;  %v5506_v60 = vadd.f32 %v5505_v14, %v5504_v53 }
 0x44d   :  { %v5702_v35 = vsel %vm5387_vm10, %v5580_v30, 0.0 }
 0x44e   :  { %v5372_v7 = vpop.f32.mrb[120].mxu0  ;;  %v5703_v17 = vadd.f32 %v5702_v35, %v5701_v10 }
 0x44f   :  { %v16320_v20 = vadd.f32 %v15770_v11, %v5372_v7  ;;  %v5374_v52 = vpop.f32.mrb[121].mxu0 }
 0x450   :  { %v5375_v19 = vpop.f32.mrb[122].mxu0 }
 0x451   :  { %19541 = vst [vmem:[#allocation32_spill] sm:$0xff] %v16320_v20  ;;  %v5507_v9 = vsel %vm5387_vm10, %v16320_v20, 0.0  ;;  %v5581_v28 = vmul.f32 %v16320_v20, %v16320_v20  ;;  %v16328_v50 = vadd.f32 %v15770_v11, %v5375_v19  ;;  %v5377_v51 = vpop.f32.mrb[123].mxu0 }
 0x452   :  { %v5508_v25 = vadd.f32 %v5507_v9, %v5506_v60 }
 0x453   :  { %19542 = vst [vmem:[#allocation33_spill] sm:$0xff] %v16328_v50  ;;  %v5704_v8 = vsel %vm5387_vm10, %v5581_v28, 0.0  ;;  %v5582_v7 = vmul.f32 %v16328_v50, %v16328_v50  ;;  %v5509_v30 = vsel %vm5387_vm10, %v16328_v50, 0.0 }
 0x454   :  { %v5705_v1 = vadd.f32 %v5704_v8, %v5703_v17  ;;  %v5510_v51 = vadd.f32 %v5509_v30, %v5508_v25 }
 0x455   :  { %v5706_v2 = vsel %vm5387_vm10, %v5582_v7, 0.0 }
 0x456   :  { %v5380_v52 = vpop.f32.mrb[124].mxu0  ;;  %v5707_v28 = vadd.f32 %v5706_v2, %v5705_v1 }
 0x457   :  { %v16337_v20 = vadd.f32 %v15770_v11, %v5380_v52  ;;  %v5382_v19 = vpop.f32.mrb[125].mxu0 }
 0x458   :  { %v5383_v53 = vpop.f32.mrb[126].mxu0 }
 0x459   :  { %19543 = vst [vmem:[#allocation34_spill] sm:$0xff] %v16337_v20  ;;  %v5511_v14 = vsel %vm5387_vm10, %v16337_v20, 0.0  ;;  %v5583_v35 = vmul.f32 %v16337_v20, %v16337_v20  ;;  %v12907_v10 = vadd.f32 %v15770_v11, %v5383_v53  ;;  %v5385_v9 = vpop.f32.mrb[127].mxu0 }
 0x45a   :  { %v5512_v60 = vadd.f32 %v5511_v14, %v5510_v51 }
 0x45b   :  { %v5708_v8 = vsel %vm5387_vm10, %v5583_v35, 0.0  ;;  %v5513_v7 = vsel %vm5387_vm10, %v12907_v10, 0.0  ;;  %v5584_v17 = vmul.f32 %v12907_v10, %v12907_v10 }
 0x45c   :  { %v5709_v52 = vadd.f32 %v5708_v8, %v5707_v28  ;;  %v5514_v19 = vadd.f32 %v5513_v7, %v5512_v60  ;;  %v5729_v7 = vlaneseq }
 0x45d   :  { %v5710_v25 = vsel %vm5387_vm10, %v5584_v17, 0.0 }
 0x45e   :  { %v5515_v30 = vrot.slane %v5514_v19, 4  ;;  %v5711_v50 = vadd.f32 %v5710_v25, %v5709_v52  ;;  %v5730_v17 = vshrl.u32 %v5729_v7, 7  ;;  %v16365_v25 = vstv %s19387_s5  ;;  %v19550_v7 = vld [vmem:[#allocation12_spill] sm:$0xff] }
 0x45f   :  { %19546 = vst [vmem:[#allocation36_spill] sm:$0xff] %v16365_v25 }
 0x460   :  { %v5516_v18 = vadd.f32 %v5515_v30, %v5514_v19  ;;  %v5712_v12 = vrot.slane %v5711_v50, 4  ;;  %v19545_v19 = vmov 0  }
 0x462   :  { %v5517_v39 = vrot.slane %v5516_v18, 2  ;;  %v5713_v20 = vadd.f32 %v5712_v12, %v5711_v50  ;;  %v3936_v12 = vld [vmem:[%s19385_s3] sm:$0x1] }
 0x464   :  { %v5518_v33 = vadd.f32 %v5517_v39, %v5516_v18  ;;  %v5714_v11 = vrot.slane %v5713_v20, 2  ;;  %v16350_v39 = vsub.s32 0, %v5730_v17  ;;  %v19551_v17 = vld [vmem:[#allocation13_spill] sm:$0xff] }
 0x466   :  { %v5519_v53 = vrot.slane %v5518_v33, 1  ;;  %v5715_v2 = vadd.f32 %v5714_v11, %v5713_v20  ;;  %19544 = vst [vmem:[#allocation35_spill] sm:$0xff] %v16350_v39 }
 0x468   :  { %v5520_v1 = vadd.f32 %v5519_v53, %v5518_v33  ;;  %v5716_v51 = vrot.slane %v5715_v2, 1  ;;  %v13825_v33 = vld [vmem:[%s19388_s6] sm:$0xff]  }
 0x469   :  { %10360 = vmatpush1.bf16.msra.mxu1 %v13825_v33 }
 0x46a   :  { %v5717_v14 = vadd.f32 %v5716_v51, %v5715_v2  ;;  %v5718_v35 = vmul.f32 0.001953125, %v5520_v1  ;;  %10361 = vmatprep.subr.bf16.mxu1 %v19545_v19 }
 0x46c   :  { %v5719_v9 = vmul.f32 0.001953125, %v5717_v14  ;;  %v5720_v61 = vmul.f32 %v5718_v35, %v5718_v35 }
 0x46e   :  { %v5721_v28 = vsub.f32 %v5719_v9, %v5720_v61  ;;  %v3937_v61 = vld [vmem:[%s19386_s4] sm:$0x1] }
 0x470   :  { %v5722_v60 = vmax.f32 %v5721_v28, 0.0 }
 0x472   :  { %v5723_v8 = vadd.f32 1e-05, %v5722_v60 }
 0x474   :  { %14161 = vrsqrt.f32 %v5723_v8 }
 0x47e   :  { %v14162_v18 = vpop.eup %14161 }
 0x47f   :  { %v5725_v20 = vmul.f32 %v14162_v18, %v3936_v12  ;;  %v19552_v12 = vld [vmem:[#allocation14_spill] sm:$0xff]  ;;  %v19553_v18 = vld [vmem:[#allocation15_spill] sm:$0xff] }
 0x481   :  { %v5726_v50 = vmul.f32 %v5725_v20, %v5718_v35  ;;  %v16359_v52 = vrot.slane %v5725_v20, %v16350_v39  ;;  %v19554_v20 = vld [vmem:[#allocation16_spill] sm:$0xff] }
 0x483   :  { %v5727_v30 = vsub.f32 %v3937_v61, %v5726_v50  ;;  %v5797_v11 = vmul.f32 %v12907_v10, %v16359_v52  ;;  %v16370_v53 = vmul.f32 %v15777_v37, %v16359_v52  ;;  %v16374_v2 = vmul.f32 %v15773_v13, %v16359_v52  ;;  %v19555_v50 = vld [vmem:[#allocation17_spill] sm:$0xff] }
 0x484   :  { %v16378_v1 = vmul.f32 %v15780_v3, %v16359_v52  ;;  %v16382_v51 = vmul.f32 %v15795_v21, %v16359_v52  ;;  %v16386_v14 = vmul.f32 %v15803_v36, %v16359_v52  ;;  %v16390_v37 = vmul.f32 %v15817_v43, %v16359_v52  ;;  %v13826_v36 = vld [vmem:[%s19388_s6 + $0x8] sm:$0xff]  }
 0x485   :  { %v16393_v10 = vrot.slane %v5727_v30, %v16350_v39  ;;  %v16397_v13 = vmul.f32 %v15825_v16, %v16359_v52  ;;  %v16401_v3 = vmul.f32 %v15836_v23, %v16359_v52  ;;  %v16405_v21 = vmul.f32 %v15845_v24, %v16359_v52  ;;  %10362 = vmatpush1.bf16.msra.mxu1 %v13826_v36 }
 0x486   :  { %v16412_v43 = vmul.f32 %v15858_v5, %v16359_v52  ;;  %v16416_v16 = vmul.f32 %v15865_v58, %v16359_v52  ;;  %v16420_v23 = vmul.f32 %v15880_v0, %v16359_v52  ;;  %v16424_v24 = vmul.f32 %v15887_v55, %v16359_v52  ;;  %10363 = vmatprep.subr.bf16.mxu1 %v19545_v19 }
 0x487   :  { %v16427_v35 = vadd.f32 %v16393_v10, %v5797_v11  ;;  %v16431_v9 = vmul.f32 %v15900_v34, %v16359_v52  ;;  %v16435_v5 = vmul.f32 %v15909_v56, %v16359_v52  ;;  %v16439_v58 = vmul.f32 %v15920_v32, %v16359_v52  ;;  %v19556_v11 = vld [vmem:[#allocation18_spill] sm:$0xff] }
 0x488   :  { %v16443_v0 = vmul.f32 %v15929_v44, %v16359_v52  ;;  %v16447_v55 = vmul.f32 %v15942_v54, %v16359_v52  ;;  %v16451_v34 = vmul.f32 %v15949_v48, %v16359_v52  ;;  %v16455_v56 = vmul.f32 %v15964_v27, %v16359_v52  ;;  %v13827_v27 = vld [vmem:[%s19388_s6 + $0x10] sm:$0xff]  }
 0x489   :  { %19547 = vst [vmem:[#allocation37_spill] sm:$0xff] %v16427_v35  ;;  %v16460_v32 = vmul.f32 %v16365_v25, %v16427_v35  ;;  %v16464_v44 = vmul.f32 %v15971_v46, %v16359_v52  ;;  %v16468_v54 = vmul.f32 %v15984_v38, %v16359_v52  ;;  %v16472_v48 = vmul.f32 %v15993_v40, %v16359_v52 }
 0x48a   :  { %v16479_v28 = vmul.f32 %v16004_v31, %v16359_v52  ;;  %v16483_v46 = vmul.f32 %v16013_v15, %v16359_v52  ;;  %v16487_v38 = vmul.f32 %v16026_v42, %v16359_v52  ;;  %v16491_v40 = vmul.f32 %v16033_v59, %v16359_v52  ;;  %10364 = vmatpush1.bf16.msra.mxu1 %v13827_v27  ;;  %v19557_v27 = vld [vmem:[#allocation19_spill] sm:$0xff] }
 0x48b   :  { %19548 = vst [vmem:[#allocation38_spill] sm:$0xff] %v16460_v32  ;;  %v16495_v60 = vmul.f32 %v16046_v49, %v16359_v52  ;;  %v16499_v31 = vmul.f32 %v16053_v41, %v16359_v52  ;;  %v16503_v15 = vmul.f32 %v16064_v62, %v16359_v52  ;;  %v16507_v42 = vmul.f32 %v16071_v4, %v16359_v52 }
 0x48c   :  { %v16511_v59 = vmul.f32 %v16082_v26, %v16359_v52  ;;  %v16515_v49 = vmul.f32 %v16089_v57, %v16359_v52  ;;  %v16519_v41 = vmul.f32 %v16100_v6, %v16359_v52  ;;  %v16523_v62 = vmul.f32 %v16106_v29, %v16359_v52  ;;  %10365 = vmatprep.subr.bf16.mxu1 %v19545_v19  ;;  %v19549_v29 = vld [vmem:[#allocation11_spill] sm:$0xff] }
 0x48d   :  { %v16528_v4 = vmul.f32 %v16117_v45, %v16359_v52  ;;  %v16532_v26 = vmul.f32 %v16123_v22, %v16359_v52  ;;  %v16536_v57 = vmul.f32 %v16133_v63, %v16359_v52  ;;  %v16540_v6 = vmul.f32 %v16139_v47, %v16359_v52  ;;  %v13828_v47 = vld [vmem:[%s19388_s6 + $0x18] sm:$0xff]  }
 0x48e   :  { %v16544_v8 = vmul.f32 %v19549_v29, %v16359_v52  ;;  %v16548_v45 = vmul.f32 %v19550_v7, %v16359_v52  ;;  %v16552_v22 = vmul.f32 %v19551_v17, %v16359_v52  ;;  %v16556_v63 = vmul.f32 %v19552_v12, %v16359_v52  ;;  %v19558_v7 = vld [vmem:[#allocation20_spill] sm:$0xff]  ;;  %v19559_v12 = vld [vmem:[#allocation21_spill] sm:$0xff]  ;;  %10366 = vmatpush1.bf16.msra.mxu1 %v13828_v47  ;;  %v19570_v47 = vld [vmem:[#allocation27_spill] sm:$0xff] }
 0x48f   :  { %v16563_v33 = vmul.f32 %v19553_v18, %v16359_v52  ;;  %v16567_v61 = vmul.f32 %v19554_v20, %v16359_v52  ;;  %v16571_v30 = vmul.f32 %v19555_v50, %v16359_v52  ;;  %v16575_v36 = vmul.f32 %v19556_v11, %v16359_v52  ;;  %v19560_v20 = vld [vmem:[#allocation22_spill] sm:$0xff]  ;;  %v19562_v11 = vld [vmem:[#allocation23_spill] sm:$0xff]  ;;  %10367 = vmatprep.subr.bf16.mxu1 %v19545_v19 }
 0x490   :  { %v16579_v29 = vmul.f32 %v19557_v27, %v16359_v52  ;;  %v16583_v17 = vmul.f32 %v19558_v7, %v16359_v52  ;;  %v16587_v18 = vmul.f32 %v19559_v12, %v16359_v52  ;;  %v16591_v50 = vmul.f32 %v19560_v20, %v16359_v52  ;;  %v19564_v27 = vld [vmem:[#allocation24_spill] sm:$0xff]  ;;  %v19566_v7 = vld [vmem:[#allocation25_spill] sm:$0xff]  ;;  %v19568_v12 = vld [vmem:[#allocation26_spill] sm:$0xff] }
 0x491   :  { %v16595_v39 = vmul.f32 %v19562_v11, %v16359_v52  ;;  %v16599_v32 = vmul.f32 %v19564_v27, %v16359_v52  ;;  %v16603_v35 = vmul.f32 %v19566_v7, %v16359_v52  ;;  %v16607_v25 = vmul.f32 %v19568_v12, %v16359_v52  ;;  %v19572_v11 = vld [vmem:[#allocation28_spill] sm:$0xff]  ;;  %v19574_v27 = vld [vmem:[#allocation29_spill] sm:$0xff]  ;;  %v19575_v7 = vld [vmem:[#allocation30_spill] sm:$0xff] }
 0x492   :  { %19561 = vst [vmem:[#allocation11_spill] sm:$0xff] %v16591_v50  ;;  %v16612_v20 = vmul.f32 %v19570_v47, %v16359_v52  ;;  %v19576_v12 = vld [vmem:[#allocation31_spill] sm:$0xff]  ;;  %v19577_v50 = vld [vmem:[#allocation32_spill] sm:$0xff] }
 0x493   :  { %19563 = vst [vmem:[#allocation12_spill] sm:$0xff] %v16595_v39  ;;  %19565 = vst [vmem:[#allocation13_spill] sm:$0xff] %v16599_v32  ;;  %v16616_v39 = vmul.f32 %v19572_v11, %v16359_v52  ;;  %v16620_v32 = vmul.f32 %v19574_v27, %v16359_v52  ;;  %v16632_v47 = vmul.f32 %v19577_v50, %v16359_v52 }
 0x494   :  { %19567 = vst [vmem:[#allocation14_spill] sm:$0xff] %v16603_v35  ;;  %19569 = vst [vmem:[#allocation15_spill] sm:$0xff] %v16607_v25  ;;  %v16624_v35 = vmul.f32 %v19575_v7, %v16359_v52  ;;  %v16628_v25 = vmul.f32 %v19576_v12, %v16359_v52  ;;  %v13829_v7 = vld [vmem:[%s19388_s6 + $0x20] sm:$0xff]   ;;  %v16647_v12 = vadd.f32 %v16393_v10, %v16370_v53 }
 0x495   :  { %19571 = vst [vmem:[#allocation16_spill] sm:$0xff] %v16612_v20  ;;  %19573 = vst [vmem:[#allocation17_spill] sm:$0xff] %v16616_v39  ;;  %v19578_v20 = vld [vmem:[#allocation33_spill] sm:$0xff]  ;;  %v19579_v39 = vld [vmem:[#allocation34_spill] sm:$0xff]  ;;  %v16651_v50 = vadd.f32 %v16393_v10, %v16374_v2  ;;  %v16667_v53 = vadd.f32 %v16393_v10, %v16390_v37  ;;  %v16671_v2 = vadd.f32 %v16393_v10, %v16397_v13  ;;  %10368 = vmatpush1.bf16.msra.mxu1 %v13829_v7 }
 0x496   :  { %v16636_v11 = vmul.f32 %v19578_v20, %v16359_v52  ;;  %v16640_v27 = vmul.f32 %v19579_v39, %v16359_v52  ;;  %v16655_v20 = vadd.f32 %v16393_v10, %v16378_v1  ;;  %v16659_v39 = vadd.f32 %v16393_v10, %v16382_v51  ;;  %10369 = vmatprep.subr.bf16.mxu1 %v19545_v19 }
 0x497   :  { %v16663_v52 = vadd.f32 %v16393_v10, %v16386_v14  ;;  %v16675_v1 = vadd.f32 %v16393_v10, %v16401_v3  ;;  %v16679_v51 = vadd.f32 %v16393_v10, %v16405_v21  ;;  %v16683_v14 = vadd.f32 %v16393_v10, %v16412_v43 }
 0x498   :  { %v16687_v37 = vadd.f32 %v16393_v10, %v16416_v16  ;;  %v16691_v13 = vadd.f32 %v16393_v10, %v16420_v23  ;;  %v16696_v3 = vadd.f32 %v16393_v10, %v16424_v24  ;;  %v16700_v21 = vadd.f32 %v16393_v10, %v16431_v9  ;;  %v13830_v23 = vld [vmem:[%s19388_s6 + $0x28] sm:$0xff]  }
 0x499   :  { %v16704_v43 = vadd.f32 %v16393_v10, %v16435_v5  ;;  %v16708_v16 = vadd.f32 %v16393_v10, %v16439_v58  ;;  %v16715_v24 = vadd.f32 %v16393_v10, %v16443_v0  ;;  %v16719_v9 = vadd.f32 %v16393_v10, %v16447_v55  ;;  %10370 = vmatpush1.bf16.msra.mxu1 %v13830_v23 }
 0x49a   :  { %v16723_v5 = vadd.f32 %v16393_v10, %v16451_v34  ;;  %v16727_v58 = vadd.f32 %v16393_v10, %v16455_v56  ;;  %v16731_v7 = vadd.f32 %v16393_v10, %v16464_v44  ;;  %v16735_v0 = vadd.f32 %v16393_v10, %v16468_v54  ;;  %10371 = vmatprep.subr.bf16.mxu1 %v19545_v19 }
 0x49b   :  { %v16739_v55 = vadd.f32 %v16393_v10, %v16472_v48  ;;  %v16743_v34 = vadd.f32 %v16393_v10, %v16479_v28  ;;  %v16747_v56 = vadd.f32 %v16393_v10, %v16483_v46  ;;  %v16751_v44 = vadd.f32 %v16393_v10, %v16487_v38 }
 0x49c   :  { %v16755_v54 = vadd.f32 %v16393_v10, %v16491_v40  ;;  %v16759_v48 = vadd.f32 %v16393_v10, %v16495_v60  ;;  %v16764_v28 = vadd.f32 %v16393_v10, %v16499_v31  ;;  %v16768_v46 = vadd.f32 %v16393_v10, %v16503_v15  ;;  %v13831_v60 = vld [vmem:[%s19388_s6 + $0x30] sm:$0xff]  }
 0x49d   :  { %v16772_v38 = vadd.f32 %v16393_v10, %v16507_v42  ;;  %v16776_v40 = vadd.f32 %v16393_v10, %v16511_v59  ;;  %v16783_v31 = vadd.f32 %v16393_v10, %v16515_v49  ;;  %v16787_v15 = vadd.f32 %v16393_v10, %v16519_v41  ;;  %10372 = vmatpush1.bf16.msra.mxu1 %v13831_v60  ;;  %v19597_v60 = vld [vmem:[#allocation11_spill] sm:$0xff] }
 0x49e   :  { %19580 = vst [vmem:[#allocation18_spill] sm:$0xff] %v16755_v54  ;;  %19581 = vst [vmem:[#allocation19_spill] sm:$0xff] %v16759_v48  ;;  %v16791_v42 = vadd.f32 %v16393_v10, %v16523_v62  ;;  %v16795_v59 = vadd.f32 %v16393_v10, %v16528_v4  ;;  %v16799_v23 = vadd.f32 %v16393_v10, %v16532_v26  ;;  %10373 = vmatprep.subr.bf16.mxu1 %v19545_v19 }
 0x49f   :  { %19582 = vst [vmem:[#allocation20_spill] sm:$0xff] %v16764_v28  ;;  %19583 = vst [vmem:[#allocation21_spill] sm:$0xff] %v16768_v46  ;;  %v16803_v49 = vadd.f32 %v16393_v10, %v16536_v57  ;;  %v16807_v41 = vadd.f32 %v16393_v10, %v16540_v6  ;;  %v16811_v62 = vadd.f32 %v16393_v10, %v16544_v8  ;;  %v19607_v28 = vld [vmem:[#allocation16_spill] sm:$0xff]  ;;  %v19609_v46 = vld [vmem:[#allocation17_spill] sm:$0xff]  ;;  %vm5870_vm11 = vcmp.ge.f32.partialorder %v16651_v50, 0.0 }
 0x4a0   :  { %19584 = vst [vmem:[#allocation22_spill] sm:$0xff] %v16772_v38  ;;  %19585 = vst [vmem:[#allocation23_spill] sm:$0xff] %v16776_v40  ;;  %v16815_v4 = vadd.f32 %v16393_v10, %v16548_v45  ;;  %v16819_v26 = vadd.f32 %v16393_v10, %v16552_v22  ;;  %v16823_v57 = vadd.f32 %v16393_v10, %v16556_v63  ;;  %vm5869_vm12 = vcmp.ge.f32.partialorder %v16647_v12, 0.0 }
 0x4a1   :  { %19586 = vst [vmem:[#allocation24_spill] sm:$0xff] %v16783_v31  ;;  %19587 = vst [vmem:[#allocation25_spill] sm:$0xff] %v16787_v15  ;;  %v16827_v6 = vadd.f32 %v16393_v10, %v16563_v33  ;;  %v16832_v8 = vadd.f32 %v16393_v10, %v16567_v61  ;;  %v16836_v45 = vadd.f32 %v16393_v10, %v16571_v30  ;;  %v19603_v31 = vld [vmem:[#allocation14_spill] sm:$0xff]  ;;  %v19605_v15 = vld [vmem:[#allocation15_spill] sm:$0xff]  ;;  %vm5872_vm13 = vcmp.ge.f32.partialorder %v16659_v39, 0.0 }
 0x4a2   :  { %19588 = vst [vmem:[#allocation26_spill] sm:$0xff] %v16791_v42  ;;  %19589 = vst [vmem:[#allocation27_spill] sm:$0xff] %v16795_v59  ;;  %v16840_v22 = vadd.f32 %v16393_v10, %v16575_v36  ;;  %v16844_v63 = vadd.f32 %v16393_v10, %v16579_v29  ;;  %v16848_v33 = vadd.f32 %v16393_v10, %v16583_v17  ;;  %v19599_v42 = vld [vmem:[#allocation12_spill] sm:$0xff]  ;;  %v19601_v59 = vld [vmem:[#allocation13_spill] sm:$0xff]  ;;  %vm5871_vm14 = vcmp.ge.f32.partialorder %v16655_v20, 0.0 }
 0x4a3   :  { %19590 = vst [vmem:[#allocation28_spill] sm:$0xff] %v16807_v41  ;;  %19591 = vst [vmem:[#allocation29_spill] sm:$0xff] %v16815_v4  ;;  %v16852_v61 = vadd.f32 %v16393_v10, %v16587_v18  ;;  %v16856_v30 = vadd.f32 %v16393_v10, %v19597_v60  ;;  %v16860_v36 = vadd.f32 %v16393_v10, %v19599_v42  ;;  %v13832_v42 = vld [vmem:[%s19388_s6 + $0x38] sm:$0xff]   ;;  %vm5874_vm15 = vcmp.ge.f32.partialorder %v16667_v53, 0.0 }
 0x4a4   :  { %19592 = vst [vmem:[#allocation30_spill] sm:$0xff] %v16823_v57  ;;  %19593 = vst [vmem:[#allocation31_spill] sm:$0xff] %v16840_v22  ;;  %v16864_v29 = vadd.f32 %v16393_v10, %v19601_v59  ;;  %v16868_v17 = vadd.f32 %v16393_v10, %v19603_v31  ;;  %v16872_v18 = vadd.f32 %v16393_v10, %v19605_v15  ;;  %10374 = vmatpush1.bf16.msra.mxu1 %v13832_v42 }
 0x4a5   :  { %19594 = vst [vmem:[#allocation32_spill] sm:$0xff] %v16844_v63  ;;  %19595 = vst [vmem:[#allocation33_spill] sm:$0xff] %v16848_v33  ;;  %v16876_v60 = vadd.f32 %v16393_v10, %v19607_v28  ;;  %v16883_v59 = vadd.f32 %v16393_v10, %v19609_v46  ;;  %v16887_v31 = vadd.f32 %v16393_v10, %v16620_v32  ;;  %10375 = vmatprep.subr.bf16.mxu1 %v19545_v19 }
 0x4a6   :  { %19596 = vst [vmem:[#allocation34_spill] sm:$0xff] %v16852_v61  ;;  %19598 = vst [vmem:[#allocation11_spill] sm:$0xff] %v16856_v30  ;;  %v16891_v15 = vadd.f32 %v16393_v10, %v16624_v35  ;;  %v16895_v28 = vadd.f32 %v16393_v10, %v16628_v25  ;;  %v16899_v54 = vadd.f32 %v16393_v10, %v16632_v47  ;;  %v19617_v35 = vld [vmem:[#allocation36_spill] sm:$0xff]  ;;  %vm5873_vm0 = vcmp.ge.f32.partialorder %v16663_v52, 0.0 }
 0x4a7   :  { %19600 = vst [vmem:[#allocation12_spill] sm:$0xff] %v16860_v36  ;;  %19602 = vst [vmem:[#allocation13_spill] sm:$0xff] %v16864_v29  ;;  %v16903_v46 = vadd.f32 %v16393_v10, %v16636_v11  ;;  %v16907_v32 = vadd.f32 %v16393_v10, %v16640_v27  ;;  %v5935_v48 = vmul.f32 %v19617_v35, %v16651_v50  ;;  %vm5876_vm1 = vcmp.ge.f32.partialorder %v16675_v1, 0.0 }
 0x4a8   :  { %19604 = vst [vmem:[#allocation14_spill] sm:$0xff] %v16868_v17  ;;  %19606 = vst [vmem:[#allocation15_spill] sm:$0xff] %v16872_v18  ;;  %v16914_v25 = vmul.f32 %v19617_v35, %v16772_v38  ;;  %v16918_v47 = vmul.f32 %v19617_v35, %v16776_v40  ;;  %v16922_v11 = vmul.f32 %v19617_v35, %v16799_v23  ;;  %vm5875_vm4 = vcmp.ge.f32.partialorder %v16671_v2, 0.0 }
 0x4a9   :  { %19608 = vst [vmem:[#allocation16_spill] sm:$0xff] %v16876_v60  ;;  %19610 = vst [vmem:[#allocation17_spill] sm:$0xff] %v16883_v59  ;;  %v16927_v10 = vmul.f32 %v19617_v35, %v16803_v49  ;;  %v16931_v27 = vmul.f32 %v19617_v35, %v16807_v41  ;;  %v16935_v42 = vmul.f32 %v19617_v35, %v16811_v62  ;;  %v13833_v41 = vld [vmem:[%s19388_s6 + $0x40] sm:$0xff]   ;;  %vm5878_vm6 = vcmp.ge.f32.partialorder %v16683_v14, 0.0 }
 0x4aa   :  { %19611 = vst [vmem:[#allocation39_spill] sm:$0xff] %v16887_v31  ;;  %19612 = vst [vmem:[#allocation40_spill] sm:$0xff] %v16891_v15  ;;  %v16944_v38 = vmul.f32 %v19617_v35, %v16819_v26  ;;  %v16948_v40 = vmul.f32 %v19617_v35, %v16823_v57  ;;  %v16971_v57 = vmul.f32 %v19617_v35, %v16844_v63  ;;  %10376 = vmatpush1.bf16.msra.mxu1 %v13833_v41 }
 0x4ab   :  { %19613 = vst [vmem:[#allocation41_spill] sm:$0xff] %v16895_v28  ;;  %19614 = vst [vmem:[#allocation42_spill] sm:$0xff] %v16899_v54  ;;  %10377 = vmatprep.subr.bf16.mxu1 %v19545_v19  ;;  %v17001_v41 = vmul.f32 %v19617_v35, %v16872_v18  ;;  %v17024_v18 = vmul.f32 %v19617_v35, %v16895_v28 }
 0x4ac   :  { %19615 = vst [vmem:[#allocation43_spill] sm:$0xff] %v16903_v46  ;;  %19616 = vst [vmem:[#allocation44_spill] sm:$0xff] %v16907_v32 }
 0x4ad   :  { %19618 = vst [vmem:[#allocation36_spill] sm:$0xff] %v16914_v25  ;;  %19619 = vst [vmem:[#allocation45_spill] sm:$0xff] %v16918_v47  ;;  %v16939_v25 = vmul.f32 %v19617_v35, %v16815_v4  ;;  %v5999_v47 = vsel %vm5870_vm11, %v16651_v50, %v5935_v48  ;;  %v16959_v50 = vmul.f32 %v19617_v35, %v16832_v8  ;;  %vm5877_vm11 = vcmp.ge.f32.partialorder %v16679_v51, 0.0 }
 0x4ae   :  { %19620 = vst [vmem:[#allocation46_spill] sm:$0xff] %v16931_v27  ;;  %19621 = vst [vmem:[#allocation47_spill] sm:$0xff] %v16948_v40  ;;  %v16952_v27 = vmul.f32 %v19617_v35, %v16827_v6  ;;  %v12781_v4 = vpack.c.bf16 %v5999_v47, %v5999_v47  ;;  %v16963_v48 = vmul.f32 %v19617_v35, %v16836_v45 }
 0x4af   :  { %19623 = vst [vmem:[#allocation49_spill] sm:$0xff] %v16959_v50  ;;  %v16967_v40 = vmul.f32 %v19617_v35, %v16840_v22  ;;  %19625 = vst [vmem:[#allocation51_spill] sm:$0xff] %v16971_v57  ;;  %v16979_v47 = vmul.f32 %v19617_v35, %v16852_v61  ;;  %v16983_v50 = vmul.f32 %v19617_v35, %v16856_v30  ;;  %v6912_v30 = vld [vmem:[#allocation3 + $0x2c] sm:$0x1] }
 0x4b0   :  { %19622 = vst [vmem:[#allocation48_spill] sm:$0xff] %v16952_v27  ;;  %v16975_v27 = vmul.f32 %v19617_v35, %v16848_v33  ;;  %7120 = vrot.lane.b32.xlu1 %v12781_v4, %s14189_s23  ;;  %v6266_v22 = vshll.u32 %v12781_v4, 16  ;;  %v16988_v57 = vmul.f32 %v19617_v35, %v16860_v36  ;;  %19632 = vst [vmem:[#allocation58_spill] sm:$0xff] %v17001_v41 }
 0x4b1   :  { %19624 = vst [vmem:[#allocation50_spill] sm:$0xff] %v16967_v40  ;;  %19627 = vst [vmem:[#allocation53_spill] sm:$0xff] %v16979_v47  ;;  %v6263_v40 = vshrl.u32 %v12781_v4, 16  ;;  %v16997_v47 = vmul.f32 %v19617_v35, %v16868_v17  ;;  %v17005_v4 = vmul.f32 %v19617_v35, %v16876_v60  ;;  %v17020_v41 = vmul.f32 %v19617_v35, %v16891_v15 }
 0x4b2   :  { %19626 = vst [vmem:[#allocation52_spill] sm:$0xff] %v16975_v27  ;;  %19628 = vst [vmem:[#allocation54_spill] sm:$0xff] %v16983_v50  ;;  %v16992_v27 = vmul.f32 %v19617_v35, %v16864_v29  ;;  %v17009_v50 = vmul.f32 %v19617_v35, %v16883_v59  ;;  %v5938_v59 = vmul.f32 %v19617_v35, %v16663_v52 }
 0x4b3   :  { %19629 = vst [vmem:[#allocation55_spill] sm:$0xff] %v16988_v57  ;;  %19631 = vst [vmem:[#allocation57_spill] sm:$0xff] %v16997_v47  ;;  %v6265_v29 = vrot.slane %v6263_v40, 7  ;;  %v17016_v47 = vmul.f32 %v19617_v35, %v16887_v31  ;;  %v17032_v40 = vmul.f32 %v19617_v35, %v16903_v46 }
 0x4b4   :  { %19630 = vst [vmem:[#allocation56_spill] sm:$0xff] %v16992_v27  ;;  %19633 = vst [vmem:[#allocation59_spill] sm:$0xff] %v17005_v4  ;;  %v13834_v27 = vld [vmem:[%s19388_s6 + $0x48] sm:$0xff]   ;;  %v6898_v4 = vld [vmem:[#allocation3 + $0x14] sm:$0x1] }
 0x4b5   :  { %19634 = vst [vmem:[#allocation60_spill] sm:$0xff] %v17009_v50  ;;  %19635 = vst [vmem:[#allocation61_spill] sm:$0xff] %v17016_v47  ;;  %v17028_v50 = vmul.f32 %v19617_v35, %v16899_v54  ;;  %v17036_v47 = vmul.f32 %v19617_v35, %v16907_v32  ;;  %10378 = vmatpush1.bf16.msra.mxu1 %v13834_v27  ;;  %v6270_v15 = vrot.slane %v6265_v29, 4 }
 0x4b6   :  { %19636 = vst [vmem:[#allocation62_spill] sm:$0xff] %v17020_v41  ;;  %19637 = vst [vmem:[#allocation63_spill] sm:$0xff] %v17024_v18  ;;  %v6268_v41 = vor.u32 %v6266_v22, %v6265_v29  ;;  %v5934_v18 = vmul.f32 %v19617_v35, %v16647_v12  ;;  %10379 = vmatprep.subr.bf16.mxu1 %v19545_v19  ;;  %v13835_v22 = vld [vmem:[%s19388_s6 + $0x50] sm:$0xff]   ;;  %v5939_v54 = vmul.f32 %v19617_v35, %v16667_v53 }
 0x4b7   :  { %19638 = vst [vmem:[#allocation64_spill] sm:$0xff] %v17028_v50  ;;  %19639 = vst [vmem:[#allocation65_spill] sm:$0xff] %v17032_v40  ;;  %v5937_v50 = vmul.f32 %v19617_v35, %v16659_v39  ;;  %v6899_v27 = vsel %vm14406_vm2, %v6270_v15, %v6898_v4 }
 0x4b8   :  { %19640 = vst [vmem:[#allocation66_spill] sm:$0xff] %v17036_v47  ;;  %v5936_v47 = vmul.f32 %v19617_v35, %v16655_v20  ;;  %v5998_v32 = vsel %vm5869_vm12, %v16647_v12, %v5934_v18  ;;  %6900 = vst [vmem:[#allocation3 + $0x14] sm:$0x1] %v6899_v27  ;;  %v6003_v15 = vsel %vm5874_vm15, %v16667_v53, %v5939_v54  ;;  %vm5880_vm12 = vcmp.ge.f32.partialorder %v16691_v13, 0.0 }
 0x4b9   :  { %v12780_v40 = vpack.c.bf16 %v5998_v32, %v5998_v32  ;;  %v6001_v46 = vsel %vm5872_vm13, %v16659_v39, %v5937_v50  ;;  %10380 = vmatpush1.bf16.msra.mxu1 %v13835_v22  ;;  %v12785_v32 = vpack.c.bf16 %v6003_v15, %v6003_v15  ;;  %v13836_v22 = vld [vmem:[%s19388_s6 + $0x58] sm:$0xff]   ;;  %v6905_v15 = vld [vmem:[#allocation3 + $0x20] sm:$0x1]  ;;  %vm5879_vm13 = vcmp.ge.f32.partialorder %v16687_v37, 0.0 }
 0x4ba   :  { %v6000_v28 = vsel %vm5871_vm14, %v16655_v20, %v5936_v47  ;;  %v12783_v31 = vpack.c.bf16 %v6001_v46, %v6001_v46  ;;  %10381 = vmatprep.subr.bf16.mxu1 %v19545_v19  ;;  %v6002_v20 = vsel %vm5873_vm0, %v16663_v52, %v5938_v59  ;;  %v5941_v52 = vmul.f32 %v19617_v35, %v16675_v1 }
 0x4bb   :  { %v12782_v60 = vpack.c.bf16 %v6000_v28, %v6000_v28  ;;  %7118 = vrot.lane.b32.xlu0 %v12780_v40, %s14189_s23  ;;  %v6255_v12 = vshrl.u32 %v12780_v40, 16  ;;  %v6258_v18 = vshll.u32 %v12780_v40, 16  ;;  %v6297_v54 = vshrl.u32 %v12785_v32, 16  ;;  %v6894_v40 = vld [vmem:[#allocation3 + $0xc] sm:$0xf] }
 0x4bc   :  { %v6280_v39 = vshrl.u32 %v12783_v31, 16  ;;  %v6283_v50 = vshll.u32 %v12783_v31, 16  ;;  %7124 = vrot.lane.b32.xlu1 %v12783_v31, %s14189_s23  ;;  %v6300_v47 = vshll.u32 %v12785_v32, 16  ;;  %v12784_v4 = vpack.c.bf16 %v6002_v20, %v6002_v20 }
 0x4bd   :  { %v6272_v28 = vshrl.u32 %v12782_v60, 16  ;;  %v6275_v46 = vshll.u32 %v12782_v60, 16  ;;  %v6257_v53 = vrot.slane %v6255_v12, 7  ;;  %v6299_v12 = vrot.slane %v6297_v54, 7  ;;  %10382 = vmatpush1.bf16.msra.mxu1 %v13836_v22 }
 0x4be   :  { %v6282_v27 = vrot.slane %v6280_v39, 7  ;;  %v6289_v20 = vshrl.u32 %v12784_v4, 16  ;;  %10383 = vmatprep.subr.bf16.mxu1 %v19545_v19  ;;  %v6292_v22 = vshll.u32 %v12784_v4, 16  ;;  %vm5882_vm14 = vcmp.ge.f32.partialorder %v16700_v21, 0.0  ;;  %v13872_v39 = vld [vmem:[%s19388_s6 + $0xa0] sm:$0xff]  }
 0x4bf   :  { %v6274_v17 = vrot.slane %v6272_v28, 7  ;;  %v6260_v59 = vor.u32 %v6258_v18, %v6257_v53  ;;  %v6261_v31 = vrot.slane %v6257_v53, 4  ;;  %7122 = vrot.lane.b32.xlu0 %v12782_v60, %s14189_s23  ;;  %v6901_v53 = vld [vmem:[#allocation3 + $0x18] sm:$0xf]  ;;  %v6302_v60 = vor.u32 %v6300_v47, %v6299_v12 }
 0x4c0   :  { %v6285_v57 = vor.u32 %v6283_v50, %v6282_v27  ;;  %v6287_v36 = vrot.slane %v6282_v27, 4  ;;  %7128 = vrot.lane.b32.xlu1 %v12785_v32, %s14189_s23  ;;  %v6304_v54 = vrot.slane %v6299_v12, 4  ;;  %vm5881_vm15 = vcmp.ge.f32.partialorder %v16696_v3, 0.0 }
 0x4c1   :  { %v6277_v33 = vor.u32 %v6275_v46, %v6274_v17  ;;  %v6278_v61 = vrot.slane %v6274_v17, 4  ;;  %v6269_v28 = vsel %vm14762_vm7, %v6261_v31, %v6268_v41  ;;  %v6895_v18 = vsel %vm14698_vm5, %v6260_v59, %v6894_v40  ;;  %v13837_v41 = vld [vmem:[%s19388_s6 + $0x60] sm:$0xff]  }
 0x4c2   :  { %6896 = vst [vmem:[#allocation3 + $0xc] sm:$0xf] %v6895_v18  ;;  %6897 = vst.msk [vmem:[#allocation3 + $0x10] sm:$0xf] %vm1046_vm3, %v6269_v28  ;;  %v6906_v50 = vsel %vm14406_vm2, %v6287_v36, %v6905_v15  ;;  %v6291_v46 = vrot.slane %v6289_v20, 7  ;;  %v6913_v47 = vsel %vm14406_vm2, %v6304_v54, %v6912_v30  ;;  %v5943_v40 = vmul.f32 %v19617_v35, %v16683_v14 }
 0x4c3   :  { %v6286_v17 = vsel %vm14762_vm7, %v6278_v61, %v6285_v57  ;;  %v6902_v32 = vsel %vm14698_vm5, %v6277_v33, %v6901_v53  ;;  %6907 = vst [vmem:[#allocation3 + $0x20] sm:$0x1] %v6906_v50  ;;  %7126 = vrot.lane.b32.xlu0 %v12784_v4, %s14189_s23  ;;  %v6005_v57 = vsel %vm5876_vm1, %v16675_v1, %v5941_v52  ;;  %6914 = vst [vmem:[#allocation3 + $0x2c] sm:$0x1] %v6913_v47  ;;  %v6908_v15 = vld [vmem:[#allocation3 + $0x24] sm:$0xf] }
 0x4c4   :  { %6903 = vst [vmem:[#allocation3 + $0x18] sm:$0xf] %v6902_v32  ;;  %6904 = vst.msk [vmem:[#allocation3 + $0x1c] sm:$0xf] %vm1046_vm3, %v6286_v17  ;;  %v5940_v33 = vmul.f32 %v19617_v35, %v16671_v2  ;;  %v6295_v61 = vrot.slane %v6291_v46, 4  ;;  %v12787_v36 = vpack.c.bf16 %v6005_v57, %v6005_v57  ;;  %10384 = vmatpush1.bf16.msra.mxu1 %v13837_v41  ;;  %vm5884_vm0 = vcmp.ge.f32.partialorder %v16708_v16, 0.0 }
 0x4c5   :  { %v6294_v30 = vor.u32 %v6292_v22, %v6291_v46  ;;  %v5942_v1 = vmul.f32 %v19617_v35, %v16679_v51  ;;  %10385 = vmatprep.subr.bf16.mxu1 %v19545_v19  ;;  %v6007_v20 = vsel %vm5878_vm6, %v16683_v14, %v5943_v40  ;;  %v6919_v50 = vld [vmem:[#allocation3 + $0x38] sm:$0x1]  ;;  %v5945_v32 = vmul.f32 %v19617_v35, %v16691_v13  ;;  %v13839_v22 = vld [vmem:[%s19388_s6 + $0x70] sm:$0xff]  }
 0x4c6   :  { %v6004_v4 = vsel %vm5875_vm4, %v16671_v2, %v5940_v33  ;;  %v6303_v27 = vsel %vm14762_vm7, %v6295_v61, %v6302_v60  ;;  %v6314_v52 = vshrl.u32 %v12787_v36, 16  ;;  %v6317_v59 = vshll.u32 %v12787_v36, 16  ;;  %7132 = vrot.lane.b32.xlu1 %v12787_v36, %s14189_s23  ;;  %v13838_v2 = vld [vmem:[%s19388_s6 + $0x68] sm:$0xff]   ;;  %v6915_v57 = vld [vmem:[#allocation3 + $0x30] sm:$0xf] }
 0x4c7   :  { %v12786_v31 = vpack.c.bf16 %v6004_v4, %v6004_v4  ;;  %v6909_v12 = vsel %vm14698_vm5, %v6294_v30, %v6908_v15  ;;  %6911 = vst.msk [vmem:[#allocation3 + $0x28] sm:$0xf] %vm1046_vm3, %v6303_v27  ;;  %v6006_v28 = vsel %vm5877_vm11, %v16679_v51, %v5942_v1  ;;  %v12789_v54 = vpack.c.bf16 %v6007_v20, %v6007_v20  ;;  %v6926_v61 = vld [vmem:[#allocation3 + $0x44] sm:$0x1] }
 0x4c8   :  { %6910 = vst [vmem:[#allocation3 + $0x24] sm:$0xf] %v6909_v12  ;;  %v6316_v18 = vrot.slane %v6314_v52, 7  ;;  %10386 = vmatpush1.bf16.msra.mxu1 %v13838_v2  ;;  %v12788_v17 = vpack.c.bf16 %v6006_v28, %v6006_v28  ;;  %v5944_v51 = vmul.f32 %v19617_v35, %v16687_v37  ;;  %v6009_v30 = vsel %vm5880_vm12, %v16691_v13, %v5945_v32  ;;  %v13840_v32 = vld [vmem:[%s19388_s6 + $0x78] sm:$0xff]  }
 0x4c9   :  { %v6306_v53 = vshrl.u32 %v12786_v31, 16  ;;  %v6309_v60 = vshll.u32 %v12786_v31, 16  ;;  %7130 = vrot.lane.b32.xlu0 %v12786_v31, %s14189_s23  ;;  %10387 = vmatprep.subr.bf16.mxu1 %v19545_v19  ;;  %v6331_v47 = vshrl.u32 %v12789_v54, 16  ;;  %v6334_v33 = vshll.u32 %v12789_v54, 16 }
 0x4ca   :  { %v6319_v14 = vor.u32 %v6317_v59, %v6316_v18  ;;  %v6321_v46 = vrot.slane %v6316_v18, 4  ;;  %7136 = vrot.lane.b32.xlu1 %v12789_v54, %s14189_s23  ;;  %v6323_v36 = vshrl.u32 %v12788_v17, 16  ;;  %v6326_v40 = vshll.u32 %v12788_v17, 16  ;;  %v6922_v54 = vld [vmem:[#allocation3 + $0x3c] sm:$0xf] }
 0x4cb   :  { %v6308_v41 = vrot.slane %v6306_v53, 7  ;;  %v6333_v15 = vrot.slane %v6331_v47, 7  ;;  %v12791_v59 = vpack.c.bf16 %v6009_v30, %v6009_v30  ;;  %v6008_v31 = vsel %vm5879_vm13, %v16687_v37, %v5944_v51  ;;  %v6933_v47 = vld [vmem:[#allocation3 + $0x50] sm:$0x1] }
 0x4cc   :  { %v6920_v4 = vsel %vm14406_vm2, %v6321_v46, %v6919_v50  ;;  %10388 = vmatpush1.bf16.msra.mxu1 %v13839_v22  ;;  %v6325_v52 = vrot.slane %v6323_v36, 7  ;;  %v12790_v50 = vpack.c.bf16 %v6008_v31, %v6008_v31  ;;  %vm5883_vm1 = vcmp.ge.f32.partialorder %v16704_v43, 0.0 }
 0x4cd   :  { %v6311_v1 = vor.u32 %v6309_v60, %v6308_v41  ;;  %v6312_v27 = vrot.slane %v6308_v41, 4  ;;  %7134 = vrot.lane.b32.xlu0 %v12788_v17, %s14189_s23  ;;  %6921 = vst [vmem:[#allocation3 + $0x38] sm:$0x1] %v6920_v4  ;;  %10389 = vmatprep.subr.bf16.mxu1 %v19545_v19  ;;  %v6336_v12 = vor.u32 %v6334_v33, %v6333_v15  ;;  %v6338_v20 = vrot.slane %v6333_v15, 4 }
 0x4ce   :  { %v6328_v28 = vor.u32 %v6326_v40, %v6325_v52  ;;  %v6329_v18 = vrot.slane %v6325_v52, 4  ;;  %v6348_v53 = vshrl.u32 %v12791_v59, 16  ;;  %v6351_v60 = vshll.u32 %v12791_v59, 16  ;;  %7140 = vrot.lane.b32.xlu1 %v12791_v59, %s14189_s23 }
 0x4cf   :  { %v6320_v13 = vsel %vm14762_vm7, %v6312_v27, %v6319_v14  ;;  %v6916_v2 = vsel %vm14698_vm5, %v6311_v1, %v6915_v57  ;;  %v6927_v37 = vsel %vm14406_vm2, %v6338_v20, %v6926_v61  ;;  %v5947_v17 = vmul.f32 %v19617_v35, %v16700_v21 }
 0x4d0   :  { %6917 = vst [vmem:[#allocation3 + $0x30] sm:$0xf] %v6916_v2  ;;  %6918 = vst.msk [vmem:[#allocation3 + $0x34] sm:$0xf] %vm1046_vm3, %v6320_v13  ;;  %v6337_v51 = vsel %vm14762_vm7, %v6329_v18, %v6336_v12  ;;  %v6923_v14 = vsel %vm14698_vm5, %v6328_v28, %v6922_v54  ;;  %v6350_v46 = vrot.slane %v6348_v53, 7  ;;  %v5946_v41 = vmul.f32 %v19617_v35, %v16696_v3 }
 0x4d1   :  { %6928 = vst [vmem:[#allocation3 + $0x44] sm:$0x1] %v6927_v37  ;;  %6924 = vst [vmem:[#allocation3 + $0x3c] sm:$0xf] %v6923_v14  ;;  %v6340_v22 = vshrl.u32 %v12790_v50, 16  ;;  %v6343_v57 = vshll.u32 %v12790_v50, 16  ;;  %7138 = vrot.lane.b32.xlu0 %v12790_v50, %s14189_s23  ;;  %v6011_v33 = vsel %vm5882_vm14, %v16700_v21, %v5947_v17  ;;  %10390 = vmatpush1.bf16.msra.mxu1 %v13840_v32 }
 0x4d2   :  { %6925 = vst.msk [vmem:[#allocation3 + $0x40] sm:$0xf] %vm1046_vm3, %v6337_v51  ;;  %v6353_v61 = vor.u32 %v6351_v60, %v6350_v46  ;;  %v6355_v36 = vrot.slane %v6350_v46, 4  ;;  %v12793_v40 = vpack.c.bf16 %v6011_v33, %v6011_v33  ;;  %v6010_v30 = vsel %vm5881_vm15, %v16696_v3, %v5946_v41  ;;  %10648 = vmatprep.subr.bf16.mxu1 %v19545_v19  ;;  %v6929_v12 = vld [vmem:[#allocation3 + $0x48] sm:$0xf] }
 0x4d3   :  { %v6342_v4 = vrot.slane %v6340_v22, 7  ;;  %v12792_v1 = vpack.c.bf16 %v6010_v30, %v6010_v30  ;;  %v5949_v27 = vmul.f32 %v19617_v35, %v16708_v16  ;;  %v5948_v59 = vmul.f32 %v19617_v35, %v16704_v43  ;;  %v6940_v37 = vld [vmem:[#allocation3 + $0x5c] sm:$0x1]  ;;  %v6936_v22 = vld [vmem:[#allocation3 + $0x54] sm:$0xf] }
 0x4d4   :  { %v6934_v21 = vsel %vm14406_vm2, %v6355_v36, %v6933_v47  ;;  %v6365_v15 = vshrl.u32 %v12793_v40, 16  ;;  %v6368_v52 = vshll.u32 %v12793_v40, 16  ;;  %7144 = vrot.lane.b32.xlu1 %v12793_v40, %s14189_s23  ;;  %vm5886_vm4 = vcmp.ge.f32.partialorder %v16719_v9, 0.0 }
 0x4d5   :  { %6935 = vst [vmem:[#allocation3 + $0x50] sm:$0x1] %v6934_v21  ;;  %v6345_v3 = vor.u32 %v6343_v57, %v6342_v4  ;;  %v6346_v31 = vrot.slane %v6342_v4, 4  ;;  %v6357_v13 = vshrl.u32 %v12792_v1, 16  ;;  %v6360_v2 = vshll.u32 %v12792_v1, 16  ;;  %7142 = vrot.lane.b32.xlu0 %v12792_v1, %s14189_s23 }
 0x4d6   :  { %v6367_v20 = vrot.slane %v6365_v15, 7  ;;  %v6013_v28 = vsel %vm5884_vm0, %v16708_v16, %v5949_v27  ;;  %v6012_v18 = vsel %vm5883_vm1, %v16704_v43, %v5948_v59  ;;  %v5951_v43 = vmul.f32 %v19617_v35, %v16719_v9  ;;  %v6947_v4 = vld [vmem:[#allocation3 + $0x68] sm:$0x1] }
 0x4d7   :  { %v6354_v53 = vsel %vm14762_vm7, %v6346_v31, %v6353_v61  ;;  %v6930_v60 = vsel %vm14698_vm5, %v6345_v3, %v6929_v12  ;;  %v6359_v54 = vrot.slane %v6357_v13, 7  ;;  %v12795_v50 = vpack.c.bf16 %v6013_v28, %v6013_v28 }
 0x4d8   :  { %6931 = vst [vmem:[#allocation3 + $0x48] sm:$0xf] %v6930_v60  ;;  %6932 = vst.msk [vmem:[#allocation3 + $0x4c] sm:$0xf] %vm1046_vm3, %v6354_v53  ;;  %v6370_v17 = vor.u32 %v6368_v52, %v6367_v20  ;;  %v6372_v32 = vrot.slane %v6367_v20, 4  ;;  %v12794_v51 = vpack.c.bf16 %v6012_v18, %v6012_v18  ;;  %v6015_v61 = vsel %vm5886_vm4, %v16719_v9, %v5951_v43 }
 0x4d9   :  { %v6362_v16 = vor.u32 %v6360_v2, %v6359_v54  ;;  %v6363_v14 = vrot.slane %v6359_v54, 4  ;;  %v6382_v46 = vshrl.u32 %v12795_v50, 16  ;;  %v6385_v41 = vshll.u32 %v12795_v50, 16  ;;  %7148 = vrot.lane.b32.xlu1 %v12795_v50, %s14189_s23  ;;  %v6943_v20 = vld [vmem:[#allocation3 + $0x60] sm:$0xf] }
 0x4da   :  { %v6941_v47 = vsel %vm14406_vm2, %v6372_v32, %v6940_v37  ;;  %v6374_v57 = vshrl.u32 %v12794_v51, 16  ;;  %v6377_v33 = vshll.u32 %v12794_v51, 16  ;;  %7146 = vrot.lane.b32.xlu0 %v12794_v51, %s14189_s23  ;;  %v12797_v1 = vpack.c.bf16 %v6015_v61, %v6015_v61  ;;  %v6954_v37 = vld [vmem:[#allocation3 + $0x74] sm:$0x1] }
 0x4db   :  { %6942 = vst [vmem:[#allocation3 + $0x5c] sm:$0x1] %v6941_v47  ;;  %v6371_v36 = vsel %vm14762_vm7, %v6363_v14, %v6370_v17  ;;  %v6937_v40 = vsel %vm14698_vm5, %v6362_v16, %v6936_v22  ;;  %v6384_v30 = vrot.slane %v6382_v46, 7  ;;  %vm5885_vm6 = vcmp.ge.f32.partialorder %v16715_v24, 0.0 }
 0x4dc   :  { %6938 = vst [vmem:[#allocation3 + $0x54] sm:$0xf] %v6937_v40  ;;  %6939 = vst.msk [vmem:[#allocation3 + $0x58] sm:$0xf] %vm1046_vm3, %v6371_v36  ;;  %v6376_v27 = vrot.slane %v6374_v57, 7  ;;  %v5950_v21 = vmul.f32 %v19617_v35, %v16715_v24  ;;  %vm5888_vm11 = vcmp.ge.f32.partialorder %v16727_v58, 0.0  ;;  %v5953_v2 = vmul.f32 %v19617_v35, %v16727_v58 }
 0x4dd   :  { %v6387_v9 = vor.u32 %v6385_v41, %v6384_v30  ;;  %v6389_v15 = vrot.slane %v6384_v30, 4  ;;  %v6399_v52 = vshrl.u32 %v12797_v1, 16  ;;  %v6402_v59 = vshll.u32 %v12797_v1, 16  ;;  %7152 = vrot.lane.b32.xlu1 %v12797_v1, %s14189_s23  ;;  %v6950_v30 = vld [vmem:[#allocation3 + $0x6c] sm:$0xf] }
 0x4de   :  { %v6379_v3 = vor.u32 %v6377_v33, %v6376_v27  ;;  %v6380_v31 = vrot.slane %v6376_v27, 4  ;;  %v6014_v13 = vsel %vm5885_vm6, %v16715_v24, %v5950_v21  ;;  %vm5887_vm12 = vcmp.ge.f32.partialorder %v16723_v5, 0.0  ;;  %v6961_v1 = vld [vmem:[#allocation3 + $0x80] sm:$0x1] }
 0x4df   :  { %v6948_v12 = vsel %vm14406_vm2, %v6389_v15, %v6947_v4  ;;  %v6401_v28 = vrot.slane %v6399_v52, 7  ;;  %v12796_v18 = vpack.c.bf16 %v6014_v13, %v6014_v13  ;;  %v6017_v24 = vsel %vm5888_vm11, %v16727_v58, %v5953_v2 }
 0x4e0   :  { %6949 = vst [vmem:[#allocation3 + $0x68] sm:$0x1] %v6948_v12  ;;  %v6388_v53 = vsel %vm14762_vm7, %v6380_v31, %v6387_v9  ;;  %v6944_v60 = vsel %vm14698_vm5, %v6379_v3, %v6943_v20  ;;  %v5952_v54 = vmul.f32 %v19617_v35, %v16723_v5  ;;  %v12799_v43 = vpack.c.bf16 %v6017_v24, %v6017_v24 }
 0x4e1   :  { %6945 = vst [vmem:[#allocation3 + $0x60] sm:$0xf] %v6944_v60  ;;  %6946 = vst.msk [vmem:[#allocation3 + $0x64] sm:$0xf] %vm1046_vm3, %v6388_v53  ;;  %v6404_v50 = vor.u32 %v6402_v59, %v6401_v28  ;;  %v6406_v17 = vrot.slane %v6401_v28, 4  ;;  %v6391_v32 = vshrl.u32 %v12796_v18, 16  ;;  %7150 = vrot.lane.b32.xlu0 %v12796_v18, %s14189_s23  ;;  %v5955_v58 = vmul.f32 %v19617_v35, %v16735_v0 }
 0x4e2   :  { %v6394_v51 = vshll.u32 %v12796_v18, 16  ;;  %v6016_v16 = vsel %vm5887_vm12, %v16723_v5, %v5952_v54  ;;  %vm5890_vm13 = vcmp.ge.f32.partialorder %v16735_v0, 0.0  ;;  %vm5889_vm14 = vcmp.ge.f32.partialorder %v16731_v7, 0.0  ;;  %7156 = vrot.lane.b32.xlu1 %v12799_v43, %s14189_s23  ;;  %v6957_v18 = vld [vmem:[#allocation3 + $0x78] sm:$0xf] }
 0x4e3   :  { %v6955_v14 = vsel %vm14406_vm2, %v6406_v17, %v6954_v37  ;;  %v6393_v46 = vrot.slane %v6391_v32, 7  ;;  %v12798_v41 = vpack.c.bf16 %v6016_v16, %v6016_v16  ;;  %v6416_v47 = vshrl.u32 %v12799_v43, 16  ;;  %v6968_v60 = vld [vmem:[#allocation3 + $0x8c] sm:$0x1] }
 0x4e4   :  { %6956 = vst [vmem:[#allocation3 + $0x74] sm:$0x1] %v6955_v14  ;;  %v6419_v22 = vshll.u32 %v12799_v43, 16  ;;  %v6019_v57 = vsel %vm5890_vm13, %v16735_v0, %v5955_v58  ;;  %v5954_v5 = vmul.f32 %v19617_v35, %v16731_v7  ;;  %vm5892_vm15 = vcmp.ge.f32.partialorder %v16743_v34, 0.0 }
 0x4e5   :  { %v6396_v33 = vor.u32 %v6394_v51, %v6393_v46  ;;  %v6397_v61 = vrot.slane %v6393_v46, 4  ;;  %v6408_v36 = vshrl.u32 %v12798_v41, 16  ;;  %v6411_v40 = vshll.u32 %v12798_v41, 16  ;;  %7154 = vrot.lane.b32.xlu0 %v12798_v41, %s14189_s23 }
 0x4e6   :  { %v6418_v4 = vrot.slane %v6416_v47, 7  ;;  %v12801_v27 = vpack.c.bf16 %v6019_v57, %v6019_v57  ;;  %v6018_v21 = vsel %vm5889_vm14, %v16731_v7, %v5954_v5  ;;  %v5957_v37 = vmul.f32 %v19617_v35, %v16743_v34  ;;  %v6964_v47 = vld [vmem:[#allocation3 + $0x84] sm:$0xf] }
 0x4e7   :  { %v6405_v0 = vsel %vm14762_vm7, %v6397_v61, %v6404_v50  ;;  %v6951_v9 = vsel %vm14698_vm5, %v6396_v33, %v6950_v30  ;;  %v6410_v15 = vrot.slane %v6408_v36, 7  ;;  %v12800_v52 = vpack.c.bf16 %v6018_v21, %v6018_v21  ;;  %v19644_v21 = vld [vmem:[#allocation19_spill] sm:$0xff] }
 0x4e8   :  { %6952 = vst [vmem:[#allocation3 + $0x6c] sm:$0xf] %v6951_v9  ;;  %6953 = vst.msk [vmem:[#allocation3 + $0x70] sm:$0xf] %vm1046_vm3, %v6405_v0  ;;  %v6421_v59 = vor.u32 %v6419_v22, %v6418_v4  ;;  %v6423_v3 = vrot.slane %v6418_v4, 4  ;;  %v6433_v31 = vshrl.u32 %v12801_v27, 16  ;;  %7160 = vrot.lane.b32.xlu1 %v12801_v27, %s14189_s23  ;;  %v5956_v17 = vmul.f32 %v19617_v35, %v16739_v55 }
 0x4e9   :  { %v6436_v13 = vshll.u32 %v12801_v27, 16  ;;  %v6413_v7 = vor.u32 %v6411_v40, %v6410_v15  ;;  %v6414_v2 = vrot.slane %v6410_v15, 4  ;;  %v6425_v12 = vshrl.u32 %v12800_v52, 16  ;;  %7158 = vrot.lane.b32.xlu0 %v12800_v52, %s14189_s23 }
 0x4ea   :  { %v6428_v20 = vshll.u32 %v12800_v52, 16  ;;  %v6962_v28 = vsel %vm14406_vm2, %v6423_v3, %v6961_v1  ;;  %v6435_v53 = vrot.slane %v6433_v31, 7  ;;  %vm5891_vm0 = vcmp.ge.f32.partialorder %v16739_v55, 0.0  ;;  %v6975_v1 = vld [vmem:[#allocation3 + $0x98] sm:$0x1]  ;;  %v19645_v52 = vld [vmem:[#allocation18_spill] sm:$0xff] }
 0x4eb   :  { %6963 = vst [vmem:[#allocation3 + $0x80] sm:$0x1] %v6962_v28  ;;  %v6422_v24 = vsel %vm14762_vm7, %v6414_v2, %v6421_v59  ;;  %v6958_v54 = vsel %vm14698_vm5, %v6413_v7, %v6957_v18  ;;  %v6427_v50 = vrot.slane %v6425_v12, 7  ;;  %v6021_v43 = vsel %vm5892_vm15, %v16743_v34, %v5957_v37 }
 0x4ec   :  { %6959 = vst [vmem:[#allocation3 + $0x78] sm:$0xf] %v6958_v54  ;;  %6960 = vst.msk [vmem:[#allocation3 + $0x7c] sm:$0xf] %vm1046_vm3, %v6422_v24  ;;  %v6438_v32 = vor.u32 %v6436_v13, %v6435_v53  ;;  %v6440_v51 = vrot.slane %v6435_v53, 4  ;;  %vm5894_vm1 = vcmp.ge.f32.partialorder %v16751_v44, 0.0  ;;  %v12803_v14 = vpack.c.bf16 %v6021_v43, %v6021_v43 }
 0x4ed   :  { %v6430_v16 = vor.u32 %v6428_v20, %v6427_v50  ;;  %v6431_v58 = vrot.slane %v6427_v50, 4  ;;  %v6020_v46 = vsel %vm5891_vm0, %v16739_v55, %v5956_v17  ;;  %v5959_v57 = vmul.f32 %v19617_v35, %v16751_v44  ;;  %v6982_v54 = vld [vmem:[#allocation3 + $0xa4] sm:$0x1] }
 0x4ee   :  { %v6969_v41 = vsel %vm14406_vm2, %v6440_v51, %v6968_v60  ;;  %v12802_v22 = vpack.c.bf16 %v6020_v46, %v6020_v46  ;;  %vm5893_vm4 = vcmp.ge.f32.partialorder %v16747_v56, 0.0  ;;  %v6450_v33 = vshrl.u32 %v12803_v14, 16  ;;  %7164 = vrot.lane.b32.xlu1 %v12803_v14, %s14189_s23  ;;  %v19646_v46 = vld [vmem:[#allocation21_spill] sm:$0xff] }
 0x4ef   :  { %6970 = vst [vmem:[#allocation3 + $0x8c] sm:$0x1] %v6969_v41  ;;  %v6439_v34 = vsel %vm14762_vm7, %v6431_v58, %v6438_v32  ;;  %v6965_v5 = vsel %vm14698_vm5, %v6430_v16, %v6964_v47  ;;  %v6453_v61 = vshll.u32 %v12803_v14, 16  ;;  %v6023_v40 = vsel %vm5894_vm1, %v16751_v44, %v5959_v57  ;;  %v19647_v57 = vld [vmem:[#allocation20_spill] sm:$0xff] }
 0x4f0   :  { %6966 = vst [vmem:[#allocation3 + $0x84] sm:$0xf] %v6965_v5  ;;  %6967 = vst.msk [vmem:[#allocation3 + $0x88] sm:$0xf] %vm1046_vm3, %v6439_v34  ;;  %v6442_v55 = vshrl.u32 %v12802_v22, 16  ;;  %v6445_v36 = vshll.u32 %v12802_v22, 16  ;;  %7162 = vrot.lane.b32.xlu0 %v12802_v22, %s14189_s23  ;;  %v5958_v30 = vmul.f32 %v19617_v35, %v16747_v56  ;;  %v12805_v27 = vpack.c.bf16 %v6023_v40, %v6023_v40 }
 0x4f1   :  { %v6452_v4 = vrot.slane %v6450_v33, 7  ;;  %vm5896_vm6 = vcmp.ge.f32.partialorder %v19644_v21, 0.0  ;;  %v5961_v0 = vmul.f32 %v19617_v35, %v19644_v21  ;;  %vm5895_vm11 = vcmp.ge.f32.partialorder %v19645_v52, 0.0  ;;  %v6978_v40 = vld [vmem:[#allocation3 + $0x9c] sm:$0xf] }
 0x4f2   :  { %v6444_v9 = vrot.slane %v6442_v55, 7  ;;  %v6022_v15 = vsel %vm5893_vm4, %v16747_v56, %v5958_v30  ;;  %v5960_v44 = vmul.f32 %v19617_v35, %v19645_v52  ;;  %v6467_v31 = vshrl.u32 %v12805_v27, 16  ;;  %7168 = vrot.lane.b32.xlu1 %v12805_v27, %s14189_s23  ;;  %v6971_v56 = vld [vmem:[#allocation3 + $0x90] sm:$0xf] }
 0x4f3   :  { %v6455_v59 = vor.u32 %v6453_v61, %v6452_v4  ;;  %v6457_v3 = vrot.slane %v6452_v4, 4  ;;  %v6470_v13 = vshll.u32 %v12805_v27, 16  ;;  %v12804_v12 = vpack.c.bf16 %v6022_v15, %v6022_v15  ;;  %v6989_v61 = vld [vmem:[#allocation3 + $0xb0] sm:$0x1] }
 0x4f4   :  { %v6447_v7 = vor.u32 %v6445_v36, %v6444_v9  ;;  %v6448_v2 = vrot.slane %v6444_v9, 4  ;;  %v6025_v20 = vsel %vm5896_vm6, %v19644_v21, %v5961_v0  ;;  %v6469_v18 = vrot.slane %v6467_v31, 7 }
 0x4f5   :  { %v6976_v28 = vsel %vm14406_vm2, %v6457_v3, %v6975_v1  ;;  %v12807_v53 = vpack.c.bf16 %v6025_v20, %v6025_v20  ;;  %v6024_v60 = vsel %vm5895_vm11, %v19645_v52, %v5960_v44  ;;  %v6459_v50 = vshrl.u32 %v12804_v12, 16  ;;  %7166 = vrot.lane.b32.xlu0 %v12804_v12, %s14189_s23 }
 0x4f6   :  { %6977 = vst [vmem:[#allocation3 + $0x98] sm:$0x1] %v6976_v28  ;;  %v6456_v37 = vsel %vm14762_vm7, %v6448_v2, %v6455_v59  ;;  %v6972_v24 = vsel %vm14698_vm5, %v6447_v7, %v6971_v56  ;;  %v6462_v17 = vshll.u32 %v12804_v12, 16  ;;  %v6472_v32 = vor.u32 %v6470_v13, %v6469_v18  ;;  %v19648_v59 = vld [vmem:[#allocation25_spill] sm:$0xff]  ;;  %v6985_v12 = vld [vmem:[#allocation3 + $0xa8] sm:$0xf] }
 0x4f7   :  { %6973 = vst [vmem:[#allocation3 + $0x90] sm:$0xf] %v6972_v24  ;;  %6974 = vst.msk [vmem:[#allocation3 + $0x94] sm:$0xf] %vm1046_vm3, %v6456_v37  ;;  %v6474_v51 = vrot.slane %v6469_v18, 4  ;;  %v6484_v43 = vshrl.u32 %v12807_v53, 16  ;;  %7172 = vrot.lane.b32.xlu1 %v12807_v53, %s14189_s23  ;;  %v12806_v14 = vpack.c.bf16 %v6024_v60, %v6024_v60  ;;  %v5963_v41 = vmul.f32 %v19617_v35, %v19646_v46 }
 0x4f8   :  { %v6487_v16 = vshll.u32 %v12807_v53, 16  ;;  %v6461_v58 = vrot.slane %v6459_v50, 7  ;;  %vm5898_vm12 = vcmp.ge.f32.partialorder %v19646_v46, 0.0  ;;  %vm5897_vm13 = vcmp.ge.f32.partialorder %v19647_v57, 0.0  ;;  %v19649_v18 = vld [vmem:[#allocation24_spill] sm:$0xff] }
 0x4f9   :  { %v6983_v47 = vsel %vm14406_vm2, %v6474_v51, %v6982_v54  ;;  %v6486_v22 = vrot.slane %v6484_v43, 7  ;;  %v5962_v34 = vmul.f32 %v19617_v35, %v19647_v57  ;;  %v6476_v55 = vshrl.u32 %v12806_v14, 16  ;;  %7170 = vrot.lane.b32.xlu0 %v12806_v14, %s14189_s23  ;;  %v6996_v24 = vld [vmem:[#allocation3 + $0xbc] sm:$0x1] }
 0x4fa   :  { %6984 = vst [vmem:[#allocation3 + $0xa4] sm:$0x1] %v6983_v47  ;;  %v6464_v5 = vor.u32 %v6462_v17, %v6461_v58  ;;  %v6465_v33 = vrot.slane %v6461_v58, 4  ;;  %v6479_v36 = vshll.u32 %v12806_v14, 16  ;;  %v6027_v1 = vsel %vm5898_vm12, %v19646_v46, %v5963_v41 }
 0x4fb   :  { %v6489_v30 = vor.u32 %v6487_v16, %v6486_v22  ;;  %v6491_v4 = vrot.slane %v6486_v22, 4  ;;  %v6026_v27 = vsel %vm5897_vm13, %v19647_v57, %v5962_v34  ;;  %v6478_v9 = vrot.slane %v6476_v55, 7  ;;  %v6992_v34 = vld [vmem:[#allocation3 + $0xb4] sm:$0xf] }
 0x4fc   :  { %v6473_v21 = vsel %vm14762_vm7, %v6465_v33, %v6472_v32  ;;  %v6979_v0 = vsel %vm14698_vm5, %v6464_v5, %v6978_v40  ;;  %v12809_v15 = vpack.c.bf16 %v6027_v1, %v6027_v1  ;;  %v12808_v44 = vpack.c.bf16 %v6026_v27, %v6026_v27  ;;  %v19650_v32 = vld [vmem:[#allocation27_spill] sm:$0xff] }
 0x4fd   :  { %6980 = vst [vmem:[#allocation3 + $0x9c] sm:$0xf] %v6979_v0  ;;  %6981 = vst.msk [vmem:[#allocation3 + $0xa0] sm:$0xf] %vm1046_vm3, %v6473_v21  ;;  %v6990_v52 = vsel %vm14406_vm2, %v6491_v4, %v6989_v61  ;;  %vm5902_vm14 = vcmp.ge.f32.partialorder %v19648_v59, 0.0  ;;  %v5967_v3 = vmul.f32 %v19617_v35, %v19648_v59  ;;  %v6481_v31 = vor.u32 %v6479_v36, %v6478_v9 }
 0x4fe   :  { %6991 = vst [vmem:[#allocation3 + $0xb0] sm:$0x1] %v6990_v52  ;;  %v6482_v13 = vrot.slane %v6478_v9, 4  ;;  %v6501_v7 = vshrl.u32 %v12809_v15, 16  ;;  %v6504_v2 = vshll.u32 %v12809_v15, 16  ;;  %7176 = vrot.lane.b32.xlu1 %v12809_v15, %s14189_s23  ;;  %v6493_v20 = vshrl.u32 %v12808_v44, 16  ;;  %7174 = vrot.lane.b32.xlu0 %v12808_v44, %s14189_s23 }
 0x4ff   :  { %v6496_v28 = vshll.u32 %v12808_v44, 16  ;;  %v6031_v56 = vsel %vm5902_vm14, %v19648_v59, %v5967_v3  ;;  %vm5901_vm15 = vcmp.ge.f32.partialorder %v19649_v18, 0.0  ;;  %v6986_v60 = vsel %vm14698_vm5, %v6481_v31, %v6985_v12  ;;  %v7010_v33 = vld [vmem:[#allocation3 + $0xec] sm:$0x1]  ;;  %v7017_v12 = vld [vmem:[#allocation3 + $0xf8] sm:$0x1] }
 0x500   :  { %v6490_v53 = vsel %vm14762_vm7, %v6482_v13, %v6489_v30  ;;  %v6503_v37 = vrot.slane %v6501_v7, 7  ;;  %v12813_v54 = vpack.c.bf16 %v6031_v56, %v6031_v56  ;;  %6987 = vst [vmem:[#allocation3 + $0xa8] sm:$0xf] %v6986_v60  ;;  %v6495_v50 = vrot.slane %v6493_v20, 7  ;;  %v19651_v30 = vld [vmem:[#allocation26_spill] sm:$0xff] }
 0x501   :  { %6988 = vst.msk [vmem:[#allocation3 + $0xac] sm:$0xf] %vm1046_vm3, %v6490_v53  ;;  %v5966_v17 = vmul.f32 %v19617_v35, %v19649_v18  ;;  %vm5904_vm0 = vcmp.ge.f32.partialorder %v19650_v32, 0.0  ;;  %v5969_v51 = vmul.f32 %v19617_v35, %v19650_v32  ;;  %vm5903_vm1 = vcmp.ge.f32.partialorder %v19651_v30, 0.0  ;;  %v7006_v56 = vld [vmem:[#allocation3 + $0xe4] sm:$0xf] }
 0x502   :  { %v6506_v43 = vor.u32 %v6504_v2, %v6503_v37  ;;  %v6508_v16 = vrot.slane %v6503_v37, 4  ;;  %v6535_v58 = vshrl.u32 %v12813_v54, 16  ;;  %v6538_v14 = vshll.u32 %v12813_v54, 16  ;;  %7184 = vrot.lane.b32.xlu1 %v12813_v54, %s14189_s23 }
 0x503   :  { %v6498_v46 = vor.u32 %v6496_v28, %v6495_v50  ;;  %v6499_v41 = vrot.slane %v6495_v50, 4  ;;  %v6030_v47 = vsel %vm5901_vm15, %v19649_v18, %v5966_v17  ;;  %v6033_v22 = vsel %vm5904_vm0, %v19650_v32, %v5969_v51 }
 0x504   :  { %v6997_v57 = vsel %vm14406_vm2, %v6508_v16, %v6996_v24  ;;  %v6537_v5 = vrot.slane %v6535_v58, 7  ;;  %v12812_v61 = vpack.c.bf16 %v6030_v47, %v6030_v47  ;;  %v12815_v55 = vpack.c.bf16 %v6033_v22, %v6033_v22  ;;  %v7024_v58 = vld [vmem:[#allocation3 + $0x104] sm:$0x1] }
 0x505   :  { %6998 = vst [vmem:[#allocation3 + $0xbc] sm:$0x1] %v6997_v57  ;;  %v6507_v36 = vsel %vm14762_vm7, %v6499_v41, %v6506_v43  ;;  %v6993_v40 = vsel %vm14698_vm5, %v6498_v46, %v6992_v34  ;;  %v5968_v4 = vmul.f32 %v19617_v35, %v19651_v30  ;;  %vm5906_vm4 = vcmp.ge.f32.partialorder %v16803_v49, 0.0  ;;  %v19652_v46 = vld [vmem:[#allocation28_spill] sm:$0xff] }
 0x506   :  { %6994 = vst [vmem:[#allocation3 + $0xb4] sm:$0xf] %v6993_v40  ;;  %6995 = vst.msk [vmem:[#allocation3 + $0xb8] sm:$0xf] %vm1046_vm3, %v6507_v36  ;;  %v6540_v1 = vor.u32 %v6538_v14, %v6537_v5  ;;  %v6542_v27 = vrot.slane %v6537_v5, 4  ;;  %v6527_v21 = vshrl.u32 %v12812_v61, 16  ;;  %7182 = vrot.lane.b32.xlu0 %v12812_v61, %s14189_s23  ;;  %7188 = vrot.lane.b32.xlu1 %v12815_v55, %s14189_s23 }
 0x507   :  { %v6530_v0 = vshll.u32 %v12812_v61, 16  ;;  %v6552_v9 = vshrl.u32 %v12815_v55, 16  ;;  %v6555_v15 = vshll.u32 %v12815_v55, 16  ;;  %v6032_v52 = vsel %vm5903_vm1, %v19651_v30, %v5968_v4  ;;  %v19653_v61 = vld [vmem:[#allocation46_spill] sm:$0xff]  ;;  %v19654_v4 = vld [vmem:[#allocation29_spill] sm:$0xff] }
 0x508   :  { %v7011_v35 = vsel %vm14406_vm2, %v6542_v27, %v7010_v33  ;;  %v6529_v44 = vrot.slane %v6527_v21, 7  ;;  %v12814_v59 = vpack.c.bf16 %v6032_v52, %v6032_v52  ;;  %v6035_v3 = vsel %vm5906_vm4, %v16803_v49, %v16927_v10  ;;  %v7031_v21 = vld [vmem:[#allocation3 + $0x110] sm:$0x1] }
 0x509   :  { %7012 = vst [vmem:[#allocation3 + $0xec] sm:$0x1] %v7011_v35  ;;  %v6554_v31 = vrot.slane %v6552_v9, 7  ;;  %v12817_v13 = vpack.c.bf16 %v6035_v3, %v6035_v3  ;;  %vm5905_vm6 = vcmp.ge.f32.partialorder %v16799_v23, 0.0  ;;  %vm5908_vm11 = vcmp.ge.f32.partialorder %v16811_v62, 0.0 }
 0x50a   :  { %v6532_v7 = vor.u32 %v6530_v0, %v6529_v44  ;;  %v6533_v2 = vrot.slane %v6529_v44, 4  ;;  %v6544_v20 = vshrl.u32 %v12814_v59, 16  ;;  %v6547_v28 = vshll.u32 %v12814_v59, 16  ;;  %7186 = vrot.lane.b32.xlu0 %v12814_v59, %s14189_s23 }
 0x50b   :  { %v6557_v18 = vor.u32 %v6555_v15, %v6554_v31  ;;  %v6559_v53 = vrot.slane %v6554_v31, 4  ;;  %v6569_v60 = vshrl.u32 %v12817_v13, 16  ;;  %v6572_v37 = vshll.u32 %v12817_v13, 16  ;;  %7192 = vrot.lane.b32.xlu1 %v12817_v13, %s14189_s23  ;;  %v7020_v15 = vld [vmem:[#allocation3 + $0xfc] sm:$0xf] }
 0x50c   :  { %v6541_v49 = vsel %vm14762_vm7, %v6533_v2, %v6540_v1  ;;  %v7007_v10 = vsel %vm14698_vm5, %v6532_v7, %v7006_v56  ;;  %v6546_v24 = vrot.slane %v6544_v20, 7  ;;  %v6034_v54 = vsel %vm5905_vm6, %v16799_v23, %v16922_v11  ;;  %v7013_v23 = vld [vmem:[#allocation3 + $0xf0] sm:$0xf]  ;;  %v7027_v2 = vld [vmem:[#allocation3 + $0x108] sm:$0xf]  ;;  %v19656_v56 = vld [vmem:[#allocation30_spill] sm:$0xff] }
 0x50d   :  { %7008 = vst [vmem:[#allocation3 + $0xe4] sm:$0xf] %v7007_v10  ;;  %7009 = vst.msk [vmem:[#allocation3 + $0xe8] sm:$0xf] %vm1046_vm3, %v6541_v49  ;;  %v7018_v50 = vsel %vm14406_vm2, %v6559_v53, %v7017_v12  ;;  %v6571_v17 = vrot.slane %v6569_v60, 7  ;;  %v12816_v32 = vpack.c.bf16 %v6034_v54, %v6034_v54  ;;  %v6037_v51 = vsel %vm5908_vm11, %v16811_v62, %v16935_v42  ;;  %v19655_v20 = vld [vmem:[#allocation48_spill] sm:$0xff] }
 0x50e   :  { %7019 = vst [vmem:[#allocation3 + $0xf8] sm:$0x1] %v7018_v50  ;;  %v6549_v43 = vor.u32 %v6547_v28, %v6546_v24  ;;  %v6550_v16 = vrot.slane %v6546_v24, 4  ;;  %v12819_v14 = vpack.c.bf16 %v6037_v51, %v6037_v51  ;;  %vm5907_vm12 = vcmp.ge.f32.partialorder %v19652_v46, 0.0  ;;  %v7038_v60 = vld [vmem:[#allocation3 + $0x11c] sm:$0x1] }
 0x50f   :  { %v6574_v11 = vor.u32 %v6572_v37, %v6571_v17  ;;  %v6576_v41 = vrot.slane %v6571_v17, 4  ;;  %v6561_v47 = vshrl.u32 %v12816_v32, 16  ;;  %v6564_v22 = vshll.u32 %v12816_v32, 16  ;;  %7190 = vrot.lane.b32.xlu0 %v12816_v32, %s14189_s23  ;;  %v19657_v50 = vld [vmem:[#allocation47_spill] sm:$0xff] }
 0x510   :  { %v6558_v57 = vsel %vm14762_vm7, %v6550_v16, %v6557_v18  ;;  %v7014_v62 = vsel %vm14698_vm5, %v6549_v43, %v7013_v23  ;;  %v6586_v42 = vshrl.u32 %v12819_v14, 16  ;;  %v6589_v34 = vshll.u32 %v12819_v14, 16  ;;  %7196 = vrot.lane.b32.xlu1 %v12819_v14, %s14189_s23 }
 0x511   :  { %7015 = vst [vmem:[#allocation3 + $0xf0] sm:$0xf] %v7014_v62  ;;  %7016 = vst.msk [vmem:[#allocation3 + $0xf4] sm:$0xf] %vm1046_vm3, %v6558_v57  ;;  %v7025_v5 = vsel %vm14406_vm2, %v6576_v41, %v7024_v58  ;;  %v6563_v33 = vrot.slane %v6561_v47, 7  ;;  %v6036_v55 = vsel %vm5907_vm12, %v19652_v46, %v19653_v61  ;;  %vm5910_vm13 = vcmp.ge.f32.partialorder %v16819_v26, 0.0 }
 0x512   :  { %7026 = vst [vmem:[#allocation3 + $0x104] sm:$0x1] %v7025_v5  ;;  %v6588_v36 = vrot.slane %v6586_v42, 7  ;;  %v12818_v40 = vpack.c.bf16 %v6036_v55, %v6036_v55  ;;  %v6039_v30 = vsel %vm5910_vm13, %v16819_v26, %v16944_v38  ;;  %vm5909_vm14 = vcmp.ge.f32.partialorder %v19654_v4, 0.0  ;;  %v19658_v42 = vld [vmem:[#allocation32_spill] sm:$0xff] }
 0x513   :  { %v6566_v1 = vor.u32 %v6564_v22, %v6563_v33  ;;  %v6567_v27 = vrot.slane %v6563_v33, 4  ;;  %v12821_v0 = vpack.c.bf16 %v6039_v30, %v6039_v30  ;;  %v6038_v9 = vsel %vm5909_vm14, %v19654_v4, %v16939_v25  ;;  %v7034_v22 = vld [vmem:[#allocation3 + $0x114] sm:$0xf]  ;;  %v19659_v33 = vld [vmem:[#allocation49_spill] sm:$0xff] }
 0x514   :  { %v6591_v52 = vor.u32 %v6589_v34, %v6588_v36  ;;  %v6593_v35 = vrot.slane %v6588_v36, 4  ;;  %v6578_v44 = vshrl.u32 %v12818_v40, 16  ;;  %v6581_v59 = vshll.u32 %v12818_v40, 16  ;;  %7194 = vrot.lane.b32.xlu0 %v12818_v40, %s14189_s23 }
 0x515   :  { %v6575_v3 = vsel %vm14762_vm7, %v6567_v27, %v6574_v11  ;;  %v7021_v38 = vsel %vm14698_vm5, %v6566_v1, %v7020_v15  ;;  %v6603_v26 = vshrl.u32 %v12821_v0, 16  ;;  %v6606_v31 = vshll.u32 %v12821_v0, 16  ;;  %7200 = vrot.lane.b32.xlu1 %v12821_v0, %s14189_s23 }
 0x516   :  { %7022 = vst [vmem:[#allocation3 + $0xfc] sm:$0xf] %v7021_v38  ;;  %7023 = vst.msk [vmem:[#allocation3 + $0x100] sm:$0xf] %vm1046_vm3, %v6575_v3  ;;  %v7032_v25 = vsel %vm14406_vm2, %v6593_v35, %v7031_v21  ;;  %v6580_v13 = vrot.slane %v6578_v44, 7  ;;  %v12820_v7 = vpack.c.bf16 %v6038_v9, %v6038_v9  ;;  %vm5912_vm15 = vcmp.ge.f32.partialorder %v16827_v6, 0.0 }
 0x517   :  { %7033 = vst [vmem:[#allocation3 + $0x110] sm:$0x1] %v7032_v25  ;;  %v6605_v12 = vrot.slane %v6603_v26, 7  ;;  %v6041_v28 = vsel %vm5912_vm15, %v16827_v6, %v19655_v20  ;;  %vm5911_vm0 = vcmp.ge.f32.partialorder %v19656_v56, 0.0  ;;  %vm5914_vm1 = vcmp.ge.f32.partialorder %v16836_v45, 0.0  ;;  %v19660_v21 = vld [vmem:[#allocation51_spill] sm:$0xff] }
 0x518   :  { %v6583_v18 = vor.u32 %v6581_v59, %v6580_v13  ;;  %v6584_v53 = vrot.slane %v6580_v13, 4  ;;  %v6595_v37 = vshrl.u32 %v12820_v7, 16  ;;  %v6598_v49 = vshll.u32 %v12820_v7, 16  ;;  %7198 = vrot.lane.b32.xlu0 %v12820_v7, %s14189_s23  ;;  %v7041_v9 = vld [vmem:[#allocation3 + $0x120] sm:$0xf]  ;;  %v19661_v35 = vld [vmem:[#allocation31_spill] sm:$0xff] }
 0x519   :  { %v6608_v10 = vor.u32 %v6606_v31, %v6605_v12  ;;  %v6610_v24 = vrot.slane %v6605_v12, 4  ;;  %v12823_v54 = vpack.c.bf16 %v6041_v28, %v6041_v28  ;;  %v6040_v17 = vsel %vm5911_vm0, %v19656_v56, %v19657_v50  ;;  %v7052_v3 = vld [vmem:[#allocation3 + $0x134] sm:$0x1]  ;;  %v19662_v20 = vld [vmem:[#allocation50_spill] sm:$0xff] }
 0x51a   :  { %v6592_v6 = vsel %vm14762_vm7, %v6584_v53, %v6591_v52  ;;  %v7028_v32 = vsel %vm14698_vm5, %v6583_v18, %v7027_v2  ;;  %v6597_v51 = vrot.slane %v6595_v37, 7  ;;  %v12822_v43 = vpack.c.bf16 %v6040_v17, %v6040_v17  ;;  %v19663_v56 = vld [vmem:[#allocation34_spill] sm:$0xff]  ;;  %v19664_v18 = vld [vmem:[#allocation33_spill] sm:$0xff] }
 0x51b   :  { %7029 = vst [vmem:[#allocation3 + $0x108] sm:$0xf] %v7028_v32  ;;  %7030 = vst.msk [vmem:[#allocation3 + $0x10c] sm:$0xf] %vm1046_vm3, %v6592_v6  ;;  %v7039_v16 = vsel %vm14406_vm2, %v6610_v24, %v7038_v60  ;;  %v6620_v58 = vshrl.u32 %v12823_v54, 16  ;;  %v6623_v14 = vshll.u32 %v12823_v54, 16  ;;  %7204 = vrot.lane.b32.xlu1 %v12823_v54, %s14189_s23  ;;  %v6043_v46 = vsel %vm5914_vm1, %v16836_v45, %v16963_v48 }
 0x51c   :  { %7040 = vst [vmem:[#allocation3 + $0x11c] sm:$0x1] %v7039_v16  ;;  %v6600_v23 = vor.u32 %v6598_v49, %v6597_v51  ;;  %v6601_v11 = vrot.slane %v6597_v51, 4  ;;  %v6612_v41 = vshrl.u32 %v12822_v43, 16  ;;  %v6615_v47 = vshll.u32 %v12822_v43, 16  ;;  %7202 = vrot.lane.b32.xlu0 %v12822_v43, %s14189_s23  ;;  %v19665_v49 = vld [vmem:[#allocation53_spill] sm:$0xff] }
 0x51d   :  { %v6622_v57 = vrot.slane %v6620_v58, 7  ;;  %v12825_v62 = vpack.c.bf16 %v6043_v46, %v6043_v46  ;;  %vm5913_vm4 = vcmp.ge.f32.partialorder %v16832_v8, 0.0  ;;  %vm5916_vm6 = vcmp.ge.f32.partialorder %v19658_v42, 0.0  ;;  %v7045_v48 = vld [vmem:[#allocation3 + $0x128] sm:$0x1]  ;;  %v19666_v6 = vld [vmem:[#allocation52_spill] sm:$0xff] }
 0x51e   :  { %v6609_v34 = vsel %vm14762_vm7, %v6601_v11, %v6608_v10  ;;  %v7035_v45 = vsel %vm14698_vm5, %v6600_v23, %v7034_v22  ;;  %v6614_v5 = vrot.slane %v6612_v41, 7  ;;  %v6042_v61 = vsel %vm5913_vm4, %v16832_v8, %v19659_v33  ;;  %v7059_v50 = vld [vmem:[#allocation3 + $0x140] sm:$0x1]  ;;  %v7048_v51 = vld [vmem:[#allocation3 + $0x12c] sm:$0xf] }
 0x51f   :  { %7036 = vst [vmem:[#allocation3 + $0x114] sm:$0xf] %v7035_v45  ;;  %7037 = vst.msk [vmem:[#allocation3 + $0x118] sm:$0xf] %vm1046_vm3, %v6609_v34  ;;  %v6625_v55 = vor.u32 %v6623_v14, %v6622_v57  ;;  %v6627_v36 = vrot.slane %v6622_v57, 4  ;;  %v6637_v40 = vshrl.u32 %v12825_v62, 16  ;;  %7208 = vrot.lane.b32.xlu1 %v12825_v62, %s14189_s23  ;;  %v12824_v27 = vpack.c.bf16 %v6042_v61, %v6042_v61 }
 0x520   :  { %v6640_v30 = vshll.u32 %v12825_v62, 16  ;;  %v6617_v4 = vor.u32 %v6615_v47, %v6614_v5  ;;  %v6618_v1 = vrot.slane %v6614_v5, 4  ;;  %v6045_v0 = vsel %vm5916_vm6, %v19658_v42, %v19660_v21  ;;  %v7066_v57 = vld [vmem:[#allocation3 + $0x14c] sm:$0x1]  ;;  %v19667_v42 = vld [vmem:[#allocation12_spill] sm:$0xff]  ;;  %v19670_v61 = vld [vmem:[#allocation14_spill] sm:$0xff] }
 0x521   :  { %v7046_v8 = vsel %vm14406_vm2, %v6627_v36, %v7045_v48  ;;  %v6639_v15 = vrot.slane %v6637_v40, 7  ;;  %v12827_v52 = vpack.c.bf16 %v6045_v0, %v6045_v0  ;;  %vm5915_vm11 = vcmp.ge.f32.partialorder %v19661_v35, 0.0  ;;  %7206 = vrot.lane.b32.xlu0 %v12824_v27, %s14189_s23  ;;  %v7055_v34 = vld [vmem:[#allocation3 + $0x138] sm:$0xf]  ;;  %v19668_v48 = vld [vmem:[#allocation55_spill] sm:$0xff]  ;;  %v19671_v21 = vld [vmem:[#allocation54_spill] sm:$0xff] }
 0x522   :  { %7047 = vst [vmem:[#allocation3 + $0x128] sm:$0x1] %v7046_v8  ;;  %v6626_v44 = vsel %vm14762_vm7, %v6618_v1, %v6625_v55  ;;  %v7042_v59 = vsel %vm14698_vm5, %v6617_v4, %v7041_v9  ;;  %v6629_v38 = vshrl.u32 %v12824_v27, 16  ;;  %v6632_v26 = vshll.u32 %v12824_v27, 16  ;;  %v7121_v2 = vpop.permute.xlu1 %7120  ;;  %v19669_v33 = vld [vmem:[#allocation11_spill] sm:$0xff] }
 0x523   :  { %7043 = vst [vmem:[#allocation3 + $0x120] sm:$0xf] %v7042_v59  ;;  %7044 = vst.msk [vmem:[#allocation3 + $0x124] sm:$0xf] %vm1046_vm3, %v6626_v44  ;;  %v6642_v31 = vor.u32 %v6640_v30, %v6639_v15  ;;  %v6644_v25 = vrot.slane %v6639_v15, 4  ;;  %v6654_v13 = vshrl.u32 %v12827_v52, 16  ;;  %7212 = vrot.lane.b32.xlu1 %v12827_v52, %s14189_s23  ;;  %v6044_v28 = vsel %vm5915_vm11, %v19661_v35, %v19662_v20 }
 0x524   :  { %v6657_v7 = vshll.u32 %v12827_v52, 16  ;;  %v6631_v12 = vrot.slane %v6629_v38, 7  ;;  %vm5918_vm12 = vcmp.ge.f32.partialorder %v19663_v56, 0.0  ;;  %vm5917_vm13 = vcmp.ge.f32.partialorder %v19664_v18, 0.0  ;;  %7311 = vst.msk [vmem:[#allocation3 + $0x10] sm:$0xf] %vm1468_vm9, %v7121_v2 }
 0x525   :  { %v7053_v53 = vsel %vm14406_vm2, %v6644_v25, %v7052_v3  ;;  %v6656_v60 = vrot.slane %v6654_v13, 7  ;;  %v12826_v37 = vpack.c.bf16 %v6044_v28, %v6044_v28  ;;  %v6047_v10 = vsel %vm5918_vm12, %v19663_v56, %v19665_v49  ;;  %v7062_v3 = vld [vmem:[#allocation3 + $0x144] sm:$0xf]  ;;  %v7073_v2 = vld [vmem:[#allocation3 + $0x158] sm:$0x1] }
 0x526   :  { %7054 = vst [vmem:[#allocation3 + $0x134] sm:$0x1] %v7053_v53  ;;  %v6634_v24 = vor.u32 %v6632_v26, %v6631_v12  ;;  %v6635_v54 = vrot.slane %v6631_v12, 4  ;;  %v12829_v17 = vpack.c.bf16 %v6047_v10, %v6047_v10  ;;  %v6046_v32 = vsel %vm5917_vm13, %v19664_v18, %v19666_v6  ;;  %v19673_v18 = vld [vmem:[#allocation13_spill] sm:$0xff]  ;;  %v19674_v53 = vld [vmem:[#allocation16_spill] sm:$0xff] }
 0x527   :  { %v6659_v43 = vor.u32 %v6657_v7, %v6656_v60  ;;  %v6661_v16 = vrot.slane %v6656_v60, 4  ;;  %v6646_v58 = vshrl.u32 %v12826_v37, 16  ;;  %v6649_v14 = vshll.u32 %v12826_v37, 16  ;;  %7210 = vrot.lane.b32.xlu0 %v12826_v37, %s14189_s23 }
 0x528   :  { %v6643_v46 = vsel %vm14762_vm7, %v6635_v54, %v6642_v31  ;;  %v7049_v23 = vsel %vm14698_vm5, %v6634_v24, %v7048_v51  ;;  %v6671_v11 = vshrl.u32 %v12829_v17, 16  ;;  %v6674_v41 = vshll.u32 %v12829_v17, 16  ;;  %7216 = vrot.lane.b32.xlu1 %v12829_v17, %s14189_s23  ;;  %v19672_v31 = vld [vmem:[#allocation57_spill] sm:$0xff]  ;;  %v19675_v24 = vld [vmem:[#allocation56_spill] sm:$0xff] }
 0x529   :  { %7050 = vst [vmem:[#allocation3 + $0x12c] sm:$0xf] %v7049_v23  ;;  %7051 = vst.msk [vmem:[#allocation3 + $0x130] sm:$0xf] %vm1046_vm3, %v6643_v46  ;;  %v7060_v47 = vsel %vm14406_vm2, %v6661_v16, %v7059_v50  ;;  %v6648_v22 = vrot.slane %v6646_v58, 7  ;;  %v12828_v62 = vpack.c.bf16 %v6046_v32, %v6046_v32  ;;  %vm5920_vm14 = vcmp.ge.f32.partialorder %v19667_v42, 0.0 }
 0x52a   :  { %7061 = vst [vmem:[#allocation3 + $0x140] sm:$0x1] %v7060_v47  ;;  %v6673_v45 = vrot.slane %v6671_v11, 7  ;;  %v6049_v5 = vsel %vm5920_vm14, %v19667_v42, %v19668_v48  ;;  %vm5919_vm15 = vcmp.ge.f32.partialorder %v19669_v33, 0.0  ;;  %vm5922_vm0 = vcmp.ge.f32.partialorder %v19670_v61, 0.0 }
 0x52b   :  { %v6651_v55 = vor.u32 %v6649_v14, %v6648_v22  ;;  %v6652_v36 = vrot.slane %v6648_v22, 4  ;;  %v6663_v40 = vshrl.u32 %v12828_v62, 16  ;;  %v6666_v30 = vshll.u32 %v12828_v62, 16  ;;  %7214 = vrot.lane.b32.xlu0 %v12828_v62, %s14189_s23  ;;  %v19676_v14 = vld [vmem:[#allocation59_spill] sm:$0xff]  ;;  %v7069_v11 = vld [vmem:[#allocation3 + $0x150] sm:$0xf] }
 0x52c   :  { %v6676_v4 = vor.u32 %v6674_v41, %v6673_v45  ;;  %v6678_v1 = vrot.slane %v6673_v45, 4  ;;  %v12831_v27 = vpack.c.bf16 %v6049_v5, %v6049_v5  ;;  %v6048_v0 = vsel %vm5919_vm15, %v19669_v33, %v19671_v21  ;;  %v19677_v22 = vld [vmem:[#allocation15_spill] sm:$0xff] }
 0x52d   :  { %v7119_v8 = vpop.permute.xlu0 %7118  ;;  %v6660_v9 = vsel %vm14762_vm7, %v6652_v36, %v6659_v43  ;;  %v7056_v15 = vsel %vm14698_vm5, %v6651_v55, %v7055_v34  ;;  %v6665_v52 = vrot.slane %v6663_v40, 7  ;;  %v12830_v35 = vpack.c.bf16 %v6048_v0, %v6048_v0  ;;  %v7080_v34 = vld [vmem:[#allocation3 + $0x164] sm:$0x1]  ;;  %v7076_v0 = vld [vmem:[#allocation3 + $0x15c] sm:$0xf] }
 0x52e   :  { %7310 = vst.msk [vmem:[#allocation3 + $0xc] sm:$0xf] %vm1468_vm9, %v7119_v8  ;;  %v7125_v44 = vpop.permute.xlu1 %7124  ;;  %7057 = vst [vmem:[#allocation3 + $0x138] sm:$0xf] %v7056_v15  ;;  %v7067_v59 = vsel %vm14406_vm2, %v6678_v1, %v7066_v57  ;;  %v6688_v38 = vshrl.u32 %v12831_v27, 16  ;;  %v6691_v26 = vshll.u32 %v12831_v27, 16  ;;  %7220 = vrot.lane.b32.xlu1 %v12831_v27, %s14189_s23  ;;  %v6051_v25 = vsel %vm5922_vm0, %v19670_v61, %v19672_v31 }
 0x52f   :  { %7058 = vst.msk [vmem:[#allocation3 + $0x13c] sm:$0xf] %vm1046_vm3, %v6660_v9  ;;  %7068 = vst [vmem:[#allocation3 + $0x14c] sm:$0x1] %v7067_v59  ;;  %v6668_v13 = vor.u32 %v6666_v30, %v6665_v52  ;;  %v6669_v7 = vrot.slane %v6665_v52, 4  ;;  %v6680_v12 = vshrl.u32 %v12830_v35, 16  ;;  %7218 = vrot.lane.b32.xlu0 %v12830_v35, %s14189_s23  ;;  %v12833_v56 = vpack.c.bf16 %v6051_v25, %v6051_v25 }
 0x530   :  { %7313 = vst.msk [vmem:[#allocation3 + $0x1c] sm:$0xf] %vm1468_vm9, %v7125_v44  ;;  %v6683_v20 = vshll.u32 %v12830_v35, 16  ;;  %v6690_v28 = vrot.slane %v6688_v38, 7  ;;  %vm5921_vm1 = vcmp.ge.f32.partialorder %v19673_v18, 0.0  ;;  %vm5924_vm4 = vcmp.ge.f32.partialorder %v19674_v53, 0.0 }
 0x531   :  { %v7123_v60 = vpop.permute.xlu0 %7122  ;;  %v6677_v37 = vsel %vm14762_vm7, %v6669_v7, %v6676_v4  ;;  %v7063_v49 = vsel %vm14698_vm5, %v6668_v13, %v7062_v3  ;;  %v6682_v10 = vrot.slane %v6680_v12, 7  ;;  %v6050_v54 = vsel %vm5921_vm1, %v19673_v18, %v19675_v24  ;;  %v19678_v40 = vld [vmem:[#allocation58_spill] sm:$0xff]  ;;  %v19679_v4 = vld [vmem:[#allocation39_spill] sm:$0xff]  ;;  %v19680_v1 = vld [vmem:[#allocation17_spill] sm:$0xff] }
 0x532   :  { %7312 = vst.msk [vmem:[#allocation3 + $0x18] sm:$0xf] %vm1468_vm9, %v7123_v60  ;;  %v7129_v50 = vpop.permute.xlu1 %7128  ;;  %7064 = vst [vmem:[#allocation3 + $0x144] sm:$0xf] %v7063_v49  ;;  %v6693_v17 = vor.u32 %v6691_v26, %v6690_v28  ;;  %v6695_v6 = vrot.slane %v6690_v28, 4  ;;  %v6705_v32 = vshrl.u32 %v12833_v56, 16  ;;  %7224 = vrot.lane.b32.xlu1 %v12833_v56, %s14189_s23  ;;  %v12832_v58 = vpack.c.bf16 %v6050_v54, %v6050_v54 }
 0x533   :  { %7065 = vst.msk [vmem:[#allocation3 + $0x148] sm:$0xf] %vm1046_vm3, %v6677_v37  ;;  %v6708_v51 = vshll.u32 %v12833_v56, 16  ;;  %v6685_v43 = vor.u32 %v6683_v20, %v6682_v10  ;;  %v6686_v16 = vrot.slane %v6682_v10, 4  ;;  %v6053_v46 = vsel %vm5924_vm4, %v19674_v53, %v19676_v14  ;;  %v7087_v9 = vld [vmem:[#allocation3 + $0x170] sm:$0x1] }
 0x534   :  { %7315 = vst.msk [vmem:[#allocation3 + $0x28] sm:$0xf] %vm1468_vm9, %v7129_v50  ;;  %v7074_v23 = vsel %vm14406_vm2, %v6695_v6, %v7073_v2  ;;  %v6707_v41 = vrot.slane %v6705_v32, 7  ;;  %v12835_v47 = vpack.c.bf16 %v6053_v46, %v6053_v46  ;;  %vm5923_vm6 = vcmp.ge.f32.partialorder %v19677_v22, 0.0  ;;  %7222 = vrot.lane.b32.xlu0 %v12832_v58, %s14189_s23  ;;  %v19681_v52 = vld [vmem:[#allocation61_spill] sm:$0xff]  ;;  %v19682_v38 = vld [vmem:[#allocation60_spill] sm:$0xff] }
 0x535   :  { %v7127_v57 = vpop.permute.xlu0 %7126  ;;  %7075 = vst [vmem:[#allocation3 + $0x158] sm:$0x1] %v7074_v23  ;;  %v6694_v62 = vsel %vm14762_vm7, %v6686_v16, %v6693_v17  ;;  %v7070_v42 = vsel %vm14698_vm5, %v6685_v43, %v7069_v11  ;;  %v6697_v45 = vshrl.u32 %v12832_v58, 16  ;;  %v6700_v48 = vshll.u32 %v12832_v58, 16  ;;  %v7094_v37 = vld [vmem:[#allocation3 + $0x17c] sm:$0x1] }
 0x536   :  { %7314 = vst.msk [vmem:[#allocation3 + $0x24] sm:$0xf] %vm1468_vm9, %v7127_v57  ;;  %7071 = vst [vmem:[#allocation3 + $0x150] sm:$0xf] %v7070_v42  ;;  %v6710_v5 = vor.u32 %v6708_v51, %v6707_v41  ;;  %v6712_v33 = vrot.slane %v6707_v41, 4  ;;  %v6722_v61 = vshrl.u32 %v12835_v47, 16  ;;  %7228 = vrot.lane.b32.xlu1 %v12835_v47, %s14189_s23  ;;  %v6052_v30 = vsel %vm5923_vm6, %v19677_v22, %v19678_v40 }
 0x537   :  { %7072 = vst.msk [vmem:[#allocation3 + $0x154] sm:$0xf] %vm1046_vm3, %v6694_v62  ;;  %v6725_v55 = vshll.u32 %v12835_v47, 16  ;;  %v6699_v36 = vrot.slane %v6697_v45, 7  ;;  %vm5926_vm11 = vcmp.ge.f32.partialorder %v19679_v4, 0.0  ;;  %vm5925_vm12 = vcmp.ge.f32.partialorder %v19680_v1, 0.0 }
 0x538   :  { %v7133_v27 = vpop.permute.xlu1 %7132  ;;  %v7081_v21 = vsel %vm14406_vm2, %v6712_v33, %v7080_v34  ;;  %v6724_v8 = vrot.slane %v6722_v61, 7  ;;  %v12834_v15 = vpack.c.bf16 %v6052_v30, %v6052_v30  ;;  %v6055_v35 = vsel %vm5926_vm11, %v19679_v4, %v19681_v52  ;;  %v19683_v10 = vld [vmem:[#allocation41_spill] sm:$0xff]  ;;  %v7083_v24 = vld [vmem:[#allocation3 + $0x168] sm:$0xf]  ;;  %v19685_v6 = vld [vmem:[#allocation40_spill] sm:$0xff] }
 0x539   :  { %7317 = vst.msk [vmem:[#allocation3 + $0x34] sm:$0xf] %vm1468_vm9, %v7133_v27  ;;  %7082 = vst [vmem:[#allocation3 + $0x164] sm:$0x1] %v7081_v21  ;;  %v6702_v44 = vor.u32 %v6700_v48, %v6699_v36  ;;  %v6703_v59 = vrot.slane %v6699_v36, 4  ;;  %v12837_v3 = vpack.c.bf16 %v6055_v35, %v6055_v35  ;;  %v6054_v26 = vsel %vm5925_vm12, %v19680_v1, %v19682_v38  ;;  %v19684_v50 = vld [vmem:[#allocation63_spill] sm:$0xff] }
 0x53a   :  { %v6727_v25 = vor.u32 %v6725_v55, %v6724_v8  ;;  %v6729_v13 = vrot.slane %v6724_v8, 4  ;;  %v6714_v7 = vshrl.u32 %v12834_v15, 16  ;;  %v6717_v2 = vshll.u32 %v12834_v15, 16  ;;  %7226 = vrot.lane.b32.xlu0 %v12834_v15, %s14189_s23  ;;  %v19686_v32 = vld [vmem:[#allocation43_spill] sm:$0xff]  ;;  %v17565_v51 = vld [vmem:[#allocation3] sm:$0xfe]  }
 0x53b   :  { %v7131_v31 = vpop.permute.xlu0 %7130  ;;  %v6711_v12 = vsel %vm14762_vm7, %v6703_v59, %v6710_v5  ;;  %v7077_v20 = vsel %vm14698_vm5, %v6702_v44, %v7076_v0  ;;  %v6739_v28 = vshrl.u32 %v12837_v3, 16  ;;  %v6742_v56 = vshll.u32 %v12837_v3, 16  ;;  %7232 = vrot.lane.b32.xlu1 %v12837_v3, %s14189_s23  ;;  %v19687_v47 = vld [vmem:[#allocation62_spill] sm:$0xff]  ;;  %v17575_v45 = vld [vmem:[#allocation3 + $0x8] ss:$0 sps:$4 sm:$0x11]  }
 0x53c   :  { %7316 = vst.msk [vmem:[#allocation3 + $0x30] sm:$0xf] %vm1468_vm9, %v7131_v31  ;;  %v7137_v18 = vpop.permute.xlu1 %7136  ;;  %7078 = vst [vmem:[#allocation3 + $0x15c] sm:$0xf] %v7077_v20  ;;  %v7088_v53 = vsel %vm14406_vm2, %v6729_v13, %v7087_v9  ;;  %v6716_v60 = vrot.slane %v6714_v7, 7  ;;  %v12836_v49 = vpack.c.bf16 %v6054_v26, %v6054_v26  ;;  %vm5928_vm13 = vcmp.ge.f32.partialorder %v19683_v10, 0.0 }
 0x53d   :  { %7079 = vst.msk [vmem:[#allocation3 + $0x160] sm:$0xf] %vm1046_vm3, %v6711_v12  ;;  %7089 = vst [vmem:[#allocation3 + $0x170] sm:$0x1] %v7088_v53  ;;  %v6741_v54 = vrot.slane %v6739_v28, 7  ;;  %v6057_v17 = vsel %vm5928_vm13, %v19683_v10, %v19684_v50  ;;  %vm5927_vm14 = vcmp.ge.f32.partialorder %v19685_v6, 0.0 }
 0x53e   :  { %7319 = vst.msk [vmem:[#allocation3 + $0x40] sm:$0xf] %vm1468_vm9, %v7137_v18  ;;  %vm5930_vm15 = vcmp.ge.f32.partialorder %v19686_v32, 0.0  ;;  %v6719_v16 = vor.u32 %v6717_v2, %v6716_v60  ;;  %v6720_v58 = vrot.slane %v6716_v60, 4  ;;  %v6731_v14 = vshrl.u32 %v12836_v49, 16  ;;  %7230 = vrot.lane.b32.xlu0 %v12836_v49, %s14189_s23  ;;  %v19688_v36 = vld [vmem:[#allocation65_spill] sm:$0xff] }
 0x53f   :  { %v7135_v43 = vpop.permute.xlu0 %7134  ;;  %v6734_v46 = vshll.u32 %v12836_v49, 16  ;;  %v6744_v23 = vor.u32 %v6742_v56, %v6741_v54  ;;  %v6746_v11 = vrot.slane %v6741_v54, 4  ;;  %v12839_v41 = vpack.c.bf16 %v6057_v17, %v6057_v17  ;;  %v7090_v33 = vld [vmem:[#allocation3 + $0x174] sm:$0xf]  ;;  %v19689_v8 = vld [vmem:[#allocation42_spill] sm:$0xff] }
 0x540   :  { %7318 = vst.msk [vmem:[#allocation3 + $0x3c] sm:$0xf] %vm1468_vm9, %v7135_v43  ;;  %v6056_v22 = vsel %vm5927_vm14, %v19685_v6, %v19687_v47  ;;  %v6728_v57 = vsel %vm14762_vm7, %v6720_v58, %v6727_v25  ;;  %v7084_v62 = vsel %vm14698_vm5, %v6719_v16, %v7083_v24  ;;  %v6733_v42 = vrot.slane %v6731_v14, 7  ;;  %v7141_v48 = vpop.permute.xlu1 %7140  ;;  %v7101_v44 = vld [vmem:[#allocation3 + $0x188] sm:$0x1]  ;;  %v19690_v3 = vld [vmem:[#allocation64_spill] sm:$0xff] }
 0x541   :  { %v12838_v34 = vpack.c.bf16 %v6056_v22, %v6056_v22  ;;  %7085 = vst [vmem:[#allocation3 + $0x168] sm:$0xf] %v7084_v62  ;;  %7086 = vst.msk [vmem:[#allocation3 + $0x16c] sm:$0xf] %vm1046_vm3, %v6728_v57  ;;  %v7095_v5 = vsel %vm14406_vm2, %v6746_v11, %v7094_v37  ;;  %v6756_v61 = vshrl.u32 %v12839_v41, 16  ;;  %v6759_v55 = vshll.u32 %v12839_v41, 16  ;;  %7236 = vrot.lane.b32.xlu1 %v12839_v41, %s14189_s23 }
 0x542   :  { %v6059_v40 = vsel %vm5930_vm15, %v19686_v32, %v19688_v36  ;;  %7321 = vst.msk [vmem:[#allocation3 + $0x4c] sm:$0xf] %vm1468_vm9, %v7141_v48  ;;  %7096 = vst [vmem:[#allocation3 + $0x17c] sm:$0x1] %v7095_v5  ;;  %v6736_v30 = vor.u32 %v6734_v46, %v6733_v42  ;;  %v6737_v4 = vrot.slane %v6733_v42, 4  ;;  %vm5929_vm0 = vcmp.ge.f32.partialorder %v19689_v8, 0.0 }
 0x543   :  { %v6748_v1 = vshrl.u32 %v12838_v34, 16  ;;  %v6751_v27 = vshll.u32 %v12838_v34, 16  ;;  %7234 = vrot.lane.b32.xlu0 %v12838_v34, %s14189_s23  ;;  %v6758_v21 = vrot.slane %v6756_v61, 7  ;;  %v12841_v0 = vpack.c.bf16 %v6059_v40, %v6059_v40  ;;  %v7139_v15 = vpop.permute.xlu0 %7138  ;;  %v7097_v25 = vld [vmem:[#allocation3 + $0x180] sm:$0xf]  ;;  %v19691_v37 = vld [vmem:[#allocation23_spill] sm:$0xff] }
 0x544   :  { %v8014_v9 = vrot.slane %v17565_v51, 1  ;;  %v6745_v52 = vsel %vm14762_vm7, %v6737_v4, %v6744_v23  ;;  %v7091_v35 = vsel %vm14698_vm5, %v6736_v30, %v7090_v33  ;;  %v6058_v38 = vsel %vm5929_vm0, %v19689_v8, %v19690_v3  ;;  %7320 = vst.msk [vmem:[#allocation3 + $0x48] sm:$0xf] %vm1468_vm9, %v7139_v15  ;;  %v7108_v20 = vld [vmem:[#allocation3 + $0x194] sm:$0x1]  ;;  %v19692_v49 = vld [vmem:[#allocation22_spill] sm:$0xff] }
 0x545   :  { %v6750_v59 = vrot.slane %v6748_v1, 7  ;;  %7092 = vst [vmem:[#allocation3 + $0x174] sm:$0xf] %v7091_v35  ;;  %7093 = vst.msk [vmem:[#allocation3 + $0x178] sm:$0xf] %vm1046_vm3, %v6745_v52  ;;  %v6761_v26 = vor.u32 %v6759_v55, %v6758_v21  ;;  %v6763_v31 = vrot.slane %v6758_v21, 4  ;;  %7240 = vrot.lane.b32.xlu1 %v12841_v0, %s14189_s23  ;;  %v12840_v28 = vpack.c.bf16 %v6058_v38, %v6058_v38 }
 0x546   :  { %v6773_v13 = vshrl.u32 %v12841_v0, 16  ;;  %v6776_v7 = vshll.u32 %v12841_v0, 16  ;;  %v8015_v56 = vrot.slane %v17575_v45, 1  ;;  %v7145_v18 = vpop.permute.xlu1 %7144  ;;  %vm5900_vm1 = vcmp.ge.f32.partialorder %v19691_v37, 0.0  ;;  %v13843_v10 = vld [vmem:[#allocation3] sm:$0xff]   ;;  %v19693_v58 = vld [vmem:[#allocation45_spill] sm:$0xff] }
 0x547   :  { %v6753_v2 = vor.u32 %v6751_v27, %v6750_v59  ;;  %v6754_v12 = vrot.slane %v6750_v59, 4  ;;  %v7102_v53 = vsel %vm14406_vm2, %v6763_v31, %v7101_v44  ;;  %vm5899_vm4 = vcmp.ge.f32.partialorder %v19692_v49, 0.0  ;;  %v13844_v24 = vld [vmem:[%s19388_s6 + $0x80] sm:$0xff]   ;;  %7323 = vst.msk [vmem:[#allocation3 + $0x58] sm:$0xf] %vm1468_vm9, %v7145_v18  ;;  %v7143_v54 = vpop.permute.xlu0 %7142  ;;  %7238 = vrot.lane.b32.xlu0 %v12840_v28, %s14189_s23  ;;  %v19694_v11 = vld [vmem:[#allocation36_spill] sm:$0xff] }
 0x548   :  { %v6775_v60 = vrot.slane %v6773_v13, 7  ;;  %7103 = vst [vmem:[#allocation3 + $0x188] sm:$0x1] %v7102_v53  ;;  %v6765_v6 = vshrl.u32 %v12840_v28, 16  ;;  %v6768_v32 = vshll.u32 %v12840_v28, 16  ;;  %v8016_v16 = vsel %vm2173_vm8, %v8014_v9, %v8015_v56  ;;  %v19695_v47 = vld [vmem:[#allocation37_spill] sm:$0xff] }
 0x549   :  { %v6762_v50 = vsel %vm14762_vm7, %v6754_v12, %v6761_v26  ;;  %v7098_v17 = vsel %vm14698_vm5, %v6753_v2, %v7097_v25  ;;  %7322 = vst.msk [vmem:[#allocation3 + $0x54] sm:$0xf] %vm1468_vm9, %v7143_v54  ;;  %v6029_v14 = vsel %vm5900_vm1, %v19691_v37, %v19693_v58  ;;  %10391 = vmatprep.mubr.bf16.mxu1 %v8016_v16  ;;  %vm5932_vm6 = vcmp.ge.f32.partialorder %v19695_v47, 0.0  ;;  %v7104_v57 = vld [vmem:[#allocation3 + $0x18c] sm:$0xf]  ;;  %v19696_v42 = vld [vmem:[#allocation38_spill] sm:$0xff] }
 0x54a   :  { %7099 = vst [vmem:[#allocation3 + $0x180] sm:$0xf] %v7098_v17  ;;  %7100 = vst.msk [vmem:[#allocation3 + $0x184] sm:$0xf] %vm1046_vm3, %v6762_v50  ;;  %v6778_v51 = vor.u32 %v6776_v7, %v6775_v60  ;;  %v6780_v43 = vrot.slane %v6775_v60, 4  ;;  %v6767_v46 = vrot.slane %v6765_v6, 7  ;;  %v12811_v23 = vpack.c.bf16 %v6029_v14, %v6029_v14  ;;  %10392 = vmatmul.mubr.bf16.vlgmr.msra.gmra.mrb[0].mxu1 %v13843_v10 }
 0x54b   :  { %v6028_v41 = vsel %vm5899_vm4, %v19692_v49, %v19694_v11  ;;  %v6061_v34 = vsel %vm5932_vm6, %v19695_v47, %v19696_v42  ;;  %v19697_v45 = vld [vmem:[#allocation44_spill] sm:$0xff]  ;;  %v7149_v33 = vpop.permute.xlu1 %7148  ;;  %10649 = vmatpush1.bf16.msra.mxu1 %v13844_v24  ;;  %v13849_v30 = vld [vmem:[#allocation3 + $0x20] ss:$0 sps:$4 sm:$0x11]   ;;  %v13851_v4 = vld [vmem:[%s19388_s6 + $0x88] sm:$0xff]  }
 0x54c   :  { %v7109_v22 = vsel %vm14406_vm2, %v6780_v43, %v7108_v20  ;;  %v12810_v62 = vpack.c.bf16 %v6028_v41, %v6028_v41  ;;  %vm5931_vm11 = vcmp.ge.f32.partialorder %v19697_v45, 0.0  ;;  %v17629_v48 = vld [vmem:[#allocation3 + $0xc] sm:$0xfe]   ;;  %v17631_v5 = vld [vmem:[#allocation3 + $0x14] ss:$0 sps:$4 sm:$0x11]   ;;  %v6770_v61 = vor.u32 %v6768_v32, %v6767_v46  ;;  %7180 = vrot.lane.b32.xlu1 %v12811_v23, %s14189_s23  ;;  %v7147_v1 = vpop.permute.xlu0 %7146  ;;  %10650 = vmatprep.subr.bf16.mxu1 %v19545_v19 }
 0x54d   :  { %7110 = vst [vmem:[#allocation3 + $0x194] sm:$0x1] %v7109_v22  ;;  %v6771_v55 = vrot.slane %v6767_v46, 4  ;;  %v6518_v36 = vshrl.u32 %v12811_v23, 16  ;;  %v6521_v40 = vshll.u32 %v12811_v23, 16  ;;  %v12843_v8 = vpack.c.bf16 %v6061_v34, %v6061_v34  ;;  %v19698_v9 = vld [vmem:[#allocation66_spill] sm:$0xff] }
 0x54e   :  { %7325 = vst.msk [vmem:[#allocation3 + $0x64] sm:$0xf] %vm1468_vm9, %v7149_v33  ;;  %v7003_v27 = vld [vmem:[#allocation3 + $0xc8] sm:$0x1]  ;;  %v6510_v21 = vshrl.u32 %v12810_v62, 16  ;;  %v6513_v0 = vshll.u32 %v12810_v62, 16  ;;  %7178 = vrot.lane.b32.xlu0 %v12810_v62, %s14189_s23  ;;  %v6060_v15 = vsel %vm5931_vm11, %v19697_v45, %v19698_v9  ;;  %v7105_v44 = vsel %vm14698_vm5, %v6770_v61, %v7104_v57 }
 0x54f   :  { %v13848_v52 = vld [vmem:[#allocation3 + $0x18] sm:$0xfe]   ;;  %7324 = vst.msk [vmem:[#allocation3 + $0x60] sm:$0xf] %vm1468_vm9, %v7147_v1  ;;  %v6779_v35 = vsel %vm14762_vm7, %v6771_v55, %v6778_v51  ;;  %v6520_v59 = vrot.slane %v6518_v36, 7  ;;  %v12842_v3 = vpack.c.bf16 %v6060_v15, %v6060_v15  ;;  %v6790_v26 = vshrl.u32 %v12843_v8, 16  ;;  %v7153_v13 = vpop.permute.xlu1 %7152  ;;  %10651 = vmatpush1.bf16.msra.mxu1 %v13851_v4 }
 0x550   :  { %7106 = vst [vmem:[#allocation3 + $0x18c] sm:$0xf] %v7105_v44  ;;  %7107 = vst.msk [vmem:[#allocation3 + $0x190] sm:$0xf] %vm1046_vm3, %v6779_v35  ;;  %v6512_v38 = vrot.slane %v6510_v21, 7  ;;  %v6793_v31 = vshll.u32 %v12843_v8, 16  ;;  %7244 = vrot.lane.b32.xlu1 %v12843_v8, %s14189_s23  ;;  %10652 = vmatprep.subr.bf16.mxu1 %v19545_v19 }
 0x551   :  { %v8017_v25 = vrot.slane %v17629_v48, 1  ;;  %v6523_v7 = vor.u32 %v6521_v40, %v6520_v59  ;;  %v6525_v2 = vrot.slane %v6520_v59, 4  ;;  %v6999_v12 = vld [vmem:[#allocation3 + $0xc0] sm:$0xf]  ;;  %v6782_v20 = vshrl.u32 %v12842_v3, 16  ;;  %v13858_v56 = vld [vmem:[%s19388_s6 + $0x90] sm:$0xff]  }
 0x552   :  { %v6785_v28 = vshll.u32 %v12842_v3, 16  ;;  %7327 = vst.msk [vmem:[#allocation3 + $0x70] sm:$0xf] %vm1468_vm9, %v7153_v13  ;;  %v6515_v18 = vor.u32 %v6513_v0, %v6512_v38  ;;  %v6516_v53 = vrot.slane %v6512_v38, 4  ;;  %v6792_v60 = vrot.slane %v6790_v26, 7  ;;  %7242 = vrot.lane.b32.xlu0 %v12842_v3, %s14189_s23  ;;  %v13847_v46 = vld [vmem:[#allocation3 + $0xc] sm:$0xff]  }
 0x553   :  { %v8018_v37 = vrot.slane %v17631_v5, 1  ;;  %v7004_v49 = vsel %vm14406_vm2, %v6525_v2, %v7003_v27  ;;  %v7115_v10 = vld [vmem:[#allocation3 + $0x1a0] sm:$0x1]  ;;  %v6784_v24 = vrot.slane %v6782_v20, 7  ;;  %v8020_v54 = vrot.slane %v13848_v52, 1  ;;  %v7151_v43 = vpop.permute.xlu0 %7150  ;;  %10653 = vmatpush1.bf16.msra.mxu1 %v13858_v56  ;;  %v13865_v11 = vld [vmem:[%s19388_s6 + $0x98] sm:$0xff]  }
 0x554   :  { %v8021_v50 = vrot.slane %v13849_v30, 1  ;;  %7005 = vst [vmem:[#allocation3 + $0xc8] sm:$0x1] %v7004_v49  ;;  %v6524_v17 = vsel %vm14762_vm7, %v6516_v53, %v6523_v7  ;;  %v7000_v6 = vsel %vm14698_vm5, %v6515_v18, %v6999_v12  ;;  %v6795_v32 = vor.u32 %v6793_v31, %v6792_v60  ;;  %7326 = vst.msk [vmem:[#allocation3 + $0x6c] sm:$0xf] %vm1468_vm9, %v7151_v43  ;;  %v7157_v42 = vpop.permute.xlu1 %7156  ;;  %v13850_v5 = vld [vmem:[#allocation3 + $0x18] sm:$0xff]  }
 0x555   :  { %v6797_v51 = vrot.slane %v6792_v60, 4  ;;  %7001 = vst [vmem:[#allocation3 + $0xc0] sm:$0xf] %v7000_v6  ;;  %7002 = vst.msk [vmem:[#allocation3 + $0xc4] sm:$0xf] %vm1046_vm3, %v6524_v17  ;;  %v6787_v16 = vor.u32 %v6785_v28, %v6784_v24  ;;  %v6788_v58 = vrot.slane %v6784_v24, 4  ;;  %v8019_v14 = vsel %vm2173_vm8, %v8017_v25, %v8018_v37  ;;  %10654 = vmatprep.subr.bf16.mxu1 %v19545_v19 }
 0x556   :  { %v8022_v23 = vsel %vm2173_vm8, %v8020_v54, %v8021_v50  ;;  %v7111_v47 = vld [vmem:[#allocation3 + $0x198] sm:$0xf]  ;;  %10399 = vmatprep.mubr.bf16.mxu1 %v8019_v14  ;;  %v13852_v62 = vld [vmem:[#allocation3 + $0x24] sm:$0xfe]   ;;  %7329 = vst.msk [vmem:[#allocation3 + $0x7c] sm:$0xf] %vm1468_vm9, %v7157_v42 }
 0x557   :  { %v7116_v41 = vsel %vm14406_vm2, %v6797_v51, %v7115_v10  ;;  %v6796_v22 = vsel %vm14762_vm7, %v6788_v58, %v6795_v32  ;;  %v7112_v57 = vsel %vm14698_vm5, %v6787_v16, %v7111_v47  ;;  %10400 = vmatmul.mubr.bf16.gmra.mrb[4].mxu1 %v13847_v46  ;;  %v7155_v29 = vpop.permute.xlu0 %7154  ;;  %v13853_v34 = vld [vmem:[#allocation3 + $0x2c] ss:$0 sps:$4 sm:$0x11]   ;;  %v8023_v63 = vrot.slane %v13852_v62, 1  ;;  %v13855_v55 = vld [vmem:[#allocation3 + $0x30] sm:$0xfe]  }
 0x558   :  { %7117 = vst [vmem:[#allocation3 + $0x1a0] sm:$0x1] %v7116_v41  ;;  %7113 = vst [vmem:[#allocation3 + $0x198] sm:$0xf] %v7112_v57  ;;  %10407 = vmatprep.mubr.bf16.mxu1 %v8022_v23  ;;  %10655 = vmatpush1.bf16.msra.mxu1 %v13865_v11  ;;  %v8024_v33 = vrot.slane %v13853_v34, 1  ;;  %v13879_v61 = vld [vmem:[%s19388_s6 + $0xa8] sm:$0xff]  }
 0x559   :  { %7114 = vst.msk [vmem:[#allocation3 + $0x19c] sm:$0xf] %vm1046_vm3, %v6796_v22  ;;  %10656 = vmatprep.subr.bf16.mxu1 %v19545_v19  ;;  %v13856_v40 = vld [vmem:[#allocation3 + $0x38] ss:$0 sps:$4 sm:$0x11]   ;;  %v13886_v30 = vld [vmem:[%s19388_s6 + $0xb0] sm:$0xff]  }
 0x55a   :  { %7328 = vst.msk [vmem:[#allocation3 + $0x78] sm:$0xf] %vm1468_vm9, %v7155_v29  ;;  %v7161_v45 = vpop.permute.xlu1 %7160  ;;  %v8025_v36 = vsel %vm2173_vm8, %v8023_v63, %v8024_v33  ;;  %v8026_v4 = vrot.slane %v13855_v55, 1  ;;  %v13854_v21 = vld [vmem:[#allocation3 + $0x24] sm:$0xff]   ;;  %v8027_v0 = vrot.slane %v13856_v40, 1  ;;  %v13893_v8 = vld [vmem:[%s19388_s6 + $0xb8] sm:$0xff]  }
 0x55b   :  { %7331 = vst.msk [vmem:[#allocation3 + $0x88] sm:$0xf] %vm1468_vm9, %v7161_v45  ;;  %v7159_v48 = vpop.permute.xlu0 %7158  ;;  %v13859_v52 = vld [vmem:[#allocation3 + $0x3c] sm:$0xfe]   ;;  %v13857_v26 = vld [vmem:[#allocation3 + $0x30] sm:$0xff]   ;;  %v13907_v13 = vld [vmem:[%s19388_s6 + $0xc8] sm:$0xff]  }
 0x55c   :  { %7330 = vst.msk [vmem:[#allocation3 + $0x84] sm:$0xf] %vm1468_vm9, %v7159_v48  ;;  %10657 = vmatpush1.bf16.msra.mxu1 %v13872_v39  ;;  %v8028_v15 = vsel %vm2173_vm8, %v8026_v4, %v8027_v0  ;;  %v13860_v35 = vld [vmem:[#allocation3 + $0x44] ss:$0 sps:$4 sm:$0x11]   ;;  %v8029_v38 = vrot.slane %v13859_v52, 1 }
 0x55d   :  { %10658 = vmatprep.subr.bf16.mxu1 %v19545_v19  ;;  %v13900_v59 = vld [vmem:[%s19388_s6 + $0xc0] sm:$0xff]   ;;  %v8030_v31 = vrot.slane %v13860_v35, 1  ;;  %v13862_v2 = vld [vmem:[#allocation3 + $0x48] sm:$0xfe]   ;;  %v13914_v28 = vld [vmem:[%s19388_s6 + $0xd0] sm:$0xff]  }
 0x55e   :  { %v13863_v12 = vld [vmem:[#allocation3 + $0x50] ss:$0 sps:$4 sm:$0x11]   ;;  %v8032_v18 = vrot.slane %v13862_v2, 1  ;;  %v13861_v53 = vld [vmem:[#allocation3 + $0x3c] sm:$0xff]   ;;  %v13864_v6 = vld [vmem:[#allocation3 + $0x48] sm:$0xff]  }
 0x55f   :  { %10408 = vmatmul.mubr.bf16.gmra.mrb[8].mxu1 %v13850_v5  ;;  %v8031_v7 = vsel %vm2173_vm8, %v8029_v38, %v8030_v31  ;;  %v8033_v60 = vrot.slane %v13863_v12, 1  ;;  %v13866_v10 = vld [vmem:[#allocation3 + $0x54] sm:$0xfe]   ;;  %v13867_v24 = vld [vmem:[#allocation3 + $0x5c] ss:$0 sps:$4 sm:$0x11]  }
 0x560   :  { %10415 = vmatprep.mubr.bf16.mxu1 %v8025_v36  ;;  %10659 = vmatpush1.bf16.msra.mxu1 %v13879_v61  ;;  %v7165_v1 = vpop.permute.xlu1 %7164  ;;  %v8035_v17 = vrot.slane %v13866_v10, 1  ;;  %v8036_v32 = vrot.slane %v13867_v24, 1  ;;  %v13869_v58 = vld [vmem:[#allocation3 + $0x60] sm:$0xfe]   ;;  %v13921_v46 = vld [vmem:[%s19388_s6 + $0xd8] sm:$0xff]  }
 0x561   :  { %10660 = vmatprep.subr.bf16.mxu1 %v19545_v19  ;;  %7333 = vst.msk [vmem:[#allocation3 + $0x94] sm:$0xf] %vm1468_vm9, %v7165_v1  ;;  %v8034_v49 = vsel %vm2173_vm8, %v8032_v18, %v8033_v60  ;;  %v13870_v14 = vld [vmem:[#allocation3 + $0x68] ss:$0 sps:$4 sm:$0x11]   ;;  %v8038_v11 = vrot.slane %v13869_v58, 1 }
 0x562   :  { %v7163_v27 = vpop.permute.xlu0 %7162  ;;  %v8037_v16 = vsel %vm2173_vm8, %v8035_v17, %v8036_v32  ;;  %v13868_v47 = vld [vmem:[#allocation3 + $0x54] sm:$0xff]   ;;  %v8039_v22 = vrot.slane %v13870_v14, 1  ;;  %v13873_v42 = vld [vmem:[#allocation3 + $0x6c] sm:$0xfe]   ;;  %v13871_v45 = vld [vmem:[#allocation3 + $0x60] sm:$0xff]  }
 0x563   :  { %7332 = vst.msk [vmem:[#allocation3 + $0x90] sm:$0xf] %vm1468_vm9, %v7163_v27  ;;  %v13874_v34 = vld [vmem:[#allocation3 + $0x74] ss:$0 sps:$4 sm:$0x11]   ;;  %v8041_v39 = vrot.slane %v13873_v42, 1 }
 0x564   :  { %10661 = vmatpush1.bf16.msra.mxu1 %v13886_v30  ;;  %v7169_v9 = vpop.permute.xlu1 %7168  ;;  %v8040_v57 = vsel %vm2173_vm8, %v8038_v11, %v8039_v22  ;;  %v8042_v48 = vrot.slane %v13874_v34, 1  ;;  %v13876_v55 = vld [vmem:[#allocation3 + $0x78] sm:$0xfe]   ;;  %v13877_v36 = vld [vmem:[#allocation3 + $0x80] ss:$0 sps:$4 sm:$0x11]  }
 0x565   :  { %10662 = vmatprep.subr.bf16.mxu1 %v19545_v19  ;;  %7335 = vst.msk [vmem:[#allocation3 + $0xa0] sm:$0xf] %vm1468_vm9, %v7169_v9  ;;  %v13928_v40 = vld [vmem:[%s19388_s6 + $0xe0] sm:$0xff]   ;;  %v8044_v4 = vrot.slane %v13876_v55, 1  ;;  %v13875_v1 = vld [vmem:[#allocation3 + $0x6c] sm:$0xff]   ;;  %v8045_v27 = vrot.slane %v13877_v36, 1 }
 0x566   :  { %v8043_v33 = vsel %vm2173_vm8, %v8041_v39, %v8042_v48  ;;  %v13880_v9 = vld [vmem:[#allocation3 + $0x84] sm:$0xfe]   ;;  %v13888_v60 = vld [vmem:[#allocation3 + $0xa4] ss:$0 sps:$4 sm:$0x11]  }
 0x567   :  { %10416 = vmatmul.mubr.bf16.gmra.mrb[12].mxu1 %v13854_v21  ;;  %v7167_v44 = vpop.permute.xlu0 %7166  ;;  %v8047_v35 = vrot.slane %v13880_v9, 1  ;;  %v13897_v34 = vld [vmem:[#allocation3 + $0xd8] sm:$0xfe]  }
 0x568   :  { %10423 = vmatprep.mubr.bf16.mxu1 %v8028_v15  ;;  %10663 = vmatpush1.bf16.msra.mxu1 %v13893_v8  ;;  %7334 = vst.msk [vmem:[#allocation3 + $0x9c] sm:$0xf] %vm1468_vm9, %v7167_v44  ;;  %v8046_v8 = vsel %vm2173_vm8, %v8044_v4, %v8045_v27  ;;  %v13881_v15 = vld [vmem:[#allocation3 + $0x8c] ss:$0 sps:$4 sm:$0x11]  }
 0x569   :  { %v7173_v3 = vpop.permute.xlu1 %7172  ;;  %10664 = vmatprep.subr.bf16.mxu1 %v19545_v19 }
 0x56a   :  { %7337 = vst.msk [vmem:[#allocation3 + $0xac] sm:$0xf] %vm1468_vm9, %v7173_v3  ;;  %v8048_v3 = vrot.slane %v13881_v15, 1  ;;  %v13885_v24 = vld [vmem:[#allocation3 + $0x90] sm:$0xff]  }
 0x56b   :  { %v7171_v25 = vpop.permute.xlu0 %7170 }
 0x56c   :  { %10665 = vmatpush1.bf16.msra.mxu1 %v13900_v59  ;;  %7336 = vst.msk [vmem:[#allocation3 + $0xa8] sm:$0xf] %vm1468_vm9, %v7171_v25  ;;  %v13878_v59 = vld [vmem:[#allocation3 + $0x78] sm:$0xff]   ;;  %v8049_v31 = vsel %vm2173_vm8, %v8047_v35, %v8048_v3  ;;  %v13935_v25 = vld [vmem:[%s19388_s6 + $0xe8] sm:$0xff]  }
 0x56d   :  { %10666 = vmatprep.subr.bf16.mxu1 %v19545_v19 }
 0x56f   :  { %10424 = vmatmul.mubr.bf16.gmra.mrb[16].mxu1 %v13857_v26  ;;  %v13883_v26 = vld [vmem:[#allocation3 + $0x90] sm:$0xfe]  }
 0x570   :  { %10431 = vmatprep.mubr.bf16.mxu1 %v8031_v7  ;;  %v7177_v20 = vpop.permute.xlu1 %7176  ;;  %10667 = vmatpush1.bf16.msra.mxu1 %v13907_v13  ;;  %v7175_v56 = vpop.permute.xlu0 %7174  ;;  %v13884_v13 = vld [vmem:[#allocation3 + $0x98] ss:$0 sps:$4 sm:$0x11]   ;;  %v8050_v12 = vrot.slane %v13883_v26, 1 }
 0x571   :  { %7339 = vst.msk [vmem:[#allocation3 + $0xb8] sm:$0xf] %vm1468_vm9, %v7177_v20  ;;  %10668 = vmatprep.subr.bf16.mxu1 %v19545_v19  ;;  %7338 = vst.msk [vmem:[#allocation3 + $0xb4] sm:$0xf] %vm1468_vm9, %v7175_v56  ;;  %v13882_v20 = vld [vmem:[#allocation3 + $0x84] sm:$0xff]  }
 0x573   :  { %v13892_v39 = vld [vmem:[#allocation3 + $0xa8] sm:$0xff]  }
 0x574   :  { %v7185_v37 = vpop.permute.xlu1 %7184  ;;  %10669 = vmatpush1.bf16.msra.mxu1 %v13914_v28  ;;  %v8051_v28 = vrot.slane %v13884_v13, 1 }
 0x575   :  { %7343 = vst.msk [vmem:[#allocation3 + $0xe8] sm:$0xf] %vm1468_vm9, %v7185_v37  ;;  %10670 = vmatprep.subr.bf16.mxu1 %v19545_v19 }
 0x576   :  { %v8052_v18 = vsel %vm2173_vm8, %v8050_v12, %v8051_v28  ;;  %v13912_v12 = vld [vmem:[#allocation3 + $0x110] ss:$0 sps:$4 sm:$0x11]  }
 0x577   :  { %10432 = vmatmul.mubr.bf16.gmra.mrb[20].mxu1 %v13861_v53  ;;  %v13887_v53 = vld [vmem:[#allocation3 + $0x9c] sm:$0xfe]  }
 0x578   :  { %10439 = vmatprep.mubr.bf16.mxu1 %v8034_v49  ;;  %v7183_v54 = vpop.permute.xlu0 %7182  ;;  %v7189_v50 = vpop.permute.xlu1 %7188  ;;  %10671 = vmatpush1.bf16.msra.mxu1 %v13921_v46  ;;  %v8053_v10 = vrot.slane %v13887_v53, 1  ;;  %v13889_v46 = vld [vmem:[#allocation3 + $0x9c] sm:$0xff]  }
 0x579   :  { %7342 = vst.msk [vmem:[#allocation3 + $0xe4] sm:$0xf] %vm1468_vm9, %v7183_v54  ;;  %7345 = vst.msk [vmem:[#allocation3 + $0xf4] sm:$0xf] %vm1468_vm9, %v7189_v50  ;;  %10672 = vmatprep.subr.bf16.mxu1 %v19545_v19  ;;  %v8054_v50 = vrot.slane %v13888_v60, 1 }
 0x57a   :  { %v13916_v60 = vld [vmem:[#allocation3 + $0x11c] ss:$0 sps:$4 sm:$0x11]  }
 0x57b   :  { %v8055_v32 = vsel %vm2173_vm8, %v8053_v10, %v8054_v50  ;;  %v8078_v10 = vrot.slane %v13916_v60, 1  ;;  %v13919_v50 = vld [vmem:[#allocation3 + $0x128] ss:$0 sps:$4 sm:$0x11]  }
 0x57c   :  { %v7187_v51 = vpop.permute.xlu0 %7186  ;;  %10673 = vmatpush1.bf16.msra.mxu1 %v13928_v40 }
 0x57d   :  { %7344 = vst.msk [vmem:[#allocation3 + $0xf0] sm:$0xf] %vm1468_vm9, %v7187_v51  ;;  %v7193_v43 = vpop.permute.xlu1 %7192  ;;  %10674 = vmatprep.subr.bf16.mxu1 %v19545_v19  ;;  %v13891_v51 = vld [vmem:[#allocation3 + $0xb0] ss:$0 sps:$4 sm:$0x11]  }
 0x57e   :  { %7347 = vst.msk [vmem:[#allocation3 + $0x100] sm:$0xf] %vm1468_vm9, %v7193_v43  ;;  %v13942_v43 = vld [vmem:[%s19388_s6 + $0xf0] sm:$0xff]   ;;  %v8057_v11 = vrot.slane %v13891_v51, 1 }
 0x57f   :  { %10440 = vmatmul.mubr.bf16.gmra.mrb[24].mxu1 %v13864_v6  ;;  %v13890_v6 = vld [vmem:[#allocation3 + $0xa8] sm:$0xfe]  }
 0x580   :  { %10447 = vmatprep.mubr.bf16.mxu1 %v8037_v16  ;;  %10675 = vmatpush1.bf16.msra.mxu1 %v13935_v25  ;;  %v8056_v58 = vrot.slane %v13890_v6, 1  ;;  %v13901_v27 = vld [vmem:[#allocation3 + $0xe4] sm:$0xfe]  }
 0x581   :  { %v7191_v23 = vpop.permute.xlu0 %7190  ;;  %10676 = vmatprep.subr.bf16.mxu1 %v19545_v19 }
 0x582   :  { %7346 = vst.msk [vmem:[#allocation3 + $0xfc] sm:$0xf] %vm1468_vm9, %v7191_v23  ;;  %v7197_v41 = vpop.permute.xlu1 %7196 }
 0x583   :  { %7349 = vst.msk [vmem:[#allocation3 + $0x10c] sm:$0xf] %vm1468_vm9, %v7197_v41  ;;  %v8058_v41 = vsel %vm2173_vm8, %v8056_v58, %v8057_v11 }
 0x584   :  { %10677 = vmatpush1.bf16.msra.mxu1 %v13942_v43  ;;  %v13904_v15 = vld [vmem:[#allocation3 + $0xf0] sm:$0xfe]  }
 0x585   :  { %10678 = vmatprep.subr.bf16.mxu1 %v19545_v19  ;;  %v8068_v35 = vrot.slane %v13904_v15, 1  ;;  %v13906_v25 = vld [vmem:[#allocation3 + $0xf0] sm:$0xff]  }
 0x586   :  { %v7195_v62 = vpop.permute.xlu0 %7194 }
 0x587   :  { %10448 = vmatmul.mubr.bf16.gmra.mrb[28].mxu1 %v13868_v47  ;;  %7348 = vst.msk [vmem:[#allocation3 + $0x108] sm:$0xf] %vm1468_vm9, %v7195_v62  ;;  %v7201_v29 = vpop.permute.xlu1 %7200  ;;  %v13894_v47 = vld [vmem:[#allocation3 + $0xb4] sm:$0xfe]  }
 0x588   :  { %10455 = vmatprep.mubr.bf16.mxu1 %v8040_v57  ;;  %7351 = vst.msk [vmem:[#allocation3 + $0x118] sm:$0xf] %vm1468_vm9, %v7201_v29  ;;  %v13895_v57 = vld [vmem:[#allocation3 + $0xbc] ss:$0 sps:$4 sm:$0x11]   ;;  %v8059_v42 = vrot.slane %v13894_v47, 1 }
 0x589   :  { %v13898_v29 = vld [vmem:[#allocation3 + $0xe0] ss:$0 sps:$4 sm:$0x11]  }
 0x58a   :  { %v7199_v63 = vpop.permute.xlu0 %7198  ;;  %v8063_v55 = vrot.slane %v13898_v29, 1  ;;  %v13908_v3 = vld [vmem:[#allocation3 + $0xfc] sm:$0xfe]   ;;  %v13930_v29 = vld [vmem:[#allocation3 + $0x14c] ss:$0 sps:$4 sm:$0x11]  }
 0x58b   :  { %7350 = vst.msk [vmem:[#allocation3 + $0x114] sm:$0xf] %vm1468_vm9, %v7199_v63  ;;  %v8060_v63 = vrot.slane %v13895_v57, 1  ;;  %v13910_v28 = vld [vmem:[#allocation3 + $0xfc] sm:$0xff]  }
 0x58d   :  { %v7205_v5 = vpop.permute.xlu1 %7204  ;;  %v8061_v48 = vsel %vm2173_vm8, %v8059_v42, %v8060_v63  ;;  %v8090_v63 = vrot.slane %v13930_v29, 1  ;;  %v13977_v29 = vld [vmem:[%s19388_s6 + $0x118] sm:$0xff]  }
 0x58e   :  { %7353 = vst.msk [vmem:[#allocation3 + $0x124] sm:$0xf] %vm1468_vm9, %v7205_v5  ;;  %v7203_v61 = vpop.permute.xlu0 %7202  ;;  %v13949_v5 = vld [vmem:[%s19388_s6 + $0xf8] sm:$0xff]  }
 0x58f   :  { %10456 = vmatmul.mubr.bf16.gmra.mrb[32].mxu1 %v13871_v45  ;;  %7352 = vst.msk [vmem:[#allocation3 + $0x120] sm:$0xf] %vm1468_vm9, %v7203_v61  ;;  %v8062_v61 = vrot.slane %v13897_v34, 1 }
 0x590   :  { %10463 = vmatprep.mubr.bf16.mxu1 %v8043_v33  ;;  %10679 = vmatpush1.bf16.msra.mxu1 %v13949_v5  ;;  %v13933_v5 = vld [vmem:[#allocation3 + $0x158] ss:$0 sps:$4 sm:$0x11]  }
 0x591   :  { %v7209_v30 = vpop.permute.xlu1 %7208  ;;  %10937 = vmatprep.subr.bf16.mxu1 %v19545_v19  ;;  %v8064_v4 = vsel %vm2173_vm8, %v8062_v61, %v8063_v55  ;;  %v8093_v55 = vrot.slane %v13933_v5, 1 }
 0x592   :  { %7355 = vst.msk [vmem:[#allocation3 + $0x130] sm:$0xf] %vm1468_vm9, %v7209_v30  ;;  %v13896_v30 = vld [vmem:[#allocation3 + $0xb4] sm:$0xff]  }
 0x593   :  { %v7207_v21 = vpop.permute.xlu0 %7206  ;;  %v13917_v6 = vld [vmem:[#allocation3 + $0x114] sm:$0xff]  }
 0x594   :  { %7354 = vst.msk [vmem:[#allocation3 + $0x12c] sm:$0xf] %vm1468_vm9, %v7207_v21  ;;  %v13899_v21 = vld [vmem:[#allocation3 + $0xd8] sm:$0xff]  }
 0x595   :  { %v7213_v0 = vpop.permute.xlu1 %7212 }
 0x596   :  { %7357 = vst.msk [vmem:[#allocation3 + $0x13c] sm:$0xf] %vm1468_vm9, %v7213_v0  ;;  %v8065_v0 = vrot.slane %v13901_v27, 1 }
 0x597   :  { %10464 = vmatmul.mubr.bf16.gmra.mrb[36].mxu1 %v13875_v1  ;;  %v13902_v1 = vld [vmem:[#allocation3 + $0xec] ss:$0 sps:$4 sm:$0x11]  }
 0x598   :  { %10471 = vmatprep.mubr.bf16.mxu1 %v8046_v8  ;;  %v8066_v8 = vrot.slane %v13902_v1, 1 }
 0x599   :  { %v7211_v52 = vpop.permute.xlu0 %7210 }
 0x59a   :  { %7356 = vst.msk [vmem:[#allocation3 + $0x138] sm:$0xf] %vm1468_vm9, %v7211_v52  ;;  %v7217_v44 = vpop.permute.xlu1 %7216  ;;  %v8067_v9 = vsel %vm2173_vm8, %v8065_v0, %v8066_v8  ;;  %v13905_v52 = vld [vmem:[#allocation3 + $0xf8] ss:$0 sps:$4 sm:$0x11]  }
 0x59b   :  { %7359 = vst.msk [vmem:[#allocation3 + $0x148] sm:$0xf] %vm1468_vm9, %v7217_v44  ;;  %v13903_v44 = vld [vmem:[#allocation3 + $0xe4] sm:$0xff]   ;;  %v13922_v43 = vld [vmem:[#allocation3 + $0x12c] sm:$0xfe]  }
 0x59c   :  { %v8083_v58 = vrot.slane %v13922_v43, 1  ;;  %v13940_v8 = vld [vmem:[#allocation3 + $0x170] ss:$0 sps:$4 sm:$0x11]   ;;  %v13956_v43 = vld [vmem:[%s19388_s6 + $0x100] sm:$0xff]  }
 0x59d   :  { %v7215_v38 = vpop.permute.xlu0 %7214 }
 0x59e   :  { %7358 = vst.msk [vmem:[#allocation3 + $0x144] sm:$0xf] %vm1468_vm9, %v7215_v38  ;;  %v13909_v38 = vld [vmem:[#allocation3 + $0x104] ss:$0 sps:$4 sm:$0x11]  }
 0x59f   :  { %10472 = vmatmul.mubr.bf16.gmra.mrb[40].mxu1 %v13878_v59  ;;  %v8069_v59 = vrot.slane %v13905_v52, 1  ;;  %v8072_v13 = vrot.slane %v13909_v38, 1  ;;  %v8099_v52 = vrot.slane %v13940_v8, 1 }
 0x5a0   :  { %10479 = vmatprep.mubr.bf16.mxu1 %v8049_v31  ;;  %v7221_v7 = vpop.permute.xlu1 %7220  ;;  %v8071_v31 = vrot.slane %v13908_v3, 1 }
 0x5a1   :  { %7361 = vst.msk [vmem:[#allocation3 + $0x154] sm:$0xf] %vm1468_vm9, %v7221_v7  ;;  %v7219_v2 = vpop.permute.xlu0 %7218  ;;  %v8070_v26 = vsel %vm2173_vm8, %v8068_v35, %v8069_v59  ;;  %v13925_v11 = vld [vmem:[#allocation3 + $0x138] sm:$0xfe]  }
 0x5a2   :  { %7360 = vst.msk [vmem:[#allocation3 + $0x150] sm:$0xf] %vm1468_vm9, %v7219_v2  ;;  %v8073_v7 = vsel %vm2173_vm8, %v8071_v31, %v8072_v13  ;;  %v13911_v2 = vld [vmem:[#allocation3 + $0x108] sm:$0xfe]   ;;  %v8086_v47 = vrot.slane %v13925_v11, 1 }
 0x5a3   :  { %v13944_v59 = vld [vmem:[#allocation3 + $0x17c] ss:$0 sps:$4 sm:$0x11]   ;;  %v13947_v13 = vld [vmem:[#allocation3 + $0x188] ss:$0 sps:$4 sm:$0x11]  }
 0x5a4   :  { %v7225_v56 = vpop.permute.xlu1 %7224  ;;  %v13961_v11 = vld [vmem:[#allocation3 + $0x2c] ss:$0 sps:$4 sm:$0x11]  }
 0x5a5   :  { %7363 = vst.msk [vmem:[#allocation3 + $0x160] sm:$0xf] %vm1468_vm9, %v7225_v56  ;;  %v8075_v56 = vrot.slane %v13912_v12, 1  ;;  %v13929_v42 = vld [vmem:[#allocation3 + $0x144] sm:$0xfe]   ;;  %v8105_v12 = vrot.slane %v13947_v13, 1 }
 0x5a6   :  { %v7223_v37 = vpop.permute.xlu0 %7222  ;;  %v8089_v34 = vrot.slane %v13929_v42, 1  ;;  %v13931_v61 = vld [vmem:[#allocation3 + $0x144] sm:$0xff]   ;;  %v13964_v42 = vld [vmem:[#allocation3 + $0x30] sm:$0xfe]  }
 0x5a7   :  { %10480 = vmatmul.mubr.bf16.gmra.mrb[44].mxu1 %v13882_v20  ;;  %7362 = vst.msk [vmem:[#allocation3 + $0x15c] sm:$0xf] %vm1468_vm9, %v7223_v37  ;;  %v8074_v20 = vrot.slane %v13911_v2, 1 }
 0x5a8   :  { %10487 = vmatprep.mubr.bf16.mxu1 %v8052_v18  ;;  %v7229_v49 = vpop.permute.xlu1 %7228  ;;  %v13915_v18 = vld [vmem:[#allocation3 + $0x114] sm:$0xfe]  }
 0x5a9   :  { %7365 = vst.msk [vmem:[#allocation3 + $0x16c] sm:$0xf] %vm1468_vm9, %v7229_v49  ;;  %v8076_v53 = vsel %vm2173_vm8, %v8074_v20, %v8075_v56  ;;  %v8077_v37 = vrot.slane %v13915_v18, 1  ;;  %v13913_v49 = vld [vmem:[#allocation3 + $0x108] sm:$0xff]   ;;  %v13934_v1 = vld [vmem:[#allocation3 + $0x150] sm:$0xff]  }
 0x5aa   :  { %v13951_v56 = vld [vmem:[#allocation3 + $0x194] ss:$0 sps:$4 sm:$0x11]  }
 0x5ab   :  { %v8108_v60 = vrot.slane %v13951_v56, 1 }
 0x5ac   :  { %v7227_v54 = vpop.permute.xlu0 %7226 }
 0x5ad   :  { %7364 = vst.msk [vmem:[#allocation3 + $0x168] sm:$0xf] %vm1468_vm9, %v7227_v54  ;;  %v7233_v17 = vpop.permute.xlu1 %7232  ;;  %v13918_v54 = vld [vmem:[#allocation3 + $0x120] sm:$0xfe]  }
 0x5ae   :  { %7367 = vst.msk [vmem:[#allocation3 + $0x178] sm:$0xf] %vm1468_vm9, %v7233_v17  ;;  %v8080_v17 = vrot.slane %v13918_v54, 1  ;;  %v13938_v15 = vld [vmem:[#allocation3 + $0x15c] sm:$0xff]  }
 0x5af   :  { %10488 = vmatmul.mubr.bf16.gmra.mrb[48].mxu1 %v13885_v24  ;;  %v8079_v24 = vsel %vm2173_vm8, %v8077_v37, %v8078_v10  ;;  %v13954_v10 = vld [vmem:[#allocation3 + $0x14] ss:$0 sps:$4 sm:$0x11]  }
 0x5b0   :  { %10495 = vmatprep.mubr.bf16.mxu1 %v8055_v32  ;;  %v7231_v16 = vpop.permute.xlu0 %7230  ;;  %v8081_v32 = vrot.slane %v13919_v50, 1  ;;  %v8815_v50 = vrot.slane %v13954_v10, 1 }
 0x5b1   :  { %7366 = vst.msk [vmem:[#allocation3 + $0x174] sm:$0xf] %vm1468_vm9, %v7231_v16  ;;  %v13923_v16 = vld [vmem:[#allocation3 + $0x134] ss:$0 sps:$4 sm:$0x11]  }
 0x5b2   :  { %v8082_v51 = vsel %vm2173_vm8, %v8080_v17, %v8081_v32  ;;  %v13958_v32 = vld [vmem:[#allocation3 + $0x20] ss:$0 sps:$4 sm:$0x11]  }
 0x5b3   :  { %v7237_v14 = vpop.permute.xlu1 %7236 }
 0x5b4   :  { %7369 = vst.msk [vmem:[#allocation3 + $0x184] sm:$0xf] %vm1468_vm9, %v7237_v14  ;;  %v13920_v14 = vld [vmem:[#allocation3 + $0x120] sm:$0xff]   ;;  %v13939_v0 = vld [vmem:[#allocation3 + $0x168] sm:$0xfe]  }
 0x5b5   :  { %v7235_v23 = vpop.permute.xlu0 %7234  ;;  %v13941_v38 = vld [vmem:[#allocation3 + $0x168] sm:$0xff]  }
 0x5b6   :  { %7368 = vst.msk [vmem:[#allocation3 + $0x180] sm:$0xf] %vm1468_vm9, %v7235_v23 }
 0x5b7   :  { %10496 = vmatmul.mubr.bf16.gmra.mrb[52].mxu1 %v13889_v46  ;;  %v7241_v22 = vpop.permute.xlu1 %7240  ;;  %v8084_v46 = vrot.slane %v13923_v16, 1  ;;  %v13955_v16 = vld [vmem:[#allocation3 + $0xc] sm:$0xff]  }
 0x5b8   :  { %10503 = vmatprep.mubr.bf16.mxu1 %v8058_v41  ;;  %7371 = vst.msk [vmem:[#allocation3 + $0x190] sm:$0xf] %vm1468_vm9, %v7241_v22  ;;  %v13926_v41 = vld [vmem:[#allocation3 + $0x140] ss:$0 sps:$4 sm:$0x11]   ;;  %v13924_v22 = vld [vmem:[#allocation3 + $0x12c] sm:$0xff]  }
 0x5b9   :  { %v7239_v62 = vpop.permute.xlu0 %7238  ;;  %v8085_v23 = vsel %vm2173_vm8, %v8083_v58, %v8084_v46  ;;  %v8087_v57 = vrot.slane %v13926_v41, 1  ;;  %v13945_v2 = vld [vmem:[#allocation3 + $0x174] sm:$0xff]   ;;  %v8818_v58 = vrot.slane %v13958_v32, 1  ;;  %v13960_v46 = vld [vmem:[#allocation3 + $0x24] sm:$0xfe]  }
 0x5ba   :  { %7370 = vst.msk [vmem:[#allocation3 + $0x18c] sm:$0xf] %vm1468_vm9, %v7239_v62  ;;  %v8820_v41 = vrot.slane %v13960_v46, 1  ;;  %v13987_v46 = vld [vmem:[#allocation3 + $0x78] sm:$0xff]  }
 0x5bb   :  { %v8088_v62 = vsel %vm2173_vm8, %v8086_v47, %v8087_v57  ;;  %v13970_v47 = vld [vmem:[%s19388_s6 + $0x110] sm:$0xff]   ;;  %v8821_v57 = vrot.slane %v13961_v11, 1 }
 0x5be   :  { %v7181_v45 = vpop.permute.xlu1 %7180 }
 0x5bf   :  { %10504 = vmatmul.mubr.bf16.gmra.mrb[56].mxu1 %v13892_v39  ;;  %7341 = vst.msk [vmem:[#allocation3 + $0xc4] sm:$0xf] %vm1468_vm9, %v7181_v45  ;;  %v13927_v39 = vld [vmem:[#allocation3 + $0x138] sm:$0xff]   ;;  %v8091_v45 = vsel %vm2173_vm8, %v8089_v34, %v8090_v63  ;;  %v13984_v63 = vld [vmem:[%s19388_s6 + $0x120] sm:$0xff]  }
 0x5c0   :  { %v7179_v33 = vpop.permute.xlu0 %7178  ;;  %10511 = vmatprep.mubr.bf16.mxu1 %v8061_v48  ;;  %v13932_v48 = vld [vmem:[#allocation3 + $0x150] sm:$0xfe]   ;;  %v13965_v34 = vld [vmem:[#allocation3 + $0x38] ss:$0 sps:$4 sm:$0x11]  }
 0x5c1   :  { %7340 = vst.msk [vmem:[#allocation3 + $0xc0] sm:$0xf] %vm1468_vm9, %v7179_v33  ;;  %v8092_v33 = vrot.slane %v13932_v48, 1  ;;  %v13952_v54 = vld [vmem:[#allocation3 + $0x18c] sm:$0xff]   ;;  %v8824_v48 = vrot.slane %v13965_v34, 1 }
 0x5c2   :  { %v7245_v36 = vpop.permute.xlu1 %7244  ;;  %v14047_v34 = vld [vmem:[%s19388_s6 + $0x168] sm:$0xff]  }
 0x5c3   :  { %7373 = vst.msk [vmem:[#allocation3 + $0x19c] sm:$0xf] %vm1468_vm9, %v7245_v36  ;;  %v8094_v36 = vsel %vm2173_vm8, %v8092_v33, %v8093_v55  ;;  %v13967_v33 = vld [vmem:[#allocation3 + $0x3c] sm:$0xfe]  }
 0x5c4   :  { %v7243_v40 = vpop.permute.xlu0 %7242  ;;  %v13968_v55 = vld [vmem:[#allocation3 + $0x44] ss:$0 sps:$4 sm:$0x11]  }
 0x5c5   :  { %7372 = vst.msk [vmem:[#allocation3 + $0x198] sm:$0xf] %vm1468_vm9, %v7243_v40  ;;  %v13936_v40 = vld [vmem:[#allocation3 + $0x15c] sm:$0xfe]  }
 0x5c7   :  { %10512 = vmatmul.mubr.bf16.gmra.mrb[60].mxu1 %v13896_v30  ;;  %v13937_v30 = vld [vmem:[#allocation3 + $0x164] ss:$0 sps:$4 sm:$0x11]  }
 0x5c8   :  { %10519 = vmatprep.mubr.bf16.mxu1 %v8064_v4  ;;  %v8095_v4 = vrot.slane %v13936_v40, 1  ;;  %v8096_v27 = vrot.slane %v13937_v30, 1  ;;  %v13998_v40 = vld [vmem:[%s19388_s6 + $0x130] sm:$0xff]  }
 0x5c9   :  { %v13966_v30 = vld [vmem:[#allocation3 + $0x30] sm:$0xff]  }
 0x5cf   :  { %10520 = vmatmul.mubr.bf16.gmra.mrb[64].mxu1 %v13899_v21  ;;  %v8097_v21 = vsel %vm2173_vm8, %v8095_v4, %v8096_v27  ;;  %v8827_v4 = vrot.slane %v13968_v55, 1  ;;  %v13971_v27 = vld [vmem:[#allocation3 + $0x48] sm:$0xfe]  }
 0x5d0   :  { %10527 = vmatprep.mubr.bf16.mxu1 %v8067_v9  ;;  %v8098_v9 = vrot.slane %v13939_v0, 1  ;;  %v13972_v0 = vld [vmem:[#allocation3 + $0x50] ss:$0 sps:$4 sm:$0x11]   ;;  %v8829_v8 = vrot.slane %v13971_v27, 1 }
 0x5d1   :  { %v14003_v27 = vld [vmem:[#allocation3 + $0xbc] ss:$0 sps:$4 sm:$0x11]  }
 0x5d2   :  { %v8100_v35 = vsel %vm2173_vm8, %v8098_v9, %v8099_v52  ;;  %v14012_v9 = vld [vmem:[%s19388_s6 + $0x140] sm:$0xff]   ;;  %v8830_v52 = vrot.slane %v13972_v0, 1  ;;  %v14001_v0 = vld [vmem:[#allocation3 + $0xa8] sm:$0xff]  }
 0x5d7   :  { %10528 = vmatmul.mubr.bf16.gmra.mrb[68].mxu1 %v13903_v44  ;;  %v13943_v44 = vld [vmem:[#allocation3 + $0x174] sm:$0xfe]  }
 0x5d8   :  { %10535 = vmatprep.mubr.bf16.mxu1 %v8070_v26  ;;  %v8101_v3 = vrot.slane %v13943_v44, 1  ;;  %v8102_v26 = vrot.slane %v13944_v59, 1  ;;  %v13974_v44 = vld [vmem:[#allocation3 + $0x54] sm:$0xfe]   ;;  %v14019_v59 = vld [vmem:[%s19388_s6 + $0x148] sm:$0xff]  }
 0x5da   :  { %v8103_v31 = vsel %vm2173_vm8, %v8101_v3, %v8102_v26  ;;  %v13975_v3 = vld [vmem:[#allocation3 + $0x5c] ss:$0 sps:$4 sm:$0x11]   ;;  %v14026_v26 = vld [vmem:[%s19388_s6 + $0x150] sm:$0xff]  }
 0x5df   :  { %10536 = vmatmul.mubr.bf16.gmra.mrb[72].mxu1 %v13906_v25  ;;  %v13946_v25 = vld [vmem:[#allocation3 + $0x180] sm:$0xfe]  }
 0x5e0   :  { %10543 = vmatprep.mubr.bf16.mxu1 %v8073_v7  ;;  %v8104_v7 = vrot.slane %v13946_v25, 1  ;;  %v8833_v25 = vrot.slane %v13975_v3, 1 }
 0x5e2   :  { %v8106_v20 = vsel %vm2173_vm8, %v8104_v7, %v8105_v12  ;;  %v13978_v7 = vld [vmem:[#allocation3 + $0x60] sm:$0xfe]  }
 0x5e3   :  { %v8835_v12 = vrot.slane %v13978_v7, 1 }
 0x5e7   :  { %10544 = vmatmul.mubr.bf16.gmra.mrb[76].mxu1 %v13910_v28  ;;  %v13950_v28 = vld [vmem:[#allocation3 + $0x18c] sm:$0xfe]  }
 0x5e8   :  { %10551 = vmatprep.mubr.bf16.mxu1 %v8076_v53  ;;  %v8107_v18 = vrot.slane %v13950_v28, 1  ;;  %v13948_v53 = vld [vmem:[#allocation3 + $0x180] sm:$0xff]  }
 0x5ea   :  { %v8109_v37 = vsel %vm2173_vm8, %v8107_v18, %v8108_v60  ;;  %v13981_v18 = vld [vmem:[#allocation3 + $0x6c] sm:$0xfe]   ;;  %v13982_v60 = vld [vmem:[#allocation3 + $0x74] ss:$0 sps:$4 sm:$0x11]  }
 0x5eb   :  { %v8839_v10 = vrot.slane %v13982_v60, 1  ;;  %v14017_v60 = vld [vmem:[#allocation3 + $0x104] ss:$0 sps:$4 sm:$0x11]  }
 0x5ef   :  { %10552 = vmatmul.mubr.bf16.gmra.mrb[80].mxu1 %v13913_v49  ;;  %v13953_v49 = vld [vmem:[#allocation3 + $0xc] sm:$0xfe]  }
 0x5f0   :  { %10559 = vmatprep.mubr.bf16.mxu1 %v8079_v24  ;;  %v8814_v24 = vrot.slane %v13953_v49, 1  ;;  %v13980_v49 = vld [vmem:[#allocation3 + $0x60] sm:$0xff]  }
 0x5f2   :  { %v8816_v17 = vsel %vm2173_vm8, %v8814_v24, %v8815_v50  ;;  %v13986_v50 = vld [vmem:[#allocation3 + $0x80] ss:$0 sps:$4 sm:$0x11]  }
 0x5f3   :  { %v8842_v32 = vrot.slane %v13986_v50, 1  ;;  %v14021_v50 = vld [vmem:[#allocation3 + $0x110] ss:$0 sps:$4 sm:$0x11]  }
 0x5f7   :  { %10560 = vmatmul.mubr.bf16.gmra.mrb[84].mxu1 %v13917_v6  ;;  %v13957_v6 = vld [vmem:[#allocation3 + $0x18] sm:$0xfe]  }
 0x5f8   :  { %10567 = vmatprep.mubr.bf16.mxu1 %v8082_v51  ;;  %v8817_v51 = vrot.slane %v13957_v6, 1  ;;  %v13983_v6 = vld [vmem:[#allocation3 + $0x6c] sm:$0xff]  }
 0x5ff   :  { %10568 = vmatmul.mubr.bf16.gmra.mrb[88].mxu1 %v13920_v14  ;;  %v8819_v14 = vsel %vm2173_vm8, %v8817_v51, %v8818_v58  ;;  %v13989_v58 = vld [vmem:[#allocation3 + $0x8c] ss:$0 sps:$4 sm:$0x11]  }
 0x600   :  { %10575 = vmatprep.mubr.bf16.mxu1 %v8085_v23  ;;  %v13963_v23 = vld [vmem:[%s19388_s6 + $0x108] sm:$0xff]  }
 0x607   :  { %10576 = vmatmul.mubr.bf16.gmra.mrb[92].mxu1 %v13924_v22  ;;  %v13959_v22 = vld [vmem:[#allocation3 + $0x18] sm:$0xff]  }
 0x608   :  { %10583 = vmatprep.mubr.bf16.mxu1 %v8088_v62  ;;  %v8822_v62 = vsel %vm2173_vm8, %v8820_v41, %v8821_v57  ;;  %v13992_v41 = vld [vmem:[#allocation3 + $0x90] sm:$0xfe]   ;;  %v13990_v57 = vld [vmem:[#allocation3 + $0x84] sm:$0xff]  }
 0x60f   :  { %10584 = vmatmul.mubr.bf16.gmra.mrb[96].mxu1 %v13927_v39  ;;  %v8823_v39 = vrot.slane %v13964_v42, 1 }
 0x610   :  { %10591 = vmatprep.mubr.bf16.mxu1 %v8091_v45  ;;  %v13962_v45 = vld [vmem:[#allocation3 + $0x24] sm:$0xff]  }
 0x611   :  { %v8825_v5 = vsel %vm2173_vm8, %v8823_v39, %v8824_v48  ;;  %v13996_v39 = vld [vmem:[#allocation3 + $0xa4] ss:$0 sps:$4 sm:$0x11]  }
 0x612   :  { %v8851_v48 = vrot.slane %v13996_v39, 1  ;;  %v14029_v39 = vld [vmem:[#allocation3 + $0x120] sm:$0xff]  }
 0x617   :  { %10592 = vmatmul.mubr.bf16.gmra.mrb[100].mxu1 %v13931_v61  ;;  %v13991_v61 = vld [vmem:[%s19388_s6 + $0x128] sm:$0xff]  }
 0x618   :  { %10599 = vmatprep.mubr.bf16.mxu1 %v8094_v36  ;;  %v8826_v36 = vrot.slane %v13967_v33, 1  ;;  %v13999_v33 = vld [vmem:[#allocation3 + $0xa8] sm:$0xfe]  }
 0x619   :  { %v8853_v55 = vrot.slane %v13999_v33, 1 }
 0x61f   :  { %10600 = vmatmul.mubr.bf16.gmra.mrb[104].mxu1 %v13934_v1  ;;  %v8828_v1 = vsel %vm2173_vm8, %v8826_v36, %v8827_v4  ;;  %v13997_v36 = vld [vmem:[#allocation3 + $0x9c] sm:$0xff]   ;;  %v14002_v4 = vld [vmem:[#allocation3 + $0xb4] sm:$0xfe]  }
 0x620   :  { %10607 = vmatprep.mubr.bf16.mxu1 %v8097_v21  ;;  %v14005_v21 = vld [vmem:[%s19388_s6 + $0x138] sm:$0xff]  }
 0x627   :  { %10608 = vmatmul.mubr.bf16.gmra.mrb[108].mxu1 %v13938_v15  ;;  %v13969_v15 = vld [vmem:[#allocation3 + $0x3c] sm:$0xff]  }
 0x628   :  { %10615 = vmatprep.mubr.bf16.mxu1 %v8100_v35  ;;  %v8831_v35 = vsel %vm2173_vm8, %v8829_v8, %v8830_v52  ;;  %v8857_v8 = vrot.slane %v14003_v27, 1  ;;  %v14007_v52 = vld [vmem:[#allocation3 + $0xc8] ss:$0 sps:$4 sm:$0x11]  }
 0x62f   :  { %10616 = vmatmul.mubr.bf16.gmra.mrb[112].mxu1 %v13941_v38  ;;  %v8832_v38 = vrot.slane %v13974_v44, 1  ;;  %v14004_v44 = vld [vmem:[#allocation3 + $0xb4] sm:$0xff]  }
 0x630   :  { %10623 = vmatprep.mubr.bf16.mxu1 %v8103_v31  ;;  %v13973_v31 = vld [vmem:[#allocation3 + $0x48] sm:$0xff]  }
 0x631   :  { %v8834_v13 = vsel %vm2173_vm8, %v8832_v38, %v8833_v25  ;;  %v14009_v38 = vld [vmem:[#allocation3 + $0xe4] sm:$0xfe]  }
 0x632   :  { %v14008_v25 = vld [vmem:[#allocation3 + $0xc0] sm:$0xff]  }
 0x637   :  { %10624 = vmatmul.mubr.bf16.gmra.mrb[116].mxu1 %v13945_v2  ;;  %v13979_v2 = vld [vmem:[#allocation3 + $0x68] ss:$0 sps:$4 sm:$0x11]  }
 0x638   :  { %10631 = vmatprep.mubr.bf16.mxu1 %v8106_v20  ;;  %v13976_v20 = vld [vmem:[#allocation3 + $0x54] sm:$0xff]   ;;  %v8836_v28 = vrot.slane %v13979_v2, 1 }
 0x639   :  { %v14013_v2 = vld [vmem:[#allocation3 + $0xf0] sm:$0xfe]  }
 0x63a   :  { %v8837_v56 = vsel %vm2173_vm8, %v8835_v12, %v8836_v28  ;;  %v14014_v12 = vld [vmem:[#allocation3 + $0xf8] ss:$0 sps:$4 sm:$0x11]   ;;  %v14011_v28 = vld [vmem:[#allocation3 + $0xe4] sm:$0xff]  }
 0x63f   :  { %10632 = vmatmul.mubr.bf16.gmra.mrb[120].mxu1 %v13948_v53  ;;  %v14033_v53 = vld [vmem:[%s19388_s6 + $0x158] sm:$0xff]  }
 0x640   :  { %10639 = vmatprep.mubr.bf16.mxu1 %v8109_v37  ;;  %v8838_v37 = vrot.slane %v13981_v18, 1 }
 0x642   :  { %v8840_v24 = vsel %vm2173_vm8, %v8838_v37, %v8839_v10  ;;  %v8869_v10 = vrot.slane %v14017_v60, 1 }
 0x647   :  { %10640 = vmatmul.mubr.bf16.gmra.mrb[124].mxu1 %v13952_v54  ;;  %v13985_v54 = vld [vmem:[#allocation3 + $0x78] sm:$0xfe]  }
 0x648   :  { %10680 = vmatprep.mubr.bf16.mxu1 %v8816_v17  ;;  %v8841_v17 = vrot.slane %v13985_v54, 1  ;;  %v14020_v54 = vld [vmem:[#allocation3 + $0x108] sm:$0xfe]  }
 0x64a   :  { %v8843_v51 = vsel %vm2173_vm8, %v8841_v17, %v8842_v32  ;;  %v8871_v17 = vrot.slane %v14020_v54, 1  ;;  %v8872_v32 = vrot.slane %v14021_v50, 1 }
 0x64f   :  { %10681 = vmatmul.mubr.bf16.vlgmr.msra.gmra.mrb[0].mxu1 %v13955_v16  ;;  %v14040_v16 = vld [vmem:[%s19388_s6 + $0x160] sm:$0xff]  }
 0x650   :  { %10938 = vmatpush1.bf16.msra.mxu1 %v13956_v43  ;;  %10688 = vmatprep.mubr.bf16.mxu1 %v8819_v14  ;;  %v13988_v43 = vld [vmem:[#allocation3 + $0x84] sm:$0xfe]  }
 0x651   :  { %10939 = vmatprep.subr.bf16.mxu1 %v19545_v19  ;;  %v8844_v14 = vrot.slane %v13988_v43, 1  ;;  %v14023_v43 = vld [vmem:[#allocation3 + $0x114] sm:$0xfe]  }
 0x654   :  { %10940 = vmatpush1.bf16.msra.mxu1 %v13963_v23  ;;  %v8845_v23 = vrot.slane %v13989_v58, 1  ;;  %v8874_v58 = vrot.slane %v14023_v43, 1 }
 0x655   :  { %10941 = vmatprep.subr.bf16.mxu1 %v19545_v19 }
 0x656   :  { %v8846_v11 = vsel %vm2173_vm8, %v8844_v14, %v8845_v23  ;;  %v14022_v14 = vld [vmem:[#allocation3 + $0x108] sm:$0xff]  }
 0x657   :  { %10689 = vmatmul.mubr.bf16.gmra.mrb[4].mxu1 %v13959_v22  ;;  %v8847_v22 = vrot.slane %v13992_v41, 1  ;;  %v14028_v41 = vld [vmem:[#allocation3 + $0x128] ss:$0 sps:$4 sm:$0x11]  }
 0x658   :  { %10696 = vmatprep.mubr.bf16.mxu1 %v8822_v62  ;;  %10942 = vmatpush1.bf16.msra.mxu1 %v13970_v47  ;;  %v13993_v47 = vld [vmem:[#allocation3 + $0x98] ss:$0 sps:$4 sm:$0x11]  }
 0x659   :  { %10943 = vmatprep.subr.bf16.mxu1 %v19545_v19  ;;  %v8848_v62 = vrot.slane %v13993_v47, 1 }
 0x65b   :  { %v8849_v42 = vsel %vm2173_vm8, %v8847_v22, %v8848_v62  ;;  %v14025_v22 = vld [vmem:[#allocation3 + $0x114] sm:$0xff]  }
 0x65c   :  { %10944 = vmatpush1.bf16.msra.mxu1 %v13977_v29  ;;  %v13995_v29 = vld [vmem:[#allocation3 + $0x9c] sm:$0xfe]  }
 0x65d   :  { %10945 = vmatprep.subr.bf16.mxu1 %v19545_v19 }
 0x65f   :  { %10697 = vmatmul.mubr.bf16.gmra.mrb[8].mxu1 %v13962_v45  ;;  %v13994_v45 = vld [vmem:[#allocation3 + $0x90] sm:$0xff]  }
 0x660   :  { %10704 = vmatprep.mubr.bf16.mxu1 %v8825_v5  ;;  %10946 = vmatpush1.bf16.msra.mxu1 %v13984_v63  ;;  %v8850_v63 = vrot.slane %v13995_v29, 1  ;;  %v14031_v29 = vld [vmem:[#allocation3 + $0x134] ss:$0 sps:$4 sm:$0x11]  }
 0x661   :  { %10947 = vmatprep.subr.bf16.mxu1 %v19545_v19 }
 0x662   :  { %v8852_v5 = vsel %vm2173_vm8, %v8850_v63, %v8851_v48  ;;  %v8881_v63 = vrot.slane %v14031_v29, 1  ;;  %v14034_v48 = vld [vmem:[#allocation3 + $0x138] sm:$0xfe]  }
 0x663   :  { %v8883_v33 = vrot.slane %v14034_v48, 1 }
 0x664   :  { %10948 = vmatpush1.bf16.msra.mxu1 %v13991_v61  ;;  %v14000_v61 = vld [vmem:[#allocation3 + $0xb0] ss:$0 sps:$4 sm:$0x11]  }
 0x665   :  { %10949 = vmatprep.subr.bf16.mxu1 %v19545_v19 }
 0x667   :  { %10705 = vmatmul.mubr.bf16.gmra.mrb[12].mxu1 %v13966_v30 }
 0x668   :  { %10712 = vmatprep.mubr.bf16.mxu1 %v8828_v1  ;;  %10950 = vmatpush1.bf16.msra.mxu1 %v13998_v40  ;;  %v8854_v40 = vrot.slane %v14000_v61, 1  ;;  %v14054_v1 = vld [vmem:[%s19388_s6 + $0x170] sm:$0xff]  }
 0x669   :  { %10951 = vmatprep.subr.bf16.mxu1 %v19545_v19  ;;  %v14032_v61 = vld [vmem:[#allocation3 + $0x12c] sm:$0xff]  }
 0x66a   :  { %v8855_v30 = vsel %vm2173_vm8, %v8853_v55, %v8854_v40  ;;  %v14037_v40 = vld [vmem:[#allocation3 + $0x144] sm:$0xfe]  }
 0x66c   :  { %10952 = vmatpush1.bf16.msra.mxu1 %v14005_v21  ;;  %v8856_v21 = vrot.slane %v14002_v4, 1  ;;  %v8886_v4 = vrot.slane %v14037_v40, 1 }
 0x66d   :  { %10953 = vmatprep.subr.bf16.mxu1 %v19545_v19 }
 0x66f   :  { %10713 = vmatmul.mubr.bf16.gmra.mrb[16].mxu1 %v13969_v15  ;;  %v14006_v15 = vld [vmem:[#allocation3 + $0xc0] sm:$0xfe]  }
 0x670   :  { %10720 = vmatprep.mubr.bf16.mxu1 %v8831_v35  ;;  %10954 = vmatpush1.bf16.msra.mxu1 %v14012_v9  ;;  %v8858_v9 = vsel %vm2173_vm8, %v8856_v21, %v8857_v8  ;;  %v8859_v35 = vrot.slane %v14006_v15, 1  ;;  %v14042_v8 = vld [vmem:[#allocation3 + $0x158] ss:$0 sps:$4 sm:$0x11]   ;;  %v14039_v15 = vld [vmem:[#allocation3 + $0x144] sm:$0xff]  }
 0x671   :  { %10955 = vmatprep.subr.bf16.mxu1 %v19545_v19 }
 0x674   :  { %10956 = vmatpush1.bf16.msra.mxu1 %v14019_v59  ;;  %v8860_v59 = vrot.slane %v14007_v52, 1  ;;  %v8890_v52 = vrot.slane %v14042_v8, 1 }
 0x675   :  { %10957 = vmatprep.subr.bf16.mxu1 %v19545_v19 }
 0x676   :  { %v8861_v3 = vsel %vm2173_vm8, %v8859_v35, %v8860_v59  ;;  %v14045_v59 = vld [vmem:[#allocation3 + $0x164] ss:$0 sps:$4 sm:$0x11]  }
 0x677   :  { %10721 = vmatmul.mubr.bf16.gmra.mrb[20].mxu1 %v13973_v31  ;;  %v8862_v31 = vrot.slane %v14009_v38, 1  ;;  %v14043_v38 = vld [vmem:[#allocation3 + $0x150] sm:$0xff]  }
 0x678   :  { %10728 = vmatprep.mubr.bf16.mxu1 %v8834_v13  ;;  %10958 = vmatpush1.bf16.msra.mxu1 %v14026_v26  ;;  %v14010_v26 = vld [vmem:[#allocation3 + $0xec] ss:$0 sps:$4 sm:$0x11]  }
 0x679   :  { %10959 = vmatprep.subr.bf16.mxu1 %v19545_v19  ;;  %v8863_v13 = vrot.slane %v14010_v26, 1 }
 0x67b   :  { %v8864_v7 = vsel %vm2173_vm8, %v8862_v31, %v8863_v13  ;;  %v14048_v31 = vld [vmem:[#allocation3 + $0x168] sm:$0xfe]  }
 0x67c   :  { %10960 = vmatpush1.bf16.msra.mxu1 %v14033_v53  ;;  %v14016_v53 = vld [vmem:[#allocation3 + $0xfc] sm:$0xfe]   ;;  %v8895_v13 = vrot.slane %v14048_v31, 1 }
 0x67d   :  { %10961 = vmatprep.subr.bf16.mxu1 %v19545_v19  ;;  %v8868_v37 = vrot.slane %v14016_v53, 1 }
 0x67f   :  { %10729 = vmatmul.mubr.bf16.gmra.mrb[24].mxu1 %v13976_v20  ;;  %v8865_v20 = vrot.slane %v14013_v2, 1 }
 0x680   :  { %10736 = vmatprep.mubr.bf16.mxu1 %v8837_v56  ;;  %10962 = vmatpush1.bf16.msra.mxu1 %v14040_v16  ;;  %v8866_v56 = vrot.slane %v14014_v12, 1  ;;  %v14024_v16 = vld [vmem:[#allocation3 + $0x11c] ss:$0 sps:$4 sm:$0x11]  }
 0x681   :  { %10963 = vmatprep.subr.bf16.mxu1 %v19545_v19 }
 0x682   :  { %v8867_v18 = vsel %vm2173_vm8, %v8865_v20, %v8866_v56  ;;  %v14051_v20 = vld [vmem:[#allocation3 + $0x174] sm:$0xfe]  }
 0x683   :  { %v8898_v56 = vrot.slane %v14051_v20, 1 }
 0x684   :  { %10964 = vmatpush1.bf16.msra.mxu1 %v14047_v34 }
 0x685   :  { %10965 = vmatprep.subr.bf16.mxu1 %v19545_v19 }
 0x687   :  { %10737 = vmatmul.mubr.bf16.gmra.mrb[28].mxu1 %v13980_v49  ;;  %v14015_v49 = vld [vmem:[#allocation3 + $0xf0] sm:$0xff]  }
 0x688   :  { %10744 = vmatprep.mubr.bf16.mxu1 %v8840_v24  ;;  %10966 = vmatpush1.bf16.msra.mxu1 %v14054_v1  ;;  %v8870_v24 = vsel %vm2173_vm8, %v8868_v37, %v8869_v10  ;;  %v14036_v1 = vld [vmem:[#allocation3 + $0x138] sm:$0xff]   ;;  %v14055_v37 = vld [vmem:[#allocation3 + $0x180] sm:$0xfe]  }
 0x689   :  { %10967 = vmatprep.subr.bf16.mxu1 %v19545_v19  ;;  %v14061_v19 = vld [vmem:[%s19388_s6 + $0x178] sm:$0xff]   ;;  %v8901_v10 = vrot.slane %v14055_v37, 1 }
 0x68c   :  { %10968 = vmatpush1.bf16.msra.mxu1 %v14061_v19  ;;  %v8893_v19 = vrot.slane %v14045_v59, 1 }
 0x68f   :  { %10745 = vmatmul.mubr.bf16.gmra.mrb[32].mxu1 %v13983_v6  ;;  %v14018_v6 = vld [vmem:[#allocation3 + $0xfc] sm:$0xff]  }
 0x690   :  { %10752 = vmatprep.mubr.bf16.mxu1 %v8843_v51  ;;  %v8873_v51 = vsel %vm2173_vm8, %v8871_v17, %v8872_v32  ;;  %v14058_v17 = vld [vmem:[#allocation3 + $0x18c] sm:$0xfe]  }
 0x691   :  { %v8904_v32 = vrot.slane %v14058_v17, 1 }
 0x697   :  { %10753 = vmatmul.mubr.bf16.gmra.mrb[36].mxu1 %v13987_v46  ;;  %v8875_v46 = vrot.slane %v14024_v16, 1 }
 0x698   :  { %10760 = vmatprep.mubr.bf16.mxu1 %v8846_v11  ;;  %v14027_v11 = vld [vmem:[#allocation3 + $0x120] sm:$0xfe]  }
 0x699   :  { %v8876_v23 = vsel %vm2173_vm8, %v8874_v58, %v8875_v46  ;;  %v8877_v47 = vrot.slane %v14027_v11, 1  ;;  %v14062_v58 = vld [vmem:[#allocation3 + $0x198] sm:$0xfe]  }
 0x69a   :  { %v8907_v46 = vrot.slane %v14062_v58, 1 }
 0x69f   :  { %10761 = vmatmul.mubr.bf16.gmra.mrb[40].mxu1 %v13990_v57  ;;  %v8878_v57 = vrot.slane %v14028_v41, 1 }
 0x6a0   :  { %10768 = vmatprep.mubr.bf16.mxu1 %v8849_v42  ;;  %v14030_v42 = vld [vmem:[#allocation3 + $0x12c] sm:$0xfe]  }
 0x6a1   :  { %v8879_v62 = vsel %vm2173_vm8, %v8877_v47, %v8878_v57  ;;  %v8880_v34 = vrot.slane %v14030_v42, 1  ;;  %v14065_v47 = vld [vmem:[#allocation3 + $0x18] sm:$0xfe]  }
 0x6a2   :  { %v9614_v57 = vrot.slane %v14065_v47, 1 }
 0x6a7   :  { %10769 = vmatmul.mubr.bf16.gmra.mrb[44].mxu1 %v13994_v45  ;;  %v8882_v45 = vsel %vm2173_vm8, %v8880_v34, %v8881_v63  ;;  %v14068_v34 = vld [vmem:[#allocation3 + $0x24] sm:$0xfe]  }
 0x6a8   :  { %10776 = vmatprep.mubr.bf16.mxu1 %v8852_v5  ;;  %v14035_v5 = vld [vmem:[#allocation3 + $0x140] ss:$0 sps:$4 sm:$0x11]   ;;  %v9617_v63 = vrot.slane %v14068_v34, 1 }
 0x6a9   :  { %v8884_v55 = vrot.slane %v14035_v5, 1 }
 0x6af   :  { %10777 = vmatmul.mubr.bf16.gmra.mrb[48].mxu1 %v13997_v36  ;;  %v8885_v36 = vsel %vm2173_vm8, %v8883_v33, %v8884_v55  ;;  %v14071_v33 = vld [vmem:[#allocation3 + $0x30] sm:$0xfe]  }
 0x6b0   :  { %10784 = vmatprep.mubr.bf16.mxu1 %v8855_v30  ;;  %v14038_v30 = vld [vmem:[#allocation3 + $0x14c] ss:$0 sps:$4 sm:$0x11]   ;;  %v9620_v55 = vrot.slane %v14071_v33, 1 }
 0x6b1   :  { %v8887_v27 = vrot.slane %v14038_v30, 1 }
 0x6b3   :  { %v8888_v21 = vsel %vm2173_vm8, %v8886_v4, %v8887_v27  ;;  %v14074_v4 = vld [vmem:[#allocation3 + $0x3c] sm:$0xfe]  }
 0x6b4   :  { %v9623_v27 = vrot.slane %v14074_v4, 1 }
 0x6b7   :  { %10785 = vmatmul.mubr.bf16.gmra.mrb[52].mxu1 %v14001_v0  ;;  %v14041_v0 = vld [vmem:[#allocation3 + $0x150] sm:$0xfe]  }
 0x6b8   :  { %10792 = vmatprep.mubr.bf16.mxu1 %v8858_v9  ;;  %v8889_v9 = vrot.slane %v14041_v0, 1 }
 0x6ba   :  { %v8891_v35 = vsel %vm2173_vm8, %v8889_v9, %v8890_v52  ;;  %v14077_v9 = vld [vmem:[#allocation3 + $0x48] sm:$0xfe]  }
 0x6bb   :  { %v9626_v52 = vrot.slane %v14077_v9, 1  ;;  %v14106_v9 = vld [vmem:[#allocation3 + $0xb4] sm:$0xff]  }
 0x6bf   :  { %10793 = vmatmul.mubr.bf16.gmra.mrb[56].mxu1 %v14004_v44  ;;  %v14044_v44 = vld [vmem:[#allocation3 + $0x15c] sm:$0xfe]  }
 0x6c0   :  { %10800 = vmatprep.mubr.bf16.mxu1 %v8861_v3  ;;  %v8892_v3 = vrot.slane %v14044_v44, 1 }
 0x6c2   :  { %v8894_v26 = vsel %vm2173_vm8, %v8892_v3, %v8893_v19  ;;  %v14080_v3 = vld [vmem:[#allocation3 + $0x54] sm:$0xfe]  }
 0x6c3   :  { %v9629_v19 = vrot.slane %v14080_v3, 1  ;;  %v14109_v3 = vld [vmem:[#allocation3 + $0xc0] sm:$0xff]  }
 0x6c7   :  { %10801 = vmatmul.mubr.bf16.gmra.mrb[60].mxu1 %v14008_v25  ;;  %v14049_v25 = vld [vmem:[#allocation3 + $0x170] ss:$0 sps:$4 sm:$0x11]  }
 0x6c8   :  { %10808 = vmatprep.mubr.bf16.mxu1 %v8864_v7  ;;  %v14046_v7 = vld [vmem:[#allocation3 + $0x15c] sm:$0xff]   ;;  %v8896_v2 = vrot.slane %v14049_v25, 1 }
 0x6ca   :  { %v8897_v12 = vsel %vm2173_vm8, %v8895_v13, %v8896_v2  ;;  %v14083_v13 = vld [vmem:[#allocation3 + $0x60] sm:$0xfe]  }
 0x6cb   :  { %v9632_v2 = vrot.slane %v14083_v13, 1 }
 0x6cf   :  { %10809 = vmatmul.mubr.bf16.gmra.mrb[64].mxu1 %v14011_v28  ;;  %v14052_v28 = vld [vmem:[#allocation3 + $0x17c] ss:$0 sps:$4 sm:$0x11]  }
 0x6d0   :  { %10816 = vmatprep.mubr.bf16.mxu1 %v8867_v18  ;;  %v14050_v18 = vld [vmem:[#allocation3 + $0x168] sm:$0xff]   ;;  %v8899_v53 = vrot.slane %v14052_v28, 1 }
 0x6d2   :  { %v8900_v60 = vsel %vm2173_vm8, %v8898_v56, %v8899_v53  ;;  %v14086_v56 = vld [vmem:[#allocation3 + $0x6c] sm:$0xfe]  }
 0x6d3   :  { %v9635_v53 = vrot.slane %v14086_v56, 1 }
 0x6d7   :  { %10817 = vmatmul.mubr.bf16.gmra.mrb[68].mxu1 %v14015_v49  ;;  %v14056_v49 = vld [vmem:[#allocation3 + $0x188] ss:$0 sps:$4 sm:$0x11]  }
 0x6d8   :  { %10824 = vmatprep.mubr.bf16.mxu1 %v8870_v24  ;;  %v14053_v24 = vld [vmem:[#allocation3 + $0x174] sm:$0xff]   ;;  %v8902_v54 = vrot.slane %v14056_v49, 1 }
 0x6da   :  { %v8903_v50 = vsel %vm2173_vm8, %v8901_v10, %v8902_v54  ;;  %v14089_v10 = vld [vmem:[#allocation3 + $0x78] sm:$0xfe]  }
 0x6db   :  { %v9638_v54 = vrot.slane %v14089_v10, 1 }
 0x6df   :  { %10825 = vmatmul.mubr.bf16.gmra.mrb[72].mxu1 %v14018_v6  ;;  %v14059_v6 = vld [vmem:[#allocation3 + $0x194] ss:$0 sps:$4 sm:$0x11]  }
 0x6e0   :  { %10832 = vmatprep.mubr.bf16.mxu1 %v8873_v51  ;;  %v14057_v51 = vld [vmem:[#allocation3 + $0x180] sm:$0xff]   ;;  %v8905_v43 = vrot.slane %v14059_v6, 1 }
 0x6e2   :  { %v8906_v16 = vsel %vm2173_vm8, %v8904_v32, %v8905_v43  ;;  %v14092_v32 = vld [vmem:[#allocation3 + $0x84] sm:$0xfe]  }
 0x6e3   :  { %v9641_v43 = vrot.slane %v14092_v32, 1 }
 0x6e7   :  { %10833 = vmatmul.mubr.bf16.gmra.mrb[76].mxu1 %v14022_v14  ;;  %v14063_v14 = vld [vmem:[#allocation3 + $0x1a0] ss:$0 sps:$4 sm:$0x11]  }
 0x6e8   :  { %10840 = vmatprep.mubr.bf16.mxu1 %v8876_v23  ;;  %v14060_v23 = vld [vmem:[#allocation3 + $0x18c] sm:$0xff]   ;;  %v8908_v11 = vrot.slane %v14063_v14, 1 }
 0x6ea   :  { %v8909_v41 = vsel %vm2173_vm8, %v8907_v46, %v8908_v11  ;;  %v14095_v46 = vld [vmem:[#allocation3 + $0x90] sm:$0xfe]  }
 0x6eb   :  { %v9644_v11 = vrot.slane %v14095_v46, 1 }
 0x6ef   :  { %10841 = vmatmul.mubr.bf16.gmra.mrb[80].mxu1 %v14025_v22  ;;  %v14066_v22 = vld [vmem:[#allocation3 + $0x20] ss:$0 sps:$4 sm:$0x11]  }
 0x6f0   :  { %10848 = vmatprep.mubr.bf16.mxu1 %v8879_v62  ;;  %v14064_v62 = vld [vmem:[#allocation3 + $0x198] sm:$0xff]   ;;  %v9615_v42 = vrot.slane %v14066_v22, 1 }
 0x6f2   :  { %v9616_v29 = vsel %vm2173_vm8, %v9614_v57, %v9615_v42  ;;  %v14098_v57 = vld [vmem:[#allocation3 + $0x9c] sm:$0xfe]  }
 0x6f3   :  { %v9647_v42 = vrot.slane %v14098_v57, 1 }
 0x6f7   :  { %10849 = vmatmul.mubr.bf16.gmra.mrb[84].mxu1 %v14029_v39  ;;  %v14069_v39 = vld [vmem:[#allocation3 + $0x2c] ss:$0 sps:$4 sm:$0x11]  }
 0x6f8   :  { %10856 = vmatprep.mubr.bf16.mxu1 %v8882_v45  ;;  %v14067_v45 = vld [vmem:[#allocation3 + $0x18] sm:$0xff]   ;;  %v9618_v48 = vrot.slane %v14069_v39, 1 }
 0x6fa   :  { %v9619_v5 = vsel %vm2173_vm8, %v9617_v63, %v9618_v48  ;;  %v14101_v63 = vld [vmem:[#allocation3 + $0xa8] sm:$0xfe]  }
 0x6fb   :  { %v9650_v48 = vrot.slane %v14101_v63, 1 }
 0x6ff   :  { %10857 = vmatmul.mubr.bf16.gmra.mrb[88].mxu1 %v14032_v61  ;;  %v14072_v61 = vld [vmem:[#allocation3 + $0x38] ss:$0 sps:$4 sm:$0x11]  }
 0x700   :  { %10864 = vmatprep.mubr.bf16.mxu1 %v8885_v36  ;;  %v14070_v36 = vld [vmem:[#allocation3 + $0x24] sm:$0xff]   ;;  %v9621_v40 = vrot.slane %v14072_v61, 1 }
 0x702   :  { %v9622_v30 = vsel %vm2173_vm8, %v9620_v55, %v9621_v40  ;;  %v14104_v55 = vld [vmem:[#allocation3 + $0xb4] sm:$0xfe]  }
 0x703   :  { %v9653_v40 = vrot.slane %v14104_v55, 1 }
 0x707   :  { %10865 = vmatmul.mubr.bf16.gmra.mrb[92].mxu1 %v14036_v1  ;;  %v14075_v1 = vld [vmem:[#allocation3 + $0x44] ss:$0 sps:$4 sm:$0x11]  }
 0x708   :  { %10872 = vmatprep.mubr.bf16.mxu1 %v8888_v21  ;;  %v14073_v21 = vld [vmem:[#allocation3 + $0x30] sm:$0xff]   ;;  %v9624_v0 = vrot.slane %v14075_v1, 1 }
 0x70a   :  { %v9625_v8 = vsel %vm2173_vm8, %v9623_v27, %v9624_v0  ;;  %v14107_v27 = vld [vmem:[#allocation3 + $0xc0] sm:$0xfe]  }
 0x70b   :  { %v9656_v0 = vrot.slane %v14107_v27, 1 }
 0x70f   :  { %10873 = vmatmul.mubr.bf16.gmra.mrb[96].mxu1 %v14039_v15  ;;  %v14078_v15 = vld [vmem:[#allocation3 + $0x50] ss:$0 sps:$4 sm:$0x11]  }
 0x710   :  { %10880 = vmatprep.mubr.bf16.mxu1 %v8891_v35  ;;  %v14076_v35 = vld [vmem:[#allocation3 + $0x3c] sm:$0xff]   ;;  %v9627_v44 = vrot.slane %v14078_v15, 1  ;;  %v14110_v15 = vld [vmem:[#allocation3 + $0xcc] sm:$0xfe]  }
 0x712   :  { %v9628_v59 = vsel %vm2173_vm8, %v9626_v52, %v9627_v44  ;;  %v14111_v52 = vld [vmem:[#allocation3 + $0xd4] ss:$0 sps:$4 sm:$0x11]   ;;  %v9659_v44 = vrot.slane %v14110_v15, 1 }
 0x713   :  { %v14139_v15 = vld [vmem:[#allocation3 + $0x150] sm:$0xff]  }
 0x717   :  { %10881 = vmatmul.mubr.bf16.gmra.mrb[100].mxu1 %v14043_v38  ;;  %v14081_v38 = vld [vmem:[#allocation3 + $0x5c] ss:$0 sps:$4 sm:$0x11]  }
 0x718   :  { %10888 = vmatprep.mubr.bf16.mxu1 %v8894_v26  ;;  %v14079_v26 = vld [vmem:[#allocation3 + $0x48] sm:$0xff]   ;;  %v9630_v31 = vrot.slane %v14081_v38, 1 }
 0x71a   :  { %v9631_v25 = vsel %vm2173_vm8, %v9629_v19, %v9630_v31  ;;  %v14113_v19 = vld [vmem:[#allocation3 + $0xf0] sm:$0xfe]  }
 0x71b   :  { %v14112_v31 = vld [vmem:[#allocation3 + $0xcc] sm:$0xff]  }
 0x71f   :  { %10889 = vmatmul.mubr.bf16.gmra.mrb[104].mxu1 %v14046_v7  ;;  %v14084_v7 = vld [vmem:[#allocation3 + $0x68] ss:$0 sps:$4 sm:$0x11]  }
 0x720   :  { %10896 = vmatprep.mubr.bf16.mxu1 %v8897_v12  ;;  %v14082_v12 = vld [vmem:[#allocation3 + $0x54] sm:$0xff]   ;;  %v9633_v20 = vrot.slane %v14084_v7, 1 }
 0x722   :  { %v9634_v28 = vsel %vm2173_vm8, %v9632_v2, %v9633_v20  ;;  %v14116_v2 = vld [vmem:[#allocation3 + $0xfc] sm:$0xfe]  }
 0x723   :  { %v9665_v20 = vrot.slane %v14116_v2, 1 }
 0x727   :  { %10897 = vmatmul.mubr.bf16.gmra.mrb[108].mxu1 %v14050_v18  ;;  %v14087_v18 = vld [vmem:[#allocation3 + $0x74] ss:$0 sps:$4 sm:$0x11]  }
 0x728   :  { %10904 = vmatprep.mubr.bf16.mxu1 %v8900_v60  ;;  %v14085_v60 = vld [vmem:[#allocation3 + $0x60] sm:$0xff]   ;;  %v9636_v37 = vrot.slane %v14087_v18, 1 }
 0x72a   :  { %v9637_v49 = vsel %vm2173_vm8, %v9635_v53, %v9636_v37  ;;  %v14119_v53 = vld [vmem:[#allocation3 + $0x108] sm:$0xfe]  }
 0x72b   :  { %v9668_v37 = vrot.slane %v14119_v53, 1 }
 0x72f   :  { %10905 = vmatmul.mubr.bf16.gmra.mrb[112].mxu1 %v14053_v24  ;;  %v14090_v24 = vld [vmem:[#allocation3 + $0x80] ss:$0 sps:$4 sm:$0x11]  }
 0x730   :  { %10912 = vmatprep.mubr.bf16.mxu1 %v8903_v50  ;;  %v14088_v50 = vld [vmem:[#allocation3 + $0x6c] sm:$0xff]   ;;  %v9639_v17 = vrot.slane %v14090_v24, 1 }
 0x732   :  { %v9640_v6 = vsel %vm2173_vm8, %v9638_v54, %v9639_v17  ;;  %v14122_v54 = vld [vmem:[#allocation3 + $0x114] sm:$0xfe]  }
 0x733   :  { %v9671_v17 = vrot.slane %v14122_v54, 1  ;;  %v14152_v54 = vld [vmem:[#allocation3 + $0x18c] sm:$0xfe]  }
 0x737   :  { %10913 = vmatmul.mubr.bf16.gmra.mrb[116].mxu1 %v14057_v51  ;;  %v14093_v51 = vld [vmem:[#allocation3 + $0x8c] ss:$0 sps:$4 sm:$0x11]  }
 0x738   :  { %10920 = vmatprep.mubr.bf16.mxu1 %v8906_v16  ;;  %v14091_v16 = vld [vmem:[#allocation3 + $0x78] sm:$0xff]   ;;  %v9642_v58 = vrot.slane %v14093_v51, 1 }
 0x73a   :  { %v9643_v14 = vsel %vm2173_vm8, %v9641_v43, %v9642_v58  ;;  %v14125_v43 = vld [vmem:[#allocation3 + $0x120] sm:$0xfe]  }
 0x73b   :  { %v9674_v58 = vrot.slane %v14125_v43, 1 }
 0x73f   :  { %10921 = vmatmul.mubr.bf16.gmra.mrb[120].mxu1 %v14060_v23  ;;  %v14096_v23 = vld [vmem:[#allocation3 + $0x98] ss:$0 sps:$4 sm:$0x11]  }
 0x740   :  { %10928 = vmatprep.mubr.bf16.mxu1 %v8909_v41  ;;  %v14094_v41 = vld [vmem:[#allocation3 + $0x84] sm:$0xff]   ;;  %v9645_v47 = vrot.slane %v14096_v23, 1 }
 0x742   :  { %v9646_v22 = vsel %vm2173_vm8, %v9644_v11, %v9645_v47  ;;  %v14128_v11 = vld [vmem:[#allocation3 + $0x12c] sm:$0xfe]  }
 0x743   :  { %v9677_v47 = vrot.slane %v14128_v11, 1 }
 0x747   :  { %10929 = vmatmul.mubr.bf16.gmra.mrb[124].mxu1 %v14064_v62  ;;  %v14099_v62 = vld [vmem:[#allocation3 + $0xa4] ss:$0 sps:$4 sm:$0x11]  }
 0x748   :  { %10969 = vmatprep.mubr.bf16.mxu1 %v9616_v29  ;;  %v14097_v29 = vld [vmem:[#allocation3 + $0x90] sm:$0xff]   ;;  %v9648_v34 = vrot.slane %v14099_v62, 1 }
 0x74a   :  { %v9649_v39 = vsel %vm2173_vm8, %v9647_v42, %v9648_v34  ;;  %v14131_v42 = vld [vmem:[#allocation3 + $0x138] sm:$0xfe]  }
 0x74b   :  { %v9680_v34 = vrot.slane %v14131_v42, 1 }
 0x74f   :  { %10970 = vmatmul.mubr.bf16.vlgmr.msra.gmra.mrb[0].mxu1 %v14067_v45  ;;  %v14102_v45 = vld [vmem:[#allocation3 + $0xb0] ss:$0 sps:$4 sm:$0x11]  }
 0x750   :  { %10977 = vmatprep.mubr.bf16.mxu1 %v9619_v5  ;;  %v14100_v5 = vld [vmem:[#allocation3 + $0x9c] sm:$0xff]   ;;  %v9651_v33 = vrot.slane %v14102_v45, 1 }
 0x752   :  { %v9652_v61 = vsel %vm2173_vm8, %v9650_v48, %v9651_v33  ;;  %v14134_v48 = vld [vmem:[#allocation3 + $0x144] sm:$0xfe]  }
 0x753   :  { %v9683_v33 = vrot.slane %v14134_v48, 1 }
 0x757   :  { %10978 = vmatmul.mubr.bf16.gmra.mrb[4].mxu1 %v14070_v36  ;;  %v14105_v36 = vld [vmem:[#allocation3 + $0xbc] ss:$0 sps:$4 sm:$0x11]  }
 0x758   :  { %10985 = vmatprep.mubr.bf16.mxu1 %v9622_v30  ;;  %v14103_v30 = vld [vmem:[#allocation3 + $0xa8] sm:$0xff]   ;;  %v9654_v4 = vrot.slane %v14105_v36, 1 }
 0x75a   :  { %v9655_v1 = vsel %vm2173_vm8, %v9653_v40, %v9654_v4  ;;  %v14137_v40 = vld [vmem:[#allocation3 + $0x150] sm:$0xfe]  }
 0x75b   :  { %v9686_v4 = vrot.slane %v14137_v40, 1 }
 0x75f   :  { %10986 = vmatmul.mubr.bf16.gmra.mrb[8].mxu1 %v14073_v21  ;;  %v14108_v21 = vld [vmem:[#allocation3 + $0xc8] ss:$0 sps:$4 sm:$0x11]  }
 0x760   :  { %10993 = vmatprep.mubr.bf16.mxu1 %v9625_v8  ;;  %v9657_v8 = vrot.slane %v14108_v21, 1 }
 0x767   :  { %10994 = vmatmul.mubr.bf16.gmra.mrb[12].mxu1 %v14076_v35  ;;  %v9658_v35 = vsel %vm2173_vm8, %v9656_v0, %v9657_v8  ;;  %v14140_v0 = vld [vmem:[#allocation3 + $0x15c] sm:$0xfe]   ;;  %v14141_v8 = vld [vmem:[#allocation3 + $0x164] ss:$0 sps:$4 sm:$0x11]  }
 0x768   :  { %11001 = vmatprep.mubr.bf16.mxu1 %v9628_v59  ;;  %v9660_v59 = vrot.slane %v14111_v52, 1  ;;  %v9690_v52 = vrot.slane %v14141_v8, 1 }
 0x76a   :  { %v9661_v38 = vsel %vm2173_vm8, %v9659_v44, %v9660_v59  ;;  %v14143_v44 = vld [vmem:[#allocation3 + $0x168] sm:$0xfe]   ;;  %v14144_v59 = vld [vmem:[#allocation3 + $0x170] ss:$0 sps:$4 sm:$0x11]  }
 0x76f   :  { %11002 = vmatmul.mubr.bf16.gmra.mrb[16].mxu1 %v14079_v26  ;;  %v14114_v26 = vld [vmem:[#allocation3 + $0xf8] ss:$0 sps:$4 sm:$0x11]  }
 0x770   :  { %11009 = vmatprep.mubr.bf16.mxu1 %v9631_v25  ;;  %v9662_v25 = vrot.slane %v14113_v19, 1  ;;  %v9663_v13 = vrot.slane %v14114_v26, 1  ;;  %v9693_v19 = vrot.slane %v14144_v59, 1 }
 0x772   :  { %v9664_v7 = vsel %vm2173_vm8, %v9662_v25, %v9663_v13  ;;  %v14147_v25 = vld [vmem:[#allocation3 + $0x17c] ss:$0 sps:$4 sm:$0x11]  }
 0x773   :  { %v9696_v2 = vrot.slane %v14147_v25, 1 }
 0x777   :  { %11010 = vmatmul.mubr.bf16.gmra.mrb[20].mxu1 %v14082_v12  ;;  %v14117_v12 = vld [vmem:[#allocation3 + $0x104] ss:$0 sps:$4 sm:$0x11]  }
 0x778   :  { %11017 = vmatprep.mubr.bf16.mxu1 %v9634_v28  ;;  %v14115_v28 = vld [vmem:[#allocation3 + $0xf0] sm:$0xff]   ;;  %v9666_v56 = vrot.slane %v14117_v12, 1 }
 0x77a   :  { %v9667_v18 = vsel %vm2173_vm8, %v9665_v20, %v9666_v56  ;;  %v14149_v20 = vld [vmem:[#allocation3 + $0x180] sm:$0xfe]  }
 0x77b   :  { %v9698_v53 = vrot.slane %v14149_v20, 1 }
 0x77f   :  { %11018 = vmatmul.mubr.bf16.gmra.mrb[24].mxu1 %v14085_v60  ;;  %v14120_v60 = vld [vmem:[#allocation3 + $0x110] ss:$0 sps:$4 sm:$0x11]  }
 0x780   :  { %11025 = vmatprep.mubr.bf16.mxu1 %v9637_v49  ;;  %v14118_v49 = vld [vmem:[#allocation3 + $0xfc] sm:$0xff]   ;;  %v9669_v10 = vrot.slane %v14120_v60, 1 }
 0x782   :  { %v9670_v24 = vsel %vm2173_vm8, %v9668_v37, %v9669_v10 }
 0x787   :  { %11026 = vmatmul.mubr.bf16.gmra.mrb[28].mxu1 %v14088_v50  ;;  %v14123_v50 = vld [vmem:[#allocation3 + $0x11c] ss:$0 sps:$4 sm:$0x11]  }
 0x788   :  { %11033 = vmatprep.mubr.bf16.mxu1 %v9640_v6  ;;  %v14121_v6 = vld [vmem:[#allocation3 + $0x108] sm:$0xff]   ;;  %v9672_v32 = vrot.slane %v14123_v50, 1  ;;  %v14153_v50 = vld [vmem:[#allocation3 + $0x194] ss:$0 sps:$4 sm:$0x11]  }
 0x78a   :  { %v9673_v51 = vsel %vm2173_vm8, %v9671_v17, %v9672_v32  ;;  %v9701_v32 = vrot.slane %v14152_v54, 1 }
 0x78f   :  { %11034 = vmatmul.mubr.bf16.gmra.mrb[32].mxu1 %v14091_v16  ;;  %v14126_v16 = vld [vmem:[#allocation3 + $0x128] ss:$0 sps:$4 sm:$0x11]  }
 0x790   :  { %11041 = vmatprep.mubr.bf16.mxu1 %v9643_v14  ;;  %v14124_v14 = vld [vmem:[#allocation3 + $0x114] sm:$0xff]   ;;  %v9675_v46 = vrot.slane %v14126_v16, 1  ;;  %v14151_v16 = vld [vmem:[#allocation3 + $0x180] sm:$0xff]  }
 0x792   :  { %v9676_v23 = vsel %vm2173_vm8, %v9674_v58, %v9675_v46  ;;  %v9702_v58 = vrot.slane %v14153_v50, 1  ;;  %v14155_v46 = vld [vmem:[#allocation3 + $0x198] sm:$0xfe]  }
 0x797   :  { %11042 = vmatmul.mubr.bf16.gmra.mrb[36].mxu1 %v14094_v41  ;;  %v14129_v41 = vld [vmem:[#allocation3 + $0x134] ss:$0 sps:$4 sm:$0x11]  }
 0x798   :  { %11049 = vmatprep.mubr.bf16.mxu1 %v9646_v22  ;;  %v14127_v22 = vld [vmem:[#allocation3 + $0x120] sm:$0xff]   ;;  %v9678_v57 = vrot.slane %v14129_v41, 1 }
 0x79a   :  { %v9679_v62 = vsel %vm2173_vm8, %v9677_v47, %v9678_v57  ;;  %v9704_v47 = vrot.slane %v14155_v46, 1  ;;  %v14154_v57 = vld [vmem:[#allocation3 + $0x18c] sm:$0xff]  }
 0x79f   :  { %11050 = vmatmul.mubr.bf16.gmra.mrb[40].mxu1 %v14097_v29  ;;  %v14132_v29 = vld [vmem:[#allocation3 + $0x140] ss:$0 sps:$4 sm:$0x11]  }
 0x7a0   :  { %11057 = vmatprep.mubr.bf16.mxu1 %v9649_v39  ;;  %v14130_v39 = vld [vmem:[#allocation3 + $0x12c] sm:$0xff]   ;;  %v9681_v63 = vrot.slane %v14132_v29, 1  ;;  %v14158_v29 = vld [vmem:[#allocation3 + $0x1a4] sm:$0xfe]  }
 0x7a2   :  { %v9682_v45 = vsel %vm2173_vm8, %v9680_v34, %v9681_v63  ;;  %v14159_v34 = vld [vmem:[#allocation3 + $0x1ac] ss:$0 sps:$4 sm:$0x11]   ;;  %v9707_v63 = vrot.slane %v14158_v29, 1 }
 0x7a7   :  { %11058 = vmatmul.mubr.bf16.gmra.mrb[44].mxu1 %v14100_v5  ;;  %v14135_v5 = vld [vmem:[#allocation3 + $0x14c] ss:$0 sps:$4 sm:$0x11]  }
 0x7a8   :  { %11065 = vmatprep.mubr.bf16.mxu1 %v9652_v61  ;;  %v14133_v61 = vld [vmem:[#allocation3 + $0x138] sm:$0xff]   ;;  %v9684_v55 = vrot.slane %v14135_v5, 1 }
 0x7aa   :  { %v9685_v36 = vsel %vm2173_vm8, %v9683_v33, %v9684_v55  ;;  %v14157_v55 = vld [vmem:[#allocation3 + $0x198] sm:$0xff]  }
 0x7af   :  { %11066 = vmatmul.mubr.bf16.gmra.mrb[48].mxu1 %v14103_v30  ;;  %v14138_v30 = vld [vmem:[#allocation3 + $0x158] ss:$0 sps:$4 sm:$0x11]  }
 0x7b0   :  { %11073 = vmatprep.mubr.bf16.mxu1 %v9655_v1  ;;  %v14136_v1 = vld [vmem:[#allocation3 + $0x144] sm:$0xff]   ;;  %v9687_v27 = vrot.slane %v14138_v30, 1 }
 0x7b2   :  { %v9688_v21 = vsel %vm2173_vm8, %v9686_v4, %v9687_v27  ;;  %v14160_v4 = vld [vmem:[#allocation3 + $0x1a4] sm:$0xff]  }
 0x7b7   :  { %11074 = vmatmul.mubr.bf16.gmra.mrb[52].mxu1 %v14106_v9  ;;  %v9689_v9 = vrot.slane %v14140_v0, 1 }
 0x7b8   :  { %11081 = vmatprep.mubr.bf16.mxu1 %v9658_v35 }
 0x7b9   :  { %v9691_v35 = vsel %vm2173_vm8, %v9689_v9, %v9690_v52 }
 0x7bf   :  { %11082 = vmatmul.mubr.bf16.gmra.mrb[56].mxu1 %v14109_v3  ;;  %v9692_v3 = vrot.slane %v14143_v44, 1 }
 0x7c0   :  { %11089 = vmatprep.mubr.bf16.mxu1 %v9661_v38  ;;  %v14142_v38 = vld [vmem:[#allocation3 + $0x15c] sm:$0xff]  }
 0x7c1   :  { %v9694_v26 = vsel %vm2173_vm8, %v9692_v3, %v9693_v19 }
 0x7c7   :  { %11090 = vmatmul.mubr.bf16.gmra.mrb[60].mxu1 %v14112_v31  ;;  %v14146_v31 = vld [vmem:[#allocation3 + $0x174] sm:$0xfe]  }
 0x7c8   :  { %11097 = vmatprep.mubr.bf16.mxu1 %v9664_v7  ;;  %v9695_v13 = vrot.slane %v14146_v31, 1  ;;  %v14145_v7 = vld [vmem:[#allocation3 + $0x168] sm:$0xff]  }
 0x7ca   :  { %v9697_v12 = vsel %vm2173_vm8, %v9695_v13, %v9696_v2 }
 0x7cf   :  { %11098 = vmatmul.mubr.bf16.gmra.mrb[64].mxu1 %v14115_v28  ;;  %v14150_v28 = vld [vmem:[#allocation3 + $0x188] ss:$0 sps:$4 sm:$0x11]  }
 0x7d0   :  { %11105 = vmatprep.mubr.bf16.mxu1 %v9667_v18  ;;  %v9699_v10 = vrot.slane %v14150_v28, 1 }
 0x7d7   :  { %11106 = vmatmul.mubr.bf16.gmra.mrb[68].mxu1 %v14118_v49  ;;  %v14148_v49 = vld [vmem:[#allocation3 + $0x174] sm:$0xff]  }
 0x7d8   :  { %11113 = vmatprep.mubr.bf16.mxu1 %v9670_v24  ;;  %v9700_v24 = vsel %vm2173_vm8, %v9698_v53, %v9699_v10 }
 0x7df   :  { %11114 = vmatmul.mubr.bf16.gmra.mrb[72].mxu1 %v14121_v6 }
 0x7e0   :  { %11121 = vmatprep.mubr.bf16.mxu1 %v9673_v51 }
 0x7e7   :  { %11122 = vmatmul.mubr.bf16.gmra.mrb[76].mxu1 %v14124_v14  ;;  %v9703_v14 = vsel %vm2173_vm8, %v9701_v32, %v9702_v58 }
 0x7e8   :  { %11129 = vmatprep.mubr.bf16.mxu1 %v9676_v23  ;;  %v14156_v23 = vld [vmem:[#allocation3 + $0x1a0] ss:$0 sps:$4 sm:$0x11]  }
 0x7ef   :  { %11130 = vmatmul.mubr.bf16.gmra.mrb[80].mxu1 %v14127_v22 }
 0x7f0   :  { %11137 = vmatprep.mubr.bf16.mxu1 %v9679_v62  ;;  %v9705_v62 = vrot.slane %v14156_v23, 1 }
 0x7f7   :  { %11138 = vmatmul.mubr.bf16.gmra.mrb[84].mxu1 %v14130_v39  ;;  %v9706_v39 = vsel %vm2173_vm8, %v9704_v47, %v9705_v62 }
 0x7f8   :  { %11145 = vmatprep.mubr.bf16.mxu1 %v9682_v45  ;;  %v9708_v45 = vrot.slane %v14159_v34, 1 }
 0x7ff   :  { %11146 = vmatmul.mubr.bf16.gmra.mrb[88].mxu1 %v14133_v61 }
 0x800   :  { %11153 = vmatprep.mubr.bf16.mxu1 %v9685_v36  ;;  %v9709_v36 = vsel %vm2173_vm8, %v9707_v63, %v9708_v45 }
 0x807   :  { %11154 = vmatmul.mubr.bf16.gmra.mrb[92].mxu1 %v14136_v1 }
 0x808   :  { %11161 = vmatprep.mubr.bf16.mxu1 %v9688_v21 }
 0x80f   :  { %11162 = vmatmul.mubr.bf16.gmra.mrb[96].mxu1 %v14139_v15 }
 0x810   :  { %11169 = vmatprep.mubr.bf16.mxu1 %v9691_v35 }
 0x817   :  { %11170 = vmatmul.mubr.bf16.gmra.mrb[100].mxu1 %v14142_v38 }
 0x818   :  { %11177 = vmatprep.mubr.bf16.mxu1 %v9694_v26  ;;  %v17956_v26 = vld [vmem:[%s19389_s7] ss:$0 sm:$0xff] }
 0x81f   :  { %11178 = vmatmul.mubr.bf16.gmra.mrb[104].mxu1 %v14145_v7 }
 0x820   :  { %11185 = vmatprep.mubr.bf16.mxu1 %v9697_v12 }
 0x822   :  { %v17927_v56 = vpop.f32.mrb[0].mxu1 }
 0x823   :  { %v10973_v18 = vpop.f32.mrb[1].mxu1  ;;  %v17963_v25 = vadd.f32 %v17956_v26, %v17927_v56 }
 0x824   :  { %v10974_v60 = vpop.f32.mrb[2].mxu1 }
 0x825   :  { %v10976_v37 = vpop.f32.mrb[3].mxu1  ;;  %v17959_v31 = vadd.f32 %v17956_v26, %v10974_v60  ;;  %v11359_v28 = vmul.f32 %v17963_v25, %v17963_v25 }
 0x826   :  { %v11226_v37 = vsel %vm5387_vm10, %v17963_v25, 0.0 }
 0x827   :  { %11186 = vmatmul.mubr.bf16.gmra.mrb[108].mxu1 %v14148_v49  ;;  %v11360_v2 = vmul.f32 %v17959_v31, %v17959_v31  ;;  %v11227_v18 = vsel %vm5387_vm10, %v17959_v31, 0.0  ;;  %v11423_v50 = vsel %vm5387_vm10, %v11359_v28, 0.0 }
 0x828   :  { %11193 = vmatprep.mubr.bf16.mxu1 %v9700_v24  ;;  %v11228_v54 = vadd.f32 %v11227_v18, %v11226_v37 }
 0x829   :  { %v11424_v49 = vsel %vm5387_vm10, %v11360_v2, 0.0 }
 0x82a   :  { %v10979_v17 = vpop.f32.mrb[4].mxu1  ;;  %v11425_v32 = vadd.f32 %v11424_v49, %v11423_v50 }
 0x82b   :  { %v10981_v6 = vpop.f32.mrb[5].mxu1  ;;  %v17966_v13 = vadd.f32 %v17956_v26, %v10979_v17 }
 0x82c   :  { %v10982_v51 = vpop.f32.mrb[6].mxu1 }
 0x82d   :  { %v10984_v43 = vpop.f32.mrb[7].mxu1  ;;  %v11361_v56 = vmul.f32 %v17966_v13, %v17966_v13  ;;  %v17981_v53 = vadd.f32 %v17956_v26, %v10982_v51  ;;  %v11229_v10 = vsel %vm5387_vm10, %v17966_v13, 0.0 }
 0x82e   :  { %v11230_v51 = vadd.f32 %v11229_v10, %v11228_v54 }
 0x82f   :  { %11194 = vmatmul.mubr.bf16.gmra.mrb[112].mxu1 %v14151_v16  ;;  %v11426_v17 = vsel %vm5387_vm10, %v11361_v56, 0.0  ;;  %v11362_v6 = vmul.f32 %v17981_v53, %v17981_v53  ;;  %v11231_v16 = vsel %vm5387_vm10, %v17981_v53, 0.0 }
 0x830   :  { %11201 = vmatprep.mubr.bf16.mxu1 %v9703_v14  ;;  %v11427_v23 = vadd.f32 %v11426_v17, %v11425_v32 }
 0x832   :  { %v10987_v11 = vpop.f32.mrb[8].mxu1 }
 0x833   :  { %v10989_v41 = vpop.f32.mrb[9].mxu1  ;;  %v17989_v24 = vadd.f32 %v17956_v26, %v10987_v11 }
 0x834   :  { %v17931_v22 = vpop.f32.mrb[10].mxu1  ;;  %v11428_v41 = vsel %vm5387_vm10, %v11362_v6, 0.0 }
 0x835   :  { %v10992_v42 = vpop.f32.mrb[11].mxu1  ;;  %v11363_v58 = vmul.f32 %v17989_v24, %v17989_v24  ;;  %v18003_v14 = vadd.f32 %v17956_v26, %v17931_v22  ;;  %v11233_v47 = vsel %vm5387_vm10, %v17989_v24, 0.0  ;;  %v11429_v34 = vadd.f32 %v11428_v41, %v11427_v23 }
 0x836   :  { %v11232_v42 = vadd.f32 %v11231_v16, %v11230_v51 }
 0x837   :  { %11202 = vmatmul.mubr.bf16.gmra.mrb[116].mxu1 %v14154_v57  ;;  %v11430_v29 = vsel %vm5387_vm10, %v11363_v58, 0.0  ;;  %v11364_v22 = vmul.f32 %v18003_v14, %v18003_v14  ;;  %v11235_v63 = vsel %vm5387_vm10, %v18003_v14, 0.0 }
 0x838   :  { %11209 = vmatprep.mubr.bf16.mxu1 %v9706_v39  ;;  %v11234_v39 = vadd.f32 %v11233_v47, %v11232_v42 }
 0x83a   :  { %v10995_v48 = vpop.f32.mrb[12].mxu1 }
 0x83b   :  { %v10997_v5 = vpop.f32.mrb[13].mxu1  ;;  %v18011_v57 = vadd.f32 %v17956_v26, %v10995_v48  ;;  %v11431_v48 = vadd.f32 %v11430_v29, %v11429_v34 }
 0x83c   :  { %v17934_v33 = vpop.f32.mrb[14].mxu1 }
 0x83d   :  { %v11000_v61 = vpop.f32.mrb[15].mxu1  ;;  %v11365_v45 = vmul.f32 %v18011_v57, %v18011_v57  ;;  %v18022_v5 = vadd.f32 %v17956_v26, %v17934_v33 }
 0x83f   :  { %11210 = vmatmul.mubr.bf16.gmra.mrb[120].mxu1 %v14157_v55  ;;  %v11432_v55 = vsel %vm5387_vm10, %v11364_v22, 0.0  ;;  %v11366_v33 = vmul.f32 %v18022_v5, %v18022_v5 }
 0x840   :  { %11217 = vmatprep.mubr.bf16.mxu1 %v9709_v36  ;;  %v11237_v36 = vsel %vm5387_vm10, %v18011_v57, 0.0 }
 0x841   :  { %v11436_v28 = vsel %vm5387_vm10, %v11366_v33, 0.0 }
 0x842   :  { %v17937_v40 = vpop.f32.mrb[16].mxu1 }
 0x843   :  { %v11005_v30 = vpop.f32.mrb[17].mxu1 }
 0x844   :  { %v17939_v1 = vpop.f32.mrb[18].mxu1  ;;  %v18031_v30 = vadd.f32 %v17956_v26, %v17937_v40 }
 0x845   :  { %v11008_v27 = vpop.f32.mrb[19].mxu1  ;;  %v18044_v40 = vadd.f32 %v17956_v26, %v17939_v1 }
 0x846   :  { %v11236_v27 = vadd.f32 %v11235_v63, %v11234_v39  ;;  %v11367_v2 = vmul.f32 %v18031_v30, %v18031_v30  ;;  %v11241_v18 = vsel %vm5387_vm10, %v18031_v30, 0.0 }
 0x847   :  { %11218 = vmatmul.mubr.bf16.gmra.mrb[124].mxu1 %v14160_v4  ;;  %v11368_v10 = vmul.f32 %v18044_v40, %v18044_v40  ;;  %v11243_v6 = vsel %vm5387_vm10, %v18044_v40, 0.0 }
 0x848   :  { %v11438_v49 = vsel %vm5387_vm10, %v11367_v2, 0.0 }
 0x849   :  { %v11440_v58 = vsel %vm5387_vm10, %v11368_v10, 0.0 }
 0x84a   :  { %v17941_v21 = vpop.f32.mrb[20].mxu1 }
 0x84b   :  { %v11013_v0 = vpop.f32.mrb[21].mxu1  ;;  %v18051_v56 = vadd.f32 %v17956_v26, %v17941_v21 }
 0x84c   :  { %v17943_v8 = vpop.f32.mrb[22].mxu1 }
 0x84d   :  { %v11016_v9 = vpop.f32.mrb[23].mxu1  ;;  %v11369_v21 = vmul.f32 %v18051_v56, %v18051_v56  ;;  %v18066_v32 = vadd.f32 %v17956_v26, %v17943_v8 }
 0x84e   :  { %v11434_v9 = vsel %vm5387_vm10, %v11365_v45, 0.0 }
 0x84f   :  { %v11442_v47 = vsel %vm5387_vm10, %v11369_v21, 0.0  ;;  %v11247_v22 = vsel %vm5387_vm10, %v18066_v32, 0.0 }
 0x852   :  { %v17945_v15 = vpop.f32.mrb[24].mxu1 }
 0x853   :  { %v11021_v52 = vpop.f32.mrb[25].mxu1  ;;  %v18073_v23 = vadd.f32 %v17956_v26, %v17945_v15 }
 0x854   :  { %v17947_v35 = vpop.f32.mrb[26].mxu1 }
 0x855   :  { %v11024_v44 = vpop.f32.mrb[27].mxu1  ;;  %v11371_v34 = vmul.f32 %v18073_v23, %v18073_v23  ;;  %v18086_v15 = vadd.f32 %v17956_v26, %v17947_v35 }
 0x856   :  { %v11433_v44 = vadd.f32 %v11432_v55, %v11431_v48  ;;  %v11249_v55 = vsel %vm5387_vm10, %v18073_v23, 0.0 }
 0x857   :  { %v11372_v35 = vmul.f32 %v18086_v15, %v18086_v15 }
 0x85a   :  { %v17949_v59 = vpop.f32.mrb[28].mxu1 }
 0x85b   :  { %v11029_v3 = vpop.f32.mrb[29].mxu1 }
 0x85c   :  { %v17951_v38 = vpop.f32.mrb[30].mxu1  ;;  %v11238_v3 = vadd.f32 %v11237_v36, %v11236_v27  ;;  %v18095_v36 = vadd.f32 %v17956_v26, %v17949_v59 }
 0x85d   :  { %v11032_v19 = vpop.f32.mrb[31].mxu1 }
 0x85e   :  { %v11239_v19 = vsel %vm5387_vm10, %v18022_v5, 0.0 }
 0x862   :  { %v17968_v7 = vpop.f32.mrb[32].mxu1 }
 0x863   :  { %v11037_v12 = vpop.f32.mrb[33].mxu1 }
 0x864   :  { %v17972_v20 = vpop.f32.mrb[34].mxu1  ;;  %v11435_v12 = vadd.f32 %v11434_v9, %v11433_v44  ;;  %v11446_v9 = vsel %vm5387_vm10, %v11371_v34, 0.0  ;;  %v11251_v44 = vsel %vm5387_vm10, %v18086_v15, 0.0 }
 0x865   :  { %v11040_v60 = vpop.f32.mrb[35].mxu1 }
 0x866   :  { %v11240_v60 = vadd.f32 %v11239_v19, %v11238_v3  ;;  %v11437_v54 = vadd.f32 %v11436_v28, %v11435_v12  ;;  %v11373_v3 = vmul.f32 %v18095_v36, %v18095_v36  ;;  %v18106_v19 = vadd.f32 %v17956_v26, %v17951_v38 }
 0x867   :  { %v11448_v12 = vsel %vm5387_vm10, %v11372_v35, 0.0  ;;  %v11253_v28 = vsel %vm5387_vm10, %v18095_v36, 0.0 }
 0x868   :  { %v11242_v50 = vadd.f32 %v11241_v18, %v11240_v60  ;;  %v11439_v16 = vadd.f32 %v11438_v49, %v11437_v54  ;;  %v18115_v18 = vadd.f32 %v17956_v26, %v17968_v7  ;;  %v11374_v38 = vmul.f32 %v18106_v19, %v18106_v19 }
 0x869   :  { %v11255_v21 = vsel %vm5387_vm10, %v18106_v19, 0.0  ;;  %v18128_v7 = vadd.f32 %v17956_v26, %v17972_v20 }
 0x86a   :  { %v17995_v43 = vpop.f32.mrb[36].mxu1  ;;  %v11244_v41 = vadd.f32 %v11243_v6, %v11242_v50  ;;  %v11441_v42 = vadd.f32 %v11440_v58, %v11439_v16  ;;  %v11452_v58 = vsel %vm5387_vm10, %v11374_v38, 0.0 }
 0x86b   :  { %v11045_v46 = vpop.f32.mrb[37].mxu1 }
 0x86c   :  { %v18005_v11 = vpop.f32.mrb[38].mxu1  ;;  %v11245_v46 = vsel %vm5387_vm10, %v18051_v56, 0.0  ;;  %v11443_v63 = vadd.f32 %v11442_v47, %v11441_v42 }
 0x86d   :  { %v11048_v62 = vpop.f32.mrb[39].mxu1  ;;  %v11246_v8 = vadd.f32 %v11245_v46, %v11244_v41  ;;  %v11257_v46 = vsel %vm5387_vm10, %v18115_v18, 0.0  ;;  %v18135_v41 = vadd.f32 %v17956_v26, %v17995_v43 }
 0x86e   :  { %v11370_v62 = vmul.f32 %v18066_v32, %v18066_v32 }
 0x86f   :  { %v11248_v27 = vadd.f32 %v11247_v22, %v11246_v8  ;;  %v11376_v8 = vmul.f32 %v18128_v7, %v18128_v7  ;;  %v11377_v43 = vmul.f32 %v18135_v41, %v18135_v41 }
 0x870   :  { %v11444_v48 = vsel %vm5387_vm10, %v11370_v62, 0.0 }
 0x871   :  { %v11445_v33 = vadd.f32 %v11444_v48, %v11443_v63  ;;  %v11259_v63 = vsel %vm5387_vm10, %v18128_v7, 0.0  ;;  %v18150_v48 = vadd.f32 %v17956_v26, %v18005_v11 }
 0x872   :  { %v18024_v61 = vpop.f32.mrb[40].mxu1 }
 0x873   :  { %v11053_v4 = vpop.f32.mrb[41].mxu1  ;;  %v11447_v59 = vadd.f32 %v11446_v9, %v11445_v33  ;;  %v11261_v9 = vsel %vm5387_vm10, %v18135_v41, 0.0  ;;  %v18157_v35 = vadd.f32 %v17956_v26, %v18024_v61 }
 0x874   :  { %v18033_v0 = vpop.f32.mrb[42].mxu1 }
 0x875   :  { %v11056_v52 = vpop.f32.mrb[43].mxu1  ;;  %v11449_v50 = vadd.f32 %v11448_v12, %v11447_v59  ;;  %v11263_v12 = vsel %vm5387_vm10, %v18150_v48, 0.0  ;;  %v18170_v61 = vadd.f32 %v17956_v26, %v18033_v0 }
 0x876   :  { %v11250_v52 = vadd.f32 %v11249_v55, %v11248_v27  ;;  %v11456_v27 = vsel %vm5387_vm10, %v11376_v8, 0.0 }
 0x877   :  { %v11380_v0 = vmul.f32 %v18170_v61, %v18170_v61 }
 0x878   :  { %v11252_v49 = vadd.f32 %v11251_v44, %v11250_v52  ;;  %v11458_v52 = vsel %vm5387_vm10, %v11377_v43, 0.0  ;;  %v11378_v44 = vmul.f32 %v18150_v48, %v18150_v48 }
 0x87a   :  { %v18053_v37 = vpop.f32.mrb[44].mxu1  ;;  %v11254_v6 = vadd.f32 %v11253_v28, %v11252_v49  ;;  %v11379_v28 = vmul.f32 %v18157_v35, %v18157_v35  ;;  %v11460_v38 = vsel %vm5387_vm10, %v11378_v44, 0.0 }
 0x87b   :  { %v11061_v1 = vpop.f32.mrb[45].mxu1 }
 0x87c   :  { %v18058_v17 = vpop.f32.mrb[46].mxu1  ;;  %v11450_v1 = vsel %vm5387_vm10, %v11373_v3, 0.0  ;;  %v11256_v47 = vadd.f32 %v11255_v21, %v11254_v6 }
 0x87d   :  { %v11064_v51 = vpop.f32.mrb[47].mxu1  ;;  %v11451_v16 = vadd.f32 %v11450_v1, %v11449_v50  ;;  %v18179_v50 = vadd.f32 %v17956_v26, %v18053_v37 }
 0x87e   :  { %v11375_v51 = vmul.f32 %v18115_v18, %v18115_v18  ;;  %v11258_v34 = vadd.f32 %v11257_v46, %v11256_v47  ;;  %v11267_v46 = vsel %vm5387_vm10, %v18170_v61, 0.0 }
 0x87f   :  { %v11453_v22 = vadd.f32 %v11452_v58, %v11451_v16  ;;  %v11381_v47 = vmul.f32 %v18179_v50, %v18179_v50 }
 0x880   :  { %v11454_v42 = vsel %vm5387_vm10, %v11375_v51, 0.0  ;;  %v11260_v33 = vadd.f32 %v11259_v63, %v11258_v34  ;;  %v11462_v51 = vsel %vm5387_vm10, %v11379_v28, 0.0 }
 0x882   :  { %v18078_v29 = vpop.f32.mrb[48].mxu1  ;;  %v11262_v11 = vadd.f32 %v11261_v9, %v11260_v33 }
 0x883   :  { %v11069_v39 = vpop.f32.mrb[49].mxu1  ;;  %v18199_v34 = vadd.f32 %v17956_v26, %v18078_v29 }
 0x884   :  { %v18088_v45 = vpop.f32.mrb[50].mxu1  ;;  %v11264_v21 = vadd.f32 %v11263_v12, %v11262_v11 }
 0x885   :  { %v11072_v4 = vpop.f32.mrb[51].mxu1  ;;  %v11383_v44 = vmul.f32 %v18199_v34, %v18199_v34  ;;  %v18212_v29 = vadd.f32 %v17956_v26, %v18088_v45  ;;  %v11273_v12 = vsel %vm5387_vm10, %v18199_v34, 0.0 }
 0x886   :  { %v11455_v4 = vadd.f32 %v11454_v42, %v11453_v22  ;;  %v18190_v42 = vadd.f32 %v17956_v26, %v18058_v17  ;;  %v11269_v22 = vsel %vm5387_vm10, %v18179_v50, 0.0 }
 0x888   :  { %v11457_v3 = vadd.f32 %v11456_v27, %v11455_v4  ;;  %v11466_v4 = vsel %vm5387_vm10, %v11381_v47, 0.0  ;;  %v11382_v17 = vmul.f32 %v18190_v42, %v18190_v42 }
 0x88a   :  { %v18108_v2 = vpop.f32.mrb[52].mxu1  ;;  %v11459_v49 = vadd.f32 %v11458_v52, %v11457_v3  ;;  %v11271_v52 = vsel %vm5387_vm10, %v18190_v42, 0.0  ;;  %v11468_v11 = vsel %vm5387_vm10, %v11382_v17, 0.0 }
 0x88b   :  { %v11077_v60 = vpop.f32.mrb[53].mxu1  ;;  %v18219_v28 = vadd.f32 %v17956_v26, %v18108_v2 }
 0x88c   :  { %v18117_v10 = vpop.f32.mrb[54].mxu1  ;;  %v11461_v16 = vadd.f32 %v11460_v38, %v11459_v49  ;;  %v11470_v38 = vsel %vm5387_vm10, %v11383_v44, 0.0 }
 0x88d   :  { %v11080_v54 = vpop.f32.mrb[55].mxu1  ;;  %v18232_v2 = vadd.f32 %v17956_v26, %v18117_v10 }
 0x88e   :  { %v11265_v54 = vsel %vm5387_vm10, %v18157_v35, 0.0  ;;  %v11463_v37 = vadd.f32 %v11462_v51, %v11461_v16  ;;  %v11385_v16 = vmul.f32 %v18219_v28, %v18219_v28 }
 0x88f   :  { %v11266_v58 = vadd.f32 %v11265_v54, %v11264_v21  ;;  %v11384_v54 = vmul.f32 %v18212_v29, %v18212_v29 }
 0x891   :  { %v11268_v43 = vadd.f32 %v11267_v46, %v11266_v58  ;;  %v11472_v47 = vsel %vm5387_vm10, %v11384_v54, 0.0 }
 0x892   :  { %v18137_v62 = vpop.f32.mrb[56].mxu1 }
 0x893   :  { %v11085_v20 = vpop.f32.mrb[57].mxu1  ;;  %v11270_v33 = vadd.f32 %v11269_v22, %v11268_v43  ;;  %v11386_v43 = vmul.f32 %v18232_v2, %v18232_v2 }
 0x894   :  { %v18142_v39 = vpop.f32.mrb[58].mxu1  ;;  %v11464_v20 = vsel %vm5387_vm10, %v11380_v0, 0.0  ;;  %v11275_v0 = vsel %vm5387_vm10, %v18212_v29, 0.0 }
 0x895   :  { %v11088_v55 = vpop.f32.mrb[59].mxu1  ;;  %v11465_v9 = vadd.f32 %v11464_v20, %v11463_v37  ;;  %v11277_v37 = vsel %vm5387_vm10, %v18219_v28, 0.0  ;;  %v18239_v20 = vadd.f32 %v17956_v26, %v18137_v62 }
 0x897   :  { %v11467_v3 = vadd.f32 %v11466_v4, %v11465_v9  ;;  %v11387_v9 = vmul.f32 %v18239_v20, %v18239_v20 }
 0x899   :  { %v11469_v45 = vadd.f32 %v11468_v11, %v11467_v3  ;;  %v11476_v3 = vsel %vm5387_vm10, %v11386_v43, 0.0  ;;  %v11281_v11 = vsel %vm5387_vm10, %v18239_v20, 0.0  ;;  %v11478_v54 = vsel %vm5387_vm10, %v11387_v9, 0.0 }
 0x89a   :  { %v18162_v59 = vpop.f32.mrb[60].mxu1 }
 0x89b   :  { %v11093_v60 = vpop.f32.mrb[61].mxu1  ;;  %v11471_v46 = vadd.f32 %v11470_v38, %v11469_v45 }
 0x89c   :  { %v18172_v1 = vpop.f32.mrb[62].mxu1  ;;  %v11272_v60 = vadd.f32 %v11271_v52, %v11270_v33  ;;  %v18250_v33 = vadd.f32 %v17956_v26, %v18142_v39 }
 0x89d   :  { %v11096_v6 = vpop.f32.mrb[63].mxu1  ;;  %v11473_v4 = vadd.f32 %v11472_v47, %v11471_v46 }
 0x89e   :  { %v11274_v21 = vadd.f32 %v11273_v12, %v11272_v60  ;;  %v18257_v12 = vadd.f32 %v17956_v26, %v18162_v59  ;;  %v11388_v39 = vmul.f32 %v18250_v33, %v18250_v33 }
 0x8a0   :  { %v11276_v22 = vadd.f32 %v11275_v0, %v11274_v21  ;;  %v11283_v21 = vsel %vm5387_vm10, %v18250_v33, 0.0  ;;  %v11389_v0 = vmul.f32 %v18257_v12, %v18257_v12  ;;  %v11480_v46 = vsel %vm5387_vm10, %v11388_v39, 0.0 }
 0x8a1   :  { %v11285_v47 = vsel %vm5387_vm10, %v18257_v12, 0.0 }
 0x8a2   :  { %v18192_v8 = vpop.f32.mrb[64].mxu1  ;;  %v11278_v10 = vadd.f32 %v11277_v37, %v11276_v22 }
 0x8a3   :  { %v11101_v63 = vpop.f32.mrb[65].mxu1  ;;  %v18275_v37 = vadd.f32 %v17956_v26, %v18192_v8 }
 0x8a4   :  { %v18201_v55 = vpop.f32.mrb[66].mxu1  ;;  %v11474_v63 = vsel %vm5387_vm10, %v11385_v16, 0.0  ;;  %v18268_v16 = vadd.f32 %v17956_v26, %v18172_v1 }
 0x8a5   :  { %v11104_v27 = vpop.f32.mrb[67].mxu1  ;;  %v11475_v52 = vadd.f32 %v11474_v63, %v11473_v4  ;;  %v11482_v4 = vsel %vm5387_vm10, %v11389_v0, 0.0  ;;  %v18286_v8 = vadd.f32 %v17956_v26, %v18201_v55 }
 0x8a6   :  { %v11279_v27 = vsel %vm5387_vm10, %v18232_v2, 0.0  ;;  %v11390_v1 = vmul.f32 %v18268_v16, %v18268_v16 }
 0x8a7   :  { %v11280_v38 = vadd.f32 %v11279_v27, %v11278_v10 }
 0x8a9   :  { %v11282_v45 = vadd.f32 %v11281_v11, %v11280_v38  ;;  %v11484_v11 = vsel %vm5387_vm10, %v11390_v1, 0.0 }
 0x8aa   :  { %v11107_v49 = vpop.f32.mrb[68].mxu1 }
 0x8ab   :  { %v11109_v6 = vpop.f32.mrb[69].mxu1  ;;  %v11284_v63 = vadd.f32 %v11283_v21, %v11282_v45  ;;  %v18292_v38 = vadd.f32 %v17956_v26, %v11107_v49  ;;  %v11392_v45 = vmul.f32 %v18286_v8, %v18286_v8 }
 0x8ac   :  { %v18224_v51 = vpop.f32.mrb[70].mxu1  ;;  %v11477_v6 = vadd.f32 %v11476_v3, %v11475_v52  ;;  %v11391_v52 = vmul.f32 %v18275_v37, %v18275_v37 }
 0x8ad   :  { %v11112_v58 = vpop.f32.mrb[71].mxu1  ;;  %v11286_v9 = vadd.f32 %v11285_v47, %v11284_v63  ;;  %v11393_v47 = vmul.f32 %v18292_v38, %v18292_v38  ;;  %v18303_v49 = vadd.f32 %v17956_v26, %v18224_v51  ;;  %v11293_v1 = vsel %vm5387_vm10, %v18292_v38, 0.0 }
 0x8ae   :  { %v11479_v59 = vadd.f32 %v11478_v54, %v11477_v6  ;;  %v11486_v6 = vsel %vm5387_vm10, %v11391_v52, 0.0 }
 0x8b0   :  { %v11481_v27 = vadd.f32 %v11480_v46, %v11479_v59  ;;  %v11291_v46 = vsel %vm5387_vm10, %v18286_v8, 0.0 }
 0x8b2   :  { %v11115_v17 = vpop.f32.mrb[72].mxu1  ;;  %v11483_v3 = vadd.f32 %v11482_v4, %v11481_v27  ;;  %v11488_v4 = vsel %vm5387_vm10, %v11392_v45, 0.0 }
 0x8b3   :  { %v11117_v62 = vpop.f32.mrb[73].mxu1 }
 0x8b4   :  { %v11118_v44 = vpop.f32.mrb[74].mxu1  ;;  %v11287_v62 = vsel %vm5387_vm10, %v18268_v16, 0.0  ;;  %v11485_v0 = vadd.f32 %v11484_v11, %v11483_v3  ;;  %v11295_v11 = vsel %vm5387_vm10, %v18303_v49, 0.0 }
 0x8b5   :  { %v11120_v60 = vpop.f32.mrb[75].mxu1  ;;  %v11288_v54 = vadd.f32 %v11287_v62, %v11286_v9  ;;  %v11490_v9 = vsel %vm5387_vm10, %v11393_v47, 0.0  ;;  %v11394_v62 = vmul.f32 %v18303_v49, %v18303_v49 }
 0x8b6   :  { %v11289_v60 = vsel %vm5387_vm10, %v18275_v37, 0.0  ;;  %v11487_v63 = vadd.f32 %v11486_v6, %v11485_v0 }
 0x8b7   :  { %v11290_v55 = vadd.f32 %v11289_v60, %v11288_v54  ;;  %v18319_v54 = vadd.f32 %v17956_v26, %v11118_v44 }
 0x8b8   :  { %v11489_v52 = vadd.f32 %v11488_v4, %v11487_v63 }
 0x8b9   :  { %v11292_v27 = vadd.f32 %v11291_v46, %v11290_v55  ;;  %v11396_v63 = vmul.f32 %v18319_v54, %v18319_v54 }
 0x8ba   :  { %v11123_v58 = vpop.f32.mrb[76].mxu1  ;;  %v11491_v6 = vadd.f32 %v11490_v9, %v11489_v52 }
 0x8bb   :  { %v11125_v22 = vpop.f32.mrb[77].mxu1  ;;  %v11294_v3 = vadd.f32 %v11293_v1, %v11292_v27  ;;  %v18325_v55 = vadd.f32 %v17956_v26, %v11123_v58  ;;  %v11299_v1 = vsel %vm5387_vm10, %v18319_v54, 0.0  ;;  %v11496_v52 = vsel %vm5387_vm10, %v11396_v63, 0.0 }
 0x8bc   :  { %v11126_v43 = vpop.f32.mrb[78].mxu1 }
 0x8bd   :  { %v11128_v10 = vpop.f32.mrb[79].mxu1  ;;  %v11296_v47 = vadd.f32 %v11295_v11, %v11294_v3  ;;  %v11397_v27 = vmul.f32 %v18325_v55, %v18325_v55  ;;  %v18335_v9 = vadd.f32 %v17956_v26, %v11126_v43  ;;  %v11301_v3 = vsel %vm5387_vm10, %v18325_v55, 0.0 }
 0x8be   :  { %v18309_v10 = vadd.f32 %v17956_v26, %v11115_v17 }
 0x8bf   :  { %19699 = vst [vmem:[#allocation8_spill] sm:$0xff] %v18335_v9 }
 0x8c0   :  { %v11395_v60 = vmul.f32 %v18309_v10, %v18309_v10  ;;  %v11297_v0 = vsel %vm5387_vm10, %v18309_v10, 0.0 }
 0x8c1   :  { %v11298_v4 = vadd.f32 %v11297_v0, %v11296_v47  ;;  %v11398_v0 = vmul.f32 %v18335_v9, %v18335_v9 }
 0x8c2   :  { %v11131_v39 = vpop.f32.mrb[80].mxu1 }
 0x8c3   :  { %v11133_v21 = vpop.f32.mrb[81].mxu1  ;;  %v18341_v11 = vadd.f32 %v17956_v26, %v11131_v39 }
 0x8c4   :  { %v11134_v59 = vpop.f32.mrb[82].mxu1  ;;  %v11492_v21 = vsel %vm5387_vm10, %v11394_v62, 0.0 }
 0x8c5   :  { %v11136_v22 = vpop.f32.mrb[83].mxu1  ;;  %v11493_v44 = vadd.f32 %v11492_v21, %v11491_v6  ;;  %19700 = vst [vmem:[#allocation10_spill] sm:$0xff] %v18341_v11  ;;  %v11498_v21 = vsel %vm5387_vm10, %v11397_v27, 0.0  ;;  %v11399_v63 = vmul.f32 %v18341_v11, %v18341_v11  ;;  %v18351_v39 = vadd.f32 %v17956_v26, %v11134_v59 }
 0x8c6   :  { %v11494_v22 = vsel %vm5387_vm10, %v11395_v60, 0.0 }
 0x8c7   :  { %v11495_v58 = vadd.f32 %v11494_v22, %v11493_v44  ;;  %v11303_v22 = vsel %vm5387_vm10, %v18335_v9, 0.0  ;;  %19701 = vst [vmem:[#allocation9_spill] sm:$0xff] %v18351_v39 }
 0x8ca   :  { %v11139_v51 = vpop.f32.mrb[84].mxu1 }
 0x8cb   :  { %v11141_v17 = vpop.f32.mrb[85].mxu1  ;;  %v18357_v27 = vadd.f32 %v17956_v26, %v11139_v51 }
 0x8cc   :  { %v11142_v45 = vpop.f32.mrb[86].mxu1  ;;  %v11300_v17 = vadd.f32 %v11299_v1, %v11298_v4  ;;  %v11500_v4 = vsel %vm5387_vm10, %v11398_v0, 0.0  ;;  %v11305_v1 = vsel %vm5387_vm10, %v18341_v11, 0.0 }
 0x8cd   :  { %v11144_v46 = vpop.f32.mrb[87].mxu1  ;;  %19702 = vst [vmem:[#allocation19_spill] sm:$0xff] %v18357_v27  ;;  %v11401_v0 = vmul.f32 %v18357_v27, %v18357_v27  ;;  %v18367_v51 = vadd.f32 %v17956_v26, %v11142_v45 }
 0x8ce   :  { %v11497_v46 = vadd.f32 %v11496_v52, %v11495_v58  ;;  %v11302_v47 = vadd.f32 %v11301_v3, %v11300_v17  ;;  %v11502_v3 = vsel %vm5387_vm10, %v11399_v63, 0.0  ;;  %v11309_v63 = vsel %vm5387_vm10, %v18357_v27, 0.0 }
 0x8cf   :  { %19703 = vst [vmem:[#allocation18_spill] sm:$0xff] %v18367_v51 }
 0x8d0   :  { %v11499_v44 = vadd.f32 %v11498_v21, %v11497_v46  ;;  %v11304_v58 = vadd.f32 %v11303_v22, %v11302_v47  ;;  %v11307_v21 = vsel %vm5387_vm10, %v18351_v39, 0.0 }
 0x8d2   :  { %v11147_v62 = vpop.f32.mrb[88].mxu1  ;;  %v11306_v59 = vadd.f32 %v11305_v1, %v11304_v58  ;;  %v11506_v1 = vsel %vm5387_vm10, %v11401_v0, 0.0  ;;  %v11402_v58 = vmul.f32 %v18367_v51, %v18367_v51 }
 0x8d3   :  { %v11149_v60 = vpop.f32.mrb[89].mxu1 }
 0x8d4   :  { %v11150_v6 = vpop.f32.mrb[90].mxu1  ;;  %v11400_v60 = vmul.f32 %v18351_v39, %v18351_v39 }
 0x8d5   :  { %v11152_v43 = vpop.f32.mrb[91].mxu1 }
 0x8d6   :  { %v11501_v43 = vadd.f32 %v11500_v4, %v11499_v44  ;;  %v11504_v22 = vsel %vm5387_vm10, %v11400_v60, 0.0  ;;  %v18373_v44 = vadd.f32 %v17956_v26, %v11147_v62  ;;  %v11308_v4 = vadd.f32 %v11307_v21, %v11306_v59 }
 0x8d7   :  { %v11508_v21 = vsel %vm5387_vm10, %v11402_v58, 0.0 }
 0x8d8   :  { %v11503_v47 = vadd.f32 %v11502_v3, %v11501_v43  ;;  %19704 = vst [vmem:[#allocation21_spill] sm:$0xff] %v18373_v44  ;;  %v11310_v39 = vadd.f32 %v11309_v63, %v11308_v4  ;;  %v11311_v3 = vsel %vm5387_vm10, %v18367_v51, 0.0  ;;  %v11403_v60 = vmul.f32 %v18373_v44, %v18373_v44 }
 0x8d9   :  { %v18383_v43 = vadd.f32 %v17956_v26, %v11150_v6  ;;  %v11313_v0 = vsel %vm5387_vm10, %v18373_v44, 0.0 }
 0x8da   :  { %v11155_v52 = vpop.f32.mrb[92].mxu1  ;;  %v11312_v63 = vadd.f32 %v11311_v3, %v11310_v39  ;;  %v11510_v4 = vsel %vm5387_vm10, %v11403_v60, 0.0 }
 0x8db   :  { %v11157_v17 = vpop.f32.mrb[93].mxu1  ;;  %19705 = vst [vmem:[#allocation20_spill] sm:$0xff] %v18383_v43  ;;  %v11404_v51 = vmul.f32 %v18383_v43, %v18383_v43 }
 0x8dc   :  { %v11158_v9 = vpop.f32.mrb[94].mxu1  ;;  %v11505_v17 = vadd.f32 %v11504_v22, %v11503_v47  ;;  %v18389_v47 = vadd.f32 %v17956_v26, %v11155_v52  ;;  %v11314_v27 = vadd.f32 %v11313_v0, %v11312_v63 }
 0x8dd   :  { %v11160_v46 = vpop.f32.mrb[95].mxu1  ;;  %v11512_v39 = vsel %vm5387_vm10, %v11404_v51, 0.0 }
 0x8de   :  { %v11507_v46 = vadd.f32 %v11506_v1, %v11505_v17  ;;  %19706 = vst [vmem:[#allocation25_spill] sm:$0xff] %v18389_v47  ;;  %v11315_v1 = vsel %vm5387_vm10, %v18383_v43, 0.0  ;;  %v11405_v58 = vmul.f32 %v18389_v47, %v18389_v47  ;;  %v18399_v17 = vadd.f32 %v17956_v26, %v11158_v9 }
 0x8df   :  { %v11317_v3 = vsel %vm5387_vm10, %v18389_v47, 0.0 }
 0x8e0   :  { %v11509_v6 = vadd.f32 %v11508_v21, %v11507_v46  ;;  %19707 = vst [vmem:[#allocation24_spill] sm:$0xff] %v18399_v17  ;;  %v11316_v21 = vadd.f32 %v11315_v1, %v11314_v27  ;;  %v11406_v63 = vmul.f32 %v18399_v17, %v18399_v17  ;;  %v11319_v51 = vsel %vm5387_vm10, %v18399_v17, 0.0 }
 0x8e2   :  { %v11163_v45 = vpop.f32.mrb[96].mxu1  ;;  %v11511_v52 = vadd.f32 %v11510_v4, %v11509_v6  ;;  %v11318_v4 = vadd.f32 %v11317_v3, %v11316_v21  ;;  %v11516_v27 = vsel %vm5387_vm10, %v11406_v63, 0.0 }
 0x8e3   :  { %v11165_v62 = vpop.f32.mrb[97].mxu1  ;;  %v18405_v60 = vadd.f32 %v17956_v26, %v11163_v45 }
 0x8e4   :  { %v11166_v59 = vpop.f32.mrb[98].mxu1  ;;  %v11513_v43 = vadd.f32 %v11512_v39, %v11511_v52  ;;  %v11320_v52 = vadd.f32 %v11319_v51, %v11318_v4 }
 0x8e5   :  { %v11168_v22 = vpop.f32.mrb[99].mxu1  ;;  %19708 = vst [vmem:[#allocation27_spill] sm:$0xff] %v18405_v60  ;;  %v11407_v6 = vmul.f32 %v18405_v60, %v18405_v60  ;;  %v18415_v45 = vadd.f32 %v17956_v26, %v11166_v59  ;;  %v11321_v1 = vsel %vm5387_vm10, %v18405_v60, 0.0 }
 0x8e6   :  { %v11514_v22 = vsel %vm5387_vm10, %v11405_v58, 0.0  ;;  %v11322_v59 = vadd.f32 %v11321_v1, %v11320_v52 }
 0x8e7   :  { %19709 = vst [vmem:[#allocation26_spill] sm:$0xff] %v18415_v45  ;;  %v11518_v3 = vsel %vm5387_vm10, %v11407_v6, 0.0  ;;  %v11408_v21 = vmul.f32 %v18415_v45, %v18415_v45 }
 0x8e9   :  { %v11520_v51 = vsel %vm5387_vm10, %v11408_v21, 0.0 }
 0x8ea   :  { %v11171_v62 = vpop.f32.mrb[100].mxu1 }
 0x8eb   :  { %v11173_v46 = vpop.f32.mrb[101].mxu1  ;;  %v18421_v58 = vadd.f32 %v17956_v26, %v11171_v62 }
 0x8ec   :  { %v11174_v0 = vpop.f32.mrb[102].mxu1  ;;  %v11515_v46 = vadd.f32 %v11514_v22, %v11513_v43  ;;  %v11323_v43 = vsel %vm5387_vm10, %v18415_v45, 0.0 }
 0x8ed   :  { %v11176_v9 = vpop.f32.mrb[103].mxu1  ;;  %19710 = vst [vmem:[#allocation28_spill] sm:$0xff] %v18421_v58  ;;  %v11409_v22 = vmul.f32 %v18421_v58, %v18421_v58  ;;  %v18431_v62 = vadd.f32 %v17956_v26, %v11174_v0  ;;  %v11325_v6 = vsel %vm5387_vm10, %v18421_v58, 0.0 }
 0x8ee   :  { %v11517_v17 = vadd.f32 %v11516_v27, %v11515_v46  ;;  %v11324_v27 = vadd.f32 %v11323_v43, %v11322_v59 }
 0x8ef   :  { %19711 = vst [vmem:[#allocation46_spill] sm:$0xff] %v18431_v62  ;;  %v11522_v1 = vsel %vm5387_vm10, %v11409_v22, 0.0  ;;  %v11410_v52 = vmul.f32 %v18431_v62, %v18431_v62 }
 0x8f0   :  { %v11519_v4 = vadd.f32 %v11518_v3, %v11517_v17  ;;  %v11326_v45 = vadd.f32 %v11325_v6, %v11324_v27  ;;  %v11327_v17 = vsel %vm5387_vm10, %v18431_v62, 0.0 }
 0x8f1   :  { %v11524_v43 = vsel %vm5387_vm10, %v11410_v52, 0.0 }
 0x8f2   :  { %v11179_v39 = vpop.f32.mrb[104].mxu1  ;;  %v11328_v6 = vadd.f32 %v11327_v17, %v11326_v45 }
 0x8f3   :  { %v11181_v9 = vpop.f32.mrb[105].mxu1  ;;  %v18437_v46 = vadd.f32 %v17956_v26, %v11179_v39 }
 0x8f4   :  { %v11182_v47 = vpop.f32.mrb[106].mxu1  ;;  %v11521_v9 = vadd.f32 %v11520_v51, %v11519_v4 }
 0x8f5   :  { %v11184_v63 = vpop.f32.mrb[107].mxu1  ;;  %19712 = vst [vmem:[#allocation29_spill] sm:$0xff] %v18437_v46  ;;  %v11411_v3 = vmul.f32 %v18437_v46, %v18437_v46  ;;  %v18447_v21 = vadd.f32 %v17956_v26, %v11182_v47  ;;  %v11329_v22 = vsel %vm5387_vm10, %v18437_v46, 0.0 }
 0x8f6   :  { %v11523_v63 = vadd.f32 %v11522_v1, %v11521_v9  ;;  %v11330_v58 = vadd.f32 %v11329_v22, %v11328_v6 }
 0x8f7   :  { %19713 = vst [vmem:[#allocation48_spill] sm:$0xff] %v18447_v21  ;;  %v11526_v27 = vsel %vm5387_vm10, %v11411_v3, 0.0  ;;  %v11412_v62 = vmul.f32 %v18447_v21, %v18447_v21  ;;  %v11331_v1 = vsel %vm5387_vm10, %v18447_v21, 0.0 }
 0x8f8   :  { %v11525_v47 = vadd.f32 %v11524_v43, %v11523_v63  ;;  %v11332_v43 = vadd.f32 %v11331_v1, %v11330_v58 }
 0x8f9   :  { %v11528_v45 = vsel %vm5387_vm10, %v11412_v62, 0.0 }
 0x8fa   :  { %v11187_v0 = vpop.f32.mrb[108].mxu1 }
 0x8fb   :  { %v11189_v39 = vpop.f32.mrb[109].mxu1  ;;  %v18453_v4 = vadd.f32 %v17956_v26, %v11187_v0  ;;  %v11527_v0 = vadd.f32 %v11526_v27, %v11525_v47 }
 0x8fc   :  { %v11190_v59 = vpop.f32.mrb[110].mxu1 }
 0x8fd   :  { %19714 = vst [vmem:[#allocation30_spill] sm:$0xff] %v18453_v4  ;;  %v11192_v51 = vpop.f32.mrb[111].mxu1  ;;  %v11413_v52 = vmul.f32 %v18453_v4, %v18453_v4  ;;  %v18463_v9 = vadd.f32 %v17956_v26, %v11190_v59  ;;  %v11333_v17 = vsel %vm5387_vm10, %v18453_v4, 0.0  ;;  %v11529_v21 = vadd.f32 %v11528_v45, %v11527_v0 }
 0x8fe   :  { %v11334_v27 = vadd.f32 %v11333_v17, %v11332_v43 }
 0x8ff   :  { %19715 = vst [vmem:[#allocation47_spill] sm:$0xff] %v18463_v9  ;;  %v11530_v51 = vsel %vm5387_vm10, %v11413_v52, 0.0  ;;  %v11414_v6 = vmul.f32 %v18463_v9, %v18463_v9  ;;  %v11335_v62 = vsel %vm5387_vm10, %v18463_v9, 0.0 }
 0x900   :  { %v11336_v52 = vadd.f32 %v11335_v62, %v11334_v27 }
 0x901   :  { %v11532_v58 = vsel %vm5387_vm10, %v11414_v6, 0.0 }
 0x902   :  { %v11195_v39 = vpop.f32.mrb[112].mxu1 }
 0x903   :  { %v18469_v3 = vadd.f32 %v17956_v26, %v11195_v39  ;;  %v11197_v63 = vpop.f32.mrb[113].mxu1 }
 0x904   :  { %v11198_v22 = vpop.f32.mrb[114].mxu1  ;;  %v11531_v63 = vadd.f32 %v11530_v51, %v11529_v21 }
 0x905   :  { %19716 = vst [vmem:[#allocation32_spill] sm:$0xff] %v18469_v3  ;;  %v11200_v59 = vpop.f32.mrb[115].mxu1  ;;  %v11415_v47 = vmul.f32 %v18469_v3, %v18469_v3  ;;  %v18479_v39 = vadd.f32 %v17956_v26, %v11198_v22  ;;  %v11337_v1 = vsel %vm5387_vm10, %v18469_v3, 0.0 }
 0x906   :  { %v11533_v59 = vadd.f32 %v11532_v58, %v11531_v63  ;;  %v11338_v22 = vadd.f32 %v11337_v1, %v11336_v52 }
 0x907   :  { %19717 = vst [vmem:[#allocation49_spill] sm:$0xff] %v18479_v39  ;;  %v11534_v0 = vsel %vm5387_vm10, %v11415_v47, 0.0  ;;  %v11416_v45 = vmul.f32 %v18479_v39, %v18479_v39  ;;  %v11339_v21 = vsel %vm5387_vm10, %v18479_v39, 0.0 }
 0x908   :  { %v11535_v62 = vadd.f32 %v11534_v0, %v11533_v59 }
 0x909   :  { %v11536_v47 = vsel %vm5387_vm10, %v11416_v45, 0.0 }
 0x90a   :  { %v11203_v4 = vpop.f32.mrb[116].mxu1  ;;  %v11537_v1 = vadd.f32 %v11536_v47, %v11535_v62 }
 0x90b   :  { %v18488_v17 = vadd.f32 %v17956_v26, %v11203_v4  ;;  %v11205_v43 = vpop.f32.mrb[117].mxu1 }
 0x90c   :  { %v11206_v9 = vpop.f32.mrb[118].mxu1  ;;  %v11340_v43 = vadd.f32 %v11339_v21, %v11338_v22 }
 0x90d   :  { %19718 = vst [vmem:[#allocation51_spill] sm:$0xff] %v18488_v17  ;;  %v11417_v51 = vmul.f32 %v18488_v17, %v18488_v17  ;;  %v18495_v6 = vadd.f32 %v17956_v26, %v11206_v9  ;;  %v11208_v27 = vpop.f32.mrb[119].mxu1  ;;  %v11341_v4 = vsel %vm5387_vm10, %v18488_v17, 0.0 }
 0x90e   :  { %v11342_v52 = vadd.f32 %v11341_v4, %v11340_v43 }
 0x90f   :  { %19719 = vst [vmem:[#allocation31_spill] sm:$0xff] %v18495_v6  ;;  %v11538_v63 = vsel %vm5387_vm10, %v11417_v51, 0.0  ;;  %v11418_v58 = vmul.f32 %v18495_v6, %v18495_v6  ;;  %v11343_v9 = vsel %vm5387_vm10, %v18495_v6, 0.0 }
 0x910   :  { %v11539_v45 = vadd.f32 %v11538_v63, %v11537_v1  ;;  %v11344_v47 = vadd.f32 %v11343_v9, %v11342_v52 }
 0x911   :  { %v11540_v17 = vsel %vm5387_vm10, %v11418_v58, 0.0 }
 0x912   :  { %v11211_v39 = vpop.f32.mrb[120].mxu1  ;;  %v11541_v43 = vadd.f32 %v11540_v17, %v11539_v45 }
 0x913   :  { %v18506_v27 = vadd.f32 %v17956_v26, %v11211_v39  ;;  %v11213_v0 = vpop.f32.mrb[121].mxu1 }
 0x914   :  { %v11214_v59 = vpop.f32.mrb[122].mxu1 }
 0x915   :  { %19720 = vst [vmem:[#allocation50_spill] sm:$0xff] %v18506_v27  ;;  %v11345_v22 = vsel %vm5387_vm10, %v18506_v27, 0.0  ;;  %v11419_v21 = vmul.f32 %v18506_v27, %v18506_v27  ;;  %v18514_v51 = vadd.f32 %v17956_v26, %v11214_v59  ;;  %v11216_v62 = vpop.f32.mrb[123].mxu1 }
 0x916   :  { %v11346_v63 = vadd.f32 %v11345_v22, %v11344_v47 }
 0x917   :  { %19721 = vst [vmem:[#allocation34_spill] sm:$0xff] %v18514_v51  ;;  %v11542_v4 = vsel %vm5387_vm10, %v11419_v21, 0.0  ;;  %v11420_v39 = vmul.f32 %v18514_v51, %v18514_v51  ;;  %v11347_v58 = vsel %vm5387_vm10, %v18514_v51, 0.0 }
 0x918   :  { %v11543_v1 = vadd.f32 %v11542_v4, %v11541_v43  ;;  %v11348_v62 = vadd.f32 %v11347_v58, %v11346_v63 }
 0x919   :  { %v11544_v6 = vsel %vm5387_vm10, %v11420_v39, 0.0 }
 0x91a   :  { %v11219_v0 = vpop.f32.mrb[124].mxu1  ;;  %v11545_v21 = vadd.f32 %v11544_v6, %v11543_v1 }
 0x91b   :  { %v18523_v27 = vadd.f32 %v17956_v26, %v11219_v0  ;;  %v11221_v59 = vpop.f32.mrb[125].mxu1 }
 0x91c   :  { %v11222_v52 = vpop.f32.mrb[126].mxu1 }
 0x91d   :  { %19722 = vst [vmem:[#allocation33_spill] sm:$0xff] %v18523_v27  ;;  %v11349_v9 = vsel %vm5387_vm10, %v18523_v27, 0.0  ;;  %v11421_v17 = vmul.f32 %v18523_v27, %v18523_v27  ;;  %v12971_v45 = vadd.f32 %v17956_v26, %v11222_v52  ;;  %v11224_v22 = vpop.f32.mrb[127].mxu1 }
 0x91e   :  { %v11350_v47 = vadd.f32 %v11349_v9, %v11348_v62 }
 0x91f   :  { %v11546_v4 = vsel %vm5387_vm10, %v11421_v17, 0.0  ;;  %v11351_v39 = vsel %vm5387_vm10, %v12971_v45, 0.0  ;;  %v11422_v43 = vmul.f32 %v12971_v45, %v12971_v45 }
 0x920   :  { %v11547_v0 = vadd.f32 %v11546_v4, %v11545_v21  ;;  %v11352_v59 = vadd.f32 %v11351_v39, %v11350_v47  ;;  %v9775_v39 = vld [vmem:[%s19390_s8] sm:$0x1] }
 0x921   :  { %v11548_v63 = vsel %vm5387_vm10, %v11422_v43, 0.0 }
 0x922   :  { %v11353_v58 = vrot.slane %v11352_v59, 4  ;;  %v11549_v51 = vadd.f32 %v11548_v63, %v11547_v0 }
 0x924   :  { %v11354_v3 = vadd.f32 %v11353_v58, %v11352_v59  ;;  %v11550_v46 = vrot.slane %v11549_v51, 4 }
 0x926   :  { %v11355_v60 = vrot.slane %v11354_v3, 2  ;;  %v11551_v27 = vadd.f32 %v11550_v46, %v11549_v51 }
 0x928   :  { %v11356_v44 = vadd.f32 %v11355_v60, %v11354_v3  ;;  %v11552_v26 = vrot.slane %v11551_v27, 2  ;;  %v9776_v60 = vld [vmem:[%s19391_s9] sm:$0x1]  ;;  %v19723_v3 = vld [vmem:[#allocation35_spill] sm:$0xff] }
 0x92a   :  { %v11357_v52 = vrot.slane %v11356_v44, 1  ;;  %v11553_v6 = vadd.f32 %v11552_v26, %v11551_v27 }
 0x92c   :  { %v11358_v1 = vadd.f32 %v11357_v52, %v11356_v44  ;;  %v11554_v62 = vrot.slane %v11553_v6, 1 }
 0x92e   :  { %v11555_v9 = vadd.f32 %v11554_v62, %v11553_v6  ;;  %v11556_v17 = vmul.f32 0.001953125, %v11358_v1  ;;  %v19724_v62 = vld [vmem:[#allocation8_spill] sm:$0xff] }
 0x930   :  { %v11557_v22 = vmul.f32 0.001953125, %v11555_v9  ;;  %v11558_v11 = vmul.f32 %v11556_v17, %v11556_v17  ;;  %v19725_v9 = vld [vmem:[#allocation10_spill] sm:$0xff] }
 0x932   :  { %v11559_v21 = vsub.f32 %v11557_v22, %v11558_v11  ;;  %v19727_v22 = vld [vmem:[#allocation19_spill] sm:$0xff] }
 0x934   :  { %v11560_v47 = vmax.f32 %v11559_v21, 0.0  ;;  %v19728_v21 = vld [vmem:[#allocation18_spill] sm:$0xff] }
 0x936   :  { %v11561_v4 = vadd.f32 1e-05, %v11560_v47  ;;  %v19729_v47 = vld [vmem:[#allocation21_spill] sm:$0xff] }
 0x938   :  { %14163 = vrsqrt.f32 %v11561_v4 }
 0x942   :  { %v14164_v43 = vpop.eup %14163 }
 0x943   :  { %v11563_v46 = vmul.f32 %v14164_v43, %v9775_v39  ;;  %v19730_v39 = vld [vmem:[#allocation20_spill] sm:$0xff] }
 0x945   :  { %v11564_v44 = vmul.f32 %v11563_v46, %v11556_v17  ;;  %v18540_v27 = vrot.slane %v11563_v46, %v19723_v3  ;;  %v19726_v17 = vld [vmem:[#allocation9_spill] sm:$0xff] }
 0x946   :  { %v19731_v46 = vld [vmem:[#allocation25_spill] sm:$0xff] }
 0x947   :  { %v11565_v51 = vsub.f32 %v9776_v60, %v11564_v44  ;;  %v11635_v11 = vmul.f32 %v12971_v45, %v18540_v27  ;;  %v18545_v0 = vmul.f32 %v17963_v25, %v18540_v27  ;;  %v18549_v59 = vmul.f32 %v17959_v31, %v18540_v27  ;;  %v19732_v44 = vld [vmem:[#allocation24_spill] sm:$0xff] }
 0x948   :  { %v18553_v63 = vmul.f32 %v17966_v13, %v18540_v27  ;;  %v18557_v58 = vmul.f32 %v17981_v53, %v18540_v27  ;;  %v18561_v26 = vmul.f32 %v17989_v24, %v18540_v27  ;;  %v18565_v25 = vmul.f32 %v18003_v14, %v18540_v27  ;;  %v11769_v24 = vld [vmem:[%s19382_s0 + $0x1f8] sm:$0xff] }
 0x949   :  { %v18568_v45 = vrot.slane %v11565_v51, %v19723_v3  ;;  %v18572_v31 = vmul.f32 %v18011_v57, %v18540_v27  ;;  %v18576_v13 = vmul.f32 %v18022_v5, %v18540_v27  ;;  %v18580_v53 = vmul.f32 %v18031_v30, %v18540_v27  ;;  %v19733_v51 = vld [vmem:[#allocation27_spill] sm:$0xff] }
 0x94a   :  { %v18587_v14 = vmul.f32 %v18044_v40, %v18540_v27  ;;  %v18591_v57 = vmul.f32 %v18051_v56, %v18540_v27  ;;  %v18595_v5 = vmul.f32 %v18066_v32, %v18540_v27  ;;  %v18599_v30 = vmul.f32 %v18073_v23, %v18540_v27 }
 0x94b   :  { %v11705_v52 = vadd.f32 %v18568_v45, %v11635_v11  ;;  %v18604_v6 = vmul.f32 %v18086_v15, %v18540_v27  ;;  %v18608_v40 = vmul.f32 %v18095_v36, %v18540_v27  ;;  %v18612_v56 = vmul.f32 %v18106_v19, %v18540_v27 }
 0x94c   :  { %v18616_v32 = vmul.f32 %v18115_v18, %v18540_v27  ;;  %v18620_v23 = vmul.f32 %v18128_v7, %v18540_v27  ;;  %v18624_v15 = vmul.f32 %v18135_v41, %v18540_v27  ;;  %v18628_v36 = vmul.f32 %v18150_v48, %v18540_v27 }
 0x94d   :  { %v11833_v1 = vadd.f32 %v11769_v24, %v11705_v52  ;;  %v18632_v19 = vmul.f32 %v18157_v35, %v18540_v27  ;;  %v18636_v18 = vmul.f32 %v18170_v61, %v18540_v27  ;;  %v18640_v7 = vmul.f32 %v18179_v50, %v18540_v27  ;;  %v19734_v24 = vld [vmem:[#allocation26_spill] sm:$0xff] }
 0x94e   :  { %v18644_v41 = vmul.f32 %v18190_v42, %v18540_v27  ;;  %v18648_v48 = vmul.f32 %v18199_v34, %v18540_v27  ;;  %v18652_v35 = vmul.f32 %v18212_v29, %v18540_v27  ;;  %v18656_v61 = vmul.f32 %v18219_v28, %v18540_v27 }
 0x94f   :  { %11897 = vst.msk [vmem:[#allocation5 + $0x1f8] sm:$0xff] %vm5387_vm10, %v11833_v1  ;;  %v18661_v50 = vmul.f32 %v18232_v2, %v18540_v27  ;;  %v18665_v42 = vmul.f32 %v18239_v20, %v18540_v27  ;;  %v18669_v34 = vmul.f32 %v18250_v33, %v18540_v27  ;;  %v18673_v29 = vmul.f32 %v18257_v12, %v18540_v27  ;;  %v19735_v1 = vld [vmem:[#allocation28_spill] sm:$0xff] }
 0x950   :  { %v18677_v28 = vmul.f32 %v18268_v16, %v18540_v27  ;;  %v18681_v2 = vmul.f32 %v18275_v37, %v18540_v27  ;;  %v18685_v20 = vmul.f32 %v18286_v8, %v18540_v27  ;;  %v18689_v33 = vmul.f32 %v18292_v38, %v18540_v27 }
 0x951   :  { %v18693_v12 = vmul.f32 %v18303_v49, %v18540_v27  ;;  %v18697_v16 = vmul.f32 %v18309_v10, %v18540_v27  ;;  %v18701_v37 = vmul.f32 %v18319_v54, %v18540_v27  ;;  %v18705_v8 = vmul.f32 %v18325_v55, %v18540_v27 }
 0x952   :  { %v18709_v38 = vmul.f32 %v19724_v62, %v18540_v27  ;;  %v18713_v49 = vmul.f32 %v19725_v9, %v18540_v27  ;;  %v18717_v10 = vmul.f32 %v19726_v17, %v18540_v27  ;;  %v18721_v54 = vmul.f32 %v19727_v22, %v18540_v27  ;;  %v19736_v9 = vld [vmem:[#allocation46_spill] sm:$0xff]  ;;  %v19738_v22 = vld [vmem:[#allocation29_spill] sm:$0xff] }
 0x953   :  { %v18725_v55 = vmul.f32 %v19728_v21, %v18540_v27  ;;  %v18729_v4 = vmul.f32 %v19729_v47, %v18540_v27  ;;  %v18733_v43 = vmul.f32 %v19730_v39, %v18540_v27  ;;  %v18737_v60 = vmul.f32 %v19731_v46, %v18540_v27  ;;  %v19740_v47 = vld [vmem:[#allocation48_spill] sm:$0xff]  ;;  %v19742_v46 = vld [vmem:[#allocation30_spill] sm:$0xff] }
 0x954   :  { %v18741_v3 = vmul.f32 %v19732_v44, %v18540_v27  ;;  %v18745_v11 = vmul.f32 %v19733_v51, %v18540_v27  ;;  %v18749_v52 = vmul.f32 %v19734_v24, %v18540_v27  ;;  %v18753_v62 = vmul.f32 %v19735_v1, %v18540_v27  ;;  %v19744_v51 = vld [vmem:[#allocation47_spill] sm:$0xff]  ;;  %v19746_v1 = vld [vmem:[#allocation32_spill] sm:$0xff] }
 0x955   :  { %v18757_v17 = vmul.f32 %v19736_v9, %v18540_v27  ;;  %v18761_v21 = vmul.f32 %v19738_v22, %v18540_v27  ;;  %v18765_v39 = vmul.f32 %v19740_v47, %v18540_v27  ;;  %v18769_v44 = vmul.f32 %v19742_v46, %v18540_v27 }
 0x956   :  { %v18773_v24 = vmul.f32 %v19744_v51, %v18540_v27  ;;  %v18777_v9 = vmul.f32 %v19746_v1, %v18540_v27 }
 0x957   :  { %19737 = vst [vmem:[#allocation53_spill] sm:$0xff] %v18757_v17  ;;  %19739 = vst [vmem:[#allocation52_spill] sm:$0xff] %v18761_v21  ;;  %v19748_v17 = vld [vmem:[#allocation49_spill] sm:$0xff]  ;;  %v19749_v21 = vld [vmem:[#allocation51_spill] sm:$0xff] }
 0x958   :  { %19741 = vst [vmem:[#allocation12_spill] sm:$0xff] %v18765_v39  ;;  %19743 = vst [vmem:[#allocation55_spill] sm:$0xff] %v18769_v44  ;;  %v18781_v22 = vmul.f32 %v19748_v17, %v18540_v27  ;;  %v18785_v47 = vmul.f32 %v19749_v21, %v18540_v27  ;;  %v19750_v39 = vld [vmem:[#allocation31_spill] sm:$0xff]  ;;  %v19751_v44 = vld [vmem:[#allocation50_spill] sm:$0xff]  ;;  %v18805_v21 = vadd.f32 %v18568_v45, %v18545_v0 }
 0x959   :  { %19745 = vst [vmem:[#allocation11_spill] sm:$0xff] %v18773_v24  ;;  %19747 = vst [vmem:[#allocation14_spill] sm:$0xff] %v18777_v9  ;;  %v18789_v46 = vmul.f32 %v19750_v39, %v18540_v27  ;;  %v18793_v51 = vmul.f32 %v19751_v44, %v18540_v27  ;;  %v19752_v24 = vld [vmem:[#allocation34_spill] sm:$0xff]  ;;  %v19753_v9 = vld [vmem:[#allocation33_spill] sm:$0xff]  ;;  %v18809_v39 = vadd.f32 %v18568_v45, %v18549_v59 }
 0x95a   :  { %v18797_v1 = vmul.f32 %v19752_v24, %v18540_v27  ;;  %v18801_v17 = vmul.f32 %v19753_v9, %v18540_v27  ;;  %v18813_v44 = vadd.f32 %v18568_v45, %v18553_v63  ;;  %v18817_v24 = vadd.f32 %v18568_v45, %v18557_v58  ;;  %v11707_v9 = vld [vmem:[%s19382_s0 + $0x8] sm:$0xff] }
 0x95b   :  { %v18821_v27 = vadd.f32 %v18568_v45, %v18561_v26  ;;  %v18825_v0 = vadd.f32 %v18568_v45, %v18565_v25  ;;  %v18829_v59 = vadd.f32 %v18568_v45, %v18572_v31  ;;  %v18833_v63 = vadd.f32 %v18568_v45, %v18576_v13 }
 0x95c   :  { %v18837_v58 = vadd.f32 %v18568_v45, %v18580_v53  ;;  %v18841_v26 = vadd.f32 %v18568_v45, %v18587_v14  ;;  %v18845_v25 = vadd.f32 %v18568_v45, %v18591_v57  ;;  %v18849_v31 = vadd.f32 %v18568_v45, %v18595_v5 }
 0x95d   :  { %v18853_v13 = vadd.f32 %v18568_v45, %v18599_v30  ;;  %v18857_v53 = vadd.f32 %v18568_v45, %v18604_v6  ;;  %v18861_v14 = vadd.f32 %v18568_v45, %v18608_v40  ;;  %v18865_v57 = vadd.f32 %v18568_v45, %v18612_v56 }
 0x95e   :  { %v18869_v5 = vadd.f32 %v18568_v45, %v18616_v32  ;;  %v18873_v30 = vadd.f32 %v18568_v45, %v18620_v23  ;;  %v18877_v6 = vadd.f32 %v18568_v45, %v18624_v15  ;;  %v18881_v40 = vadd.f32 %v18568_v45, %v18628_v36 }
 0x95f   :  { %v18885_v56 = vadd.f32 %v18568_v45, %v18632_v19  ;;  %v18889_v32 = vadd.f32 %v18568_v45, %v18636_v18  ;;  %v18893_v23 = vadd.f32 %v18568_v45, %v18640_v7  ;;  %v18897_v15 = vadd.f32 %v18568_v45, %v18644_v41 }
 0x960   :  { %v18901_v36 = vadd.f32 %v18568_v45, %v18648_v48  ;;  %v18905_v19 = vadd.f32 %v18568_v45, %v18652_v35  ;;  %v18909_v18 = vadd.f32 %v18568_v45, %v18656_v61  ;;  %v18913_v7 = vadd.f32 %v18568_v45, %v18661_v50 }
 0x961   :  { %v18917_v41 = vadd.f32 %v18568_v45, %v18665_v42  ;;  %v18921_v48 = vadd.f32 %v18568_v45, %v18669_v34  ;;  %v18925_v35 = vadd.f32 %v18568_v45, %v18673_v29  ;;  %v18929_v61 = vadd.f32 %v18568_v45, %v18677_v28 }
 0x962   :  { %v18933_v50 = vadd.f32 %v18568_v45, %v18681_v2  ;;  %v18937_v42 = vadd.f32 %v18568_v45, %v18685_v20  ;;  %v18941_v34 = vadd.f32 %v18568_v45, %v18689_v33  ;;  %v18945_v29 = vadd.f32 %v18568_v45, %v18693_v12  ;;  %v11706_v12 = vld [vmem:[%s19382_s0] sm:$0xff] }
 0x963   :  { %v18949_v28 = vadd.f32 %v18568_v45, %v18697_v16  ;;  %v18953_v2 = vadd.f32 %v18568_v45, %v18701_v37  ;;  %v18957_v20 = vadd.f32 %v18568_v45, %v18705_v8  ;;  %v18961_v33 = vadd.f32 %v18568_v45, %v18709_v38 }
 0x964   :  { %19754 = vst [vmem:[#allocation54_spill] sm:$0xff] %v18937_v42  ;;  %19755 = vst [vmem:[#allocation57_spill] sm:$0xff] %v18941_v34  ;;  %v18968_v16 = vadd.f32 %v18568_v45, %v18713_v49  ;;  %v18972_v37 = vadd.f32 %v18568_v45, %v18717_v10  ;;  %v18976_v8 = vadd.f32 %v18568_v45, %v18721_v54  ;;  %v11708_v49 = vld [vmem:[%s19382_s0 + $0x10] sm:$0xff]  ;;  %v11709_v10 = vld [vmem:[%s19382_s0 + $0x18] sm:$0xff] }
 0x965   :  { %19756 = vst [vmem:[#allocation13_spill] sm:$0xff] %v18945_v29  ;;  %19757 = vst [vmem:[#allocation16_spill] sm:$0xff] %v18949_v28  ;;  %v18980_v38 = vadd.f32 %v18568_v45, %v18725_v55  ;;  %v11710_v54 = vld [vmem:[%s19382_s0 + $0x20] sm:$0xff]  ;;  %v18996_v55 = vadd.f32 %v18568_v45, %v18729_v4  ;;  %v11712_v4 = vld [vmem:[%s19382_s0 + $0x30] sm:$0xff] }
 0x966   :  { %19758 = vst [vmem:[#allocation56_spill] sm:$0xff] %v18953_v2  ;;  %19759 = vst [vmem:[#allocation59_spill] sm:$0xff] %v18957_v20  ;;  %v19780_v2 = vld [vmem:[#allocation11_spill] sm:$0xff]  ;;  %v11728_v42 = vld [vmem:[%s19382_s0 + $0xb0] sm:$0xff] }
 0x967   :  { %19760 = vst [vmem:[#allocation15_spill] sm:$0xff] %v18961_v33  ;;  %19761 = vst [vmem:[#allocation58_spill] sm:$0xff] %v18968_v16  ;;  %v11711_v16 = vld [vmem:[%s19382_s0 + $0x28] sm:$0xff]  ;;  %v19064_v28 = vadd.f32 %v18568_v45, %v19780_v2 }
 0x968   :  { %19762 = vst [vmem:[#allocation39_spill] sm:$0xff] %v18972_v37  ;;  %19763 = vst [vmem:[#allocation17_spill] sm:$0xff] %v18976_v8  ;;  %v19004_v8 = vadd.f32 %v18568_v45, %v18737_v60  ;;  %v19008_v37 = vadd.f32 %v18568_v45, %v18741_v3  ;;  %v11714_v60 = vld [vmem:[%s19382_s0 + $0x40] sm:$0xff]  ;;  %v19024_v3 = vadd.f32 %v18568_v45, %v18745_v11  ;;  %v11715_v33 = vld [vmem:[%s19382_s0 + $0x48] sm:$0xff] }
 0x969   :  { %19764 = vst [vmem:[#allocation61_spill] sm:$0xff] %v18980_v38  ;;  %19765 = vst [vmem:[#allocation60_spill] sm:$0xff] %v18996_v55  ;;  %v19000_v38 = vadd.f32 %v18568_v45, %v18733_v43  ;;  %v11713_v43 = vld [vmem:[%s19382_s0 + $0x38] sm:$0xff]  ;;  %v11716_v11 = vld [vmem:[%s19382_s0 + $0x50] sm:$0xff] }
 0x96a   :  { %19767 = vst [vmem:[#allocation63_spill] sm:$0xff] %v19004_v8  ;;  %19768 = vst [vmem:[#allocation40_spill] sm:$0xff] %v19008_v37  ;;  %v19028_v37 = vadd.f32 %v18568_v45, %v18749_v52  ;;  %v19032_v8 = vadd.f32 %v18568_v45, %v18753_v62  ;;  %v11717_v52 = vld [vmem:[%s19382_s0 + $0x58] sm:$0xff]  ;;  %v11718_v62 = vld [vmem:[%s19382_s0 + $0x60] sm:$0xff] }
 0x96b   :  { %19766 = vst [vmem:[#allocation41_spill] sm:$0xff] %v19000_v38  ;;  %19769 = vst [vmem:[#allocation43_spill] sm:$0xff] %v19024_v3  ;;  %v19772_v38 = vld [vmem:[#allocation53_spill] sm:$0xff]  ;;  %v19778_v3 = vld [vmem:[#allocation55_spill] sm:$0xff] }
 0x96c   :  { %19770 = vst [vmem:[#allocation62_spill] sm:$0xff] %v19028_v37  ;;  %19771 = vst [vmem:[#allocation65_spill] sm:$0xff] %v19032_v8  ;;  %v19036_v55 = vadd.f32 %v18568_v45, %v19772_v38  ;;  %v19774_v8 = vld [vmem:[#allocation52_spill] sm:$0xff]  ;;  %v19060_v20 = vadd.f32 %v18568_v45, %v19778_v3  ;;  %v11719_v29 = vld [vmem:[%s19382_s0 + $0x68] sm:$0xff] }
 0x96d   :  { %v19052_v38 = vadd.f32 %v18568_v45, %v19774_v8  ;;  %19781 = vst [vmem:[#allocation45_spill] sm:$0xff] %v19064_v28  ;;  %v11720_v8 = vld [vmem:[%s19382_s0 + $0x70] sm:$0xff]  ;;  %v11722_v3 = vld [vmem:[%s19382_s0 + $0x80] sm:$0xff]  ;;  %v19084_v28 = vadd.f32 %v18568_v45, %v18781_v22  ;;  %v11723_v34 = vld [vmem:[%s19382_s0 + $0x88] sm:$0xff] }
 0x96e   :  { %19773 = vst [vmem:[#allocation42_spill] sm:$0xff] %v19036_v55  ;;  %v19776_v55 = vld [vmem:[#allocation12_spill] sm:$0xff]  ;;  %19779 = vst [vmem:[#allocation22_spill] sm:$0xff] %v19060_v20  ;;  %v19782_v20 = vld [vmem:[#allocation14_spill] sm:$0xff] }
 0x96f   :  { %19775 = vst [vmem:[#allocation64_spill] sm:$0xff] %v19052_v38  ;;  %v19056_v37 = vadd.f32 %v18568_v45, %v19776_v55  ;;  %v11721_v55 = vld [vmem:[%s19382_s0 + $0x78] sm:$0xff]  ;;  %v19080_v2 = vadd.f32 %v18568_v45, %v19782_v20  ;;  %19784 = vst [vmem:[#allocation37_spill] sm:$0xff] %v19084_v28  ;;  %v19092_v38 = vadd.f32 %v18568_v45, %v18789_v46  ;;  %v11724_v20 = vld [vmem:[%s19382_s0 + $0x90] sm:$0xff] }
 0x970   :  { %v11725_v22 = vld [vmem:[%s19382_s0 + $0x98] sm:$0xff]  ;;  %v19108_v46 = vadd.f32 %v18568_v45, %v18793_v51  ;;  %v11770_v28 = vadd.f32 %v11706_v12, %v18805_v21  ;;  %v11773_v21 = vadd.f32 %v11709_v10, %v18817_v24  ;;  %v11774_v12 = vadd.f32 %v11710_v54, %v18821_v27  ;;  %v11736_v10 = vld [vmem:[%s19382_s0 + $0xf0] sm:$0xff]  ;;  %v11739_v54 = vld [vmem:[%s19382_s0 + $0x108] sm:$0xff] }
 0x971   :  { %19777 = vst [vmem:[#allocation23_spill] sm:$0xff] %v19056_v37  ;;  %19783 = vst [vmem:[#allocation36_spill] sm:$0xff] %v19080_v2  ;;  %v19088_v37 = vadd.f32 %v18568_v45, %v18785_v47  ;;  %v11726_v47 = vld [vmem:[%s19382_s0 + $0xa0] sm:$0xff]  ;;  %v11727_v2 = vld [vmem:[%s19382_s0 + $0xa8] sm:$0xff]  ;;  %v11776_v24 = vadd.f32 %v11712_v4, %v18829_v59  ;;  %v11777_v27 = vadd.f32 %v11713_v43, %v18833_v63 }
 0x972   :  { %19786 = vst [vmem:[#allocation44_spill] sm:$0xff] %v19092_v38  ;;  %19787 = vst [vmem:[#allocation66_spill] sm:$0xff] %v19108_v46  ;;  %v19112_v38 = vadd.f32 %v18568_v45, %v18797_v1  ;;  %v11729_v51 = vld [vmem:[%s19382_s0 + $0xb8] sm:$0xff]  ;;  %v11730_v1 = vld [vmem:[%s19382_s0 + $0xc0] sm:$0xff]  ;;  %v11779_v63 = vadd.f32 %v11715_v33, %v18841_v26  ;;  %v11784_v33 = vadd.f32 %v11720_v8, %v18861_v14 }
 0x973   :  { %19785 = vst [vmem:[#allocation38_spill] sm:$0xff] %v19088_v37  ;;  %v19116_v37 = vadd.f32 %v18568_v45, %v18801_v17  ;;  %v11771_v45 = vadd.f32 %v11707_v9, %v18809_v39  ;;  %v11772_v17 = vadd.f32 %v11708_v49, %v18813_v44  ;;  %v11733_v46 = vld [vmem:[%s19382_s0 + $0xd8] sm:$0xff]  ;;  %v11734_v39 = vld [vmem:[%s19382_s0 + $0xe0] sm:$0xff]  ;;  %v11775_v44 = vadd.f32 %v11711_v16, %v18825_v0  ;;  %v11735_v49 = vld [vmem:[%s19382_s0 + $0xe8] sm:$0xff] }
 0x974   :  { %19788 = vst [vmem:[#allocation35_spill] sm:$0xff] %v19112_v38  ;;  %v11732_v38 = vld [vmem:[%s19382_s0 + $0xd0] sm:$0xff]  ;;  %v11778_v9 = vadd.f32 %v11714_v60, %v18837_v58  ;;  %11834 = vst.msk [vmem:[#allocation5] sm:$0xff] %vm5387_vm10, %v11770_v28  ;;  %v11737_v0 = vld [vmem:[%s19382_s0 + $0xf8] sm:$0xff]  ;;  %v11780_v58 = vadd.f32 %v11716_v11, %v18845_v25  ;;  %v11781_v28 = vadd.f32 %v11717_v52, %v18849_v31 }
 0x975   :  { %19789 = vst [vmem:[#allocation8_spill] sm:$0xff] %v19116_v37  ;;  %v11731_v37 = vld [vmem:[%s19382_s0 + $0xc8] sm:$0xff]  ;;  %v11738_v59 = vld [vmem:[%s19382_s0 + $0x100] sm:$0xff]  ;;  %v11782_v16 = vadd.f32 %v11718_v62, %v18853_v13  ;;  %11835 = vst.msk [vmem:[#allocation5 + $0x8] sm:$0xff] %vm5387_vm10, %v11771_v45  ;;  %v11783_v13 = vadd.f32 %v11719_v29, %v18857_v53  ;;  %v11785_v4 = vadd.f32 %v11721_v55, %v18865_v57 }
 0x976   :  { %11836 = vst.msk [vmem:[#allocation5 + $0x10] sm:$0xff] %vm5387_vm10, %v11772_v17  ;;  %11837 = vst.msk [vmem:[#allocation5 + $0x18] sm:$0xff] %vm5387_vm10, %v11773_v21  ;;  %v11740_v26 = vld [vmem:[%s19382_s0 + $0x110] sm:$0xff]  ;;  %v11741_v25 = vld [vmem:[%s19382_s0 + $0x118] sm:$0xff]  ;;  %v11786_v43 = vadd.f32 %v11722_v3, %v18869_v5  ;;  %v11787_v57 = vadd.f32 %v11723_v34, %v18873_v30  ;;  %v11788_v5 = vadd.f32 %v11724_v20, %v18877_v6 }
 0x977   :  { %11838 = vst.msk [vmem:[#allocation5 + $0x20] sm:$0xff] %vm5387_vm10, %v11774_v12  ;;  %v11742_v31 = vld [vmem:[%s19382_s0 + $0x120] sm:$0xff]  ;;  %11839 = vst.msk [vmem:[#allocation5 + $0x28] sm:$0xff] %vm5387_vm10, %v11775_v44  ;;  %v11743_v60 = vld [vmem:[%s19382_s0 + $0x128] sm:$0xff]  ;;  %v11789_v29 = vadd.f32 %v11725_v22, %v18881_v40  ;;  %v11790_v11 = vadd.f32 %v11726_v47, %v18885_v56  ;;  %v11791_v40 = vadd.f32 %v11727_v2, %v18889_v32 }
 0x978   :  { %11840 = vst.msk [vmem:[#allocation5 + $0x30] sm:$0xff] %vm5387_vm10, %v11776_v24  ;;  %11841 = vst.msk [vmem:[#allocation5 + $0x38] sm:$0xff] %vm5387_vm10, %v11777_v27  ;;  %v11744_v53 = vld [vmem:[%s19382_s0 + $0x130] sm:$0xff]  ;;  %v11745_v14 = vld [vmem:[%s19382_s0 + $0x138] sm:$0xff]  ;;  %v11792_v56 = vadd.f32 %v11728_v42, %v18893_v23  ;;  %v11793_v34 = vadd.f32 %v11729_v51, %v18897_v15  ;;  %v11794_v62 = vadd.f32 %v11730_v1, %v18901_v36 }
 0x979   :  { %11842 = vst.msk [vmem:[#allocation5 + $0x40] sm:$0xff] %vm5387_vm10, %v11778_v9  ;;  %11843 = vst.msk [vmem:[#allocation5 + $0x48] sm:$0xff] %vm5387_vm10, %v11779_v63  ;;  %v11746_v52 = vld [vmem:[%s19382_s0 + $0x140] sm:$0xff]  ;;  %v11747_v30 = vld [vmem:[%s19382_s0 + $0x148] sm:$0xff]  ;;  %v11795_v15 = vadd.f32 %v11731_v37, %v18905_v19  ;;  %v11796_v36 = vadd.f32 %v11732_v38, %v18909_v18  ;;  %v11797_v42 = vadd.f32 %v11733_v46, %v18913_v7 }
 0x97a   :  { %11844 = vst.msk [vmem:[#allocation5 + $0x50] sm:$0xff] %vm5387_vm10, %v11780_v58  ;;  %11845 = vst.msk [vmem:[#allocation5 + $0x58] sm:$0xff] %vm5387_vm10, %v11781_v28  ;;  %v11748_v6 = vld [vmem:[%s19382_s0 + $0x150] sm:$0xff]  ;;  %v11749_v8 = vld [vmem:[%s19382_s0 + $0x158] sm:$0xff]  ;;  %v11798_v55 = vadd.f32 %v11734_v39, %v18917_v41  ;;  %v11799_v7 = vadd.f32 %v11735_v49, %v18921_v48  ;;  %v11800_v41 = vadd.f32 %v11736_v10, %v18925_v35 }
 0x97b   :  { %11846 = vst.msk [vmem:[#allocation5 + $0x60] sm:$0xff] %vm5387_vm10, %v11782_v16  ;;  %11847 = vst.msk [vmem:[#allocation5 + $0x68] sm:$0xff] %vm5387_vm10, %v11783_v13  ;;  %v11750_v32 = vld [vmem:[%s19382_s0 + $0x160] sm:$0xff]  ;;  %v11751_v23 = vld [vmem:[%s19382_s0 + $0x168] sm:$0xff]  ;;  %v11801_v37 = vadd.f32 %v11737_v0, %v18929_v61  ;;  %v11802_v38 = vadd.f32 %v11738_v59, %v18933_v50 }
 0x97c   :  { %11848 = vst.msk [vmem:[#allocation5 + $0x70] sm:$0xff] %vm5387_vm10, %v11784_v33  ;;  %11849 = vst.msk [vmem:[#allocation5 + $0x78] sm:$0xff] %vm5387_vm10, %v11785_v4  ;;  %v11752_v3 = vld [vmem:[%s19382_s0 + $0x170] sm:$0xff]  ;;  %v11753_v19 = vld [vmem:[%s19382_s0 + $0x178] sm:$0xff] }
 0x97d   :  { %11850 = vst.msk [vmem:[#allocation5 + $0x80] sm:$0xff] %vm5387_vm10, %v11786_v43  ;;  %11851 = vst.msk [vmem:[#allocation5 + $0x88] sm:$0xff] %vm5387_vm10, %v11787_v57  ;;  %v11754_v18 = vld [vmem:[%s19382_s0 + $0x180] sm:$0xff]  ;;  %v11755_v2 = vld [vmem:[%s19382_s0 + $0x188] sm:$0xff] }
 0x97e   :  { %11852 = vst.msk [vmem:[#allocation5 + $0x90] sm:$0xff] %vm5387_vm10, %v11788_v5  ;;  %11853 = vst.msk [vmem:[#allocation5 + $0x98] sm:$0xff] %vm5387_vm10, %v11789_v29  ;;  %v11756_v48 = vld [vmem:[%s19382_s0 + $0x190] sm:$0xff]  ;;  %v11757_v35 = vld [vmem:[%s19382_s0 + $0x198] sm:$0xff] }
 0x97f   :  { %11854 = vst.msk [vmem:[#allocation5 + $0xa0] sm:$0xff] %vm5387_vm10, %v11790_v11  ;;  %11855 = vst.msk [vmem:[#allocation5 + $0xa8] sm:$0xff] %vm5387_vm10, %v11791_v40  ;;  %v19790_v61 = vld [vmem:[#allocation54_spill] sm:$0xff]  ;;  %v19791_v20 = vld [vmem:[#allocation57_spill] sm:$0xff] }
 0x980   :  { %11856 = vst.msk [vmem:[#allocation5 + $0xb0] sm:$0xff] %vm5387_vm10, %v11792_v56  ;;  %11857 = vst.msk [vmem:[#allocation5 + $0xb8] sm:$0xff] %vm5387_vm10, %v11793_v34  ;;  %v11803_v50 = vadd.f32 %v11739_v54, %v19790_v61  ;;  %v11804_v22 = vadd.f32 %v11740_v26, %v19791_v20  ;;  %v19792_v47 = vld [vmem:[#allocation13_spill] sm:$0xff]  ;;  %v19793_v51 = vld [vmem:[#allocation16_spill] sm:$0xff] }
 0x981   :  { %11858 = vst.msk [vmem:[#allocation5 + $0xc0] sm:$0xff] %vm5387_vm10, %v11794_v62  ;;  %v11805_v46 = vadd.f32 %v11741_v25, %v19792_v47  ;;  %v11806_v1 = vadd.f32 %v11742_v31, %v19793_v51  ;;  %11859 = vst.msk [vmem:[#allocation5 + $0xc8] sm:$0xff] %vm5387_vm10, %v11795_v15  ;;  %v11758_v45 = vld [vmem:[%s19382_s0 + $0x1a0] sm:$0xff]  ;;  %v11759_v17 = vld [vmem:[%s19382_s0 + $0x1a8] sm:$0xff] }
 0x982   :  { %11860 = vst.msk [vmem:[#allocation5 + $0xd0] sm:$0xff] %vm5387_vm10, %v11796_v36  ;;  %11861 = vst.msk [vmem:[#allocation5 + $0xd8] sm:$0xff] %vm5387_vm10, %v11797_v42  ;;  %v11760_v21 = vld [vmem:[%s19382_s0 + $0x1b0] sm:$0xff]  ;;  %v19795_v44 = vld [vmem:[#allocation59_spill] sm:$0xff] }
 0x983   :  { %11862 = vst.msk [vmem:[#allocation5 + $0xe0] sm:$0xff] %vm5387_vm10, %v11798_v55  ;;  %v19794_v12 = vld [vmem:[#allocation56_spill] sm:$0xff]  ;;  %v11808_v24 = vadd.f32 %v11744_v53, %v19795_v44  ;;  %v19796_v27 = vld [vmem:[#allocation15_spill] sm:$0xff]  ;;  %v19797_v49 = vld [vmem:[#allocation58_spill] sm:$0xff] }
 0x984   :  { %v11807_v39 = vadd.f32 %v11743_v60, %v19794_v12  ;;  %v11809_v9 = vadd.f32 %v11745_v14, %v19796_v27  ;;  %v11810_v10 = vadd.f32 %v11746_v52, %v19797_v49  ;;  %11863 = vst.msk [vmem:[#allocation5 + $0xe8] sm:$0xff] %vm5387_vm10, %v11799_v7  ;;  %11864 = vst.msk [vmem:[#allocation5 + $0xf0] sm:$0xff] %vm5387_vm10, %v11800_v41  ;;  %v11761_v0 = vld [vmem:[%s19382_s0 + $0x1b8] sm:$0xff]  ;;  %v11762_v59 = vld [vmem:[%s19382_s0 + $0x1c0] sm:$0xff] }
 0x985   :  { %11865 = vst.msk [vmem:[#allocation5 + $0xf8] sm:$0xff] %vm5387_vm10, %v11801_v37  ;;  %11866 = vst.msk [vmem:[#allocation5 + $0x100] sm:$0xff] %vm5387_vm10, %v11802_v38  ;;  %v11763_v63 = vld [vmem:[%s19382_s0 + $0x1c8] sm:$0xff]  ;;  %v19799_v16 = vld [vmem:[#allocation17_spill] sm:$0xff] }
 0x986   :  { %v19798_v58 = vld [vmem:[#allocation39_spill] sm:$0xff]  ;;  %v11812_v54 = vadd.f32 %v11748_v6, %v19799_v16  ;;  %v19800_v26 = vld [vmem:[#allocation61_spill] sm:$0xff]  ;;  %v19801_v31 = vld [vmem:[#allocation60_spill] sm:$0xff]  ;;  %11867 = vst.msk [vmem:[#allocation5 + $0x108] sm:$0xff] %vm5387_vm10, %v11803_v50 }
 0x987   :  { %v11811_v28 = vadd.f32 %v11747_v30, %v19798_v58  ;;  %v11813_v25 = vadd.f32 %v11749_v8, %v19800_v26  ;;  %v11814_v13 = vadd.f32 %v11750_v32, %v19801_v31  ;;  %11868 = vst.msk [vmem:[#allocation5 + $0x110] sm:$0xff] %vm5387_vm10, %v11804_v22  ;;  %11869 = vst.msk [vmem:[#allocation5 + $0x118] sm:$0xff] %vm5387_vm10, %v11805_v46  ;;  %v11764_v33 = vld [vmem:[%s19382_s0 + $0x1d0] sm:$0xff]  ;;  %v11765_v4 = vld [vmem:[%s19382_s0 + $0x1d8] sm:$0xff] }
 0x988   :  { %11870 = vst.msk [vmem:[#allocation5 + $0x120] sm:$0xff] %vm5387_vm10, %v11806_v1  ;;  %v11766_v43 = vld [vmem:[%s19382_s0 + $0x1e0] sm:$0xff]  ;;  %v19802_v60 = vld [vmem:[#allocation41_spill] sm:$0xff]  ;;  %v19803_v14 = vld [vmem:[#allocation63_spill] sm:$0xff] }
 0x989   :  { %v11815_v53 = vadd.f32 %v11751_v23, %v19802_v60  ;;  %v11816_v57 = vadd.f32 %v11752_v3, %v19803_v14  ;;  %v19804_v5 = vld [vmem:[#allocation40_spill] sm:$0xff]  ;;  %v19805_v11 = vld [vmem:[#allocation43_spill] sm:$0xff]  ;;  %11871 = vst.msk [vmem:[#allocation5 + $0x128] sm:$0xff] %vm5387_vm10, %v11807_v39  ;;  %11872 = vst.msk [vmem:[#allocation5 + $0x130] sm:$0xff] %vm5387_vm10, %v11808_v24 }
 0x98a   :  { %v11817_v29 = vadd.f32 %v11753_v19, %v19804_v5  ;;  %v11818_v52 = vadd.f32 %v11754_v18, %v19805_v11  ;;  %11873 = vst.msk [vmem:[#allocation5 + $0x138] sm:$0xff] %vm5387_vm10, %v11809_v9  ;;  %11874 = vst.msk [vmem:[#allocation5 + $0x140] sm:$0xff] %vm5387_vm10, %v11810_v10  ;;  %v11767_v30 = vld [vmem:[%s19382_s0 + $0x1e8] sm:$0xff]  ;;  %v11768_v6 = vld [vmem:[%s19382_s0 + $0x1f0] sm:$0xff]  ;;  %s14165_s0 = scalar_lea.vmem %s11904_s25, 8192 }
 0x98b   :  { %v19806_v40 = vld [vmem:[#allocation62_spill] sm:$0xff]  ;;  %v19807_v34 = vld [vmem:[#allocation65_spill] sm:$0xff]  ;;  %v19809_v23 = vld [vmem:[#allocation64_spill] sm:$0xff]  ;;  %11875 = vst.msk [vmem:[#allocation5 + $0x148] sm:$0xff] %vm5387_vm10, %v11811_v28  ;;  %p14166_p0 = scmp.ne.s32.totalorder %s11904_s25, %s14165_s0  ;;  %p14171_p2 = scmp.lt.s32.totalorder %s14165_s0, %s14165_s0 }
 0x98c   :  { %v11819_v56 = vadd.f32 %v11755_v2, %v19806_v40  ;;  %v11820_v62 = vadd.f32 %v11756_v48, %v19807_v34  ;;  %v19808_v8 = vld [vmem:[#allocation42_spill] sm:$0xff]  ;;  %v11822_v15 = vadd.f32 %v11758_v45, %v19809_v23  ;;  %11876 = vst.msk [vmem:[#allocation5 + $0x150] sm:$0xff] %vm5387_vm10, %v11812_v54  ;;  %11877 = vst.msk [vmem:[#allocation5 + $0x158] sm:$0xff] %vm5387_vm10, %v11813_v25  ;;  %v19810_v36 = vld [vmem:[#allocation23_spill] sm:$0xff] }
 0x98d   :  { %v11821_v32 = vadd.f32 %v11757_v35, %v19808_v8  ;;  %11878 = vst.msk [vmem:[#allocation5 + $0x160] sm:$0xff] %vm5387_vm10, %v11814_v13  ;;  %v11823_v42 = vadd.f32 %v11759_v17, %v19810_v36  ;;  %v19811_v55 = vld [vmem:[#allocation22_spill] sm:$0xff]  ;;  %v19812_v19 = vld [vmem:[#allocation45_spill] sm:$0xff]  ;;  %v19813_v7 = vld [vmem:[#allocation36_spill] sm:$0xff]  ;;  %p14172_p3 = por %p14171_p2, %p14170_p1 }
 0x98e   :  { %v11824_v3 = vadd.f32 %v11760_v21, %v19811_v55  ;;  %v11825_v18 = vadd.f32 %v11761_v0, %v19812_v19  ;;  %v11826_v41 = vadd.f32 %v11762_v59, %v19813_v7  ;;  %11879 = vst.msk [vmem:[#allocation5 + $0x168] sm:$0xff] %vm5387_vm10, %v11815_v53  ;;  %11880 = vst.msk [vmem:[#allocation5 + $0x170] sm:$0xff] %vm5387_vm10, %v11816_v57  ;;  %v19814_v37 = vld [vmem:[#allocation37_spill] sm:$0xff]  ;;  %v19815_v2 = vld [vmem:[#allocation38_spill] sm:$0xff] }
 0x98f   :  { %11881 = vst.msk [vmem:[#allocation5 + $0x178] sm:$0xff] %vm5387_vm10, %v11817_v29  ;;  %11882 = vst.msk [vmem:[#allocation5 + $0x180] sm:$0xff] %vm5387_vm10, %v11818_v52  ;;  %v11827_v38 = vadd.f32 %v11763_v63, %v19814_v37  ;;  %v11828_v48 = vadd.f32 %v11764_v33, %v19815_v2  ;;  %v19816_v35 = vld [vmem:[#allocation44_spill] sm:$0xff]  ;;  %v19817_v50 = vld [vmem:[#allocation66_spill] sm:$0xff]  ;;  %p14173_p4 = pnand %p14172_p3, %p14166_p0 }
 0x990   :  { %v11829_v61 = vadd.f32 %v11765_v4, %v19816_v35  ;;  %v11830_v20 = vadd.f32 %v11766_v43, %v19817_v50  ;;  %11883 = vst.msk [vmem:[#allocation5 + $0x188] sm:$0xff] %vm5387_vm10, %v11819_v56  ;;  %11884 = vst.msk [vmem:[#allocation5 + $0x190] sm:$0xff] %vm5387_vm10, %v11820_v62  ;;  %v19818_v22 = vld [vmem:[#allocation35_spill] sm:$0xff]  ;;  %v19819_v46 = vld [vmem:[#allocation8_spill] sm:$0xff] }
 0x991   :  { %11885 = vst.msk [vmem:[#allocation5 + $0x198] sm:$0xff] %vm5387_vm10, %v11821_v32  ;;  %11886 = vst.msk [vmem:[#allocation5 + $0x1a0] sm:$0xff] %vm5387_vm10, %v11822_v15  ;;  %v11831_v47 = vadd.f32 %v11767_v30, %v19818_v22  ;;  %v11832_v51 = vadd.f32 %v11768_v6, %v19819_v46 }
 0x992   :  { %11887 = vst.msk [vmem:[#allocation5 + $0x1a8] sm:$0xff] %vm5387_vm10, %v11823_v42  ;;  %11888 = vst.msk [vmem:[#allocation5 + $0x1b0] sm:$0xff] %vm5387_vm10, %v11824_v3 }
 0x993   :  { %11889 = vst.msk [vmem:[#allocation5 + $0x1b8] sm:$0xff] %vm5387_vm10, %v11825_v18  ;;  %11890 = vst.msk [vmem:[#allocation5 + $0x1c0] sm:$0xff] %vm5387_vm10, %v11826_v41 }
 0x994   :  { %11891 = vst.msk [vmem:[#allocation5 + $0x1c8] sm:$0xff] %vm5387_vm10, %v11827_v38  ;;  %11892 = vst.msk [vmem:[#allocation5 + $0x1d0] sm:$0xff] %vm5387_vm10, %v11828_v48 }
 0x995   :  { %11893 = vst.msk [vmem:[#allocation5 + $0x1d8] sm:$0xff] %vm5387_vm10, %v11829_v61  ;;  %11894 = vst.msk [vmem:[#allocation5 + $0x1e0] sm:$0xff] %vm5387_vm10, %v11830_v20 }
 0x996   :  { %11895 = vst.msk [vmem:[#allocation5 + $0x1e8] sm:$0xff] %vm5387_vm10, %v11831_v47  ;;  %11896 = vst.msk [vmem:[#allocation5 + $0x1f0] sm:$0xff] %vm5387_vm10, %v11832_v51 }
 0x997   :  { %14176 = shalt.err (!%p14173_p4)
}
 0x998   :  { %s14177_s27 = scalar_lea.hbm %s19392_s10, 8192 }
 0x999   :  { %p14178_p5 = scmp.ne.s32.totalorder %s19392_s10, %s14177_s27  ;;  %p14181_p6 = scmp.lt.u32.totalorder %s14177_s27, %s19392_s10 }
 0x99b   :  { %p14183_p7 = pnand %p14181_p6, %p14178_p5 }
 0x99d   :  { %14186 = shalt.err (!%p14183_p7)
}
 0x99e   :  { %s14192_s30 = smov 128   ;;  %s14193_s11 = smov 8  }
 0x99f   :  { %11909 = dma.vmem_to_hbm [thread:$0]  %s11904_s25, 8192, %s19392_s10, [#allocation6], %s14192_s30, %s14192_s30, %s14193_s11  }
 0x9a0   :  { %14187 = dma.done.wait [#allocation6], 8192  }
 0x9a1   :  { %14188 = vsyncadd [#allocation6], 4294959104 }
 0x9a2   :  { %11913 = vsyncpa [#allocation6], 1 }

</bundles_post_ra>
